<compile_context>
chip_gen: v7x
topology: tpu7x:2x2x1
jax: 0.10.0
libtpu: 0.0.40
codegen_flags: <defaults>
</compile_context>

<pallas_src>
import jax
import jax.numpy as jnp
from jax import lax
from jax.experimental import pallas as pl
from jax.experimental.pallas import tpu as pltpu

_K, _P = 5, 2  # depthwise kernel 5x5, autopad = 2


def _dw5x5(pad_ref, w, H, W):
    """5x5 'same' depthwise conv. pad_ref: (H+4, W+4, C) VMEM scratch with a
    2-px zero halo; w: (25, C) with row = dh*5 + dw. Fully unrolled VPU MACs."""
    acc = pad_ref[pl.ds(0, H), pl.ds(0, W), :] * w[0]
    for tap in range(1, _K * _K):
        dh, dw = divmod(tap, _K)
        acc = acc + pad_ref[pl.ds(dh, H), pl.ds(dw, W), :] * w[tap]
    return acc


def _ghost_bottleneck_kernel(
    x_ref,                          # (1, H, W, C)      C = c1 = c2
    w1p_ref, b1p_ref,               # (C, G1), (1, G1)      GhostConv1.cv1 (BN-scaled)
    w1d_ref, b1d_ref,               # (25, G1), (1, G1)     GhostConv1.cv2 depthwise
    w2pa_ref, w2pb_ref, b2p_ref,    # (G1, G2) x2, (1, G2)  GhostConv2.cv1 (split halves)
    w2d_ref, b2d_ref,               # (25, G2), (1, G2)     GhostConv2.cv2 depthwise
    o_ref,                          # (1, H, W, C)      C == 2*G2
    a_pad,                          # VMEM (H+4, W+4, G1) f32 scratch (halo for dw1)
    p_pad,                          # VMEM (H+4, W+4, G2) f32 scratch (halo for dw2)
):
    _, H, W, C = x_ref.shape
    G1 = w1p_ref.shape[1]
    G2 = w2d_ref.shape[1]

    x = x_ref[0].astype(jnp.float32)                     # (H, W, C)
    x2d = x.reshape(H * W, C)

    # ---- GhostConv1.cv1 : 1x1 conv (+folded BN scale) + bias + SiLU ---------
    a = jnp.dot(x2d, w1p_ref[...], preferred_element_type=jnp.float32) + b1p_ref[0]
    a = a * jax.nn.sigmoid(a)                            # SiLU, (H*W, G1)

    # ---- GhostConv1.cv2 : 5x5 depthwise conv + bias + SiLU ------------------
    a_pad[...] = jnp.zeros_like(a_pad)                   # zero halo in VMEM
    a_pad[pl.ds(_P, H), pl.ds(_P, W), :] = a.reshape(H, W, G1)
    b = _dw5x5(a_pad, w1d_ref[...], H, W) + b1d_ref[0]   # (H, W, G1)
    b = b * jax.nn.sigmoid(b)

    # ---- GhostConv2.cv1 : 1x1 conv on concat(a, b) + bias (no activation) ---
    # concat avoided: [a, b] @ W2 == a @ W2[:G1] + b @ W2[G1:]
    p = (jnp.dot(a, w2pa_ref[...], preferred_element_type=jnp.float32)
         + jnp.dot(b.reshape(H * W, G1), w2pb_ref[...],
                   preferred_element_type=jnp.float32)
         + b2p_ref[0])                                   # (H*W, G2)

    # ---- GhostConv2.cv2 : 5x5 depthwise conv + bias (no activation) ---------
    p_pad[...] = jnp.zeros_like(p_pad)
    p_pad[pl.ds(_P, H), pl.ds(_P, W), :] = p.reshape(H, W, G2)
    q = _dw5x5(p_pad, w2d_ref[...], H, W) + b2d_ref[0]   # (H, W, G2)

    # ---- channel concat + fused residual (shortcut = Identity for s=1) ------
    out = jnp.concatenate([p.reshape(H, W, G2), q], axis=-1) + x
    o_ref[0] = out.astype(o_ref.dtype)


def _full_spec(shape):
    """BlockSpec covering the whole (small) parameter array, resident in VMEM."""
    return pl.BlockSpec(shape, lambda n, _r=len(shape): (0,) * _r)


def ghost_bottleneck(x_nchw, params):
    """GhostBottleneck forward (s=1). Input/output NCHW like PyTorch."""
    N, C, H, W = x_nchw.shape
    G1 = params["w1p"].shape[1]
    G2 = params["w2p"].shape[1]
    assert 2 * G2 == C, "s=1 GhostBottleneck residual requires c1 == c2"

    # Fold BN scale into the conv weights (exact for conv); biases stay separate.
    w1p = params["w1p"] * params["s1p"][0]               # (C, G1)
    w1d = params["w1d"] * params["s1d"][0]               # (25, G1)
    w2p = params["w2p"] * params["s2p"][0]               # (2*G1, G2)
    w2pa, w2pb = w2p[:G1], w2p[G1:]
    w2d = params["w2d"] * params["s2d"][0]               # (25, G2)

    x = jnp.transpose(x_nchw, (0, 2, 3, 1))              # NCHW -> NHWC (channels -> lanes)
    out_shape = jax.ShapeDtypeStruct((N, H, W, C), x.dtype)

    out = pl.pallas_call(
        _ghost_bottleneck_kernel,
        out_shape=out_shape,
        grid=(N,),                                       # pipelined over batch
        in_specs=[
            pl.BlockSpec((1, H, W, C), lambda n: (n, 0, 0, 0)),
            _full_spec((C, G1)), _full_spec((1, G1)),
            _full_spec((25, G1)), _full_spec((1, G1)),
            _full_spec((G1, G2)), _full_spec((G1, G2)), _full_spec((1, G2)),
            _full_spec((25, G2)), _full_spec((1, G2)),
        ],
        out_specs=pl.BlockSpec((1, H, W, C), lambda n: (n, 0, 0, 0)),
        scratch_shapes=[
            pltpu.VMEM((H + 2 * _P, W + 2 * _P, G1), jnp.float32),
            pltpu.VMEM((H + 2 * _P, W + 2 * _P, G2), jnp.float32),
        ],
        compiler_params=pltpu.CompilerParams(
            dimension_semantics=("parallel",),           # megacore sharding
            vmem_limit_bytes=48 * 1024 * 1024,
        ),
    )(x,
      w1p, params["b1p"],
      w1d, params["b1d"],
      w2pa, w2pb, params["b2p"],
      w2d, params["b2d"])

    return jnp.transpose(out, (0, 3, 1, 2))              # NHWC -> NCHW


# ----------------------------- validation helpers ----------------------------

def _fold_bn(gamma, beta, mean, var, eps=1e-5):
    scale = gamma / jnp.sqrt(var + eps)
    bias = beta - mean * scale
    return scale[None, :], bias[None, :]                 # (1, C)


def make_params(key, c1, c2):
    assert c1 == c2 and c2 % 4 == 0
    c_ = c2 // 2
    g1, g2 = c_ // 2, c2 // 2
    k1, k2, k3, k4 = jax.random.split(key, 4)
    # pointwise weights (Cin, Cout); depthwise weights (25, C) with row = dh*5+dw.
    w1p = jax.random.normal(k1, (c1, g1), jnp.float32) * 0.2
    w1d = jax.random.normal(k2, (25, g1), jnp.float32) * 0.2
    w2p = jax.random.normal(k3, (2 * g1, g2), jnp.float32) * 0.2
    w2d = jax.random.normal(k4, (25, g2), jnp.float32) * 0.2

    def bn(c, shift):
        gamma = 1.0 + 0.05 * jnp.arange(c, dtype=jnp.float32)
        beta = 0.01 * jnp.arange(c, dtype=jnp.float32) + shift
        mean = 0.02 * jnp.arange(c, dtype=jnp.float32)
        var = 1.0 + 0.03 * jnp.arange(c, dtype=jnp.float32)
        return _fold_bn(gamma, beta, mean, var)

    s1p, b1p = bn(g1, 0.00)
    s1d, b1d = bn(g1, 0.01)
    s2p, b2p = bn(g2, 0.02)
    s2d, b2d = bn(g2, 0.03)
    return dict(w1p=w1p, s1p=s1p, b1p=b1p, w1d=w1d, s1d=s1d, b1d=b1d,
                w2p=w2p, s2p=s2p, b2p=b2p, w2d=w2d, s2d=s2d, b2d=b2d)


def _reference_ghost_bottleneck(x_nchw, params):
    """Pure-JAX reference (lax.conv_general_dilated) for validation."""
    x = jnp.transpose(x_nchw, (0, 2, 3, 1))
    dn = ("NHWC", "HWIO", "NHWC")
    hp = lax.Precision.HIGHEST
    g1 = params["w1p"].shape[1]
    g2 = params["w2p"].shape[1]

    a = lax.conv_general_dilated(x, params["w1p"][None, None], (1, 1), "VALID",
                                 dimension_numbers=dn, precision=hp)
    a = a * params["s1p"][0] + params["b1p"][0]
    a = a * jax.nn.sigmoid(a)
    b = lax.conv_general_dilated(a, params["w1d"].reshape(5, 5, 1, g1), (1, 1),
                                 ((2, 2), (2, 2)), dimension_numbers=dn,
                                 feature_group_count=g1, precision=hp)
    b = b * params["s1d"][0] + params["b1d"][0]
    b = b * jax.nn.sigmoid(b)
    y = jnp.concatenate([a, b], axis=-1)

    p = lax.conv_general_dilated(y, params["w2p"][None, None], (1, 1), "VALID",
                                 dimension_numbers=dn, precision=hp)
    p = p * params["s2p"][0] + params["b2p"][0]
    q = lax.conv_general_dilated(p, params["w2d"].reshape(5, 5, 1, g2), (1, 1),
                                 ((2, 2), (2, 2)), dimension_numbers=dn,
                                 feature_group_count=g2, precision=hp)
    q = q * params["s2d"][0] + params["b2d"][0]

    out = jnp.concatenate([p, q], axis=-1) + x
    return jnp.transpose(out, (0, 3, 1, 2))


if __name__ == "__main__":
    key = jax.random.PRNGKey(0)
    k_x, k_p = jax.random.split(key)

    N, C, H, W = 2, 16, 16, 16                           # c1 == c2 (residual), s=1
    x = jax.random.normal(k_x, (N, C, H, W), jnp.float32)  # NCHW like PyTorch
    params = make_params(k_p, C, C)

    out = ghost_bottleneck(x, params)
    out = jax.block_until_ready(out)

    ref = _reference_ghost_bottleneck(x, params)
    ref = jax.block_until_ready(ref)

    assert out.shape == (N, C, H, W), out.shape
    assert jnp.allclose(out, ref, atol=1e-3, rtol=1e-3), (
        float(jnp.max(jnp.abs(out - ref))))

    print("KERNEL_OK")
</pallas_src>

<mosaic_0001>
module attributes {stable_mosaic.version = 11 : i64} {
  func.func @_ghost_bottleneck_kernel(%arg0: i32, %arg1: memref<1x16x16x16xf32, #tpu.memory_space<vmem>>, %arg2: memref<16x4xf32, #tpu.memory_space<vmem>>, %arg3: memref<1x4xf32, #tpu.memory_space<vmem>>, %arg4: memref<25x4xf32, #tpu.memory_space<vmem>>, %arg5: memref<1x4xf32, #tpu.memory_space<vmem>>, %arg6: memref<4x8xf32, #tpu.memory_space<vmem>>, %arg7: memref<4x8xf32, #tpu.memory_space<vmem>>, %arg8: memref<1x8xf32, #tpu.memory_space<vmem>>, %arg9: memref<25x8xf32, #tpu.memory_space<vmem>>, %arg10: memref<1x8xf32, #tpu.memory_space<vmem>>, %arg11: memref<1x16x16x16xf32, #tpu.memory_space<vmem>>, %arg12: memref<20x20x4xf32, #tpu.memory_space<vmem>>, %arg13: memref<20x20x8xf32, #tpu.memory_space<vmem>>) attributes {dimension_semantics = [#tpu.dimension_semantics<parallel>], iteration_bounds = array<i64: 2>, scalar_prefetch = 0 : i64, scratch_operands = 2 : i64, tpu.core_type = #tpu.core_type<tc>, window_params = [{transform_indices = @transform_0, window_bounds = array<i64: 1, 16, 16, 16>}, {pipeline_mode = #tpu.pipeline_mode<synchronous>, transform_indices = @transform_1, window_bounds = array<i64: 16, 4>}, {pipeline_mode = #tpu.pipeline_mode<synchronous>, transform_indices = @transform_2, window_bounds = array<i64: 1, 4>}, {pipeline_mode = #tpu.pipeline_mode<synchronous>, transform_indices = @transform_3, window_bounds = array<i64: 25, 4>}, {pipeline_mode = #tpu.pipeline_mode<synchronous>, transform_indices = @transform_4, window_bounds = array<i64: 1, 4>}, {pipeline_mode = #tpu.pipeline_mode<synchronous>, transform_indices = @transform_5, window_bounds = array<i64: 4, 8>}, {pipeline_mode = #tpu.pipeline_mode<synchronous>, transform_indices = @transform_6, window_bounds = array<i64: 4, 8>}, {pipeline_mode = #tpu.pipeline_mode<synchronous>, transform_indices = @transform_7, window_bounds = array<i64: 1, 8>}, {pipeline_mode = #tpu.pipeline_mode<synchronous>, transform_indices = @transform_8, window_bounds = array<i64: 25, 8>}, {pipeline_mode = #tpu.pipeline_mode<synchronous>, transform_indices = @transform_9, window_bounds = array<i64: 1, 8>}, {transform_indices = @transform_10, window_bounds = array<i64: 1, 16, 16, 16>}]} {
    %c0 = arith.constant 0 : index
    %c0_0 = arith.constant 0 : index
    %c0_1 = arith.constant 0 : index
    %c0_2 = arith.constant 0 : index
    %0 = vector.load %arg1[%c0, %c0_0, %c0_1, %c0_2] : memref<1x16x16x16xf32, #tpu.memory_space<vmem>>, vector<1x16x16x16xf32>
    %1 = vector.shape_cast %0 : vector<1x16x16x16xf32> to vector<16x16x16xf32>
    %2 = vector.shape_cast %1 : vector<16x16x16xf32> to vector<256x16xf32>
    %c0_3 = arith.constant 0 : index
    %c0_4 = arith.constant 0 : index
    %3 = vector.load %arg2[%c0_3, %c0_4] : memref<16x4xf32, #tpu.memory_space<vmem>>, vector<16x4xf32>
    %cst = arith.constant dense<0.000000e+00> : vector<256x4xf32>
    %4 = tpu.matmul %2, %3, %cst {dimension_numbers = #tpu.dot_dimension_numbers<[1], [0], [0], [1], [0, 0, 1, 1], [], []>} : vector<256x16xf32>, vector<16x4xf32>, vector<256x4xf32> -> vector<256x4xf32>
    %c0_5 = arith.constant 0 : index
    %c0_6 = arith.constant 0 : index
    %5 = vector.load %arg3[%c0_5, %c0_6] : memref<1x4xf32, #tpu.memory_space<vmem>>, vector<1x4xf32>
    %6 = vector.shape_cast %5 : vector<1x4xf32> to vector<4xf32>
    %7 = vector.shape_cast %6 : vector<4xf32> to vector<1x4xf32>
    %8 = vector.broadcast %7 : vector<1x4xf32> to vector<256x4xf32>
    %9 = arith.addf %4, %8 : vector<256x4xf32>
    %10 = arith.negf %9 : vector<256x4xf32>
    %11 = math.exp %10 : vector<256x4xf32>
    %cst_7 = arith.constant 1.000000e+00 : f32
    %12 = vector.broadcast %cst_7 : f32 to vector<256x4xf32>
    %13 = arith.addf %12, %11 : vector<256x4xf32>
    %14 = arith.divf %12, %13 : vector<256x4xf32>
    %15 = arith.mulf %9, %14 : vector<256x4xf32>
    %cst_8 = arith.constant 0.000000e+00 : f32
    %16 = vector.broadcast %cst_8 : f32 to vector<20x20x4xf32>
    %c0_9 = arith.constant 0 : index
    %c0_10 = arith.constant 0 : index
    %c0_11 = arith.constant 0 : index
    %17 = vector.load %arg12[%c0_9, %c0_10, %c0_11] : memref<20x20x4xf32, #tpu.memory_space<vmem>>, vector<20x20x4xf32>
    tpu.vector_store %arg12[%c0_9, %c0_10, %c0_11], %16 {strides = array<i32>} : memref<20x20x4xf32, #tpu.memory_space<vmem>>, vector<20x20x4xf32>,
    %18 = vector.shape_cast %15 : vector<256x4xf32> to vector<16x16x4xf32>
    %c2 = arith.constant 2 : index
    %c2_12 = arith.constant 2 : index
    %c0_13 = arith.constant 0 : index
    %19 = vector.load %arg12[%c2, %c2_12, %c0_13] : memref<20x20x4xf32, #tpu.memory_space<vmem>>, vector<16x16x4xf32>
    tpu.vector_store %arg12[%c2, %c2_12, %c0_13], %18 {strides = array<i32>} : memref<20x20x4xf32, #tpu.memory_space<vmem>>, vector<16x16x4xf32>,
    %c0_14 = arith.constant 0 : index
    %c0_15 = arith.constant 0 : index
    %20 = vector.load %arg4[%c0_14, %c0_15] : memref<25x4xf32, #tpu.memory_space<vmem>>, vector<25x4xf32>
    %c0_16 = arith.constant 0 : index
    %c0_17 = arith.constant 0 : index
    %c0_18 = arith.constant 0 : index
    %21 = vector.load %arg12[%c0_16, %c0_17, %c0_18] : memref<20x20x4xf32, #tpu.memory_space<vmem>>, vector<16x16x4xf32>
    %22 = vector.extract_strided_slice %20 {offsets = [0, 0], sizes = [1, 4], strides = [1, 1]} : vector<25x4xf32> to vector<1x4xf32>
    %23 = vector.shape_cast %22 : vector<1x4xf32> to vector<4xf32>
    %24 = vector.shape_cast %23 : vector<4xf32> to vector<1x1x4xf32>
    %25 = vector.broadcast %24 : vector<1x1x4xf32> to vector<16x16x4xf32>
    %26 = arith.mulf %21, %25 : vector<16x16x4xf32>
    %c0_19 = arith.constant 0 : index
    %c1 = arith.constant 1 : index
    %c0_20 = arith.constant 0 : index
    %27 = vector.load %arg12[%c0_19, %c1, %c0_20] : memref<20x20x4xf32, #tpu.memory_space<vmem>>, vector<16x16x4xf32>
    %28 = vector.extract_strided_slice %20 {offsets = [1, 0], sizes = [1, 4], strides = [1, 1]} : vector<25x4xf32> to vector<1x4xf32>
    %29 = vector.shape_cast %28 : vector<1x4xf32> to vector<4xf32>
    %30 = vector.shape_cast %29 : vector<4xf32> to vector<1x1x4xf32>
    %31 = vector.broadcast %30 : vector<1x1x4xf32> to vector<16x16x4xf32>
    %32 = arith.mulf %27, %31 : vector<16x16x4xf32>
    %33 = arith.addf %26, %32 : vector<16x16x4xf32>
    %c0_21 = arith.constant 0 : index
    %c2_22 = arith.constant 2 : index
    %c0_23 = arith.constant 0 : index
    %34 = vector.load %arg12[%c0_21, %c2_22, %c0_23] : memref<20x20x4xf32, #tpu.memory_space<vmem>>, vector<16x16x4xf32>
    %35 = vector.extract_strided_slice %20 {offsets = [2, 0], sizes = [1, 4], strides = [1, 1]} : vector<25x4xf32> to vector<1x4xf32>
    %36 = vector.shape_cast %35 : vector<1x4xf32> to vector<4xf32>
    %37 = vector.shape_cast %36 : vector<4xf32> to vector<1x1x4xf32>
    %38 = vector.broadcast %37 : vector<1x1x4xf32> to vector<16x16x4xf32>
    %39 = arith.mulf %34, %38 : vector<16x16x4xf32>
    %40 = arith.addf %33, %39 : vector<16x16x4xf32>
    %c0_24 = arith.constant 0 : index
    %c3 = arith.constant 3 : index
    %c0_25 = arith.constant 0 : index
    %41 = vector.load %arg12[%c0_24, %c3, %c0_25] : memref<20x20x4xf32, #tpu.memory_space<vmem>>, vector<16x16x4xf32>
    %42 = vector.extract_strided_slice %20 {offsets = [3, 0], sizes = [1, 4], strides = [1, 1]} : vector<25x4xf32> to vector<1x4xf32>
    %43 = vector.shape_cast %42 : vector<1x4xf32> to vector<4xf32>
    %44 = vector.shape_cast %43 : vector<4xf32> to vector<1x1x4xf32>
    %45 = vector.broadcast %44 : vector<1x1x4xf32> to vector<16x16x4xf32>
    %46 = arith.mulf %41, %45 : vector<16x16x4xf32>
    %47 = arith.addf %40, %46 : vector<16x16x4xf32>
    %c0_26 = arith.constant 0 : index
    %c4 = arith.constant 4 : index
    %c0_27 = arith.constant 0 : index
    %48 = vector.load %arg12[%c0_26, %c4, %c0_27] : memref<20x20x4xf32, #tpu.memory_space<vmem>>, vector<16x16x4xf32>
    %49 = vector.extract_strided_slice %20 {offsets = [4, 0], sizes = [1, 4], strides = [1, 1]} : vector<25x4xf32> to vector<1x4xf32>
    %50 = vector.shape_cast %49 : vector<1x4xf32> to vector<4xf32>
    %51 = vector.shape_cast %50 : vector<4xf32> to vector<1x1x4xf32>
    %52 = vector.broadcast %51 : vector<1x1x4xf32> to vector<16x16x4xf32>
    %53 = arith.mulf %48, %52 : vector<16x16x4xf32>
    %54 = arith.addf %47, %53 : vector<16x16x4xf32>
    %c1_28 = arith.constant 1 : index
    %c0_29 = arith.constant 0 : index
    %c0_30 = arith.constant 0 : index
    %55 = vector.load %arg12[%c1_28, %c0_29, %c0_30] : memref<20x20x4xf32, #tpu.memory_space<vmem>>, vector<16x16x4xf32>
    %56 = vector.extract_strided_slice %20 {offsets = [5, 0], sizes = [1, 4], strides = [1, 1]} : vector<25x4xf32> to vector<1x4xf32>
    %57 = vector.shape_cast %56 : vector<1x4xf32> to vector<4xf32>
    %58 = vector.shape_cast %57 : vector<4xf32> to vector<1x1x4xf32>
    %59 = vector.broadcast %58 : vector<1x1x4xf32> to vector<16x16x4xf32>
    %60 = arith.mulf %55, %59 : vector<16x16x4xf32>
    %61 = arith.addf %54, %60 : vector<16x16x4xf32>
    %c1_31 = arith.constant 1 : index
    %c1_32 = arith.constant 1 : index
    %c0_33 = arith.constant 0 : index
    %62 = vector.load %arg12[%c1_31, %c1_32, %c0_33] : memref<20x20x4xf32, #tpu.memory_space<vmem>>, vector<16x16x4xf32>
    %63 = vector.extract_strided_slice %20 {offsets = [6, 0], sizes = [1, 4], strides = [1, 1]} : vector<25x4xf32> to vector<1x4xf32>
    %64 = vector.shape_cast %63 : vector<1x4xf32> to vector<4xf32>
    %65 = vector.shape_cast %64 : vector<4xf32> to vector<1x1x4xf32>
    %66 = vector.broadcast %65 : vector<1x1x4xf32> to vector<16x16x4xf32>
    %67 = arith.mulf %62, %66 : vector<16x16x4xf32>
    %68 = arith.addf %61, %67 : vector<16x16x4xf32>
    %c1_34 = arith.constant 1 : index
    %c2_35 = arith.constant 2 : index
    %c0_36 = arith.constant 0 : index
    %69 = vector.load %arg12[%c1_34, %c2_35, %c0_36] : memref<20x20x4xf32, #tpu.memory_space<vmem>>, vector<16x16x4xf32>
    %70 = vector.extract_strided_slice %20 {offsets = [7, 0], sizes = [1, 4], strides = [1, 1]} : vector<25x4xf32> to vector<1x4xf32>
    %71 = vector.shape_cast %70 : vector<1x4xf32> to vector<4xf32>
    %72 = vector.shape_cast %71 : vector<4xf32> to vector<1x1x4xf32>
    %73 = vector.broadcast %72 : vector<1x1x4xf32> to vector<16x16x4xf32>
    %74 = arith.mulf %69, %73 : vector<16x16x4xf32>
    %75 = arith.addf %68, %74 : vector<16x16x4xf32>
    %c1_37 = arith.constant 1 : index
    %c3_38 = arith.constant 3 : index
    %c0_39 = arith.constant 0 : index
    %76 = vector.load %arg12[%c1_37, %c3_38, %c0_39] : memref<20x20x4xf32, #tpu.memory_space<vmem>>, vector<16x16x4xf32>
    %77 = vector.extract_strided_slice %20 {offsets = [8, 0], sizes = [1, 4], strides = [1, 1]} : vector<25x4xf32> to vector<1x4xf32>
    %78 = vector.shape_cast %77 : vector<1x4xf32> to vector<4xf32>
    %79 = vector.shape_cast %78 : vector<4xf32> to vector<1x1x4xf32>
    %80 = vector.broadcast %79 : vector<1x1x4xf32> to vector<16x16x4xf32>
    %81 = arith.mulf %76, %80 : vector<16x16x4xf32>
    %82 = arith.addf %75, %81 : vector<16x16x4xf32>
    %c1_40 = arith.constant 1 : index
    %c4_41 = arith.constant 4 : index
    %c0_42 = arith.constant 0 : index
    %83 = vector.load %arg12[%c1_40, %c4_41, %c0_42] : memref<20x20x4xf32, #tpu.memory_space<vmem>>, vector<16x16x4xf32>
    %84 = vector.extract_strided_slice %20 {offsets = [9, 0], sizes = [1, 4], strides = [1, 1]} : vector<25x4xf32> to vector<1x4xf32>
    %85 = vector.shape_cast %84 : vector<1x4xf32> to vector<4xf32>
    %86 = vector.shape_cast %85 : vector<4xf32> to vector<1x1x4xf32>
    %87 = vector.broadcast %86 : vector<1x1x4xf32> to vector<16x16x4xf32>
    %88 = arith.mulf %83, %87 : vector<16x16x4xf32>
    %89 = arith.addf %82, %88 : vector<16x16x4xf32>
    %c2_43 = arith.constant 2 : index
    %c0_44 = arith.constant 0 : index
    %c0_45 = arith.constant 0 : index
    %90 = vector.load %arg12[%c2_43, %c0_44, %c0_45] : memref<20x20x4xf32, #tpu.memory_space<vmem>>, vector<16x16x4xf32>
    %91 = vector.extract_strided_slice %20 {offsets = [10, 0], sizes = [1, 4], strides = [1, 1]} : vector<25x4xf32> to vector<1x4xf32>
    %92 = vector.shape_cast %91 : vector<1x4xf32> to vector<4xf32>
    %93 = vector.shape_cast %92 : vector<4xf32> to vector<1x1x4xf32>
    %94 = vector.broadcast %93 : vector<1x1x4xf32> to vector<16x16x4xf32>
    %95 = arith.mulf %90, %94 : vector<16x16x4xf32>
    %96 = arith.addf %89, %95 : vector<16x16x4xf32>
    %c2_46 = arith.constant 2 : index
    %c1_47 = arith.constant 1 : index
    %c0_48 = arith.constant 0 : index
    %97 = vector.load %arg12[%c2_46, %c1_47, %c0_48] : memref<20x20x4xf32, #tpu.memory_space<vmem>>, vector<16x16x4xf32>
    %98 = vector.extract_strided_slice %20 {offsets = [11, 0], sizes = [1, 4], strides = [1, 1]} : vector<25x4xf32> to vector<1x4xf32>
    %99 = vector.shape_cast %98 : vector<1x4xf32> to vector<4xf32>
    %100 = vector.shape_cast %99 : vector<4xf32> to vector<1x1x4xf32>
    %101 = vector.broadcast %100 : vector<1x1x4xf32> to vector<16x16x4xf32>
    %102 = arith.mulf %97, %101 : vector<16x16x4xf32>
    %103 = arith.addf %96, %102 : vector<16x16x4xf32>
    %c2_49 = arith.constant 2 : index
    %c2_50 = arith.constant 2 : index
    %c0_51 = arith.constant 0 : index
    %104 = vector.load %arg12[%c2_49, %c2_50, %c0_51] : memref<20x20x4xf32, #tpu.memory_space<vmem>>, vector<16x16x4xf32>
    %105 = vector.extract_strided_slice %20 {offsets = [12, 0], sizes = [1, 4], strides = [1, 1]} : vector<25x4xf32> to vector<1x4xf32>
    %106 = vector.shape_cast %105 : vector<1x4xf32> to vector<4xf32>
    %107 = vector.shape_cast %106 : vector<4xf32> to vector<1x1x4xf32>
    %108 = vector.broadcast %107 : vector<1x1x4xf32> to vector<16x16x4xf32>
    %109 = arith.mulf %104, %108 : vector<16x16x4xf32>
    %110 = arith.addf %103, %109 : vector<16x16x4xf32>
    %c2_52 = arith.constant 2 : index
    %c3_53 = arith.constant 3 : index
    %c0_54 = arith.constant 0 : index
    %111 = vector.load %arg12[%c2_52, %c3_53, %c0_54] : memref<20x20x4xf32, #tpu.memory_space<vmem>>, vector<16x16x4xf32>
    %112 = vector.extract_strided_slice %20 {offsets = [13, 0], sizes = [1, 4], strides = [1, 1]} : vector<25x4xf32> to vector<1x4xf32>
    %113 = vector.shape_cast %112 : vector<1x4xf32> to vector<4xf32>
    %114 = vector.shape_cast %113 : vector<4xf32> to vector<1x1x4xf32>
    %115 = vector.broadcast %114 : vector<1x1x4xf32> to vector<16x16x4xf32>
    %116 = arith.mulf %111, %115 : vector<16x16x4xf32>
    %117 = arith.addf %110, %116 : vector<16x16x4xf32>
    %c2_55 = arith.constant 2 : index
    %c4_56 = arith.constant 4 : index
    %c0_57 = arith.constant 0 : index
    %118 = vector.load %arg12[%c2_55, %c4_56, %c0_57] : memref<20x20x4xf32, #tpu.memory_space<vmem>>, vector<16x16x4xf32>
    %119 = vector.extract_strided_slice %20 {offsets = [14, 0], sizes = [1, 4], strides = [1, 1]} : vector<25x4xf32> to vector<1x4xf32>
    %120 = vector.shape_cast %119 : vector<1x4xf32> to vector<4xf32>
    %121 = vector.shape_cast %120 : vector<4xf32> to vector<1x1x4xf32>
    %122 = vector.broadcast %121 : vector<1x1x4xf32> to vector<16x16x4xf32>
    %123 = arith.mulf %118, %122 : vector<16x16x4xf32>
    %124 = arith.addf %117, %123 : vector<16x16x4xf32>
    %c3_58 = arith.constant 3 : index
    %c0_59 = arith.constant 0 : index
    %c0_60 = arith.constant 0 : index
    %125 = vector.load %arg12[%c3_58, %c0_59, %c0_60] : memref<20x20x4xf32, #tpu.memory_space<vmem>>, vector<16x16x4xf32>
    %126 = vector.extract_strided_slice %20 {offsets = [15, 0], sizes = [1, 4], strides = [1, 1]} : vector<25x4xf32> to vector<1x4xf32>
    %127 = vector.shape_cast %126 : vector<1x4xf32> to vector<4xf32>
    %128 = vector.shape_cast %127 : vector<4xf32> to vector<1x1x4xf32>
    %129 = vector.broadcast %128 : vector<1x1x4xf32> to vector<16x16x4xf32>
    %130 = arith.mulf %125, %129 : vector<16x16x4xf32>
    %131 = arith.addf %124, %130 : vector<16x16x4xf32>
    %c3_61 = arith.constant 3 : index
    %c1_62 = arith.constant 1 : index
    %c0_63 = arith.constant 0 : index
    %132 = vector.load %arg12[%c3_61, %c1_62, %c0_63] : memref<20x20x4xf32, #tpu.memory_space<vmem>>, vector<16x16x4xf32>
    %133 = vector.extract_strided_slice %20 {offsets = [16, 0], sizes = [1, 4], strides = [1, 1]} : vector<25x4xf32> to vector<1x4xf32>
    %134 = vector.shape_cast %133 : vector<1x4xf32> to vector<4xf32>
    %135 = vector.shape_cast %134 : vector<4xf32> to vector<1x1x4xf32>
    %136 = vector.broadcast %135 : vector<1x1x4xf32> to vector<16x16x4xf32>
    %137 = arith.mulf %132, %136 : vector<16x16x4xf32>
    %138 = arith.addf %131, %137 : vector<16x16x4xf32>
    %c3_64 = arith.constant 3 : index
    %c2_65 = arith.constant 2 : index
    %c0_66 = arith.constant 0 : index
    %139 = vector.load %arg12[%c3_64, %c2_65, %c0_66] : memref<20x20x4xf32, #tpu.memory_space<vmem>>, vector<16x16x4xf32>
    %140 = vector.extract_strided_slice %20 {offsets = [17, 0], sizes = [1, 4], strides = [1, 1]} : vector<25x4xf32> to vector<1x4xf32>
    %141 = vector.shape_cast %140 : vector<1x4xf32> to vector<4xf32>
    %142 = vector.shape_cast %141 : vector<4xf32> to vector<1x1x4xf32>
    %143 = vector.broadcast %142 : vector<1x1x4xf32> to vector<16x16x4xf32>
    %144 = arith.mulf %139, %143 : vector<16x16x4xf32>
    %145 = arith.addf %138, %144 : vector<16x16x4xf32>
    %c3_67 = arith.constant 3 : index
    %c3_68 = arith.constant 3 : index
    %c0_69 = arith.constant 0 : index
    %146 = vector.load %arg12[%c3_67, %c3_68, %c0_69] : memref<20x20x4xf32, #tpu.memory_space<vmem>>, vector<16x16x4xf32>
    %147 = vector.extract_strided_slice %20 {offsets = [18, 0], sizes = [1, 4], strides = [1, 1]} : vector<25x4xf32> to vector<1x4xf32>
    %148 = vector.shape_cast %147 : vector<1x4xf32> to vector<4xf32>
    %149 = vector.shape_cast %148 : vector<4xf32> to vector<1x1x4xf32>
    %150 = vector.broadcast %149 : vector<1x1x4xf32> to vector<16x16x4xf32>
    %151 = arith.mulf %146, %150 : vector<16x16x4xf32>
    %152 = arith.addf %145, %151 : vector<16x16x4xf32>
    %c3_70 = arith.constant 3 : index
    %c4_71 = arith.constant 4 : index
    %c0_72 = arith.constant 0 : index
    %153 = vector.load %arg12[%c3_70, %c4_71, %c0_72] : memref<20x20x4xf32, #tpu.memory_space<vmem>>, vector<16x16x4xf32>
    %154 = vector.extract_strided_slice %20 {offsets = [19, 0], sizes = [1, 4], strides = [1, 1]} : vector<25x4xf32> to vector<1x4xf32>
    %155 = vector.shape_cast %154 : vector<1x4xf32> to vector<4xf32>
    %156 = vector.shape_cast %155 : vector<4xf32> to vector<1x1x4xf32>
    %157 = vector.broadcast %156 : vector<1x1x4xf32> to vector<16x16x4xf32>
    %158 = arith.mulf %153, %157 : vector<16x16x4xf32>
    %159 = arith.addf %152, %158 : vector<16x16x4xf32>
    %c4_73 = arith.constant 4 : index
    %c0_74 = arith.constant 0 : index
    %c0_75 = arith.constant 0 : index
    %160 = vector.load %arg12[%c4_73, %c0_74, %c0_75] : memref<20x20x4xf32, #tpu.memory_space<vmem>>, vector<16x16x4xf32>
    %161 = vector.extract_strided_slice %20 {offsets = [20, 0], sizes = [1, 4], strides = [1, 1]} : vector<25x4xf32> to vector<1x4xf32>
    %162 = vector.shape_cast %161 : vector<1x4xf32> to vector<4xf32>
    %163 = vector.shape_cast %162 : vector<4xf32> to vector<1x1x4xf32>
    %164 = vector.broadcast %163 : vector<1x1x4xf32> to vector<16x16x4xf32>
    %165 = arith.mulf %160, %164 : vector<16x16x4xf32>
    %166 = arith.addf %159, %165 : vector<16x16x4xf32>
    %c4_76 = arith.constant 4 : index
    %c1_77 = arith.constant 1 : index
    %c0_78 = arith.constant 0 : index
    %167 = vector.load %arg12[%c4_76, %c1_77, %c0_78] : memref<20x20x4xf32, #tpu.memory_space<vmem>>, vector<16x16x4xf32>
    %168 = vector.extract_strided_slice %20 {offsets = [21, 0], sizes = [1, 4], strides = [1, 1]} : vector<25x4xf32> to vector<1x4xf32>
    %169 = vector.shape_cast %168 : vector<1x4xf32> to vector<4xf32>
    %170 = vector.shape_cast %169 : vector<4xf32> to vector<1x1x4xf32>
    %171 = vector.broadcast %170 : vector<1x1x4xf32> to vector<16x16x4xf32>
    %172 = arith.mulf %167, %171 : vector<16x16x4xf32>
    %173 = arith.addf %166, %172 : vector<16x16x4xf32>
    %c4_79 = arith.constant 4 : index
    %c2_80 = arith.constant 2 : index
    %c0_81 = arith.constant 0 : index
    %174 = vector.load %arg12[%c4_79, %c2_80, %c0_81] : memref<20x20x4xf32, #tpu.memory_space<vmem>>, vector<16x16x4xf32>
    %175 = vector.extract_strided_slice %20 {offsets = [22, 0], sizes = [1, 4], strides = [1, 1]} : vector<25x4xf32> to vector<1x4xf32>
    %176 = vector.shape_cast %175 : vector<1x4xf32> to vector<4xf32>
    %177 = vector.shape_cast %176 : vector<4xf32> to vector<1x1x4xf32>
    %178 = vector.broadcast %177 : vector<1x1x4xf32> to vector<16x16x4xf32>
    %179 = arith.mulf %174, %178 : vector<16x16x4xf32>
    %180 = arith.addf %173, %179 : vector<16x16x4xf32>
    %c4_82 = arith.constant 4 : index
    %c3_83 = arith.constant 3 : index
    %c0_84 = arith.constant 0 : index
    %181 = vector.load %arg12[%c4_82, %c3_83, %c0_84] : memref<20x20x4xf32, #tpu.memory_space<vmem>>, vector<16x16x4xf32>
    %182 = vector.extract_strided_slice %20 {offsets = [23, 0], sizes = [1, 4], strides = [1, 1]} : vector<25x4xf32> to vector<1x4xf32>
    %183 = vector.shape_cast %182 : vector<1x4xf32> to vector<4xf32>
    %184 = vector.shape_cast %183 : vector<4xf32> to vector<1x1x4xf32>
    %185 = vector.broadcast %184 : vector<1x1x4xf32> to vector<16x16x4xf32>
    %186 = arith.mulf %181, %185 : vector<16x16x4xf32>
    %187 = arith.addf %180, %186 : vector<16x16x4xf32>
    %c4_85 = arith.constant 4 : index
    %c4_86 = arith.constant 4 : index
    %c0_87 = arith.constant 0 : index
    %188 = vector.load %arg12[%c4_85, %c4_86, %c0_87] : memref<20x20x4xf32, #tpu.memory_space<vmem>>, vector<16x16x4xf32>
    %189 = vector.extract_strided_slice %20 {offsets = [24, 0], sizes = [1, 4], strides = [1, 1]} : vector<25x4xf32> to vector<1x4xf32>
    %190 = vector.shape_cast %189 : vector<1x4xf32> to vector<4xf32>
    %191 = vector.shape_cast %190 : vector<4xf32> to vector<1x1x4xf32>
    %192 = vector.broadcast %191 : vector<1x1x4xf32> to vector<16x16x4xf32>
    %193 = arith.mulf %188, %192 : vector<16x16x4xf32>
    %194 = arith.addf %187, %193 : vector<16x16x4xf32>
    %c0_88 = arith.constant 0 : index
    %c0_89 = arith.constant 0 : index
    %195 = vector.load %arg5[%c0_88, %c0_89] : memref<1x4xf32, #tpu.memory_space<vmem>>, vector<1x4xf32>
    %196 = vector.shape_cast %195 : vector<1x4xf32> to vector<4xf32>
    %197 = vector.shape_cast %196 : vector<4xf32> to vector<1x1x4xf32>
    %198 = vector.broadcast %197 : vector<1x1x4xf32> to vector<16x16x4xf32>
    %199 = arith.addf %194, %198 : vector<16x16x4xf32>
    %200 = arith.negf %199 : vector<16x16x4xf32>
    %201 = math.exp %200 : vector<16x16x4xf32>
    %cst_90 = arith.constant 1.000000e+00 : f32
    %202 = vector.broadcast %cst_90 : f32 to vector<16x16x4xf32>
    %203 = arith.addf %202, %201 : vector<16x16x4xf32>
    %204 = arith.divf %202, %203 : vector<16x16x4xf32>
    %205 = arith.mulf %199, %204 : vector<16x16x4xf32>
    %c0_91 = arith.constant 0 : index
    %c0_92 = arith.constant 0 : index
    %206 = vector.load %arg6[%c0_91, %c0_92] : memref<4x8xf32, #tpu.memory_space<vmem>>, vector<4x8xf32>
    %cst_93 = arith.constant dense<0.000000e+00> : vector<256x8xf32>
    %207 = tpu.matmul %15, %206, %cst_93 {dimension_numbers = #tpu.dot_dimension_numbers<[1], [0], [0], [1], [0, 0, 1, 1], [], []>} : vector<256x4xf32>, vector<4x8xf32>, vector<256x8xf32> -> vector<256x8xf32>
    %208 = vector.shape_cast %205 : vector<16x16x4xf32> to vector<256x4xf32>
    %c0_94 = arith.constant 0 : index
    %c0_95 = arith.constant 0 : index
    %209 = vector.load %arg7[%c0_94, %c0_95] : memref<4x8xf32, #tpu.memory_space<vmem>>, vector<4x8xf32>
    %cst_96 = arith.constant dense<0.000000e+00> : vector<256x8xf32>
    %210 = tpu.matmul %208, %209, %cst_96 {dimension_numbers = #tpu.dot_dimension_numbers<[1], [0], [0], [1], [0, 0, 1, 1], [], []>} : vector<256x4xf32>, vector<4x8xf32>, vector<256x8xf32> -> vector<256x8xf32>
    %211 = arith.addf %207, %210 : vector<256x8xf32>
    %c0_97 = arith.constant 0 : index
    %c0_98 = arith.constant 0 : index
    %212 = vector.load %arg8[%c0_97, %c0_98] : memref<1x8xf32, #tpu.memory_space<vmem>>, vector<1x8xf32>
    %213 = vector.shape_cast %212 : vector<1x8xf32> to vector<8xf32>
    %214 = vector.shape_cast %213 : vector<8xf32> to vector<1x8xf32>
    %215 = vector.broadcast %214 : vector<1x8xf32> to vector<256x8xf32>
    %216 = arith.addf %211, %215 : vector<256x8xf32>
    %cst_99 = arith.constant 0.000000e+00 : f32
    %217 = vector.broadcast %cst_99 : f32 to vector<20x20x8xf32>
    %c0_100 = arith.constant 0 : index
    %c0_101 = arith.constant 0 : index
    %c0_102 = arith.constant 0 : index
    %218 = vector.load %arg13[%c0_100, %c0_101, %c0_102] : memref<20x20x8xf32, #tpu.memory_space<vmem>>, vector<20x20x8xf32>
    tpu.vector_store %arg13[%c0_100, %c0_101, %c0_102], %217 {strides = array<i32>} : memref<20x20x8xf32, #tpu.memory_space<vmem>>, vector<20x20x8xf32>,
    %219 = vector.shape_cast %216 : vector<256x8xf32> to vector<16x16x8xf32>
    %c2_103 = arith.constant 2 : index
    %c2_104 = arith.constant 2 : index
    %c0_105 = arith.constant 0 : index
    %220 = vector.load %arg13[%c2_103, %c2_104, %c0_105] : memref<20x20x8xf32, #tpu.memory_space<vmem>>, vector<16x16x8xf32>
    tpu.vector_store %arg13[%c2_103, %c2_104, %c0_105], %219 {strides = array<i32>} : memref<20x20x8xf32, #tpu.memory_space<vmem>>, vector<16x16x8xf32>,
    %c0_106 = arith.constant 0 : index
    %c0_107 = arith.constant 0 : index
    %221 = vector.load %arg9[%c0_106, %c0_107] : memref<25x8xf32, #tpu.memory_space<vmem>>, vector<25x8xf32>
    %c0_108 = arith.constant 0 : index
    %c0_109 = arith.constant 0 : index
    %c0_110 = arith.constant 0 : index
    %222 = vector.load %arg13[%c0_108, %c0_109, %c0_110] : memref<20x20x8xf32, #tpu.memory_space<vmem>>, vector<16x16x8xf32>
    %223 = vector.extract_strided_slice %221 {offsets = [0, 0], sizes = [1, 8], strides = [1, 1]} : vector<25x8xf32> to vector<1x8xf32>
    %224 = vector.shape_cast %223 : vector<1x8xf32> to vector<8xf32>
    %225 = vector.shape_cast %224 : vector<8xf32> to vector<1x1x8xf32>
    %226 = vector.broadcast %225 : vector<1x1x8xf32> to vector<16x16x8xf32>
    %227 = arith.mulf %222, %226 : vector<16x16x8xf32>
    %c0_111 = arith.constant 0 : index
    %c1_112 = arith.constant 1 : index
    %c0_113 = arith.constant 0 : index
    %228 = vector.load %arg13[%c0_111, %c1_112, %c0_113] : memref<20x20x8xf32, #tpu.memory_space<vmem>>, vector<16x16x8xf32>
    %229 = vector.extract_strided_slice %221 {offsets = [1, 0], sizes = [1, 8], strides = [1, 1]} : vector<25x8xf32> to vector<1x8xf32>
    %230 = vector.shape_cast %229 : vector<1x8xf32> to vector<8xf32>
    %231 = vector.shape_cast %230 : vector<8xf32> to vector<1x1x8xf32>
    %232 = vector.broadcast %231 : vector<1x1x8xf32> to vector<16x16x8xf32>
    %233 = arith.mulf %228, %232 : vector<16x16x8xf32>
    %234 = arith.addf %227, %233 : vector<16x16x8xf32>
    %c0_114 = arith.constant 0 : index
    %c2_115 = arith.constant 2 : index
    %c0_116 = arith.constant 0 : index
    %235 = vector.load %arg13[%c0_114, %c2_115, %c0_116] : memref<20x20x8xf32, #tpu.memory_space<vmem>>, vector<16x16x8xf32>
    %236 = vector.extract_strided_slice %221 {offsets = [2, 0], sizes = [1, 8], strides = [1, 1]} : vector<25x8xf32> to vector<1x8xf32>
    %237 = vector.shape_cast %236 : vector<1x8xf32> to vector<8xf32>
    %238 = vector.shape_cast %237 : vector<8xf32> to vector<1x1x8xf32>
    %239 = vector.broadcast %238 : vector<1x1x8xf32> to vector<16x16x8xf32>
    %240 = arith.mulf %235, %239 : vector<16x16x8xf32>
    %241 = arith.addf %234, %240 : vector<16x16x8xf32>
    %c0_117 = arith.constant 0 : index
    %c3_118 = arith.constant 3 : index
    %c0_119 = arith.constant 0 : index
    %242 = vector.load %arg13[%c0_117, %c3_118, %c0_119] : memref<20x20x8xf32, #tpu.memory_space<vmem>>, vector<16x16x8xf32>
    %243 = vector.extract_strided_slice %221 {offsets = [3, 0], sizes = [1, 8], strides = [1, 1]} : vector<25x8xf32> to vector<1x8xf32>
    %244 = vector.shape_cast %243 : vector<1x8xf32> to vector<8xf32>
    %245 = vector.shape_cast %244 : vector<8xf32> to vector<1x1x8xf32>
    %246 = vector.broadcast %245 : vector<1x1x8xf32> to vector<16x16x8xf32>
    %247 = arith.mulf %242, %246 : vector<16x16x8xf32>
    %248 = arith.addf %241, %247 : vector<16x16x8xf32>
    %c0_120 = arith.constant 0 : index
    %c4_121 = arith.constant 4 : index
    %c0_122 = arith.constant 0 : index
    %249 = vector.load %arg13[%c0_120, %c4_121, %c0_122] : memref<20x20x8xf32, #tpu.memory_space<vmem>>, vector<16x16x8xf32>
    %250 = vector.extract_strided_slice %221 {offsets = [4, 0], sizes = [1, 8], strides = [1, 1]} : vector<25x8xf32> to vector<1x8xf32>
    %251 = vector.shape_cast %250 : vector<1x8xf32> to vector<8xf32>
    %252 = vector.shape_cast %251 : vector<8xf32> to vector<1x1x8xf32>
    %253 = vector.broadcast %252 : vector<1x1x8xf32> to vector<16x16x8xf32>
    %254 = arith.mulf %249, %253 : vector<16x16x8xf32>
    %255 = arith.addf %248, %254 : vector<16x16x8xf32>
    %c1_123 = arith.constant 1 : index
    %c0_124 = arith.constant 0 : index
    %c0_125 = arith.constant 0 : index
    %256 = vector.load %arg13[%c1_123, %c0_124, %c0_125] : memref<20x20x8xf32, #tpu.memory_space<vmem>>, vector<16x16x8xf32>
    %257 = vector.extract_strided_slice %221 {offsets = [5, 0], sizes = [1, 8], strides = [1, 1]} : vector<25x8xf32> to vector<1x8xf32>
    %258 = vector.shape_cast %257 : vector<1x8xf32> to vector<8xf32>
    %259 = vector.shape_cast %258 : vector<8xf32> to vector<1x1x8xf32>
    %260 = vector.broadcast %259 : vector<1x1x8xf32> to vector<16x16x8xf32>
    %261 = arith.mulf %256, %260 : vector<16x16x8xf32>
    %262 = arith.addf %255, %261 : vector<16x16x8xf32>
    %c1_126 = arith.constant 1 : index
    %c1_127 = arith.constant 1 : index
    %c0_128 = arith.constant 0 : index
    %263 = vector.load %arg13[%c1_126, %c1_127, %c0_128] : memref<20x20x8xf32, #tpu.memory_space<vmem>>, vector<16x16x8xf32>
    %264 = vector.extract_strided_slice %221 {offsets = [6, 0], sizes = [1, 8], strides = [1, 1]} : vector<25x8xf32> to vector<1x8xf32>
    %265 = vector.shape_cast %264 : vector<1x8xf32> to vector<8xf32>
    %266 = vector.shape_cast %265 : vector<8xf32> to vector<1x1x8xf32>
    %267 = vector.broadcast %266 : vector<1x1x8xf32> to vector<16x16x8xf32>
    %268 = arith.mulf %263, %267 : vector<16x16x8xf32>
    %269 = arith.addf %262, %268 : vector<16x16x8xf32>
    %c1_129 = arith.constant 1 : index
    %c2_130 = arith.constant 2 : index
    %c0_131 = arith.constant 0 : index
    %270 = vector.load %arg13[%c1_129, %c2_130, %c0_131] : memref<20x20x8xf32, #tpu.memory_space<vmem>>, vector<16x16x8xf32>
    %271 = vector.extract_strided_slice %221 {offsets = [7, 0], sizes = [1, 8], strides = [1, 1]} : vector<25x8xf32> to vector<1x8xf32>
    %272 = vector.shape_cast %271 : vector<1x8xf32> to vector<8xf32>
    %273 = vector.shape_cast %272 : vector<8xf32> to vector<1x1x8xf32>
    %274 = vector.broadcast %273 : vector<1x1x8xf32> to vector<16x16x8xf32>
    %275 = arith.mulf %270, %274 : vector<16x16x8xf32>
    %276 = arith.addf %269, %275 : vector<16x16x8xf32>
    %c1_132 = arith.constant 1 : index
    %c3_133 = arith.constant 3 : index
    %c0_134 = arith.constant 0 : index
    %277 = vector.load %arg13[%c1_132, %c3_133, %c0_134] : memref<20x20x8xf32, #tpu.memory_space<vmem>>, vector<16x16x8xf32>
    %278 = vector.extract_strided_slice %221 {offsets = [8, 0], sizes = [1, 8], strides = [1, 1]} : vector<25x8xf32> to vector<1x8xf32>
    %279 = vector.shape_cast %278 : vector<1x8xf32> to vector<8xf32>
    %280 = vector.shape_cast %279 : vector<8xf32> to vector<1x1x8xf32>
    %281 = vector.broadcast %280 : vector<1x1x8xf32> to vector<16x16x8xf32>
    %282 = arith.mulf %277, %281 : vector<16x16x8xf32>
    %283 = arith.addf %276, %282 : vector<16x16x8xf32>
    %c1_135 = arith.constant 1 : index
    %c4_136 = arith.constant 4 : index
    %c0_137 = arith.constant 0 : index
    %284 = vector.load %arg13[%c1_135, %c4_136, %c0_137] : memref<20x20x8xf32, #tpu.memory_space<vmem>>, vector<16x16x8xf32>
    %285 = vector.extract_strided_slice %221 {offsets = [9, 0], sizes = [1, 8], strides = [1, 1]} : vector<25x8xf32> to vector<1x8xf32>
    %286 = vector.shape_cast %285 : vector<1x8xf32> to vector<8xf32>
    %287 = vector.shape_cast %286 : vector<8xf32> to vector<1x1x8xf32>
    %288 = vector.broadcast %287 : vector<1x1x8xf32> to vector<16x16x8xf32>
    %289 = arith.mulf %284, %288 : vector<16x16x8xf32>
    %290 = arith.addf %283, %289 : vector<16x16x8xf32>
    %c2_138 = arith.constant 2 : index
    %c0_139 = arith.constant 0 : index
    %c0_140 = arith.constant 0 : index
    %291 = vector.load %arg13[%c2_138, %c0_139, %c0_140] : memref<20x20x8xf32, #tpu.memory_space<vmem>>, vector<16x16x8xf32>
    %292 = vector.extract_strided_slice %221 {offsets = [10, 0], sizes = [1, 8], strides = [1, 1]} : vector<25x8xf32> to vector<1x8xf32>
    %293 = vector.shape_cast %292 : vector<1x8xf32> to vector<8xf32>
    %294 = vector.shape_cast %293 : vector<8xf32> to vector<1x1x8xf32>
    %295 = vector.broadcast %294 : vector<1x1x8xf32> to vector<16x16x8xf32>
    %296 = arith.mulf %291, %295 : vector<16x16x8xf32>
    %297 = arith.addf %290, %296 : vector<16x16x8xf32>
    %c2_141 = arith.constant 2 : index
    %c1_142 = arith.constant 1 : index
    %c0_143 = arith.constant 0 : index
    %298 = vector.load %arg13[%c2_141, %c1_142, %c0_143] : memref<20x20x8xf32, #tpu.memory_space<vmem>>, vector<16x16x8xf32>
    %299 = vector.extract_strided_slice %221 {offsets = [11, 0], sizes = [1, 8], strides = [1, 1]} : vector<25x8xf32> to vector<1x8xf32>
    %300 = vector.shape_cast %299 : vector<1x8xf32> to vector<8xf32>
    %301 = vector.shape_cast %300 : vector<8xf32> to vector<1x1x8xf32>
    %302 = vector.broadcast %301 : vector<1x1x8xf32> to vector<16x16x8xf32>
    %303 = arith.mulf %298, %302 : vector<16x16x8xf32>
    %304 = arith.addf %297, %303 : vector<16x16x8xf32>
    %c2_144 = arith.constant 2 : index
    %c2_145 = arith.constant 2 : index
    %c0_146 = arith.constant 0 : index
    %305 = vector.load %arg13[%c2_144, %c2_145, %c0_146] : memref<20x20x8xf32, #tpu.memory_space<vmem>>, vector<16x16x8xf32>
    %306 = vector.extract_strided_slice %221 {offsets = [12, 0], sizes = [1, 8], strides = [1, 1]} : vector<25x8xf32> to vector<1x8xf32>
    %307 = vector.shape_cast %306 : vector<1x8xf32> to vector<8xf32>
    %308 = vector.shape_cast %307 : vector<8xf32> to vector<1x1x8xf32>
    %309 = vector.broadcast %308 : vector<1x1x8xf32> to vector<16x16x8xf32>
    %310 = arith.mulf %305, %309 : vector<16x16x8xf32>
    %311 = arith.addf %304, %310 : vector<16x16x8xf32>
    %c2_147 = arith.constant 2 : index
    %c3_148 = arith.constant 3 : index
    %c0_149 = arith.constant 0 : index
    %312 = vector.load %arg13[%c2_147, %c3_148, %c0_149] : memref<20x20x8xf32, #tpu.memory_space<vmem>>, vector<16x16x8xf32>
    %313 = vector.extract_strided_slice %221 {offsets = [13, 0], sizes = [1, 8], strides = [1, 1]} : vector<25x8xf32> to vector<1x8xf32>
    %314 = vector.shape_cast %313 : vector<1x8xf32> to vector<8xf32>
    %315 = vector.shape_cast %314 : vector<8xf32> to vector<1x1x8xf32>
    %316 = vector.broadcast %315 : vector<1x1x8xf32> to vector<16x16x8xf32>
    %317 = arith.mulf %312, %316 : vector<16x16x8xf32>
    %318 = arith.addf %311, %317 : vector<16x16x8xf32>
    %c2_150 = arith.constant 2 : index
    %c4_151 = arith.constant 4 : index
    %c0_152 = arith.constant 0 : index
    %319 = vector.load %arg13[%c2_150, %c4_151, %c0_152] : memref<20x20x8xf32, #tpu.memory_space<vmem>>, vector<16x16x8xf32>
    %320 = vector.extract_strided_slice %221 {offsets = [14, 0], sizes = [1, 8], strides = [1, 1]} : vector<25x8xf32> to vector<1x8xf32>
    %321 = vector.shape_cast %320 : vector<1x8xf32> to vector<8xf32>
    %322 = vector.shape_cast %321 : vector<8xf32> to vector<1x1x8xf32>
    %323 = vector.broadcast %322 : vector<1x1x8xf32> to vector<16x16x8xf32>
    %324 = arith.mulf %319, %323 : vector<16x16x8xf32>
    %325 = arith.addf %318, %324 : vector<16x16x8xf32>
    %c3_153 = arith.constant 3 : index
    %c0_154 = arith.constant 0 : index
    %c0_155 = arith.constant 0 : index
    %326 = vector.load %arg13[%c3_153, %c0_154, %c0_155] : memref<20x20x8xf32, #tpu.memory_space<vmem>>, vector<16x16x8xf32>
    %327 = vector.extract_strided_slice %221 {offsets = [15, 0], sizes = [1, 8], strides = [1, 1]} : vector<25x8xf32> to vector<1x8xf32>
    %328 = vector.shape_cast %327 : vector<1x8xf32> to vector<8xf32>
    %329 = vector.shape_cast %328 : vector<8xf32> to vector<1x1x8xf32>
    %330 = vector.broadcast %329 : vector<1x1x8xf32> to vector<16x16x8xf32>
    %331 = arith.mulf %326, %330 : vector<16x16x8xf32>
    %332 = arith.addf %325, %331 : vector<16x16x8xf32>
    %c3_156 = arith.constant 3 : index
    %c1_157 = arith.constant 1 : index
    %c0_158 = arith.constant 0 : index
    %333 = vector.load %arg13[%c3_156, %c1_157, %c0_158] : memref<20x20x8xf32, #tpu.memory_space<vmem>>, vector<16x16x8xf32>
    %334 = vector.extract_strided_slice %221 {offsets = [16, 0], sizes = [1, 8], strides = [1, 1]} : vector<25x8xf32> to vector<1x8xf32>
    %335 = vector.shape_cast %334 : vector<1x8xf32> to vector<8xf32>
    %336 = vector.shape_cast %335 : vector<8xf32> to vector<1x1x8xf32>
    %337 = vector.broadcast %336 : vector<1x1x8xf32> to vector<16x16x8xf32>
    %338 = arith.mulf %333, %337 : vector<16x16x8xf32>
    %339 = arith.addf %332, %338 : vector<16x16x8xf32>
    %c3_159 = arith.constant 3 : index
    %c2_160 = arith.constant 2 : index
    %c0_161 = arith.constant 0 : index
    %340 = vector.load %arg13[%c3_159, %c2_160, %c0_161] : memref<20x20x8xf32, #tpu.memory_space<vmem>>, vector<16x16x8xf32>
    %341 = vector.extract_strided_slice %221 {offsets = [17, 0], sizes = [1, 8], strides = [1, 1]} : vector<25x8xf32> to vector<1x8xf32>
    %342 = vector.shape_cast %341 : vector<1x8xf32> to vector<8xf32>
    %343 = vector.shape_cast %342 : vector<8xf32> to vector<1x1x8xf32>
    %344 = vector.broadcast %343 : vector<1x1x8xf32> to vector<16x16x8xf32>
    %345 = arith.mulf %340, %344 : vector<16x16x8xf32>
    %346 = arith.addf %339, %345 : vector<16x16x8xf32>
    %c3_162 = arith.constant 3 : index
    %c3_163 = arith.constant 3 : index
    %c0_164 = arith.constant 0 : index
    %347 = vector.load %arg13[%c3_162, %c3_163, %c0_164] : memref<20x20x8xf32, #tpu.memory_space<vmem>>, vector<16x16x8xf32>
    %348 = vector.extract_strided_slice %221 {offsets = [18, 0], sizes = [1, 8], strides = [1, 1]} : vector<25x8xf32> to vector<1x8xf32>
    %349 = vector.shape_cast %348 : vector<1x8xf32> to vector<8xf32>
    %350 = vector.shape_cast %349 : vector<8xf32> to vector<1x1x8xf32>
    %351 = vector.broadcast %350 : vector<1x1x8xf32> to vector<16x16x8xf32>
    %352 = arith.mulf %347, %351 : vector<16x16x8xf32>
    %353 = arith.addf %346, %352 : vector<16x16x8xf32>
    %c3_165 = arith.constant 3 : index
    %c4_166 = arith.constant 4 : index
    %c0_167 = arith.constant 0 : index
    %354 = vector.load %arg13[%c3_165, %c4_166, %c0_167] : memref<20x20x8xf32, #tpu.memory_space<vmem>>, vector<16x16x8xf32>
    %355 = vector.extract_strided_slice %221 {offsets = [19, 0], sizes = [1, 8], strides = [1, 1]} : vector<25x8xf32> to vector<1x8xf32>
    %356 = vector.shape_cast %355 : vector<1x8xf32> to vector<8xf32>
    %357 = vector.shape_cast %356 : vector<8xf32> to vector<1x1x8xf32>
    %358 = vector.broadcast %357 : vector<1x1x8xf32> to vector<16x16x8xf32>
    %359 = arith.mulf %354, %358 : vector<16x16x8xf32>
    %360 = arith.addf %353, %359 : vector<16x16x8xf32>
    %c4_168 = arith.constant 4 : index
    %c0_169 = arith.constant 0 : index
    %c0_170 = arith.constant 0 : index
    %361 = vector.load %arg13[%c4_168, %c0_169, %c0_170] : memref<20x20x8xf32, #tpu.memory_space<vmem>>, vector<16x16x8xf32>
    %362 = vector.extract_strided_slice %221 {offsets = [20, 0], sizes = [1, 8], strides = [1, 1]} : vector<25x8xf32> to vector<1x8xf32>
    %363 = vector.shape_cast %362 : vector<1x8xf32> to vector<8xf32>
    %364 = vector.shape_cast %363 : vector<8xf32> to vector<1x1x8xf32>
    %365 = vector.broadcast %364 : vector<1x1x8xf32> to vector<16x16x8xf32>
    %366 = arith.mulf %361, %365 : vector<16x16x8xf32>
    %367 = arith.addf %360, %366 : vector<16x16x8xf32>
    %c4_171 = arith.constant 4 : index
    %c1_172 = arith.constant 1 : index
    %c0_173 = arith.constant 0 : index
    %368 = vector.load %arg13[%c4_171, %c1_172, %c0_173] : memref<20x20x8xf32, #tpu.memory_space<vmem>>, vector<16x16x8xf32>
    %369 = vector.extract_strided_slice %221 {offsets = [21, 0], sizes = [1, 8], strides = [1, 1]} : vector<25x8xf32> to vector<1x8xf32>
    %370 = vector.shape_cast %369 : vector<1x8xf32> to vector<8xf32>
    %371 = vector.shape_cast %370 : vector<8xf32> to vector<1x1x8xf32>
    %372 = vector.broadcast %371 : vector<1x1x8xf32> to vector<16x16x8xf32>
    %373 = arith.mulf %368, %372 : vector<16x16x8xf32>
    %374 = arith.addf %367, %373 : vector<16x16x8xf32>
    %c4_174 = arith.constant 4 : index
    %c2_175 = arith.constant 2 : index
    %c0_176 = arith.constant 0 : index
    %375 = vector.load %arg13[%c4_174, %c2_175, %c0_176] : memref<20x20x8xf32, #tpu.memory_space<vmem>>, vector<16x16x8xf32>
    %376 = vector.extract_strided_slice %221 {offsets = [22, 0], sizes = [1, 8], strides = [1, 1]} : vector<25x8xf32> to vector<1x8xf32>
    %377 = vector.shape_cast %376 : vector<1x8xf32> to vector<8xf32>
    %378 = vector.shape_cast %377 : vector<8xf32> to vector<1x1x8xf32>
    %379 = vector.broadcast %378 : vector<1x1x8xf32> to vector<16x16x8xf32>
    %380 = arith.mulf %375, %379 : vector<16x16x8xf32>
    %381 = arith.addf %374, %380 : vector<16x16x8xf32>
    %c4_177 = arith.constant 4 : index
    %c3_178 = arith.constant 3 : index
    %c0_179 = arith.constant 0 : index
    %382 = vector.load %arg13[%c4_177, %c3_178, %c0_179] : memref<20x20x8xf32, #tpu.memory_space<vmem>>, vector<16x16x8xf32>
    %383 = vector.extract_strided_slice %221 {offsets = [23, 0], sizes = [1, 8], strides = [1, 1]} : vector<25x8xf32> to vector<1x8xf32>
    %384 = vector.shape_cast %383 : vector<1x8xf32> to vector<8xf32>
    %385 = vector.shape_cast %384 : vector<8xf32> to vector<1x1x8xf32>
    %386 = vector.broadcast %385 : vector<1x1x8xf32> to vector<16x16x8xf32>
    %387 = arith.mulf %382, %386 : vector<16x16x8xf32>
    %388 = arith.addf %381, %387 : vector<16x16x8xf32>
    %c4_180 = arith.constant 4 : index
    %c4_181 = arith.constant 4 : index
    %c0_182 = arith.constant 0 : index
    %389 = vector.load %arg13[%c4_180, %c4_181, %c0_182] : memref<20x20x8xf32, #tpu.memory_space<vmem>>, vector<16x16x8xf32>
    %390 = vector.extract_strided_slice %221 {offsets = [24, 0], sizes = [1, 8], strides = [1, 1]} : vector<25x8xf32> to vector<1x8xf32>
    %391 = vector.shape_cast %390 : vector<1x8xf32> to vector<8xf32>
    %392 = vector.shape_cast %391 : vector<8xf32> to vector<1x1x8xf32>
    %393 = vector.broadcast %392 : vector<1x1x8xf32> to vector<16x16x8xf32>
    %394 = arith.mulf %389, %393 : vector<16x16x8xf32>
    %395 = arith.addf %388, %394 : vector<16x16x8xf32>
    %c0_183 = arith.constant 0 : index
    %c0_184 = arith.constant 0 : index
    %396 = vector.load %arg10[%c0_183, %c0_184] : memref<1x8xf32, #tpu.memory_space<vmem>>, vector<1x8xf32>
    %397 = vector.shape_cast %396 : vector<1x8xf32> to vector<8xf32>
    %398 = vector.shape_cast %397 : vector<8xf32> to vector<1x1x8xf32>
    %399 = vector.broadcast %398 : vector<1x1x8xf32> to vector<16x16x8xf32>
    %400 = arith.addf %395, %399 : vector<16x16x8xf32>
    %401 = vector.shape_cast %216 : vector<256x8xf32> to vector<16x16x8xf32>
    %402 = tpu.concatenate %401, %400 in 2 : vector<16x16x8xf32>, vector<16x16x8xf32> -> vector<16x16x16xf32>
    %403 = arith.addf %402, %1 : vector<16x16x16xf32>
    %c0_185 = arith.constant 0 : index
    %c0_186 = arith.constant 0 : index
    %c0_187 = arith.constant 0 : index
    %c0_188 = arith.constant 0 : index
    %404 = vector.load %arg11[%c0_185, %c0_186, %c0_187, %c0_188] : memref<1x16x16x16xf32, #tpu.memory_space<vmem>>, vector<1x16x16x16xf32>
    %405 = vector.shape_cast %404 : vector<1x16x16x16xf32> to vector<16x16x16xf32>
    %406 = vector.shape_cast %403 : vector<16x16x16xf32> to vector<1x16x16x16xf32>
    tpu.vector_store %arg11[%c0_185, %c0_186, %c0_187, %c0_188], %406 {strides = array<i32>} : memref<1x16x16x16xf32, #tpu.memory_space<vmem>>, vector<1x16x16x16xf32>,
    return
  }
  func.func @transform_0(%arg0: i32) -> (i32, i32, i32, i32) {
    %c0_i32 = arith.constant 0 : i32
    %c0_i32_0 = arith.constant 0 : i32
    %c0_i32_1 = arith.constant 0 : i32
    %c0_i32_2 = arith.constant 0 : i32
    return %arg0, %c0_i32, %c0_i32_0, %c0_i32_1 : i32, i32, i32, i32
  }
  func.func @transform_1(%arg0: i32) -> (i32, i32) {
    %c0_i32 = arith.constant 0 : i32
    %c0_i32_0 = arith.constant 0 : i32
    %c0_i32_1 = arith.constant 0 : i32
    return %c0_i32, %c0_i32_0 : i32, i32
  }
  func.func @transform_2(%arg0: i32) -> (i32, i32) {
    %c0_i32 = arith.constant 0 : i32
    %c0_i32_0 = arith.constant 0 : i32
    %c0_i32_1 = arith.constant 0 : i32
    return %c0_i32, %c0_i32_0 : i32, i32
  }
  func.func @transform_3(%arg0: i32) -> (i32, i32) {
    %c0_i32 = arith.constant 0 : i32
    %c0_i32_0 = arith.constant 0 : i32
    %c0_i32_1 = arith.constant 0 : i32
    return %c0_i32, %c0_i32_0 : i32, i32
  }
  func.func @transform_4(%arg0: i32) -> (i32, i32) {
    %c0_i32 = arith.constant 0 : i32
    %c0_i32_0 = arith.constant 0 : i32
    %c0_i32_1 = arith.constant 0 : i32
    return %c0_i32, %c0_i32_0 : i32, i32
  }
  func.func @transform_5(%arg0: i32) -> (i32, i32) {
    %c0_i32 = arith.constant 0 : i32
    %c0_i32_0 = arith.constant 0 : i32
    %c0_i32_1 = arith.constant 0 : i32
    return %c0_i32, %c0_i32_0 : i32, i32
  }
  func.func @transform_6(%arg0: i32) -> (i32, i32) {
    %c0_i32 = arith.constant 0 : i32
    %c0_i32_0 = arith.constant 0 : i32
    %c0_i32_1 = arith.constant 0 : i32
    return %c0_i32, %c0_i32_0 : i32, i32
  }
  func.func @transform_7(%arg0: i32) -> (i32, i32) {
    %c0_i32 = arith.constant 0 : i32
    %c0_i32_0 = arith.constant 0 : i32
    %c0_i32_1 = arith.constant 0 : i32
    return %c0_i32, %c0_i32_0 : i32, i32
  }
  func.func @transform_8(%arg0: i32) -> (i32, i32) {
    %c0_i32 = arith.constant 0 : i32
    %c0_i32_0 = arith.constant 0 : i32
    %c0_i32_1 = arith.constant 0 : i32
    return %c0_i32, %c0_i32_0 : i32, i32
  }
  func.func @transform_9(%arg0: i32) -> (i32, i32) {
    %c0_i32 = arith.constant 0 : i32
    %c0_i32_0 = arith.constant 0 : i32
    %c0_i32_1 = arith.constant 0 : i32
    return %c0_i32, %c0_i32_0 : i32, i32
  }
  func.func @transform_10(%arg0: i32) -> (i32, i32, i32, i32) {
    %c0_i32 = arith.constant 0 : i32
    %c0_i32_0 = arith.constant 0 : i32
    %c0_i32_1 = arith.constant 0 : i32
    %c0_i32_2 = arith.constant 0 : i32
    return %arg0, %c0_i32, %c0_i32_0, %c0_i32_1 : i32, i32, i32, i32
  }
}

</mosaic_0001>

<bundles_post_ra>
// kernel: tpu_custom_call.1
= control target key start
LH: loop header
LB: loop body
LE: loop exit
PB: predicated region body
PF: predicated region fallthrough
CT: control target
= control target key end

     0   :  { %15 = vsyncpa [#allocation5], 0  ;;  %s14989_s0 = inlined_call_operand.hbm [shape: f32[2,16,16,16], index: 0, kind: input, shape index: {}]   ;;  %s14990_s1 = inlined_call_operand.vmem [shape: f32[16,4], index: 1, kind: input, shape index: {}]   ;;  %s14991_s2 = inlined_call_operand.vmem [shape: f32[1,4], index: 2, kind: input, shape index: {}]   ;;  %s14992_s3 = inlined_call_operand.vmem [shape: f32[25,4], index: 3, kind: input, shape index: {}]   ;;  %s14993_s4 = inlined_call_operand.vmem [shape: f32[1,4], index: 4, kind: input, shape index: {}]   ;;  %s14994_s5 = inlined_call_operand.vmem [shape: f32[4,8], index: 5, kind: input, shape index: {}]   ;;  %s14995_s6 = inlined_call_operand.vmem [shape: f32[4,8], index: 6, kind: input, shape index: {}]   ;;  %s14996_s7 = inlined_call_operand.vmem [shape: f32[1,8], index: 7, kind: input, shape index: {}]   ;;  %s14997_s8 = inlined_call_operand.vmem [shape: f32[25,8], index: 8, kind: input, shape index: {}]   ;;  %s14998_s9 = inlined_call_operand.vmem [shape: f32[1,8], index: 9, kind: input, shape index: {}]   ;;  %s14999_s10 = inlined_call_operand.hbm [shape: f32[2,16,16,16], index: 10, kind: output, shape index: {}]  }
   0x1   :  { %17 = vsyncpa [#allocation5 + $0x1], 0 }
   0x2   :  { %18 = vsyncpa [#allocation6], 0 }
   0x3   :  { %20 = vsyncpa [#allocation6 + $0x1], 0  ;;  %s8394_s13 = smov 0   ;;  %s8396_s14 = smov 0  }
   0x4   :  { %s8398_s15 = smov 0   ;;  %s8400_s16 = smov 0  }
   0x5 LB: > { %s8415_s17 = sadd.s32 4294967295, %s8330_s16   ;;  %s7408_s18 = sadd.s32 4294967294, %s8330_s16   ;;  %s8330_s16 = sphi %s8400_s16, %s17139_s16   ;;  %s8326_s15 = sphi %s8398_s15, %s17138_s15   ;;  %s8322_s14 = sphi %s8396_s14, %s17137_s14   ;;  %s8318_s13 = sphi %s8394_s13, %s17136_s13  }
   0x6   : > { %s8419_s19 = sadd.s32 1, %s8330_s16   ;;  %s33_s20 = sadd.s32 1, %s8326_s15 }
   0x7   : > { %s30_s21 = ssub.s32 %s8330_s16, %s8419_s19  ;;  %p40_p0 = scmp.ne.s32.totalorder %s8326_s15, %s8322_s14 }
   0x8   : > { %p31_p1 = scmp.eq.s32.totalorder %s30_s21, 0  ;;  %p41_p2 = scmp.eq.s32.totalorder %s8330_s16, 0 }
   0x9   : > { %p46_p3 = scmp.ne.s32.totalorder %s8322_s14, %s8318_s13  ;;  %p47_p4 = scmp.eq.s32.totalorder %s8415_s17, 0 }
   0xa   : > { %s8431_s22 = scalar_select %p31_p1, %s8326_s15, %s33_s20  }
   0xb   : > { %p8433_p5 = por %p41_p2, %p40_p0  ;;  %p8437_p6 = por %p47_p4, %p46_p3 }
   0xc   : > { %15689 = sst [smem:[#allocation10_spill]] %s8431_s22  ;;  %p259_p7 = scmp.eq.s32.totalorder %s8415_s17, 1 }
   0xd   : > { %p265_p8 = scmp.eq.s32.totalorder %s7408_s18, 1  ;;  %p7894_p10 = scmp.lt.s32.totalorder %s8330_s16, 2 }
   0xe   : > { %p8444_p11 = por %p259_p7, %p40_p0  ;;  %s312_s27 = sand.u32 1, %s8326_s15  }
   0xf   : > { %p8448_p12 = por %p265_p8, %p46_p3  ;;  %s7590_s28 = sshll.u32 %s8330_s16, 12 }
  0x10   : > { %s15692_s25 = scalar_select %p8444_p11, 1, 0 }
  0x11   : > { %s15693_s26 = scalar_select %p8448_p12, 1, 0 }
  0x12   : > { %s7411_s29 = sshll.u32 %s312_s27, 8  ;;  %s8457_s12 = scalar_lea.hbm %s14989_s0, %s7590_s28 }
  0x13   : > { %s316_s18 = scalar_lea.vmem [#allocation4], %s7411_s29  ;;  %p8461_p13 = pnand %p7894_p10, %p8433_p5 }
  0x14   : > { %s323_s20 = sshll.u32 %s316_s18, 4  ;;  %s8467_s22 = scalar_lea.sflag [#allocation5], %s312_s27  ;;  %s8465_s20 = int_to_ptr.vmem [resolvable:$true] %s323_s20 }
  0x15   : > { %s8234_s30 = scalar_lea.hbm %s8457_s12, 4096  ;;  %p8236_p1 = pneg %p8461_p13 }
  0x16   : > { %p8235_p0 = scmp.ne.s32.totalorder %s8457_s12, %s8234_s30  ;;  %s8239_s29 = scalar_lea.hbm %s14989_s0, 8192 }
  0x17   : > { %p8240_p4 = scmp.lt.u32.totalorder %s8457_s12, %s14989_s0  ;;  %p8241_p5 = scmp.lt.u32.totalorder %s8239_s29, %s8234_s30 }
  0x18   : > { %p8237_p2 = pnand %p8236_p1, %p8235_p0  ;;  %p8243_p8 = scmp.lt.u32.totalorder %s8234_s30, %s8457_s12 }
  0x19   : > { %p8242_p7 = por %p8241_p5, %p8240_p4 }
  0x1a   : > { %p8238_p3 = pneg %p8237_p2 }
  0x1b   : > { %p8244_p10 = por %p8243_p8, %p8242_p7 }
  0x1d   : > { %p8245_p9 = pnand %p8244_p10, %p8238_p3 }
  0x1f   : > { %8248 = shalt.err (!%p8245_p9)
}
  0x20   : > { %s8249_s27 = scalar_lea.vmem %s8465_s20, 4096  ;;  %s8332_s28 = smov [#allocation4]  }
  0x21   : > { %p8250_p0 = scmp.ne.s32.totalorder %s8465_s20, %s8249_s27  ;;  %s8254_s23 = sshll.u32 %s8332_s28, 4  ;;  %s8255_s23 = int_to_ptr.vmem [resolvable:$false] %s8254_s23 }
  0x22   : > { %s8256_s11 = scalar_lea.vmem %s8255_s23, 8192  ;;  %p8257_p11 = scmp.lt.s32.totalorder %s8465_s20, %s8255_s23 }
  0x23   : > { %p8252_p2 = pnand %p8250_p0, %p8236_p1  ;;  %p8258_p4 = scmp.lt.s32.totalorder %s8256_s11, %s8249_s27 }
  0x25   : > { %p8253_p12 = pneg %p8252_p2  ;;  %p8259_p5 = por %p8258_p4, %p8257_p11 }
  0x27   : > { %p8260_p7 = pnand %p8259_p5, %p8253_p12 }
  0x29   : > { %8263 = shalt.err (!%p8260_p7)
}
  0x2a   : > { %s8333_s30 = smov 128   ;;  %s8334_s29 = smov 8  }
  0x2b   : > { %7889 = dma.hbm_to_vmem [thread:$0]  (!%p8461_p13), %s8457_s12, 4096, %s8465_s20, %s8467_s22, %s8333_s30, %s8333_s30, %s8334_s29  }
  0x2c   : > { %p7414_p9 = scmp.ge.s32.totalorder %s8330_s16, 1  ;;  %p331_p1 = scmp.lt.s32.totalorder %s8330_s16, 3 }
  0x2e   : > { %p332_p3 = pnand %p7414_p9, %p331_p1 }
  0x30   : > { %335 = sbr.rel (%p332_p3) target bundleno = 1668 (0x684), region = 60 }
  0x37   : > { %s8498_s18 = sand.u32 1, %s8322_s14  }
  0x38   : > { %s7415_s27 = sshll.u32 %s8498_s18, 8  ;;  %s338_s28 = scalar_lea.sflag [#allocation5], %s8498_s18 }
  0x39   : > { %s8504_s23 = scalar_lea.vmem [#allocation4], %s7415_s27 }
  0x3a   : > { %8309 = dma.done.wait (%p8437_p6), %s338_s28, 4096  }
  0x3b   : > { %8311 = vsyncadd (%p8437_p6), %s338_s28, 4294963200  ;;  %vm419_vm0 = vcmask 130048   ;;  %v410_v0 = vld [vmem:[%s14990_s1] sm:$0xff]  ;;  %v411_v1 = vld [vmem:[%s14990_s1 + $0x8] sm:$0xff]  ;;  %vm965_vm1 = vcmask 31744   ;;  %vm968_vm2 = vcmask 27648   ;;  %v1096_v36 = vlaneseq }
  0x3c   : > { %v378_v2 = vld [vmem:[%s8504_s23] sm:$0xff]  ;;  %v7844_v3 = vpack.c.bf16 %v411_v1, %v410_v0  ;;  %v379_v4 = vld [vmem:[%s8504_s23 + $0x8] sm:$0xff]  ;;  %v380_v5 = vld [vmem:[%s8504_s23 + $0x10] sm:$0xff]  ;;  %v15001_v35 = vmov 0.0   ;;  %vm3896_vm3 = vcmask 1043456   ;;  %vm4488_vm4 = vcmask 64512  }
  0x3d   : > { %7696 = vmatprep.mubr.msk.f32.mxu0 %vm419_vm0, %v378_v2  ;;  %v381_v6 = vld [vmem:[%s8504_s23 + $0x18] sm:$0xff]  ;;  %v382_v7 = vld [vmem:[%s8504_s23 + $0x20] sm:$0xff]  ;;  %v383_v8 = vld [vmem:[%s8504_s23 + $0x28] sm:$0xff]  ;;  %974 = vst.msk [vmem:[#allocation2 + $0x38] sm:$0xff] %vm965_vm1, %v15001_v35  ;;  %v8700_v37 = vshrl.u32 %v1096_v36, 7  ;;  %vm4491_vm5 = vcmask 60416  }
  0x3e   : > { %7845 = vmatprep.subr.bf16.mxu0 %v7844_v3  ;;  %v384_v9 = vld [vmem:[%s8504_s23 + $0x30] sm:$0xff]  ;;  %v385_v10 = vld [vmem:[%s8504_s23 + $0x38] sm:$0xff]  ;;  %v386_v11 = vld [vmem:[%s8504_s23 + $0x40] sm:$0xff]  ;;  %975 = vst.msk [vmem:[#allocation2 + $0x40] sm:$0xf] %vm968_vm2, %v15001_v35  ;;  %s8336_s12 = smov 8  }
  0x3f   : > { %7847 = vmatpush3.bf16.msra.mxu0 %v7844_v3  ;;  %v387_v12 = vld [vmem:[%s8504_s23 + $0x48] sm:$0xff]  ;;  %v388_v13 = vld [vmem:[%s8504_s23 + $0x50] sm:$0xff]  ;;  %v389_v14 = vld [vmem:[%s8504_s23 + $0x58] sm:$0xff]  ;;  %966 = vst.msk [vmem:[#allocation2] sm:$0xff] %vm965_vm1, %v15001_v35  ;;  %v8703_v38 = vsub.s32 0, %v8700_v37  ;;  %v8706_v39 = vsub.s32 1, %v8700_v37 }
  0x40   : > { %v390_v15 = vld [vmem:[%s8504_s23 + $0x60] sm:$0xff]  ;;  %v391_v16 = vld [vmem:[%s8504_s23 + $0x68] sm:$0xff]  ;;  %v392_v17 = vld [vmem:[%s8504_s23 + $0x70] sm:$0xff]  ;;  %967 = vst.msk [vmem:[#allocation2 + $0x8] sm:$0xff] %vm965_vm1, %v15001_v35  ;;  %v8719_v42 = vsub.s32 2, %v8700_v37  ;;  %v8736_v48 = vsub.s32 3, %v8700_v37 }
  0x41   : > { %v393_v18 = vld [vmem:[%s8504_s23 + $0x78] sm:$0xff]  ;;  %v394_v19 = vld [vmem:[%s8504_s23 + $0x80] sm:$0xff]  ;;  %v395_v20 = vld [vmem:[%s8504_s23 + $0x88] sm:$0xff]  ;;  %969 = vst.msk [vmem:[#allocation2 + $0x10] sm:$0xf] %vm968_vm2, %v15001_v35  ;;  %v8746_v53 = vsub.s32 4, %v8700_v37 }
  0x42   : > { %7697 = vmatmul.mubr.msk.f32.vlgmr.msra.gmra.mrb[0].mxu0 %vm419_vm0, %v379_v4  ;;  %v396_v21 = vld [vmem:[%s8504_s23 + $0x90] sm:$0xff]  ;;  %v397_v22 = vld [vmem:[%s8504_s23 + $0x98] sm:$0xff]  ;;  %v398_v23 = vld [vmem:[%s8504_s23 + $0xa0] sm:$0xff]  ;;  %970 = vst.msk [vmem:[#allocation2 + $0x18] sm:$0xff] %vm965_vm1, %v15001_v35  ;;  %v8767_v4 = vsub.s32 5, %v8700_v37  ;;  %s14735_s30 = scalar_lea.vmem [#allocation7], %s7415_s27 }
  0x43   : > { %7699 = vmatprep.mubr.msk.f32.mxu0 %vm419_vm0, %v380_v5  ;;  %v399_v24 = vld [vmem:[%s8504_s23 + $0xa8] sm:$0xff]  ;;  %v400_v25 = vld [vmem:[%s8504_s23 + $0xb0] sm:$0xff]  ;;  %v401_v26 = vld [vmem:[%s8504_s23 + $0xb8] sm:$0xff]  ;;  %971 = vst.msk [vmem:[#allocation2 + $0x20] sm:$0xff] %vm965_vm1, %v15001_v35  ;;  %s7591_s27 = sshll.u32 %s8415_s17, 12  ;;  %s7335_s29 = sshll.u32 %s14735_s30, 4  ;;  %s14942_s29 = int_to_ptr.vmem [resolvable:$true] %s7335_s29 }
  0x44   : > { %v402_v27 = vld [vmem:[%s8504_s23 + $0xc0] sm:$0xff]  ;;  %v403_v28 = vld [vmem:[%s8504_s23 + $0xc8] sm:$0xff]  ;;  %v404_v29 = vld [vmem:[%s8504_s23 + $0xd0] sm:$0xff]  ;;  %972 = vst.msk [vmem:[#allocation2 + $0x28] sm:$0xf] %vm968_vm2, %v15001_v35  ;;  %s14939_s20 = scalar_lea.hbm %s14999_s10, %s7591_s27  ;;  %s7322_s17 = scalar_lea.sflag [#allocation6], %s8498_s18 }
  0x45   : > { %v405_v30 = vld [vmem:[%s8504_s23 + $0xd8] sm:$0xff]  ;;  %v406_v31 = vld [vmem:[%s8504_s23 + $0xe0] sm:$0xff]  ;;  %v407_v32 = vld [vmem:[%s8504_s23 + $0xe8] sm:$0xff]  ;;  %973 = vst.msk [vmem:[#allocation2 + $0x30] sm:$0xff] %vm965_vm1, %v15001_v35  ;;  %s8264_s21 = scalar_lea.vmem %s14942_s29, 4096  ;;  %p17132_p11 = scmp.ne.s32.totalorder %s15692_s25, 0 }
  0x46   : > { %7700 = vmatmul.mubr.msk.f32.gmra.mrb[2].mxu0 %vm419_vm0, %v381_v6  ;;  %v408_v33 = vld [vmem:[%s8504_s23 + $0xf0] sm:$0xff]  ;;  %v409_v34 = vld [vmem:[%s8504_s23 + $0xf8] sm:$0xff]  ;;  %976 = vst.msk [vmem:[#allocation2 + $0x48] sm:$0xff] %vm965_vm1, %v15001_v35  ;;  %977 = vst.msk [vmem:[#allocation2 + $0x50] sm:$0xff] %vm965_vm1, %v15001_v35  ;;  %p8265_p6 = scmp.ne.s32.totalorder %s14942_s29, %s8264_s21  ;;  %s8337_s24 = smov [#allocation7]  }
  0x47   : > { %7702 = vmatprep.mubr.msk.f32.mxu0 %vm419_vm0, %v382_v7  ;;  %978 = vst.msk [vmem:[#allocation2 + $0x58] sm:$0xf] %vm968_vm2, %v15001_v35  ;;  %981 = vst.msk [vmem:[#allocation2 + $0x70] sm:$0xf] %vm968_vm2, %v15001_v35  ;;  %v8711_v40 = vld [vmem:[%s14992_s3] sm:$0xff]  ;;  %v1065_v57 = vld [vmem:[#allocation2 + $0x8] sm:$0xff] }
  0x48   : > { %979 = vst.msk [vmem:[#allocation2 + $0x60] sm:$0xff] %vm965_vm1, %v15001_v35  ;;  %980 = vst.msk [vmem:[#allocation2 + $0x68] sm:$0xff] %vm965_vm1, %v15001_v35  ;;  %v3799_v41 = vld [vmem:[%s14995_s6] sm:$0xf]  ;;  %v8723_v43 = vrot.slane %v8711_v40, %v8703_v38  ;;  %v8727_v44 = vrot.slane %v8711_v40, %v8706_v39  ;;  %v8733_v47 = vrot.slane %v8711_v40, %v8719_v42  ;;  %v1133_v58 = vld [vmem:[#allocation2 + $0x9] sm:$0xff]  ;;  %p8266_p12 = pnand %p8265_p6, %p17132_p11  ;;  %s8268_s11 = sshll.u32 %s8337_s24, 4  ;;  %s8269_s11 = int_to_ptr.vmem [resolvable:$false] %s8268_s11 }
  0x49   : > { %982 = vst.msk [vmem:[#allocation2 + $0x78] sm:$0xff] %vm965_vm1, %v15001_v35  ;;  %983 = vst.msk [vmem:[#allocation2 + $0x80] sm:$0xff] %vm965_vm1, %v15001_v35  ;;  %7744 = vmatprep.subr.msk.mxu0 %vm3896_vm3, %v3799_v41  ;;  %7848 = vmatprep.subr.msk.mxu1 %vm3896_vm3, %v3799_v41  ;;  %v1064_v45 = vld [vmem:[#allocation2] sm:$0xff]  ;;  %v8750_v54 = vrot.slane %v8711_v40, %v8736_v48  ;;  %v8758_v63 = vrot.slane %v8711_v40, %v8746_v53  ;;  %v1233_v7 = vld [vmem:[#allocation2 + $0xa] sm:$0xff]  ;;  %s8270_s27 = scalar_lea.vmem %s8269_s11, 8192  ;;  %p8271_p8 = scmp.lt.s32.totalorder %s14942_s29, %s8269_s11 }
  0x4a   : > { %7703 = vmatmul.mubr.msk.f32.gmra.mrb[4].mxu0 %vm419_vm0, %v383_v8  ;;  %984 = vst.msk [vmem:[#allocation2 + $0x88] sm:$0xf] %vm968_vm2, %v15001_v35  ;;  %987 = vst.msk [vmem:[#allocation2 + $0xa0] sm:$0xf] %vm968_vm2, %v15001_v35  ;;  %7849 = vmatpush3.msk.msra.mxu1 %vm3896_vm3, %v3799_v41  ;;  %v1132_v46 = vld [vmem:[#allocation2 + $0x1] sm:$0xff]  ;;  %v1100_v49 = vmul.f32 %v8723_v43, %v1064_v45  ;;  %v1101_v1 = vmul.f32 %v8723_v43, %v1065_v57  ;;  %v1433_v36 = vld [vmem:[#allocation2 + $0xc] sm:$0xff]  ;;  %p8267_p13 = pneg %p8266_p12  ;;  %p8272_p10 = scmp.lt.s32.totalorder %s8270_s27, %s8264_s21 }
  0x4b   : > { %7705 = vmatprep.mubr.msk.f32.mxu0 %vm419_vm0, %v384_v9  ;;  %985 = vst.msk [vmem:[#allocation2 + $0x90] sm:$0xff] %vm965_vm1, %v15001_v35  ;;  %986 = vst.msk [vmem:[#allocation2 + $0x98] sm:$0xff] %vm965_vm1, %v15001_v35  ;;  %7745 = vmatpush3.msk.msra.mxu0 %vm3896_vm3, %v3799_v41  ;;  %v1168_v50 = vmul.f32 %v8727_v44, %v1132_v46  ;;  %v1232_v51 = vld [vmem:[#allocation2 + $0x2] sm:$0xff]  ;;  %v8743_v52 = vld [vmem:[%s14991_s2] ss:$0 sm:$0xff]  ;;  %v1169_v2 = vmul.f32 %v8727_v44, %v1133_v58 }
  0x4c   : > { %988 = vst.msk [vmem:[#allocation2 + $0xa8] sm:$0xff] %vm965_vm1, %v15001_v35  ;;  %989 = vst.msk [vmem:[#allocation2 + $0xb0] sm:$0xff] %vm965_vm1, %v15001_v35  ;;  %v1268_v56 = vmul.f32 %v8733_v47, %v1232_v51  ;;  %v1332_v60 = vld [vmem:[#allocation2 + $0x3] sm:$0xff]  ;;  %v1633_v46 = vld [vmem:[#allocation2 + $0x19] sm:$0xff]  ;;  %p8273_p0 = por %p8272_p10, %p8271_p8 }
  0x4d   : > { %990 = vst.msk [vmem:[#allocation2 + $0xb8] sm:$0xf] %vm968_vm2, %v15001_v35  ;;  %993 = vst.msk [vmem:[#allocation2 + $0xd0] sm:$0xf] %vm968_vm2, %v15001_v35  ;;  %v1200_v55 = vadd.f32 %v1168_v50, %v1100_v49  ;;  %v1368_v6 = vmul.f32 %v8750_v54, %v1332_v60 }
  0x4e   : > { %7706 = vmatmul.mubr.msk.f32.gmra.mrb[6].mxu0 %vm419_vm0, %v385_v10  ;;  %991 = vst.msk [vmem:[#allocation2 + $0xc0] sm:$0xff] %vm965_vm1, %v15001_v35  ;;  %992 = vst.msk [vmem:[#allocation2 + $0xc8] sm:$0xff] %vm965_vm1, %v15001_v35  ;;  %v1432_v10 = vld [vmem:[#allocation2 + $0x4] sm:$0xff]  ;;  %p8274_p2 = pnand %p8273_p0, %p8267_p13 }
  0x4f   : > { %7708 = vmatprep.mubr.msk.f32.mxu0 %vm419_vm0, %v386_v11  ;;  %994 = vst.msk [vmem:[#allocation2 + $0xd8] sm:$0xff] %vm965_vm1, %v15001_v35  ;;  %995 = vst.msk [vmem:[#allocation2 + $0xe0] sm:$0xff] %vm965_vm1, %v15001_v35  ;;  %v1300_v5 = vadd.f32 %v1268_v56, %v1200_v55  ;;  %v8772_v11 = vsub.s32 6, %v8700_v37  ;;  %v1469_v56 = vmul.f32 %v8758_v63, %v1433_v36 }
  0x50   : > { %996 = vst.msk [vmem:[#allocation2 + $0xe8] sm:$0xf] %vm968_vm2, %v15001_v35  ;;  %999 = vst.msk [vmem:[#allocation2 + $0x100] sm:$0xf] %vm968_vm2, %v15001_v35 }
  0x51   : > { %997 = vst.msk [vmem:[#allocation2 + $0xf0] sm:$0xff] %vm965_vm1, %v15001_v35  ;;  %998 = vst.msk [vmem:[#allocation2 + $0xf8] sm:$0xff] %vm965_vm1, %v15001_v35 }
  0x52   : > { %7709 = vmatmul.mubr.msk.f32.gmra.mrb[8].mxu0 %vm419_vm0, %v387_v12  ;;  %1000 = vst.msk [vmem:[#allocation2 + $0x108] sm:$0xff] %vm965_vm1, %v15001_v35  ;;  %1001 = vst.msk [vmem:[#allocation2 + $0x110] sm:$0xff] %vm965_vm1, %v15001_v35 }
  0x53   : > { %7711 = vmatprep.mubr.msk.f32.mxu0 %vm419_vm0, %v388_v13  ;;  %1002 = vst.msk [vmem:[#allocation2 + $0x118] sm:$0xf] %vm968_vm2, %v15001_v35  ;;  %1005 = vst.msk [vmem:[#allocation2 + $0x130] sm:$0xf] %vm968_vm2, %v15001_v35 }
  0x54   : > { %1003 = vst.msk [vmem:[#allocation2 + $0x120] sm:$0xff] %vm965_vm1, %v15001_v35  ;;  %1004 = vst.msk [vmem:[#allocation2 + $0x128] sm:$0xff] %vm965_vm1, %v15001_v35 }
  0x55   : > { %1006 = vst.msk [vmem:[#allocation2 + $0x138] sm:$0xff] %vm965_vm1, %v15001_v35  ;;  %1007 = vst.msk [vmem:[#allocation2 + $0x140] sm:$0xff] %vm965_vm1, %v15001_v35 }
  0x56   : > { %7712 = vmatmul.mubr.msk.f32.gmra.mrb[10].mxu0 %vm419_vm0, %v389_v14  ;;  %1008 = vst.msk [vmem:[#allocation2 + $0x148] sm:$0xf] %vm968_vm2, %v15001_v35  ;;  %1011 = vst.msk [vmem:[#allocation2 + $0x160] sm:$0xf] %vm968_vm2, %v15001_v35 }
  0x57   : > { %7714 = vmatprep.mubr.msk.f32.mxu0 %vm419_vm0, %v390_v15  ;;  %1009 = vst.msk [vmem:[#allocation2 + $0x150] sm:$0xff] %vm965_vm1, %v15001_v35  ;;  %1010 = vst.msk [vmem:[#allocation2 + $0x158] sm:$0xff] %vm965_vm1, %v15001_v35  ;;  %v1201_v15 = vadd.f32 %v1169_v2, %v1101_v1 }
  0x58   : > { %1012 = vst.msk [vmem:[#allocation2 + $0x168] sm:$0xff] %vm965_vm1, %v15001_v35  ;;  %1013 = vst.msk [vmem:[#allocation2 + $0x170] sm:$0xff] %vm965_vm1, %v15001_v35 }
  0x59   : > { %1014 = vst.msk [vmem:[#allocation2 + $0x178] sm:$0xf] %vm968_vm2, %v15001_v35  ;;  %1017 = vst.msk [vmem:[#allocation2 + $0x190] sm:$0xf] %vm968_vm2, %v15001_v35 }
  0x5a   : > { %7715 = vmatmul.mubr.msk.f32.gmra.mrb[12].mxu0 %vm419_vm0, %v391_v16  ;;  %1015 = vst.msk [vmem:[#allocation2 + $0x180] sm:$0xff] %vm965_vm1, %v15001_v35  ;;  %1016 = vst.msk [vmem:[#allocation2 + $0x188] sm:$0xff] %vm965_vm1, %v15001_v35  ;;  %v1269_v16 = vmul.f32 %v8733_v47, %v1233_v7 }
  0x5b   : > { %7717 = vmatprep.mubr.msk.f32.mxu0 %vm419_vm0, %v392_v17  ;;  %1018 = vst.msk [vmem:[#allocation2 + $0x198] sm:$0xff] %vm965_vm1, %v15001_v35  ;;  %1019 = vst.msk [vmem:[#allocation2 + $0x1a0] sm:$0xff] %vm965_vm1, %v15001_v35  ;;  %v8783_v17 = vrot.slane %v8711_v40, %v8767_v4 }
  0x5c   : > { %1020 = vst.msk [vmem:[#allocation2 + $0x1a8] sm:$0xf] %vm968_vm2, %v15001_v35  ;;  %1023 = vst.msk [vmem:[#allocation2 + $0x1c0] sm:$0xf] %vm968_vm2, %v15001_v35 }
  0x5d   : > { %1021 = vst.msk [vmem:[#allocation2 + $0x1b0] sm:$0xff] %vm965_vm1, %v15001_v35  ;;  %1022 = vst.msk [vmem:[#allocation2 + $0x1b8] sm:$0xff] %vm965_vm1, %v15001_v35 }
  0x5e   : > { %7718 = vmatmul.mubr.msk.f32.gmra.mrb[14].mxu0 %vm419_vm0, %v393_v18  ;;  %1024 = vst.msk [vmem:[#allocation2 + $0x1c8] sm:$0xff] %vm965_vm1, %v15001_v35  ;;  %1025 = vst.msk [vmem:[#allocation2 + $0x1d0] sm:$0xff] %vm965_vm1, %v15001_v35 }
  0x5f   : > { %7720 = vmatprep.mubr.msk.f32.mxu0 %vm419_vm0, %v394_v19  ;;  %1026 = vst.msk [vmem:[#allocation2 + $0x1d8] sm:$0xf] %vm968_vm2, %v15001_v35  ;;  %15695 = vst [vmem:[#allocation11_spill] sm:$0xff] %v8703_v38  ;;  %v1400_v19 = vadd.f32 %v1368_v6, %v1300_v5  ;;  %v8822_v6 = vld [vmem:[#allocation2 + $0x1a] sm:$0xff] }
  0x60   : > { %15696 = vst [vmem:[#allocation12_spill] sm:$0xff] %v8706_v39  ;;  %15697 = vst [vmem:[#allocation13_spill] sm:$0xff] %v8719_v42 }
  0x61   : > { %15698 = vst [vmem:[#allocation14_spill] sm:$0xff] %v8723_v43  ;;  %15699 = vst [vmem:[#allocation15_spill] sm:$0xff] %v8727_v44 }
  0x62   : > { %7721 = vmatmul.mubr.msk.f32.gmra.mrb[16].mxu0 %vm419_vm0, %v395_v20  ;;  %15700 = vst [vmem:[#allocation16_spill] sm:$0xff] %v8733_v47  ;;  %15701 = vst [vmem:[#allocation17_spill] sm:$0xff] %v8736_v48  ;;  %v1468_v20 = vmul.f32 %v8758_v63, %v1432_v10 }
  0x63   : > { %7723 = vmatprep.mubr.msk.f32.mxu0 %vm419_vm0, %v396_v21  ;;  %15702 = vst [vmem:[#allocation18_spill] sm:$0xff] %v8746_v53  ;;  %15703 = vst [vmem:[#allocation19_spill] sm:$0xff] %v8750_v54  ;;  %v1333_v21 = vld [vmem:[#allocation2 + $0xb] sm:$0xff] }
  0x64   : > { %15704 = vst [vmem:[#allocation20_spill] sm:$0xff] %v8758_v63  ;;  %15705 = vst [vmem:[#allocation21_spill] sm:$0xff] %v8767_v4 }
  0x65   : > { %15706 = vst [vmem:[#allocation22_spill] sm:$0xff] %v8772_v11  ;;  %15707 = vst [vmem:[#allocation23_spill] sm:$0xff] %v8783_v17 }
  0x66   : > { %7724 = vmatmul.mubr.msk.f32.gmra.mrb[18].mxu0 %vm419_vm0, %v397_v22 }
  0x67   : > { %7726 = vmatprep.mubr.msk.f32.mxu0 %vm419_vm0, %v398_v23 }
  0x6a   : > { %7727 = vmatmul.mubr.msk.f32.gmra.mrb[20].mxu0 %vm419_vm0, %v399_v24  ;;  %v8788_v24 = vld [vmem:[#allocation2 + $0x18] sm:$0xff] }
  0x6b   : > { %7729 = vmatprep.mubr.msk.f32.mxu0 %vm419_vm0, %v400_v25  ;;  %v8792_v25 = vrot.slane %v8711_v40, %v8772_v11 }
  0x6d   : > { %15708 = vst [vmem:[#allocation24_spill] sm:$0xff] %v8792_v25 }
  0x6e   : > { %7730 = vmatmul.mubr.msk.f32.gmra.mrb[22].mxu0 %vm419_vm0, %v401_v26 }
  0x6f   : > { %7732 = vmatprep.mubr.msk.f32.mxu0 %vm419_vm0, %v402_v27 }
  0x72   : > { %7733 = vmatmul.mubr.msk.f32.gmra.mrb[24].mxu0 %vm419_vm0, %v403_v28 }
  0x73   : > { %7735 = vmatprep.mubr.msk.f32.mxu0 %vm419_vm0, %v404_v29  ;;  %v1301_v29 = vadd.f32 %v1269_v16, %v1201_v15  ;;  %v8834_v16 = vld [vmem:[%s14992_s3 + $0x8] sm:$0xff] }
  0x76   : > { %7736 = vmatmul.mubr.msk.f32.gmra.mrb[26].mxu0 %vm419_vm0, %v405_v30  ;;  %v1369_v30 = vmul.f32 %v8750_v54, %v1333_v21  ;;  %v1634_v21 = vld [vmem:[#allocation2 + $0x21] sm:$0xff] }
  0x77   : > { %7738 = vmatprep.mubr.msk.f32.mxu0 %vm419_vm0, %v406_v31 }
  0x78   : > { %v1401_v55 = vadd.f32 %v1369_v30, %v1301_v29  ;;  %v8842_v30 = vrot.slane %v8834_v16, %v8719_v42 }
  0x7a   : > { %7739 = vmatmul.mubr.msk.f32.gmra.mrb[28].mxu0 %vm419_vm0, %v407_v32  ;;  %v1500_v32 = vadd.f32 %v1468_v20, %v1400_v19  ;;  %15711 = vst [vmem:[#allocation27_spill] sm:$0xff] %v8842_v30 }
  0x7b   : > { %7741 = vmatprep.mubr.msk.f32.mxu0 %vm419_vm0, %v408_v33  ;;  %v1569_v33 = vmul.f32 %v8783_v17, %v8788_v24 }
  0x7d   : > { %v1601_v58 = vadd.f32 %v1569_v33, %v1500_v32 }
  0x7e   : > { %7742 = vmatmul.mubr.msk.f32.gmra.mrb[30].mxu0 %vm419_vm0, %v409_v34  ;;  %v8805_v34 = vsub.s32 7, %v8700_v37 }
  0x80   : > { %15709 = vst [vmem:[#allocation25_spill] sm:$0xff] %v8805_v34  ;;  %v8819_v60 = vrot.slane %v8711_v40, %v8805_v34  ;;  %v1501_v40 = vadd.f32 %v1469_v56, %v1401_v55 }
  0x82   : > { %15710 = vst [vmem:[#allocation26_spill] sm:$0xff] %v8819_v60  ;;  %v1769_v20 = vmul.f32 %v8819_v60, %v8822_v6 }
 0x115   : > { %v7698_v59 = vpop.f32.mrb[0].mxu0 }
 0x116   : > { %v8754_v61 = vadd.f32 %v7698_v59, %v8743_v52  ;;  %v582_v62 = vpop.f32.mrb[1].mxu0  ;;  %v1669_v59 = vmul.f32 %v8792_v25, %v1633_v46 }
 0x117   : > { %v8761_v0 = vadd.f32 %v8743_v52, %v582_v62  ;;  %v1534_v62 = vld [vmem:[#allocation2 + $0x20] sm:$0xff] }
 0x118   : > { %v7451_v3 = vmul.f32 -1.442695, %v8754_v61  ;;  %v1701_v19 = vadd.f32 %v1669_v59, %v1601_v58 }
 0x119   : > { %v7450_v8 = vmul.f32 -1.442695, %v8761_v0  ;;  %v7701_v9 = vpop.f32.mrb[2].mxu0 }
 0x11a   : > { %7933 = vpow2.f32 %v7451_v3  ;;  %v8775_v12 = vadd.f32 %v7701_v9, %v8743_v52  ;;  %v592_v13 = vpop.f32.mrb[3].mxu0  ;;  %v1801_v56 = vadd.f32 %v1769_v20, %v1701_v19  ;;  %v1103_v20 = vmul.f32 %v1534_v62, %v8723_v43 }
 0x11b   : > { %7935 = vpow2.f32 %v7450_v8  ;;  %v8778_v14 = vadd.f32 %v8743_v52, %v592_v13  ;;  %v1570_v13 = vmul.f32 %v8783_v17, %v1534_v62 }
 0x11c   : > { %v7453_v18 = vmul.f32 -1.442695, %v8775_v12 }
 0x11d   : > { %v7452_v22 = vmul.f32 -1.442695, %v8778_v14  ;;  %v7704_v23 = vpop.f32.mrb[4].mxu0 }
 0x11e   : > { %7937 = vpow2.f32 %v7453_v18  ;;  %v8795_v26 = vadd.f32 %v7704_v23, %v8743_v52  ;;  %v602_v27 = vpop.f32.mrb[5].mxu0 }
 0x11f   : > { %7939 = vpow2.f32 %v7452_v22  ;;  %v8798_v28 = vadd.f32 %v8743_v52, %v602_v27 }
 0x120   : > { %v7455_v31 = vmul.f32 -1.442695, %v8795_v26 }
 0x121   : > { %v7454_v41 = vmul.f32 -1.442695, %v8798_v28  ;;  %v7707_v45 = vpop.f32.mrb[6].mxu0 }
 0x122   : > { %7941 = vpow2.f32 %v7455_v31  ;;  %v8809_v49 = vadd.f32 %v7707_v45, %v8743_v52  ;;  %v612_v50 = vpop.f32.mrb[7].mxu0  ;;  %v1670_v45 = vmul.f32 %v8792_v25, %v1634_v21 }
 0x123   : > { %7943 = vpow2.f32 %v7454_v41  ;;  %v8812_v51 = vadd.f32 %v8743_v52, %v612_v50  ;;  %v8852_v41 = vrot.slane %v8834_v16, %v8703_v38 }
 0x124   : > { %v7934_v57 = vpop.eup %7933  ;;  %v7457_v37 = vmul.f32 -1.442695, %v8809_v49 }
 0x125   : > { %v7936_v1 = vpop.eup %7935  ;;  %v838_v2 = vadd.f32 1.0, %v7934_v57  ;;  %v7456_v3 = vmul.f32 -1.442695, %v8812_v51  ;;  %v7710_v5 = vpop.f32.mrb[8].mxu0  ;;  %15712 = vst [vmem:[#allocation28_spill] sm:$0xff] %v8852_v41  ;;  %v8856_v57 = vld [vmem:[#allocation2 + $0x1b] sm:$0xff] }
 0x126   : > { %v837_v7 = vadd.f32 1.0, %v7936_v1  ;;  %7945 = vpow2.f32 %v7457_v37  ;;  %v8825_v8 = vadd.f32 %v7710_v5, %v8743_v52  ;;  %v622_v9 = vpop.f32.mrb[9].mxu0  ;;  %v1602_v37 = vadd.f32 %v1570_v13, %v1501_v40 }
 0x127   : > { %7947 = vrcp.f32 %v838_v2  ;;  %v8828_v10 = vadd.f32 %v8743_v52, %v622_v9  ;;  %v1102_v2 = vmul.f32 %v8788_v24, %v8723_v43  ;;  %v1869_v13 = vmul.f32 %v8852_v41, %v8856_v57 }
 0x128   : > { %v7938_v15 = vpop.eup %7937  ;;  %7949 = vrcp.f32 %v837_v7  ;;  %v7459_v18 = vmul.f32 -1.442695, %v8825_v8  ;;  %v8872_v24 = vrot.slane %v8834_v16, %v8706_v39 }
 0x129   : > { %v7940_v22 = vpop.eup %7939  ;;  %v840_v23 = vadd.f32 1.0, %v7938_v15  ;;  %7951 = vpow2.f32 %v7456_v3  ;;  %v7458_v27 = vmul.f32 -1.442695, %v8828_v10  ;;  %v7713_v29 = vpop.f32.mrb[10].mxu0  ;;  %v1170_v3 = vmul.f32 %v1633_v46, %v8727_v44 }
 0x12a   : > { %v839_v31 = vadd.f32 1.0, %v7940_v22  ;;  %7953 = vpow2.f32 %v7459_v18  ;;  %v8845_v32 = vadd.f32 %v7713_v29, %v8743_v52  ;;  %v632_v33 = vpop.f32.mrb[11].mxu0  ;;  %v1734_v18 = vld [vmem:[#allocation2 + $0x22] sm:$0xff]  ;;  %15713 = vst [vmem:[#allocation29_spill] sm:$0xff] %v8872_v24  ;;  %v1171_v22 = vmul.f32 %v1634_v21, %v8727_v44 }
 0x12b   : > { %7955 = vrcp.f32 %v840_v23  ;;  %v8848_v36 = vadd.f32 %v8743_v52, %v632_v33  ;;  %v1702_v33 = vadd.f32 %v1670_v45, %v1602_v37  ;;  %v1202_v62 = vadd.f32 %v1170_v3, %v1102_v2  ;;  %v1933_v45 = vld [vmem:[#allocation2 + $0x1c] sm:$0xff] }
 0x12c   : > { %v7942_v50 = vpop.eup %7941  ;;  %7957 = vrcp.f32 %v839_v31  ;;  %v7461_v55 = vmul.f32 -1.442695, %v8845_v32  ;;  %v1270_v37 = vmul.f32 %v8822_v6, %v8733_v47  ;;  %v1834_v3 = vld [vmem:[#allocation2 + $0x23] sm:$0xff]  ;;  %v1271_v6 = vmul.f32 %v1734_v18, %v8733_v47 }
 0x12d   : > { %v7944_v58 = vpop.eup %7943  ;;  %v842_v59 = vadd.f32 1.0, %v7942_v50  ;;  %7959 = vpow2.f32 %v7458_v27  ;;  %v7716_v1 = vpop.f32.mrb[12].mxu0  ;;  %v7460_v7 = vmul.f32 -1.442695, %v8848_v36  ;;  %v1770_v50 = vmul.f32 %v8819_v60, %v1734_v18 }
 0x12e   : > { %v841_v5 = vadd.f32 1.0, %v7944_v58  ;;  %7961 = vpow2.f32 %v7461_v55  ;;  %v8863_v9 = vadd.f32 %v7716_v1, %v8743_v52  ;;  %v642_v15 = vpop.f32.mrb[13].mxu0 }
 0x12f   : > { %7963 = vrcp.f32 %v842_v59  ;;  %v8866_v40 = vadd.f32 %v8743_v52, %v642_v15 }
 0x130   : > { %v7946_v46 = vpop.eup %7945  ;;  %7965 = vrcp.f32 %v841_v5  ;;  %v7463_v19 = vmul.f32 -1.442695, %v8863_v9 }
 0x131   : > { %v7948_v23 = vpop.eup %7947  ;;  %v844_v27 = vadd.f32 1.0, %v7946_v46  ;;  %v7462_v29 = vmul.f32 -1.442695, %v8866_v40  ;;  %v7719_v31 = vpop.f32.mrb[14].mxu0  ;;  %7967 = vpow2.f32 %v7460_v7  ;;  %v1203_v46 = vadd.f32 %v1171_v22, %v1103_v20 }
 0x132   : > { %v7950_v55 = vpop.eup %7949  ;;  %v8880_v58 = vmul.f32 %v7948_v23, %v8754_v61  ;;  %v8883_v59 = vadd.f32 %v7719_v31, %v8743_v52  ;;  %v652_v1 = vpop.f32.mrb[15].mxu0  ;;  %7969 = vpow2.f32 %v7463_v19  ;;  %v1969_v20 = vmul.f32 %v8872_v24, %v1933_v45 }
 0x133   : > { %v7952_v5 = vpop.eup %7951  ;;  %v8886_v21 = vmul.f32 %v7950_v55, %v8761_v0  ;;  %v8889_v15 = vadd.f32 %v8743_v52, %v652_v1  ;;  %7971 = vrcp.f32 %v844_v27 }
 0x134   : > { %15714 = vst [vmem:[#allocation30_spill] sm:$0xff] %v8880_v58  ;;  %v7954_v61 = vpop.eup %7953  ;;  %1029 = vst.msk [vmem:[#allocation2 + $0x3a] sm:$0xff] %vm965_vm1, %v8880_v58  ;;  %v843_v7 = vadd.f32 1.0, %v7952_v5  ;;  %v7465_v2 = vmul.f32 -1.442695, %v8883_v59  ;;  %7973 = vpow2.f32 %v7462_v29  ;;  %v1901_v5 = vadd.f32 %v1869_v13, %v1801_v56 }
 0x135   : > { %15715 = vst [vmem:[#allocation31_spill] sm:$0xff] %v8886_v21  ;;  %v7956_v0 = vpop.eup %7955  ;;  %1028 = vst.msk [vmem:[#allocation2 + $0x32] sm:$0xff] %vm965_vm1, %v8886_v21  ;;  %v846_v19 = vadd.f32 1.0, %v7954_v61  ;;  %v7464_v23 = vmul.f32 -1.442695, %v8889_v15  ;;  %v7722_v31 = vpop.f32.mrb[16].mxu0  ;;  %v1802_v29 = vadd.f32 %v1770_v50, %v1702_v33  ;;  %v1870_v61 = vmul.f32 %v8852_v41, %v1834_v3 }
 0x136   : > { %v7958_v55 = vpop.eup %7957  ;;  %v8901_v1 = vmul.f32 %v7956_v0, %v8775_v12  ;;  %7975 = vrcp.f32 %v843_v7  ;;  %v662_v27 = vpop.f32.mrb[17].mxu0  ;;  %v1934_v12 = vld [vmem:[#allocation2 + $0x24] sm:$0xff]  ;;  %v1302_v7 = vadd.f32 %v1270_v37, %v1202_v62  ;;  %v1370_v56 = vmul.f32 %v8856_v57, %v8750_v54 }
 0x137   : > { %v7960_v22 = vpop.eup %7959  ;;  %v8905_v35 = vmul.f32 %v7958_v55, %v8778_v14  ;;  %7977 = vrcp.f32 %v846_v19  ;;  %v1303_v50 = vadd.f32 %v1271_v6, %v1203_v46  ;;  %v1371_v0 = vmul.f32 %v1834_v3, %v8750_v54 }
 0x138   : > { %15716 = vst [vmem:[#allocation32_spill] sm:$0xff] %v8901_v1  ;;  %v7962_v58 = vpop.eup %7961  ;;  %1031 = vst.msk [vmem:[#allocation2 + $0x52] sm:$0xff] %vm965_vm1, %v8901_v1  ;;  %v845_v18 = vadd.f32 1.0, %v7960_v22  ;;  %7979 = vpow2.f32 %v7465_v2  ;;  %v8917_v55 = vrot.slane %v8834_v16, %v8736_v48  ;;  %v8924_v37 = vrot.slane %v8834_v16, %v8746_v53  ;;  %v1062_v2 = vld [vmem:[%s14992_s3 + $0x10] sm:$0xff] }
 0x139   : > { %15717 = vst [vmem:[#allocation33_spill] sm:$0xff] %v8905_v35  ;;  %v7964_v13 = vpop.eup %7963  ;;  %1030 = vst.msk [vmem:[#allocation2 + $0x4a] sm:$0xff] %vm965_vm1, %v8905_v35  ;;  %v848_v14 = vadd.f32 1.0, %v7962_v58  ;;  %7981 = vpow2.f32 %v7464_v23  ;;  %v7725_v33 = vpop.f32.mrb[18].mxu0  ;;  %v1902_v3 = vadd.f32 %v1870_v61, %v1802_v29  ;;  %v1970_v46 = vmul.f32 %v8872_v24, %v1934_v12 }
 0x13a   : > { %v7966_v19 = vpop.eup %7965  ;;  %15718 = vst [vmem:[#allocation34_spill] sm:$0xff] %v8917_v55  ;;  %v8920_v62 = vmul.f32 %v7964_v13, %v8795_v26  ;;  %7983 = vrcp.f32 %v845_v18  ;;  %v672_v57 = vpop.f32.mrb[19].mxu0  ;;  %v8937_v26 = vrot.slane %v8834_v16, %v8767_v4  ;;  %v1402_v6 = vadd.f32 %v1370_v56, %v1302_v7 }
 0x13b   : > { %v8927_v58 = vmul.f32 %v7966_v19, %v8798_v28  ;;  %7985 = vrcp.f32 %v848_v14  ;;  %v7968_v23 = vpop.eup %7967  ;;  %v8941_v28 = vrot.slane %v8834_v16, %v8772_v11  ;;  %v1470_v22 = vmul.f32 %v1933_v45, %v8758_v63  ;;  %v1337_v35 = vld [vmem:[#allocation2 + $0x3b] sm:$0xff] }
 0x13c   : > { %15719 = vst [vmem:[#allocation35_spill] sm:$0xff] %v8920_v62  ;;  %1033 = vst.msk [vmem:[#allocation2 + $0x6a] sm:$0xff] %vm965_vm1, %v8920_v62  ;;  %v8944_v18 = vpop.eup %7969  ;;  %v8949_v29 = vadd.f32 %v7722_v31, %v8743_v52  ;;  %v8953_v13 = vadd.f32 %v1969_v20, %v1901_v5  ;;  %v1403_v14 = vadd.f32 %v1371_v0, %v1303_v50  ;;  %v8956_v1 = vld [vmem:[#allocation2 + $0x30] sm:$0xff]  ;;  %v1437_v21 = vld [vmem:[#allocation2 + $0x3c] sm:$0xff] }
 0x13d   : > { %15720 = vst [vmem:[#allocation36_spill] sm:$0xff] %v8927_v58  ;;  %15721 = vst [vmem:[#allocation37_spill] sm:$0xff] %v8937_v26  ;;  %v8951_v61 = vpop.f32.mrb[20].mxu0  ;;  %v1471_v19 = vmul.f32 %v1934_v12, %v8758_v63  ;;  %v7972_v62 = vpop.eup %7971  ;;  %v8958_v7 = vld [vmem:[#allocation2 + $0x31] sm:$0xff]  ;;  %v8961_v45 = vadd.f32 %v8743_v52, %v662_v27  ;;  %v8966_v31 = vrot.slane %v1062_v2, %v8706_v39  ;;  %v8974_v12 = vld [vmem:[#allocation2 + $0x3a] sm:$0xff] }
 0x13e   : > { %15722 = vst [vmem:[#allocation38_spill] sm:$0xff] %v8941_v28  ;;  %1032 = vst.msk [vmem:[#allocation2 + $0x62] sm:$0xff] %vm965_vm1, %v8927_v58  ;;  %v8963_v56 = vpop.f32.mrb[21].mxu0  ;;  %v8969_v58 = vrot.slane %v1062_v2, %v8719_v42  ;;  %v8972_v5 = vrot.slane %v1062_v2, %v8736_v48  ;;  %v7974_v20 = vpop.eup %7973  ;;  %v8978_v50 = vrot.slane %v8834_v16, %v8805_v34  ;;  %v1069_v48 = vld [vmem:[#allocation2 + $0x38] sm:$0xff] }
 0x13f   : > { %15723 = vst [vmem:[#allocation39_spill] sm:$0xff] %v8949_v29  ;;  %15724 = vst [vmem:[#allocation40_spill] sm:$0xff] %v8961_v45  ;;  %v8981_v27 = vrot.slane %v1062_v2, %v8703_v38  ;;  %v8984_v0 = vrot.slane %v1062_v2, %v8772_v11  ;;  %v8986_v39 = vadd.f32 %v1970_v46, %v1902_v3  ;;  %v1137_v46 = vld [vmem:[#allocation2 + $0x39] sm:$0xff] }
 0x140   : > { %15725 = vst [vmem:[#allocation41_spill] sm:$0xff] %v8966_v31  ;;  %15726 = vst [vmem:[#allocation42_spill] sm:$0xff] %v8969_v58  ;;  %v7976_v42 = vpop.eup %7975  ;;  %v8989_v24 = vrot.slane %v1062_v2, %v8746_v53  ;;  %v8992_v41 = vrot.slane %v1062_v2, %v8767_v4  ;;  %v8995_v16 = vrot.slane %v1062_v2, %v8805_v34  ;;  %v9005_v53 = vld [vmem:[#allocation2 + $0x33] sm:$0xff]  ;;  %v9008_v4 = vmul.f32 -1.442695, %v8949_v29 }
 0x141   : > { %15727 = vst [vmem:[#allocation43_spill] sm:$0xff] %v8972_v5  ;;  %15728 = vst [vmem:[#allocation44_spill] sm:$0xff] %v8974_v12  ;;  %v8997_v38 = vadd.f32 %v1470_v22, %v1402_v6  ;;  %v7978_v60 = vpop.eup %7977  ;;  %v1104_v3 = vmul.f32 %v8723_v43, %v8956_v1  ;;  %v1172_v11 = vmul.f32 %v8727_v44, %v8958_v7  ;;  %v9016_v34 = vld [vmem:[#allocation2 + $0x34] sm:$0xff] }
 0x142   : > { %15729 = vst [vmem:[#allocation45_spill] sm:$0xff] %v8981_v27  ;;  %15730 = vst [vmem:[#allocation46_spill] sm:$0xff] %v8984_v0  ;;  %v9003_v0 = vld [vmem:[#allocation2 + $0x32] sm:$0xff]  ;;  %v9010_v2 = vadd.f32 %v1471_v19, %v1403_v14  ;;  %v7980_v6 = vpop.eup %7979  ;;  %v9014_v22 = vmul.f32 %v8733_v47, %v8974_v12  ;;  %v9028_v14 = vmul.f32 %v8750_v54, %v1337_v35  ;;  %v847_v12 = vadd.f32 1.0, %v7968_v23 }
 0x143   : > { %15731 = vst [vmem:[#allocation47_spill] sm:$0xff] %v8986_v39  ;;  %15732 = vst [vmem:[#allocation48_spill] sm:$0xff] %v8989_v24  ;;  %v9025_v24 = vadd.f32 %v8743_v52, %v672_v57  ;;  %v7982_v5 = vpop.eup %7981  ;;  %v9031_v19 = vmul.f32 %v8758_v63, %v1437_v21  ;;  %v9039_v57 = vmul.f32 %v8750_v54, %v9005_v53 }
 0x144   : > { %15733 = vst [vmem:[#allocation49_spill] sm:$0xff] %v8992_v41  ;;  %15734 = vst [vmem:[#allocation50_spill] sm:$0xff] %v8995_v16  ;;  %v7731_v41 = vpop.f32.mrb[22].mxu0  ;;  %v9022_v16 = vadd.f32 %v7725_v33, %v8743_v52  ;;  %v7984_v58 = vpop.eup %7983  ;;  %v1272_v33 = vmul.f32 %v8733_v47, %v9003_v0  ;;  %v9043_v35 = vmul.f32 %v8783_v17, %v8956_v1  ;;  %7987 = vrcp.f32 %v847_v12 }
 0x145   : > { %15735 = vst [vmem:[#allocation51_spill] sm:$0xff] %v8997_v38  ;;  %15736 = vst [vmem:[#allocation52_spill] sm:$0xff] %v9010_v2  ;;  %v9019_v38 = vmul.f32 -1.442695, %v8961_v45  ;;  %v692_v29 = vpop.f32.mrb[23].mxu0  ;;  %v1105_v2 = vmul.f32 %v8723_v43, %v1069_v48  ;;  %v1173_v45 = vmul.f32 %v8727_v44, %v1137_v46  ;;  %v1204_v21 = vadd.f32 %v1172_v11, %v1104_v3 }
 0x146   : > { %15737 = vst [vmem:[#allocation53_spill] sm:$0xff] %v9028_v14  ;;  %15738 = vst [vmem:[#allocation54_spill] sm:$0xff] %v9031_v19  ;;  %v7986_v14 = vpop.eup %7985  ;;  %v9047_v19 = vmul.f32 %v8758_v63, %v9016_v34  ;;  %v9050_v23 = vmul.f32 %v8783_v17, %v1069_v48  ;;  %v9053_v44 = vmul.f32 %v7972_v62, %v8809_v49  ;;  %v7734_v39 = vpop.f32.mrb[24].mxu0  ;;  %v9068_v17 = vld [vmem:[#allocation2 + $0x52] sm:$0xff] }
 0x147   : > { %15739 = vst [vmem:[#allocation55_spill] sm:$0xff] %v9039_v57  ;;  %v9057_v57 = vmul.f32 %v8792_v25, %v8958_v7  ;;  %v9060_v31 = vmul.f32 %v8792_v25, %v1137_v46  ;;  %v9063_v11 = vmul.f32 %v7976_v42, %v8812_v51  ;;  %v9066_v3 = vmul.f32 %v7978_v60, %v8825_v8 }
 0x148   : > { %15740 = vst [vmem:[#allocation56_spill] sm:$0xff] %v9047_v19  ;;  %15741 = vst [vmem:[#allocation57_spill] sm:$0xff] %v9053_v44  ;;  %v702_v19 = vpop.f32.mrb[25].mxu0  ;;  %v9073_v49 = vmul.f32 %v7984_v58, %v8828_v10  ;;  %v9076_v62 = vmul.f32 %v7986_v14, %v8845_v32  ;;  %v850_v25 = vadd.f32 1.0, %v8944_v18  ;;  %v9079_v42 = vadd.f32 %v1173_v45, %v1105_v2  ;;  %v9091_v58 = vld [vmem:[#allocation2 + $0x53] sm:$0xff] }
 0x149   : > { %15742 = vst [vmem:[#allocation58_spill] sm:$0xff] %v9060_v31  ;;  %15743 = vst [vmem:[#allocation59_spill] sm:$0xff] %v9063_v11  ;;  %v849_v51 = vadd.f32 1.0, %v7974_v20  ;;  %v852_v60 = vadd.f32 1.0, %v7980_v6  ;;  %v851_v8 = vadd.f32 1.0, %v7982_v5  ;;  %v9086_v10 = vmul.f32 %v8842_v30, %v1069_v48  ;;  %v7737_v45 = vpop.f32.mrb[26].mxu0 }
 0x14a   : > { %15744 = vst [vmem:[#allocation60_spill] sm:$0xff] %v9066_v3  ;;  %15745 = vst [vmem:[#allocation61_spill] sm:$0xff] %v9068_v17  ;;  %v9089_v32 = vmul.f32 %v8917_v55, %v1137_v46  ;;  %7989 = vrcp.f32 %v850_v25  ;;  %v9099_v18 = vadd.f32 %v8951_v61, %v8743_v52  ;;  %v9103_v48 = vmul.f32 %v8733_v47, %v9068_v17  ;;  %v9105_v5 = vld [vmem:[#allocation2 + $0x54] sm:$0xff]  ;;  %v712_v25 = vpop.f32.mrb[27].mxu0 }
 0x14b   : > { %1035 = vst.msk [vmem:[#allocation2 + $0x82] sm:$0xff] %vm965_vm1, %v9053_v44  ;;  %15746 = vst [vmem:[#allocation62_spill] sm:$0xff] %v9073_v49  ;;  %7991 = vrcp.f32 %v849_v51  ;;  %v9109_v20 = vadd.f32 %v8743_v52, %v8963_v56  ;;  %v9112_v12 = vadd.f32 %v7731_v41, %v8743_v52  ;;  %v9114_v46 = vadd.f32 %v1272_v33, %v1204_v21 }
 0x14c   : > { %15747 = vst [vmem:[#allocation63_spill] sm:$0xff] %v9076_v62  ;;  %1034 = vst.msk [vmem:[#allocation2 + $0x7a] sm:$0xff] %vm965_vm1, %v9063_v11  ;;  %7993 = vrcp.f32 %v852_v60  ;;  %v7469_v61 = vmul.f32 -1.442695, %v9022_v16  ;;  %v9118_v2 = vadd.f32 %v8743_v52, %v692_v29  ;;  %v9122_v6 = vmul.f32 %v8750_v54, %v9091_v58 }
 0x14d   : > { %1037 = vst.msk [vmem:[#allocation2 + $0x9a] sm:$0xff] %vm965_vm1, %v9066_v3  ;;  %1036 = vst.msk [vmem:[#allocation2 + $0x92] sm:$0xff] %vm965_vm1, %v9073_v49  ;;  %7995 = vrcp.f32 %v851_v8  ;;  %v7468_v56 = vmul.f32 -1.442695, %v9025_v24  ;;  %v9126_v14 = vadd.f32 %v7734_v39, %v8743_v52  ;;  %v9130_v41 = vmul.f32 %v8758_v63, %v9105_v5  ;;  %v7740_v21 = vpop.f32.mrb[28].mxu0 }
 0x14e   : > { %1039 = vst.msk [vmem:[#allocation2 + $0xb2] sm:$0xff] %vm965_vm1, %v9076_v62  ;;  %15748 = vst [vmem:[#allocation64_spill] sm:$0xff] %v9103_v48  ;;  %7997 = vpow2.f32 %v9008_v4  ;;  %v7471_v33 = vmul.f32 -1.442695, %v9099_v18  ;;  %v9135_v29 = vadd.f32 %v8743_v52, %v702_v19  ;;  %v7470_v51 = vmul.f32 -1.442695, %v9109_v20 }
 0x14f   : > { %15749 = vst [vmem:[#allocation65_spill] sm:$0xff] %v9122_v6  ;;  %15750 = vst [vmem:[#allocation66_spill] sm:$0xff] %v9130_v41  ;;  %7999 = vpow2.f32 %v9019_v38  ;;  %v7473_v60 = vmul.f32 -1.442695, %v9112_v12  ;;  %v9141_v39 = vadd.f32 %v7737_v45, %v8743_v52  ;;  %v722_v8 = vpop.f32.mrb[29].mxu0  ;;  %v2069_v19 = vmul.f32 %v8842_v30, %v8956_v1  ;;  %v7988_v45 = vpop.eup %7987 }
 0x150   : > { %8001 = vpow2.f32 %v7469_v61  ;;  %v7472_v62 = vmul.f32 -1.442695, %v9118_v2  ;;  %v9145_v4 = vadd.f32 %v8743_v52, %v722_v8  ;;  %v7475_v38 = vmul.f32 -1.442695, %v9126_v14 }
 0x151   : > { %8003 = vpow2.f32 %v7468_v56  ;;  %v9151_v3 = vadd.f32 %v8743_v52, %v712_v25  ;;  %v9154_v49 = vadd.f32 %v7740_v21, %v8743_v52  ;;  %v7474_v61 = vmul.f32 -1.442695, %v9135_v29  ;;  %v7743_v44 = vpop.f32.mrb[30].mxu0 }
 0x152   : > { %15751 = vst [vmem:[#allocation67_spill] sm:$0xff] %v9145_v4  ;;  %8005 = vpow2.f32 %v7471_v33  ;;  %v2101_v8 = vadd.f32 %v2069_v19, %v8953_v13  ;;  %v2169_v11 = vmul.f32 %v8917_v55, %v8958_v7  ;;  %v9161_v1 = vmul.f32 %v7988_v45, %v8848_v36  ;;  %v732_v21 = vpop.f32.mrb[31].mxu0  ;;  %v9167_v33 = vld [vmem:[#allocation2 + $0x48] sm:$0xff]  ;;  %v9181_v45 = vld [vmem:[#allocation2 + $0x50] sm:$0xff] }
 0x153   : > { %8007 = vpow2.f32 %v7470_v51  ;;  %v7477_v25 = vmul.f32 -1.442695, %v9141_v39  ;;  %v9165_v56 = vadd.f32 %v7743_v44, %v8743_v52  ;;  %v9170_v6 = vadd.f32 %v8743_v52, %v732_v21 }
 0x154   : > { %15752 = vst [vmem:[#allocation68_spill] sm:$0xff] %v9161_v1  ;;  %v7990_v41 = vpop.eup %7989  ;;  %8009 = vpow2.f32 %v7473_v60  ;;  %v2201_v13 = vadd.f32 %v2169_v11, %v2101_v8  ;;  %v2269_v7 = vmul.f32 %v8924_v37, %v9003_v0  ;;  %1038 = vst.msk [vmem:[#allocation2 + $0xaa] sm:$0xff] %vm965_vm1, %v9161_v1  ;;  %v7476_v44 = vmul.f32 -1.442695, %v9151_v3 }
 0x155   : > { %15753 = vst [vmem:[#allocation69_spill] sm:$0xff] %v9165_v56  ;;  %15754 = vst [vmem:[#allocation70_spill] sm:$0xff] %v9170_v6  ;;  %v7992_v36 = vpop.eup %7991  ;;  %v9177_v51 = vmul.f32 %v7990_v41, %v8863_v9  ;;  %8011 = vpow2.f32 %v7472_v62  ;;  %v7479_v19 = vmul.f32 -1.442695, %v9154_v49  ;;  %v2369_v8 = vmul.f32 %v8937_v26, %v9005_v53 }
 0x156   : > { %v7994_v60 = vpop.eup %7993  ;;  %v9184_v52 = vmul.f32 %v7992_v36, %v8866_v40  ;;  %8013 = vpow2.f32 %v7475_v38  ;;  %v2301_v11 = vadd.f32 %v2269_v7, %v2201_v13  ;;  %v9190_v9 = vadd.f32 %v9014_v22, %v9079_v42  ;;  %v9219_v36 = vld [vmem:[#allocation2 + $0x4a] sm:$0xff] }
 0x157   : > { %15755 = vst [vmem:[#allocation71_spill] sm:$0xff] %v9177_v51  ;;  %v7996_v21 = vpop.eup %7995  ;;  %v9194_v62 = vmul.f32 %v8723_v43, %v9167_v33  ;;  %1041 = vst.msk [vmem:[#allocation2 + $0xca] sm:$0xff] %vm965_vm1, %v9177_v51  ;;  %v9199_v40 = vmul.f32 %v7994_v60, %v8883_v59  ;;  %8015 = vpow2.f32 %v7474_v61  ;;  %v2469_v42 = vmul.f32 %v8941_v28, %v9016_v34  ;;  %v9212_v59 = vld [vmem:[#allocation2 + $0x49] sm:$0xff] }
 0x158   : > { %15756 = vst [vmem:[#allocation72_spill] sm:$0xff] %v9184_v52  ;;  %15757 = vst [vmem:[#allocation73_spill] sm:$0xff] %v9190_v9  ;;  %v7998_v41 = vpop.eup %7997  ;;  %v9204_v38 = vmul.f32 %v7996_v21, %v8889_v15  ;;  %8017 = vpow2.f32 %v7477_v25  ;;  %v2401_v22 = vadd.f32 %v2369_v8, %v2301_v11  ;;  %v9210_v7 = vmul.f32 %v8723_v43, %v9181_v45  ;;  %v9225_v51 = vld [vmem:[#allocation2 + $0x4b] sm:$0xff]  ;;  %v15764_v43 = vld [vmem:[#allocation47_spill] sm:$0xff] }
 0x159   : > { %15758 = vst [vmem:[#allocation74_spill] sm:$0xff] %v9199_v40  ;;  %1040 = vst.msk [vmem:[#allocation2 + $0xc2] sm:$0xff] %vm965_vm1, %v9184_v52  ;;  %v8000_v13 = vpop.eup %7999  ;;  %v854_v61 = vadd.f32 1.0, %v7998_v41  ;;  %8019 = vpow2.f32 %v7476_v44  ;;  %v9217_v15 = vmul.f32 -1.442695, %v9145_v4  ;;  %v2570_v8 = vmul.f32 %v8978_v50, %v9167_v33 }
 0x15a   : > { %15759 = vst [vmem:[#allocation75_spill] sm:$0xff] %v9204_v38  ;;  %15760 = vst [vmem:[#allocation76_spill] sm:$0xff] %v9210_v7  ;;  %v8002_v25 = vpop.eup %8001  ;;  %v853_v60 = vadd.f32 1.0, %v8000_v13  ;;  %8021 = vpow2.f32 %v7479_v19  ;;  %v2501_v11 = vadd.f32 %v2469_v42, %v2401_v22  ;;  %v9228_v41 = vmul.f32 -1.442695, %v9165_v56  ;;  %v9235_v42 = vld [vmem:[#allocation2 + $0x4c] sm:$0xff] }
 0x15b   : > { %1043 = vst.msk [vmem:[#allocation2 + $0xe2] sm:$0xff] %vm965_vm1, %v9199_v40  ;;  %1042 = vst.msk [vmem:[#allocation2 + $0xda] sm:$0xff] %vm965_vm1, %v9204_v38  ;;  %v8004_v21 = vpop.eup %8003  ;;  %8023 = vrcp.f32 %v854_v61  ;;  %v856_v44 = vadd.f32 1.0, %v8002_v25  ;;  %v9231_v40 = vmul.f32 -1.442695, %v9170_v6  ;;  %v2670_v19 = vmul.f32 %v8981_v27, %v9212_v59  ;;  %v15763_v61 = vld [vmem:[#allocation41_spill] sm:$0xff] }
 0x15c   : > { %15761 = vst [vmem:[#allocation77_spill] sm:$0xff] %v9225_v51  ;;  %v8006_v52 = vpop.eup %8005  ;;  %8025 = vrcp.f32 %v853_v60  ;;  %v855_v38 = vadd.f32 1.0, %v8004_v21  ;;  %v2602_v13 = vadd.f32 %v2570_v8, %v2501_v11  ;;  %15762 = vst [vmem:[#allocation78_spill] sm:$0xff] %v9235_v42  ;;  %v2770_v25 = vmul.f32 %v15763_v61, %v9219_v36  ;;  %v15765_v11 = vld [vmem:[#allocation42_spill] sm:$0xff]  ;;  %v15768_v7 = vld [vmem:[#allocation44_spill] sm:$0xff] }
 0x15d   : > { %v8008_v22 = vpop.eup %8007  ;;  %8027 = vrcp.f32 %v856_v44  ;;  %v858_v1 = vadd.f32 1.0, %v8006_v52  ;;  %v2102_v9 = vadd.f32 %v9086_v10, %v15764_v43  ;;  %v2870_v8 = vmul.f32 %v15765_v11, %v9225_v51  ;;  %v9243_v21 = vld [vmem:[#allocation2 + $0x3b] sm:$0xff] }
 0x15e   : > { %v8010_v48 = vpop.eup %8009  ;;  %8029 = vrcp.f32 %v855_v38  ;;  %v857_v6 = vadd.f32 1.0, %v8008_v22  ;;  %v2702_v60 = vadd.f32 %v2670_v19, %v2602_v13  ;;  %15766 = vst [vmem:[#allocation41_spill] sm:$0xff] %v9243_v21  ;;  %v9245_v44 = vld [vmem:[#allocation2 + $0x60] sm:$0xff]  ;;  %v2270_v31 = vmul.f32 %v8924_v37, %v15768_v7 }
 0x15f   : > { %v8012_v56 = vpop.eup %8011  ;;  %8031 = vrcp.f32 %v858_v1  ;;  %v860_v4 = vadd.f32 1.0, %v8010_v48  ;;  %15767 = vst [vmem:[#allocation47_spill] sm:$0xff] %v9245_v44  ;;  %v2202_v52 = vadd.f32 %v9089_v32, %v2102_v9  ;;  %v15769_v13 = vld [vmem:[#allocation43_spill] sm:$0xff]  ;;  %v2370_v32 = vmul.f32 %v8937_v26, %v9243_v21 }
 0x160   : > { %v8014_v43 = vpop.eup %8013  ;;  %8033 = vrcp.f32 %v857_v6  ;;  %v859_v10 = vadd.f32 1.0, %v8012_v56  ;;  %v2802_v38 = vadd.f32 %v2770_v25, %v2702_v60  ;;  %v2970_v19 = vmul.f32 %v15769_v13, %v9235_v42  ;;  %v9252_v22 = vld [vmem:[#allocation2 + $0x3c] sm:$0xff]  ;;  %v15772_v56 = vld [vmem:[#allocation48_spill] sm:$0xff] }
 0x161   : > { %15770 = vst [vmem:[#allocation43_spill] sm:$0xff] %v9252_v22  ;;  %v8016_v63 = vpop.eup %8015  ;;  %8035 = vrcp.f32 %v860_v4  ;;  %v862_v1 = vadd.f32 1.0, %v8014_v43  ;;  %v9254_v48 = vld [vmem:[#allocation2 + $0x61] sm:$0xff]  ;;  %v2302_v54 = vadd.f32 %v2270_v31, %v2202_v52  ;;  %v3071_v25 = vmul.f32 %v15772_v56, %v9245_v44  ;;  %v9264_v52 = vld [vmem:[#allocation2 + $0x51] sm:$0xff] }
 0x162   : > { %15771 = vst [vmem:[#allocation79_spill] sm:$0xff] %v9254_v48  ;;  %v8018_v9 = vpop.eup %8017  ;;  %8037 = vrcp.f32 %v859_v10  ;;  %v861_v7 = vadd.f32 1.0, %v8016_v63  ;;  %v2902_v6 = vadd.f32 %v2870_v8, %v2802_v38  ;;  %v9260_v51 = vld [vmem:[#allocation2 + $0x62] sm:$0xff]  ;;  %v2470_v43 = vmul.f32 %v8941_v28, %v9252_v22  ;;  %v15773_v63 = vld [vmem:[#allocation49_spill] sm:$0xff] }
 0x163   : > { %v8020_v60 = vpop.eup %8019  ;;  %8039 = vrcp.f32 %v862_v1  ;;  %v864_v42 = vadd.f32 1.0, %v8018_v9  ;;  %v2402_v4 = vadd.f32 %v2370_v32, %v2302_v54  ;;  %v3171_v8 = vmul.f32 %v15773_v63, %v9254_v48  ;;  %v9268_v1 = vld [vmem:[#allocation2 + $0x63] sm:$0xff] }
 0x164   : > { %v8022_v31 = vpop.eup %8021  ;;  %8041 = vrcp.f32 %v861_v7  ;;  %v863_v21 = vadd.f32 1.0, %v8020_v60  ;;  %v3002_v10 = vadd.f32 %v2970_v19, %v2902_v6  ;;  %15774 = vst [vmem:[#allocation48_spill] sm:$0xff] %v9268_v1  ;;  %v2571_v54 = vmul.f32 %v8978_v50, %v9181_v45  ;;  %v15775_v22 = vld [vmem:[#allocation39_spill] sm:$0xff]  ;;  %v15777_v19 = vld [vmem:[#allocation46_spill] sm:$0xff]  ;;  %v15778_v48 = vld [vmem:[#allocation40_spill] sm:$0xff] }
 0x165   : > { %v8024_v38 = vpop.eup %8023  ;;  %8043 = vrcp.f32 %v864_v42  ;;  %v866_v44 = vadd.f32 1.0, %v8022_v31  ;;  %v2502_v9 = vadd.f32 %v2470_v43, %v2402_v4  ;;  %v3271_v6 = vmul.f32 %v15777_v19, %v9260_v51  ;;  %v9295_v31 = vld [vmem:[#allocation2 + $0x64] sm:$0xff] }
 0x166   : > { %v8026_v32 = vpop.eup %8025  ;;  %v9273_v28 = vmul.f32 %v8024_v38, %v15775_v22  ;;  %8045 = vrcp.f32 %v863_v21  ;;  %v3103_v7 = vadd.f32 %v3071_v25, %v3002_v10  ;;  %v2671_v4 = vmul.f32 %v8981_v27, %v9264_v52  ;;  %v9291_v21 = vld [vmem:[%s14992_s3 + $0x18] ss:$0 sm:$0xff] }
 0x167   : > { %v8028_v60 = vpop.eup %8027  ;;  %v9278_v26 = vmul.f32 %v8026_v32, %v15778_v48  ;;  %8047 = vrcp.f32 %v866_v44  ;;  %v2603_v42 = vadd.f32 %v2571_v54, %v2502_v9  ;;  %15781 = vst [vmem:[#allocation40_spill] sm:$0xff] %v9291_v21  ;;  %v15782_v44 = vld [vmem:[#allocation50_spill] sm:$0xff]  ;;  %v2771_v38 = vmul.f32 %v15763_v61, %v9068_v17  ;;  %v15786_v32 = vld [vmem:[#allocation51_spill] sm:$0xff] }
 0x168   : > { %15776 = vst [vmem:[#allocation49_spill] sm:$0xff] %v9273_v28  ;;  %v8030_v43 = vpop.eup %8029  ;;  %1045 = vst.msk [vmem:[#allocation2 + $0xfa] sm:$0xff] %vm965_vm1, %v9273_v28  ;;  %v9285_v22 = vmul.f32 %v8028_v60, %v9022_v16  ;;  %8049 = vpow2.f32 %v9217_v15  ;;  %v3203_v48 = vadd.f32 %v3171_v8, %v3103_v7  ;;  %v3371_v25 = vmul.f32 %v15782_v44, %v9268_v1 }
 0x169   : > { %15779 = vst [vmem:[#allocation39_spill] sm:$0xff] %v9278_v26  ;;  %15783 = vst [vmem:[#allocation50_spill] sm:$0xff] %v9295_v31  ;;  %v8032_v10 = vpop.eup %8031  ;;  %v9300_v16 = vmul.f32 %v8030_v43, %v9025_v24  ;;  %8051 = vpow2.f32 %v9228_v41  ;;  %v2703_v15 = vadd.f32 %v2671_v4, %v2603_v42  ;;  %v1603_v24 = vadd.f32 %v9043_v35, %v15786_v32  ;;  %v15789_v43 = vld [vmem:[#allocation26_spill] sm:$0xff]  ;;  %v9351_v32 = vld [vmem:[#allocation2 + $0x69] sm:$0xff] }
 0x16a   : > { %15780 = vst [vmem:[#allocation46_spill] sm:$0xff] %v9285_v22  ;;  %1044 = vst.msk [vmem:[#allocation2 + $0xf2] sm:$0xff] %vm965_vm1, %v9278_v26  ;;  %v8034_v9 = vpop.eup %8033  ;;  %v9308_v8 = vmul.f32 %v8032_v10, %v9099_v18  ;;  %8053 = vpow2.f32 %v9231_v40  ;;  %v3303_v54 = vadd.f32 %v3271_v6, %v3203_v48  ;;  %v3471_v60 = vmul.f32 %v9291_v21, %v9295_v31  ;;  %v9327_v6 = vld [vmem:[#allocation2 + $0x68] sm:$0xff] }
 0x16b   : > { %15784 = vst [vmem:[#allocation80_spill] sm:$0xff] %v9300_v16  ;;  %1047 = vst.msk [vmem:[#allocation2 + $0x112] sm:$0xff] %vm965_vm1, %v9285_v22  ;;  %v8036_v7 = vpop.eup %8035  ;;  %v9316_v41 = vmul.f32 %v8034_v9, %v9109_v20  ;;  %v2803_v42 = vadd.f32 %v2771_v38, %v2703_v15  ;;  %v2871_v18 = vmul.f32 %v15765_v11, %v9091_v58  ;;  %v15790_v15 = vld [vmem:[#allocation15_spill] sm:$0xff]  ;;  %v15812_v22 = vld [vmem:[#allocation56_spill] sm:$0xff] }
 0x16c   : > { %15785 = vst [vmem:[#allocation81_spill] sm:$0xff] %v9308_v8  ;;  %1046 = vst.msk [vmem:[#allocation2 + $0x10a] sm:$0xff] %vm965_vm1, %v9300_v16  ;;  %v8038_v4 = vpop.eup %8037  ;;  %v9325_v35 = vmul.f32 %v8036_v7, %v9112_v12  ;;  %v3403_v40 = vadd.f32 %v3371_v25, %v3303_v54  ;;  %v1703_v20 = vadd.f32 %v9057_v57, %v1603_v24  ;;  %v9342_v12 = vld [vmem:[%s14993_s4] ss:$0 sm:$0xff]  ;;  %v15795_v24 = vld [vmem:[#allocation28_spill] sm:$0xff] }
 0x16d   : > { %15787 = vst [vmem:[#allocation51_spill] sm:$0xff] %v9316_v41  ;;  %1049 = vst.msk [vmem:[#allocation2 + $0x12a] sm:$0xff] %vm965_vm1, %v9308_v8  ;;  %v1771_v48 = vmul.f32 %v15789_v43, %v9003_v0  ;;  %v8040_v10 = vpop.eup %8039  ;;  %v1174_v38 = vmul.f32 %v15790_v15, %v9212_v59  ;;  %v9337_v58 = vmul.f32 %v8038_v4, %v9118_v2  ;;  %v15811_v8 = vld [vmem:[#allocation44_spill] sm:$0xff] }
 0x16e   : > { %15788 = vst [vmem:[#allocation82_spill] sm:$0xff] %v9325_v35  ;;  %1048 = vst.msk [vmem:[#allocation2 + $0x122] sm:$0xff] %vm965_vm1, %v9316_v41  ;;  %v2903_v25 = vadd.f32 %v2871_v18, %v2803_v42  ;;  %v2971_v57 = vmul.f32 %v15769_v13, %v9105_v5  ;;  %v8042_v0 = vpop.eup %8041  ;;  %v9349_v9 = vmul.f32 %v8040_v10, %v9126_v14 }
 0x16f   : > { %15791 = vst [vmem:[#allocation26_spill] sm:$0xff] %v9337_v58  ;;  %15792 = vst [vmem:[#allocation83_spill] sm:$0xff] %v9342_v12  ;;  %v3503_v54 = vadd.f32 %v3471_v60, %v3403_v40  ;;  %v1803_v2 = vadd.f32 %v1771_v48, %v1703_v20  ;;  %v1871_v7 = vmul.f32 %v15795_v24, %v9005_v53  ;;  %v8044_v4 = vpop.eup %8043  ;;  %v9372_v20 = vld [vmem:[#allocation2 + $0x6a] sm:$0xff] }
 0x170   : > { %1051 = vst.msk [vmem:[#allocation2 + $0x142] sm:$0xff] %vm965_vm1, %v9325_v35  ;;  %15793 = vst [vmem:[#allocation84_spill] sm:$0xff] %v9349_v9  ;;  %v1175_v42 = vmul.f32 %v15790_v15, %v9264_v52  ;;  %v9360_v5 = vmul.f32 %v8042_v0, %v9135_v29  ;;  %v3003_v18 = vadd.f32 %v2971_v57, %v2903_v25  ;;  %v8046_v60 = vpop.eup %8045  ;;  %v15799_v29 = vld [vmem:[#allocation29_spill] sm:$0xff]  ;;  %v15800_v57 = vld [vmem:[#allocation55_spill] sm:$0xff] }
 0x171   : > { %15794 = vst [vmem:[#allocation85_spill] sm:$0xff] %v9351_v32  ;;  %1050 = vst.msk [vmem:[#allocation2 + $0x13a] sm:$0xff] %vm965_vm1, %v9337_v58  ;;  %v3072_v14 = vmul.f32 %v15772_v56, %v9327_v6  ;;  %v9367_v53 = vmul.f32 %v8044_v4, %v9141_v39  ;;  %v9370_v40 = vadd.f32 %v9342_v12, %v3503_v54  ;;  %v8048_v25 = vpop.eup %8047  ;;  %v15807_v35 = vld [vmem:[#allocation37_spill] sm:$0xff]  ;;  %v15822_v15 = vld [vmem:[#allocation67_spill] sm:$0xff] }
 0x172   : > { %15796 = vst [vmem:[#allocation28_spill] sm:$0xff] %v9360_v5  ;;  %1053 = vst.msk [vmem:[#allocation2 + $0x15a] sm:$0xff] %vm965_vm1, %v9349_v9  ;;  %v1903_v48 = vadd.f32 %v1871_v7, %v1803_v2  ;;  %v1971_v10 = vmul.f32 %v15799_v29, %v9016_v34  ;;  %v1404_v0 = vadd.f32 %v15800_v57, %v9114_v46  ;;  %v8050_v4 = vpop.eup %8049  ;;  %v9391_v46 = vld [vmem:[#allocation2 + $0x6b] sm:$0xff] }
 0x173   : > { %15797 = vst [vmem:[#allocation86_spill] sm:$0xff] %v9367_v53  ;;  %15798 = vst [vmem:[#allocation87_spill] sm:$0xff] %v9372_v20  ;;  %v9381_v9 = vmul.f32 %v8046_v60, %v9151_v3  ;;  %v3104_v39 = vadd.f32 %v3072_v14, %v3003_v18  ;;  %v3172_v54 = vmul.f32 %v15773_v63, %v9351_v32  ;;  %v7484_v2 = vmul.f32 -1.442695, %v9370_v40  ;;  %v8052_v60 = vpop.eup %8051 }
 0x174   : > { %1052 = vst.msk [vmem:[#allocation2 + $0x152] sm:$0xff] %vm965_vm1, %v9360_v5  ;;  %1055 = vst.msk [vmem:[#allocation2 + $0x172] sm:$0xff] %vm965_vm1, %v9367_v53  ;;  %v9388_v34 = vmul.f32 %v8048_v25, %v9154_v49  ;;  %v2003_v7 = vadd.f32 %v1971_v10, %v1903_v48  ;;  %v2071_v3 = vmul.f32 %v8842_v30, %v9167_v33  ;;  %v865_v14 = vadd.f32 1.0, %v8050_v4  ;;  %v8054_v25 = vpop.eup %8053  ;;  %v9402_v48 = vld [vmem:[#allocation2 + $0x6c] sm:$0xff] }
 0x175   : > { %15801 = vst [vmem:[#allocation29_spill] sm:$0xff] %v9381_v9  ;;  %15803 = vst [vmem:[#allocation88_spill] sm:$0xff] %v9391_v46  ;;  %v1206_v18 = vadd.f32 %v1174_v38, %v9194_v62  ;;  %v3204_v57 = vadd.f32 %v3172_v54, %v3104_v39  ;;  %v3272_v49 = vmul.f32 %v15777_v19, %v9372_v20  ;;  %v868_v53 = vadd.f32 1.0, %v8052_v60 }
 0x176   : > { %15802 = vst [vmem:[#allocation55_spill] sm:$0xff] %v9388_v34  ;;  %1054 = vst.msk [vmem:[#allocation2 + $0x16a] sm:$0xff] %vm965_vm1, %v9381_v9  ;;  %8055 = vpow2.f32 %v7484_v2  ;;  %v2103_v10 = vadd.f32 %v2071_v3, %v2003_v7  ;;  %v2171_v62 = vmul.f32 %v8917_v55, %v9212_v59  ;;  %v867_v38 = vadd.f32 1.0, %v8054_v25  ;;  %v15804_v3 = vld [vmem:[#allocation52_spill] sm:$0xff]  ;;  %v15806_v25 = vld [vmem:[#allocation19_spill] sm:$0xff] }
 0x177   : > { %1057 = vst.msk [vmem:[#allocation2 + $0x18a] sm:$0xff] %vm965_vm1, %v9388_v34  ;;  %8057 = vrcp.f32 %v865_v14  ;;  %v3304_v9 = vadd.f32 %v3272_v49, %v3204_v57  ;;  %v3372_v39 = vmul.f32 %v15782_v44, %v9391_v46  ;;  %v1274_v54 = vmul.f32 %v8733_v47, %v9219_v36  ;;  %v15805_v49 = vld [vmem:[#allocation77_spill] sm:$0xff] }
 0x178   : > { %8059 = vrcp.f32 %v868_v53  ;;  %v2203_v4 = vadd.f32 %v2171_v62, %v2103_v10  ;;  %v2271_v2 = vmul.f32 %v8924_v37, %v9219_v36  ;;  %v3472_v7 = vmul.f32 %v9291_v21, %v9402_v48  ;;  %v15808_v10 = vld [vmem:[#allocation78_spill] sm:$0xff]  ;;  %v15809_v62 = vld [vmem:[#allocation20_spill] sm:$0xff] }
 0x179   : > { %8061 = vrcp.f32 %v867_v38  ;;  %v3404_v60 = vadd.f32 %v3372_v39, %v3304_v9  ;;  %v1604_v14 = vadd.f32 %v9050_v23, %v15804_v3  ;;  %v1306_v57 = vadd.f32 %v1274_v54, %v1206_v18  ;;  %v15810_v9 = vld [vmem:[#allocation58_spill] sm:$0xff]  ;;  %v15813_v18 = vld [vmem:[#allocation76_spill] sm:$0xff] }
 0x17a   : > { %v1374_v34 = vmul.f32 %v15806_v25, %v15805_v49  ;;  %v2303_v5 = vadd.f32 %v2271_v2, %v2203_v4  ;;  %v2371_v53 = vmul.f32 %v15807_v35, %v15805_v49  ;;  %v9422_v58 = vmul.f32 %v15809_v62, %v15808_v10  ;;  %v15814_v4 = vld [vmem:[#allocation38_spill] sm:$0xff]  ;;  %v15815_v49 = vld [vmem:[#allocation23_spill] sm:$0xff] }
 0x17b   : > { %v3504_v38 = vadd.f32 %v3472_v7, %v3404_v60  ;;  %v1704_v39 = vadd.f32 %v15810_v9, %v1604_v14  ;;  %v1772_v41 = vmul.f32 %v15789_v43, %v15811_v8  ;;  %v1504_v23 = vadd.f32 %v15812_v22, %v1404_v0  ;;  %v15817_v7 = vld [vmem:[#allocation41_spill] sm:$0xff]  ;;  %v15818_v8 = vld [vmem:[#allocation24_spill] sm:$0xff] }
 0x17c   : > { %v1207_v54 = vadd.f32 %v1175_v42, %v15813_v18  ;;  %v2403_v3 = vadd.f32 %v2371_v53, %v2303_v5  ;;  %v2471_v2 = vmul.f32 %v15814_v4, %v15808_v10  ;;  %v1573_v16 = vmul.f32 %v15815_v49, %v9167_v33  ;;  %v15819_v42 = vld [vmem:[#allocation47_spill] sm:$0xff]  ;;  %v2036_v53 = vld [vmem:[#allocation2 + $0x50] sm:$0xff] }
 0x17d   : > { %v9434_v28 = vadd.f32 %v9342_v12, %v3504_v38  ;;  %v1804_v60 = vadd.f32 %v1772_v41, %v1704_v39  ;;  %v1872_v14 = vmul.f32 %v15817_v7, %v15795_v24  ;;  %v1406_v9 = vadd.f32 %v1374_v34, %v1306_v57  ;;  %v15820_v33 = vld [vmem:[#allocation79_spill] sm:$0xff]  ;;  %v2136_v57 = vld [vmem:[#allocation2 + $0x51] sm:$0xff] }
 0x17e   : > { %v1673_v22 = vmul.f32 %v15818_v8, %v9212_v59  ;;  %v2503_v0 = vadd.f32 %v2471_v2, %v2403_v3  ;;  %v2572_v5 = vmul.f32 %v15819_v42, %v8978_v50  ;;  %v2672_v18 = vmul.f32 %v15820_v33, %v8981_v27  ;;  %v15821_v41 = vld [vmem:[#allocation43_spill] sm:$0xff] }
 0x17f   : > { %15816 = vst [vmem:[#allocation52_spill] sm:$0xff] %v9434_v28  ;;  %v7485_v10 = vmul.f32 -1.442695, %v9434_v28  ;;  %v1904_v38 = vadd.f32 %v1872_v14, %v1804_v60  ;;  %v1972_v39 = vmul.f32 %v15821_v41, %v15799_v29  ;;  %v2772_v34 = vmul.f32 %v9260_v51, %v15763_v61  ;;  %v1837_v60 = vld [vmem:[#allocation2 + $0x4b] sm:$0xff] }
 0x180   : > { %v8056_v26 = vpop.eup %8055  ;;  %v2604_v7 = vadd.f32 %v2572_v5, %v2503_v0  ;;  %v2872_v59 = vmul.f32 %v9268_v1, %v15765_v11  ;;  %v1605_v3 = vadd.f32 %v1573_v16, %v1504_v23  ;;  %v2072_v47 = vmul.f32 %v8842_v30, %v2036_v53  ;;  %v2236_v5 = vld [vmem:[#allocation2 + $0x52] sm:$0xff] }
 0x181   : > { %v8058_v2 = vpop.eup %8057  ;;  %v3670_v62 = vadd.f32 1.0, %v8056_v26  ;;  %8063 = vpow2.f32 %v7485_v10  ;;  %v2004_v25 = vadd.f32 %v1972_v39, %v1904_v38  ;;  %v1773_v12 = vmul.f32 %v15789_v43, %v9219_v36  ;;  %v15824_v1 = vld [vmem:[#allocation69_spill] sm:$0xff]  ;;  %v9488_v39 = vld [vmem:[#allocation2 + $0x7a] sm:$0xff] }
 0x182   : > { %v8060_v14 = vpop.eup %8059  ;;  %v9453_v41 = vmul.f32 %v8058_v2, %v15822_v15  ;;  %v2704_v0 = vadd.f32 %v2672_v18, %v2604_v7  ;;  %v1705_v28 = vadd.f32 %v1673_v22, %v1605_v3  ;;  %v2172_v23 = vmul.f32 %v8917_v55, %v2136_v57  ;;  %v1937_v53 = vld [vmem:[#allocation2 + $0x4c] sm:$0xff]  ;;  %v15826_v15 = vld [vmem:[#allocation70_spill] sm:$0xff] }
 0x183   : > { %v8062_v17 = vpop.eup %8061  ;;  %v9458_v16 = vmul.f32 %v8060_v14, %v15824_v1  ;;  %8065 = vrcp.f32 %v3670_v62  ;;  %v2104_v26 = vadd.f32 %v2072_v47, %v2004_v25  ;;  %v9466_v22 = vld [vmem:[#allocation2 + $0x53] sm:$0xff]  ;;  %v1873_v36 = vmul.f32 %v15795_v24, %v1837_v60  ;;  %v15829_v57 = vld [vmem:[#allocation64_spill] sm:$0xff]  ;;  %v9499_v60 = vld [vmem:[#allocation2 + $0x7b] sm:$0xff] }
 0x184   : > { %15823 = vst [vmem:[#allocation77_spill] sm:$0xff] %v9453_v41  ;;  %1056 = vst.msk [vmem:[#allocation2 + $0x182] sm:$0xff] %vm965_vm1, %v9453_v41  ;;  %v9464_v10 = vmul.f32 %v8062_v17, %v15826_v15  ;;  %v2804_v18 = vadd.f32 %v2772_v34, %v2704_v0  ;;  %v1805_v38 = vadd.f32 %v1773_v12, %v1705_v28  ;;  %v9479_v25 = vld [vmem:[#allocation2 + $0x78] sm:$0xff] }
 0x185   : > { %15825 = vst [vmem:[#allocation37_spill] sm:$0xff] %v9458_v16  ;;  %v9471_v1 = vmul.f32 %v15815_v49, %v9181_v45  ;;  %v9475_v47 = vmul.f32 %v15818_v8, %v9264_v52  ;;  %1059 = vst.msk [vmem:[#allocation2 + $0x1a2] sm:$0xff] %vm965_vm1, %v9458_v16  ;;  %v2204_v17 = vadd.f32 %v2172_v23, %v2104_v26  ;;  %v9486_v12 = vld [vmem:[#allocation2 + $0x79] sm:$0xff]  ;;  %v9535_v16 = vld [vmem:[#allocation2 + $0x82] sm:$0xff] }
 0x186   : > { %15827 = vst [vmem:[#allocation78_spill] sm:$0xff] %v9464_v10  ;;  %15828 = vst [vmem:[#allocation58_spill] sm:$0xff] %v9479_v25  ;;  %v2272_v62 = vmul.f32 %v8924_v37, %v2236_v5  ;;  %v2904_v28 = vadd.f32 %v2872_v59, %v2804_v18  ;;  %v2972_v45 = vmul.f32 %v9295_v31, %v15769_v13  ;;  %v9490_v52 = vld [vmem:[#allocation2 + $0x54] sm:$0xff]  ;;  %v9505_v26 = vld [vmem:[#allocation2 + $0x7c] sm:$0xff] }
 0x187   : > { %1058 = vst.msk [vmem:[#allocation2 + $0x19a] sm:$0xff] %vm965_vm1, %v9464_v10  ;;  %v1905_v7 = vadd.f32 %v1873_v36, %v1805_v38  ;;  %v1973_v34 = vmul.f32 %v15799_v29, %v1937_v53  ;;  %v9494_v3 = vadd.f32 %v15829_v57, %v1207_v54  ;;  %v9497_v2 = vadd.f32 %v9422_v58, %v1406_v9 }
 0x188   : > { %v2304_v59 = vadd.f32 %v2272_v62, %v2204_v17  ;;  %v2372_v14 = vmul.f32 %v15807_v35, %v9466_v22  ;;  %v3004_v0 = vadd.f32 %v2972_v45, %v2904_v28  ;;  %v3073_v5 = vmul.f32 %v15772_v56, %v9479_v25  ;;  %v15831_v17 = vld [vmem:[#allocation73_spill] sm:$0xff]  ;;  %15835 = vst [vmem:[#allocation38_spill] sm:$0xff] %v9535_v16 }
 0x189   : > { %15830 = vst [vmem:[#allocation44_spill] sm:$0xff] %v9494_v3  ;;  %v2005_v23 = vadd.f32 %v1973_v34, %v1905_v7  ;;  %v2073_v54 = vmul.f32 %v15819_v42, %v8842_v30  ;;  %v3173_v58 = vmul.f32 %v15773_v63, %v9486_v12  ;;  %v3273_v9 = vmul.f32 %v15777_v19, %v9488_v39  ;;  %v15832_v62 = vld [vmem:[#allocation53_spill] sm:$0xff] }
 0x18a   : > { %v2404_v53 = vadd.f32 %v2372_v14, %v2304_v59  ;;  %v2472_v15 = vmul.f32 %v15814_v4, %v9490_v52  ;;  %v3105_v18 = vadd.f32 %v3073_v5, %v3004_v0  ;;  %v3373_v38 = vmul.f32 %v15782_v44, %v9499_v60 }
 0x18b   : > { %v2105_v36 = vadd.f32 %v2073_v54, %v2005_v23  ;;  %v1405_v28 = vadd.f32 %v15832_v62, %v15831_v17  ;;  %v8064_v45 = vpop.eup %8063  ;;  %v3473_v7 = vmul.f32 %v9291_v21, %v9505_v26  ;;  %v2573_v57 = vmul.f32 %v9327_v6, %v8978_v50 }
 0x18c   : > { %v2504_v34 = vadd.f32 %v2472_v15, %v2404_v53  ;;  %v2173_v59 = vmul.f32 %v15820_v33, %v8917_v55  ;;  %v3671_v14 = vadd.f32 1.0, %v8064_v45  ;;  %v2673_v0 = vmul.f32 %v9351_v32, %v8981_v27  ;;  %v9531_v53 = vld [vmem:[#allocation2 + $0x80] sm:$0xff] }
 0x18d   : > { %v2773_v5 = vmul.f32 %v9372_v20, %v15763_v61  ;;  %v2873_v23 = vmul.f32 %v9391_v46, %v15765_v11  ;;  %v8066_v54 = vpop.eup %8065  ;;  %v3205_v17 = vadd.f32 %v3173_v58, %v3105_v18  ;;  %15833 = vst [vmem:[#allocation56_spill] sm:$0xff] %v9531_v53  ;;  %v9533_v15 = vld [vmem:[#allocation2 + $0x81] sm:$0xff]  ;;  %v2273_v45 = vmul.f32 %v9260_v51, %v8924_v37  ;;  %v15836_v46 = vld [vmem:[#allocation54_spill] sm:$0xff] }
 0x18e   : > { %v2605_v62 = vadd.f32 %v2573_v57, %v2504_v34  ;;  %15834 = vst [vmem:[#allocation76_spill] sm:$0xff] %v9533_v15  ;;  %v2205_v10 = vadd.f32 %v2173_v59, %v2105_v36  ;;  %v3766_v41 = vmul.f32 %v8066_v54, %v9370_v40  ;;  %8067 = vrcp.f32 %v3671_v14  ;;  %v9543_v34 = vld [vmem:[#allocation2 + $0x83] sm:$0xff] }
 0x18f   : > { %v2973_v3 = vmul.f32 %v9402_v48, %v15769_v13  ;;  %v1505_v20 = vadd.f32 %v15836_v46, %v1405_v28  ;;  %v3305_v58 = vadd.f32 %v3273_v9, %v3205_v17  ;;  %v9545_v57 = vld [vmem:[#allocation2 + $0x84] sm:$0xff]  ;;  %v3074_v40 = vmul.f32 %v15772_v56, %v9531_v53 }
 0x190   : > { %v2705_v18 = vadd.f32 %v2673_v0, %v2605_v62  ;;  %v2305_v32 = vadd.f32 %v2273_v45, %v2205_v10  ;;  %v15837_v36 = vld [vmem:[#allocation48_spill] sm:$0xff]  ;;  %7746 = vmatprep.mubr.msk.f32.mxu0 %vm965_vm1, %v3766_v41  ;;  %v3174_v14 = vmul.f32 %v15773_v63, %v9533_v15  ;;  %v3274_v46 = vmul.f32 %v15777_v19, %v9535_v16  ;;  %v15838_v45 = vld [vmem:[#allocation61_spill] sm:$0xff] }
 0x191   : > { %v2373_v59 = vmul.f32 %v15837_v36, %v15807_v35  ;;  %v1606_v9 = vadd.f32 %v9471_v1, %v1505_v20  ;;  %v3405_v28 = vadd.f32 %v3373_v38, %v3305_v58  ;;  %v2473_v10 = vmul.f32 %v9295_v31, %v15814_v4 }
 0x192   : > { %v2805_v0 = vadd.f32 %v2773_v5, %v2705_v18  ;;  %v3374_v41 = vmul.f32 %v15782_v44, %v9543_v34  ;;  %v3474_v17 = vmul.f32 %v9291_v21, %v9545_v57  ;;  %v1774_v15 = vmul.f32 %v15789_v43, %v15838_v45  ;;  %v9572_v5 = vld [vmem:[#allocation2 + $0x90] sm:$0xff]  ;;  %v15840_v18 = vld [vmem:[#allocation83_spill] sm:$0xff] }
 0x193   : > { %v2405_v54 = vadd.f32 %v2373_v59, %v2305_v32  ;;  %v1706_v62 = vadd.f32 %v9475_v47, %v1606_v9  ;;  %v3505_v16 = vadd.f32 %v3473_v7, %v3405_v28  ;;  %v2574_v32 = vmul.f32 %v9479_v25, %v8978_v50  ;;  %15839 = vst [vmem:[#allocation23_spill] sm:$0xff] %v9572_v5  ;;  %v9592_v45 = vld [vmem:[#allocation2 + $0x92] sm:$0xff] }
 0x194   : > { %v2905_v53 = vadd.f32 %v2873_v23, %v2805_v0  ;;  %v2674_v1 = vmul.f32 %v9486_v12, %v8981_v27  ;;  %v2774_v38 = vmul.f32 %v9488_v39, %v15763_v61  ;;  %v1874_v47 = vmul.f32 %v9466_v22, %v15795_v24  ;;  %15843 = vst [vmem:[#allocation47_spill] sm:$0xff] %v9592_v45 }
 0x195   : > { %v2505_v20 = vadd.f32 %v2473_v10, %v2405_v54  ;;  %v1806_v58 = vadd.f32 %v1774_v15, %v1706_v62  ;;  %v9577_v59 = vadd.f32 %v15840_v18, %v3505_v16  ;;  %v2874_v9 = vmul.f32 %v9499_v60, %v15765_v11  ;;  %v9590_v62 = vld [vmem:[#allocation2 + $0x91] sm:$0xff] }
 0x196   : > { %v3005_v7 = vadd.f32 %v2973_v3, %v2905_v53  ;;  %v2974_v28 = vmul.f32 %v9505_v26, %v15769_v13  ;;  %v1974_v54 = vmul.f32 %v9490_v52, %v15799_v29  ;;  %v1575_v15 = vmul.f32 %v15819_v42, %v15815_v49  ;;  %15842 = vst [vmem:[#allocation24_spill] sm:$0xff] %v9590_v62 }
 0x197   : > { %15841 = vst [vmem:[#allocation41_spill] sm:$0xff] %v9577_v59  ;;  %v2606_v23 = vadd.f32 %v2574_v32, %v2505_v20  ;;  %v1906_v0 = vadd.f32 %v1874_v47, %v1806_v58  ;;  %v7486_v22 = vmul.f32 -1.442695, %v9577_v59  ;;  %v3075_v3 = vmul.f32 %v15772_v56, %v9572_v5  ;;  %v15844_v58 = vld [vmem:[#allocation52_spill] sm:$0xff] }
 0x198   : > { %v3106_v10 = vadd.f32 %v3074_v40, %v3005_v7  ;;  %v8068_v53 = vpop.eup %8067  ;;  %v2074_v32 = vmul.f32 %v9327_v6, %v8842_v30  ;;  %v1607_v52 = vadd.f32 %v1575_v15, %v9497_v2  ;;  %v1675_v42 = vmul.f32 %v15820_v33, %v15818_v8  ;;  %v9600_v7 = vld [vmem:[#allocation2 + $0x93] sm:$0xff] }
 0x199   : > { %v2706_v16 = vadd.f32 %v2674_v1, %v2606_v23  ;;  %v2006_v20 = vadd.f32 %v1974_v54, %v1906_v0  ;;  %v3767_v40 = vmul.f32 %v8068_v53, %v15844_v58  ;;  %8069 = vpow2.f32 %v7486_v22  ;;  %15845 = vst [vmem:[#allocation79_spill] sm:$0xff] %v9600_v7  ;;  %v9602_v23 = vld [vmem:[#allocation2 + $0x94] sm:$0xff] }
 0x19a   : > { %v3206_v1 = vadd.f32 %v3174_v14, %v3106_v10  ;;  %15846 = vst [vmem:[#allocation43_spill] sm:$0xff] %v9602_v23  ;;  %v15847_v0 = vld [vmem:[#allocation85_spill] sm:$0xff]  ;;  %v1707_v5 = vadd.f32 %v1675_v42, %v1607_v52  ;;  %v1775_v2 = vmul.f32 %v9260_v51, %v15789_v43  ;;  %v3175_v14 = vmul.f32 %v15773_v63, %v9590_v62  ;;  %v15848_v10 = vld [vmem:[#allocation87_spill] sm:$0xff]  ;;  %v15849_v42 = vld [vmem:[#allocation88_spill] sm:$0xff] }
 0x19b   : > { %v2806_v47 = vadd.f32 %v2774_v38, %v2706_v16  ;;  %v2106_v59 = vadd.f32 %v2074_v32, %v2006_v20  ;;  %v2174_v54 = vmul.f32 %v15847_v0, %v8917_v55  ;;  %7747 = vmatmul.mubr.msk.f32.vlgmr.msra.gmra.mrb[32].mxu0 %vm965_vm1, %v3767_v40  ;;  %v3275_v38 = vmul.f32 %v15777_v19, %v9592_v45 }
 0x19c   : > { %v3306_v33 = vadd.f32 %v3274_v46, %v3206_v1  ;;  %v2274_v16 = vmul.f32 %v15848_v10, %v8924_v37  ;;  %v1807_v53 = vadd.f32 %v1775_v2, %v1707_v5  ;;  %v1875_v20 = vmul.f32 %v15837_v36, %v15795_v24 }
 0x19d   : > { %v2906_v15 = vadd.f32 %v2874_v9, %v2806_v47  ;;  %v2206_v22 = vadd.f32 %v2174_v54, %v2106_v59  ;;  %v3375_v46 = vmul.f32 %v15782_v44, %v9600_v7  ;;  %v3475_v9 = vmul.f32 %v9291_v21, %v9602_v23  ;;  %v15851_v54 = vld [vmem:[#allocation76_spill] sm:$0xff] }
 0x19e   : > { %v3406_v32 = vadd.f32 %v3374_v41, %v3306_v33  ;;  %v2374_v58 = vmul.f32 %v15849_v42, %v15807_v35  ;;  %v1907_v59 = vadd.f32 %v1875_v20, %v1807_v53  ;;  %v1975_v40 = vmul.f32 %v9295_v31, %v15799_v29  ;;  %v15850_v41 = vld [vmem:[#allocation56_spill] sm:$0xff]  ;;  %v15854_v20 = vld [vmem:[#allocation65_spill] sm:$0xff]  ;;  %v15855_v31 = vld [vmem:[#allocation66_spill] sm:$0xff] }
 0x19f   : > { %v3006_v51 = vadd.f32 %v2974_v28, %v2906_v15  ;;  %v2306_v52 = vadd.f32 %v2274_v16, %v2206_v22  ;;  %v2474_v36 = vmul.f32 %v9402_v48, %v15814_v4  ;;  %v2575_v28 = vmul.f32 %v15850_v41, %v8978_v50  ;;  %v15853_v53 = vld [vmem:[#allocation44_spill] sm:$0xff] }
 0x1a0   : > { %v3506_v5 = vadd.f32 %v3474_v17, %v3406_v32  ;;  %v2675_v2 = vmul.f32 %v15851_v54, %v8981_v27  ;;  %v2007_v33 = vadd.f32 %v1975_v40, %v1907_v59  ;;  %v2075_v15 = vmul.f32 %v9479_v25, %v8842_v30  ;;  %v15852_v17 = vld [vmem:[#allocation38_spill] sm:$0xff] }
 0x1a1   : > { %v3107_v1 = vadd.f32 %v3075_v3, %v3006_v51  ;;  %v2406_v47 = vadd.f32 %v2374_v58, %v2306_v52  ;;  %v2775_v3 = vmul.f32 %v15852_v17, %v15763_v61  ;;  %v1407_v32 = vadd.f32 %v15854_v20, %v15853_v53 }
 0x1a2   : > { %v9634_v22 = vadd.f32 %v15840_v18, %v3506_v5  ;;  %v2875_v52 = vmul.f32 %v9543_v34, %v15765_v11  ;;  %v2107_v58 = vadd.f32 %v2075_v15, %v2007_v33  ;;  %v2175_v59 = vmul.f32 %v9486_v12, %v8917_v55  ;;  %v9650_v33 = vld [vmem:[#allocation2 + $0x98] sm:$0xff] }
 0x1a3   : > { %v3207_v16 = vadd.f32 %v3175_v14, %v3107_v1  ;;  %v2506_v51 = vadd.f32 %v2474_v36, %v2406_v47  ;;  %v8070_v40 = vpop.eup %8069  ;;  %v1507_v14 = vadd.f32 %v15855_v31, %v1407_v32  ;;  %v1576_v1 = vmul.f32 %v9327_v6, %v15815_v49  ;;  %v9654_v31 = vld [vmem:[#allocation2 + $0x99] sm:$0xff] }
 0x1a4   : > { %v7487_v25 = vmul.f32 -1.442695, %v9634_v22  ;;  %v3672_v21 = vadd.f32 1.0, %v8070_v40  ;;  %v2207_v53 = vadd.f32 %v2175_v59, %v2107_v58  ;;  %v2275_v36 = vmul.f32 %v9488_v39, %v8924_v37 }
 0x1a5   : > { %v3307_v5 = vadd.f32 %v3275_v38, %v3207_v16  ;;  %v2607_v17 = vadd.f32 %v2575_v28, %v2506_v51  ;;  %v1608_v15 = vadd.f32 %v1576_v1, %v1507_v14  ;;  %v1676_v20 = vmul.f32 %v15847_v0, %v15818_v8  ;;  %v9666_v0 = vld [vmem:[#allocation2 + $0x9b] sm:$0xff] }
 0x1a6   : > { %8071 = vpow2.f32 %v7487_v25  ;;  %v2307_v16 = vadd.f32 %v2275_v36, %v2207_v53  ;;  %v2375_v6 = vmul.f32 %v9499_v60, %v15807_v35  ;;  %v2975_v32 = vmul.f32 %v9545_v57, %v15769_v13  ;;  %v9660_v25 = vld [vmem:[#allocation2 + $0x9a] sm:$0xff]  ;;  %15856 = vst [vmem:[#allocation67_spill] sm:$0xff] %v9666_v0 }
 0x1a7   : > { %v3407_v47 = vadd.f32 %v3375_v46, %v3307_v5  ;;  %8073 = vrcp.f32 %v3672_v21  ;;  %v2707_v38 = vadd.f32 %v2675_v2, %v2607_v17  ;;  %v1708_v46 = vadd.f32 %v1676_v20, %v1608_v15  ;;  %v15858_v1 = vld [vmem:[#allocation23_spill] sm:$0xff] }
 0x1a8   : > { %v1776_v51 = vmul.f32 %v15848_v10, %v15789_v43  ;;  %v3076_v21 = vmul.f32 %v15772_v56, %v9650_v33  ;;  %v2407_v2 = vadd.f32 %v2375_v6, %v2307_v16  ;;  %v2475_v17 = vmul.f32 %v9505_v26, %v15814_v4  ;;  %v1140_v16 = vld [vmem:[#allocation2 + $0x61] sm:$0xff] }
 0x1a9   : > { %v3507_v28 = vadd.f32 %v3475_v9, %v3407_v47  ;;  %v2807_v58 = vadd.f32 %v2775_v3, %v2707_v38  ;;  %v3176_v59 = vmul.f32 %v15773_v63, %v9654_v31  ;;  %v1876_v10 = vmul.f32 %v15849_v42, %v15795_v24  ;;  %v1072_v38 = vld [vmem:[#allocation2 + $0x60] sm:$0xff] }
 0x1aa   : > { %v1808_v40 = vadd.f32 %v1776_v51, %v1708_v46  ;;  %v3276_v5 = vmul.f32 %v15777_v19, %v9660_v25  ;;  %v2507_v14 = vadd.f32 %v2475_v17, %v2407_v2  ;;  %v2576_v53 = vmul.f32 %v15858_v1, %v8978_v50  ;;  %v1240_v46 = vld [vmem:[#allocation2 + $0x62] sm:$0xff] }
 0x1ab   : > { %v9671_v9 = vadd.f32 %v15840_v18, %v3507_v28  ;;  %v2907_v3 = vadd.f32 %v2875_v52, %v2807_v58  ;;  %v3376_v47 = vmul.f32 %v15782_v44, %v9666_v0  ;;  %v1976_v20 = vmul.f32 %v9402_v48, %v15799_v29 }
 0x1ac   : > { %v1908_v15 = vadd.f32 %v1876_v10, %v1808_v40  ;;  %v2608_v52 = vadd.f32 %v2576_v53, %v2507_v14  ;;  %v2676_v6 = vmul.f32 %v9590_v62, %v8981_v27  ;;  %v2776_v28 = vmul.f32 %v9592_v45, %v15763_v61  ;;  %v15859_v40 = vld [vmem:[#allocation14_spill] sm:$0xff]  ;;  %v15860_v10 = vld [vmem:[#allocation15_spill] sm:$0xff] }
 0x1ad   : > { %15857 = vst [vmem:[#allocation69_spill] sm:$0xff] %v9671_v9  ;;  %v7488_v36 = vmul.f32 -1.442695, %v9671_v9  ;;  %v3007_v42 = vadd.f32 %v2975_v32, %v2907_v3  ;;  %v2876_v51 = vmul.f32 %v9600_v7, %v15765_v11  ;;  %v2076_v2 = vmul.f32 %v15850_v41, %v8842_v30  ;;  %v1340_v14 = vld [vmem:[#allocation2 + $0x63] sm:$0xff] }
 0x1ae   : > { %v2008_v58 = vadd.f32 %v1976_v20, %v1908_v15  ;;  %v2708_v17 = vadd.f32 %v2676_v6, %v2608_v52  ;;  %v1108_v32 = vmul.f32 %v15859_v40, %v1072_v38  ;;  %v1176_v3 = vmul.f32 %v15860_v10, %v1140_v16  ;;  %v15861_v7 = vld [vmem:[#allocation16_spill] sm:$0xff]  ;;  %v15863_v52 = vld [vmem:[#allocation41_spill] sm:$0xff] }
 0x1af   : > { %8075 = vpow2.f32 %v7488_v36  ;;  %v3108_v48 = vadd.f32 %v3076_v21, %v3007_v42  ;;  %v2976_v9 = vmul.f32 %v9602_v23, %v15769_v13  ;;  %v2176_v36 = vmul.f32 %v15851_v54, %v8917_v55  ;;  %v9701_v21 = vld [vmem:[#allocation2 + $0x9c] sm:$0xff]  ;;  %v9703_v38 = vld [vmem:[#allocation2 + $0xa8] sm:$0xff] }
 0x1b0   : > { %v8072_v53 = vpop.eup %8071  ;;  %v2108_v45 = vadd.f32 %v2076_v2, %v2008_v58  ;;  %v1276_v15 = vmul.f32 %v15861_v7, %v1240_v46  ;;  %15862 = vst [vmem:[#allocation70_spill] sm:$0xff] %v9701_v21  ;;  %v2808_v42 = vadd.f32 %v2776_v28, %v2708_v17  ;;  %v1208_v16 = vadd.f32 %v1176_v3, %v1108_v32  ;;  %v15864_v23 = vld [vmem:[#allocation38_spill] sm:$0xff]  ;;  %v15865_v2 = vld [vmem:[#allocation19_spill] sm:$0xff]  ;;  %v9709_v55 = vld [vmem:[#allocation2 + $0xa9] sm:$0xff] }
 0x1b1   : > { %v8074_v20 = vpop.eup %8073  ;;  %v3673_v62 = vadd.f32 1.0, %v8072_v53  ;;  %v3208_v41 = vadd.f32 %v3176_v59, %v3108_v48  ;;  %v2276_v58 = vmul.f32 %v15864_v23, %v8924_v37  ;;  %v1376_v30 = vmul.f32 %v15865_v2, %v1340_v14  ;;  %v15866_v28 = vld [vmem:[#allocation40_spill] sm:$0xff] }
 0x1b2   : > { %v3768_v6 = vmul.f32 %v8074_v20, %v15863_v52  ;;  %v2208_v1 = vadd.f32 %v2176_v36, %v2108_v45  ;;  %v2908_v46 = vadd.f32 %v2876_v51, %v2808_v42  ;;  %v1308_v59 = vadd.f32 %v1276_v15, %v1208_v16  ;;  %v15868_v51 = vld [vmem:[#allocation50_spill] sm:$0xff]  ;;  %v9726_v16 = vld [vmem:[#allocation2 + $0xab] sm:$0xff] }
 0x1b3   : > { %8077 = vrcp.f32 %v3673_v62  ;;  %v3308_v54 = vadd.f32 %v3276_v5, %v3208_v41  ;;  %v3476_v48 = vmul.f32 %v15866_v28, %v9701_v21  ;;  %v3077_v17 = vmul.f32 %v15772_v56, %v9703_v38  ;;  %v9718_v62 = vld [vmem:[#allocation2 + $0xaa] sm:$0xff] }
 0x1b4   : > { %7749 = vmatprep.mubr.msk.f32.mxu0 %vm965_vm1, %v3768_v6  ;;  %v2308_v45 = vadd.f32 %v2276_v58, %v2208_v1  ;;  %v2376_v32 = vmul.f32 %v9543_v34, %v15807_v35  ;;  %v3008_v14 = vadd.f32 %v2976_v9, %v2908_v46  ;;  %v1408_v41 = vadd.f32 %v1376_v30, %v1308_v59  ;;  %v15867_v5 = vld [vmem:[#allocation20_spill] sm:$0xff] }
 0x1b5   : > { %v3408_v3 = vadd.f32 %v3376_v47, %v3308_v54  ;;  %v1476_v53 = vmul.f32 %v15868_v51, %v15867_v5  ;;  %v3177_v36 = vmul.f32 %v15773_v63, %v9709_v55  ;;  %v2476_v20 = vmul.f32 %v9545_v57, %v15814_v4  ;;  %v15869_v54 = vld [vmem:[#allocation58_spill] sm:$0xff] }
 0x1b6   : > { %v2408_v15 = vadd.f32 %v2376_v32, %v2308_v45  ;;  %v3109_v1 = vadd.f32 %v3077_v17, %v3008_v14  ;;  %v1577_v9 = vmul.f32 %v15869_v54, %v15815_v49  ;;  %v3277_v30 = vmul.f32 %v15777_v19, %v9718_v62  ;;  %v9739_v45 = vld [vmem:[#allocation2 + $0xac] sm:$0xff] }
 0x1b7   : > { %v3508_v42 = vadd.f32 %v3476_v48, %v3408_v3  ;;  %v1508_v52 = vadd.f32 %v1476_v53, %v1408_v41  ;;  %v2577_v58 = vmul.f32 %v9650_v33, %v8978_v50  ;;  %v1677_v46 = vmul.f32 %v9486_v12, %v15818_v8 }
 0x1b8   : > { %v2508_v6 = vadd.f32 %v2476_v20, %v2408_v15  ;;  %v3209_v17 = vadd.f32 %v3177_v36, %v3109_v1  ;;  %v3377_v3 = vmul.f32 %v15782_v44, %v9726_v16  ;;  %v2677_v41 = vmul.f32 %v9654_v31, %v8981_v27  ;;  %v1073_v20 = vld [vmem:[#allocation2 + $0x68] sm:$0xff] }
 0x1b9   : > { %v8076_v47 = vpop.eup %8075  ;;  %v9737_v48 = vadd.f32 %v15840_v18, %v3508_v42  ;;  %v1609_v32 = vadd.f32 %v1577_v9, %v1508_v52  ;;  %v1777_v51 = vmul.f32 %v9488_v39, %v15789_v43  ;;  %v1141_v36 = vld [vmem:[#allocation2 + $0x69] sm:$0xff]  ;;  %v3477_v42 = vmul.f32 %v15866_v28, %v9739_v45 }
 0x1ba   : > { %v3674_v59 = vadd.f32 1.0, %v8076_v47  ;;  %v2609_v14 = vadd.f32 %v2577_v58, %v2508_v6  ;;  %v3309_v53 = vadd.f32 %v3277_v30, %v3209_v17  ;;  %v2777_v52 = vmul.f32 %v9660_v25, %v15763_v61  ;;  %v1241_v6 = vld [vmem:[#allocation2 + $0x6a] sm:$0xff] }
 0x1bb   : > { %v7489_v12 = vmul.f32 -1.442695, %v9737_v48  ;;  %v1709_v15 = vadd.f32 %v1677_v46, %v1609_v32  ;;  %v2877_v54 = vmul.f32 %v9666_v0, %v15765_v11  ;;  %v1877_v30 = vmul.f32 %v9499_v60, %v15795_v24 }
 0x1bc   : > { %8079 = vrcp.f32 %v3674_v59  ;;  %v2709_v1 = vadd.f32 %v2677_v41, %v2609_v14  ;;  %v3409_v39 = vadd.f32 %v3377_v3, %v3309_v53  ;;  %v1109_v59 = vmul.f32 %v15859_v40, %v1073_v20  ;;  %v9759_v14 = vld [vmem:[#allocation2 + $0xb0] sm:$0xff] }
 0x1bd   : > { %v8078_v9 = vpop.eup %8077  ;;  %8081 = vpow2.f32 %v7489_v12  ;;  %v1809_v47 = vadd.f32 %v1777_v51, %v1709_v15  ;;  %v1177_v17 = vmul.f32 %v15860_v10, %v1141_v36  ;;  %15870 = vst [vmem:[#allocation64_spill] sm:$0xff] %v9759_v14  ;;  %v1977_v12 = vmul.f32 %v9505_v26, %v15799_v29  ;;  %v1341_v3 = vld [vmem:[#allocation2 + $0x6b] sm:$0xff] }
 0x1be   : > { %v3769_v58 = vmul.f32 %v8078_v9, %v9634_v22  ;;  %v2809_v46 = vadd.f32 %v2777_v52, %v2709_v1  ;;  %v3509_v32 = vadd.f32 %v3477_v42, %v3409_v39  ;;  %v2977_v60 = vmul.f32 %v9701_v21, %v15769_v13  ;;  %v9770_v20 = vld [vmem:[#allocation2 + $0xb1] sm:$0xff]  ;;  %v15873_v42 = vld [vmem:[#allocation27_spill] sm:$0xff]  ;;  %v15882_v21 = vld [vmem:[#allocation56_spill] sm:$0xff] }
 0x1bf   : > { %v1909_v41 = vadd.f32 %v1877_v30, %v1809_v47  ;;  %v1209_v22 = vadd.f32 %v1177_v17, %v1109_v59  ;;  %v1277_v53 = vmul.f32 %v15861_v7, %v1241_v6  ;;  %15872 = vst [vmem:[#allocation53_spill] sm:$0xff] %v9770_v20  ;;  %v15874_v1 = vld [vmem:[#allocation23_spill] sm:$0xff]  ;;  %v1441_v26 = vld [vmem:[#allocation2 + $0x6c] sm:$0xff]  ;;  %v1377_v30 = vmul.f32 %v15865_v2, %v1341_v3 }
 0x1c0   : > { %7750 = vmatmul.mubr.msk.f32.gmra.mrb[34].mxu0 %vm965_vm1, %v3769_v58  ;;  %v2909_v51 = vadd.f32 %v2877_v54, %v2809_v46  ;;  %v9768_v15 = vadd.f32 %v15840_v18, %v3509_v32  ;;  %v2077_v52 = vmul.f32 %v15874_v1, %v15873_v42  ;;  %v3078_v54 = vmul.f32 %v15772_v56, %v9759_v14  ;;  %v9776_v39 = vld [vmem:[#allocation2 + $0xb2] sm:$0xff]  ;;  %v15877_v59 = vld [vmem:[#allocation24_spill] sm:$0xff] }
 0x1c1   : > { %v2009_v36 = vadd.f32 %v1977_v12, %v1909_v41  ;;  %15875 = vst [vmem:[#allocation54_spill] sm:$0xff] %v9776_v39  ;;  %v1309_v47 = vadd.f32 %v1277_v53, %v1209_v22  ;;  %v15876_v46 = vld [vmem:[#allocation34_spill] sm:$0xff]  ;;  %v3178_v41 = vmul.f32 %v15773_v63, %v9770_v20  ;;  %v3278_v3 = vmul.f32 %v15777_v19, %v9776_v39  ;;  %v15879_v53 = vld [vmem:[#allocation47_spill] sm:$0xff] }
 0x1c2   : > { %15871 = vst [vmem:[#allocation73_spill] sm:$0xff] %v9768_v15  ;;  %v3009_v9 = vadd.f32 %v2977_v60, %v2909_v51  ;;  %v7490_v6 = vmul.f32 -1.442695, %v9768_v15  ;;  %v2177_v17 = vmul.f32 %v15877_v59, %v15876_v46  ;;  %v9784_v12 = vld [vmem:[#allocation2 + $0xb3] sm:$0xff]  ;;  %v1477_v60 = vmul.f32 %v15867_v5, %v1441_v26  ;;  %v15883_v39 = vld [vmem:[#allocation79_spill] sm:$0xff] }
 0x1c3   : > { %v2109_v58 = vadd.f32 %v2077_v52, %v2009_v36  ;;  %15878 = vst [vmem:[#allocation48_spill] sm:$0xff] %v9784_v12  ;;  %v1409_v51 = vadd.f32 %v1377_v30, %v1309_v47  ;;  %v2277_v36 = vmul.f32 %v15879_v53, %v8924_v37  ;;  %v15880_v52 = vld [vmem:[#allocation69_spill] sm:$0xff]  ;;  %v1578_v47 = vmul.f32 %v15882_v21, %v15815_v49 }
 0x1c4   : > { %v3110_v32 = vadd.f32 %v3078_v54, %v3009_v9  ;;  %8083 = vpow2.f32 %v7490_v6  ;;  %v9792_v54 = vld [vmem:[#allocation2 + $0xb4] sm:$0xff]  ;;  %v3378_v26 = vmul.f32 %v15782_v44, %v9784_v12  ;;  %v15885_v12 = vld [vmem:[#allocation43_spill] sm:$0xff] }
 0x1c5   : > { %v2209_v22 = vadd.f32 %v2177_v17, %v2109_v58  ;;  %15881 = vst [vmem:[#allocation61_spill] sm:$0xff] %v9792_v54  ;;  %v1509_v20 = vadd.f32 %v1477_v60, %v1409_v51  ;;  %v2377_v58 = vmul.f32 %v15883_v39, %v15807_v35  ;;  %v1074_v51 = vld [vmem:[#allocation2 + $0x78] sm:$0xff]  ;;  %v3478_v21 = vmul.f32 %v15866_v28, %v9792_v54 }
 0x1c6   : > { %v8080_v14 = vpop.eup %8079  ;;  %v3210_v9 = vadd.f32 %v3178_v41, %v3110_v32  ;;  %v15884_v32 = vld [vmem:[#allocation76_spill] sm:$0xff]  ;;  %v1142_v60 = vld [vmem:[#allocation2 + $0x79] sm:$0xff] }
 0x1c7   : > { %v3770_v15 = vmul.f32 %v8080_v14, %v15880_v52  ;;  %v8082_v30 = vpop.eup %8081  ;;  %v2309_v6 = vadd.f32 %v2277_v36, %v2209_v22  ;;  %v1610_v14 = vadd.f32 %v1578_v47, %v1509_v20  ;;  %v1678_v41 = vmul.f32 %v15884_v32, %v15818_v8 }
 0x1c8   : > { %v3675_v17 = vadd.f32 1.0, %v8082_v30  ;;  %v3310_v53 = vadd.f32 %v3278_v3, %v3210_v9  ;;  %v2477_v22 = vmul.f32 %v15885_v12, %v15814_v4  ;;  %v1242_v3 = vld [vmem:[#allocation2 + $0x7a] sm:$0xff]  ;;  %v2578_v9 = vmul.f32 %v9703_v38, %v8978_v50 }
 0x1c9   : > { %7752 = vmatprep.mubr.msk.f32.mxu0 %vm965_vm1, %v3770_v15  ;;  %v2409_v52 = vadd.f32 %v2377_v58, %v2309_v6  ;;  %v1710_v39 = vadd.f32 %v1678_v41, %v1610_v14  ;;  %v1778_v15 = vmul.f32 %v15864_v23, %v15789_v43  ;;  %v1110_v47 = vmul.f32 %v15859_v40, %v1074_v51 }
 0x1ca   : > { %8085 = vrcp.f32 %v3675_v17  ;;  %v3410_v36 = vadd.f32 %v3378_v26, %v3310_v53  ;;  %v1178_v30 = vmul.f32 %v15860_v10, %v1142_v60  ;;  %v2678_v6 = vmul.f32 %v9709_v55, %v8981_v27  ;;  %v1342_v26 = vld [vmem:[#allocation2 + $0x7b] sm:$0xff] }
 0x1cb   : > { %v2509_v20 = vadd.f32 %v2477_v22, %v2409_v52  ;;  %v1810_v58 = vadd.f32 %v1778_v15, %v1710_v39  ;;  %v1878_v53 = vmul.f32 %v9543_v34, %v15795_v24  ;;  %v2778_v23 = vmul.f32 %v9718_v62, %v15763_v61  ;;  %v9825_v60 = vld [vmem:[#allocation2 + $0xc0] sm:$0xff] }
 0x1cc   : > { %v3510_v28 = vadd.f32 %v3478_v21, %v3410_v36  ;;  %v1210_v14 = vadd.f32 %v1178_v30, %v1110_v47  ;;  %v1278_v32 = vmul.f32 %v15861_v7, %v1242_v3  ;;  %v2878_v51 = vmul.f32 %v9726_v16, %v15765_v11  ;;  %15887 = vst [vmem:[#allocation52_spill] sm:$0xff] %v9825_v60  ;;  %v1442_v21 = vld [vmem:[#allocation2 + $0x7c] sm:$0xff] }
 0x1cd   : > { %v2610_v17 = vadd.f32 %v2578_v9, %v2509_v20  ;;  %v1910_v39 = vadd.f32 %v1878_v53, %v1810_v58  ;;  %v1978_v34 = vmul.f32 %v9545_v57, %v15799_v29  ;;  %v2978_v36 = vmul.f32 %v9739_v45, %v15769_v13  ;;  %v9831_v15 = vld [vmem:[#allocation2 + $0xc1] sm:$0xff] }
 0x1ce   : > { %v9821_v41 = vadd.f32 %v15840_v18, %v3510_v28  ;;  %v8084_v52 = vpop.eup %8083  ;;  %15888 = vst [vmem:[#allocation85_spill] sm:$0xff] %v9831_v15  ;;  %v1310_v3 = vadd.f32 %v1278_v32, %v1210_v14  ;;  %v1378_v18 = vmul.f32 %v15865_v2, %v1342_v26  ;;  %v2078_v30 = vmul.f32 %v9650_v33, %v15873_v42  ;;  %v9841_v58 = vld [vmem:[#allocation2 + $0xc3] sm:$0xff] }
 0x1cf   : > { %v2710_v22 = vadd.f32 %v2678_v6, %v2610_v17  ;;  %v3676_v20 = vadd.f32 1.0, %v8084_v52  ;;  %v2010_v47 = vadd.f32 %v1978_v34, %v1910_v39  ;;  %v3079_v57 = vmul.f32 %v15772_v56, %v9825_v60  ;;  %v9839_v6 = vld [vmem:[#allocation2 + $0xc2] sm:$0xff]  ;;  %15890 = vst [vmem:[#allocation88_spill] sm:$0xff] %v9841_v58 }
 0x1d0   : > { %15886 = vst [vmem:[#allocation83_spill] sm:$0xff] %v9821_v41  ;;  %v7491_v9 = vmul.f32 -1.442695, %v9821_v41  ;;  %15889 = vst [vmem:[#allocation87_spill] sm:$0xff] %v9839_v6  ;;  %v1410_v53 = vadd.f32 %v1378_v18, %v1310_v3  ;;  %v1478_v17 = vmul.f32 %v15867_v5, %v1442_v21  ;;  %v3179_v26 = vmul.f32 %v15773_v63, %v9831_v15  ;;  %v9851_v34 = vld [vmem:[#allocation2 + $0xc4] sm:$0xff] }
 0x1d1   : > { %v2810_v28 = vadd.f32 %v2778_v23, %v2710_v22  ;;  %8087 = vrcp.f32 %v3676_v20  ;;  %v2110_v14 = vadd.f32 %v2078_v30, %v2010_v47  ;;  %v2178_v32 = vmul.f32 %v9654_v31, %v15876_v46  ;;  %v3798_v23 = vld [vmem:[%s14994_s5] sm:$0xf]  ;;  %15891 = vst [vmem:[#allocation44_spill] sm:$0xff] %v9851_v34 }
 0x1d2   : > { %8089 = vpow2.f32 %v7491_v9  ;;  %v1510_v52 = vadd.f32 %v1478_v17, %v1410_v53  ;;  %v1579_v21 = vmul.f32 %v15874_v1, %v15815_v49  ;;  %7794 = vmatprep.subr.msk.mxu1 %vm3896_vm3, %v3798_v23  ;;  %v3279_v3 = vmul.f32 %v15777_v19, %v9839_v6  ;;  %v1143_v53 = vld [vmem:[#allocation2 + $0x81] sm:$0xff]  ;;  %v9868_v17 = vld [vmem:[%s14992_s3 + $0x18] ss:$0 sm:$0xff] }
 0x1d3   : > { %v2910_v39 = vadd.f32 %v2878_v51, %v2810_v28  ;;  %v3379_v18 = vmul.f32 %v15782_v44, %v9841_v58  ;;  %v2210_v20 = vadd.f32 %v2178_v32, %v2110_v14  ;;  %v2278_v9 = vmul.f32 %v9660_v25, %v8924_v37  ;;  %v1075_v51 = vld [vmem:[#allocation2 + $0x80] sm:$0xff] }
 0x1d4   : > { %v8086_v22 = vpop.eup %8085  ;;  %v1611_v28 = vadd.f32 %v1579_v21, %v1510_v52  ;;  %v1679_v1 = vmul.f32 %v15877_v59, %v15818_v8  ;;  %v3479_v14 = vmul.f32 %v9868_v17, %v9851_v34  ;;  %v2378_v23 = vmul.f32 %v9666_v0, %v15807_v35  ;;  %v15893_v52 = vld [vmem:[#allocation47_spill] sm:$0xff]  ;;  %v15894_v34 = vld [vmem:[#allocation64_spill] sm:$0xff] }
 0x1d5   : > { %v3771_v47 = vmul.f32 %v8086_v22, %v9737_v48  ;;  %v3010_v30 = vadd.f32 %v2978_v36, %v2910_v39  ;;  %v2310_v32 = vadd.f32 %v2278_v9, %v2210_v20  ;;  %v15892_v48 = vld [vmem:[#allocation70_spill] sm:$0xff]  ;;  %v1779_v21 = vmul.f32 %v15893_v52, %v15789_v43  ;;  %v1243_v41 = vld [vmem:[#allocation2 + $0x82] sm:$0xff]  ;;  %v15895_v9 = vld [vmem:[#allocation53_spill] sm:$0xff] }
 0x1d6   : > { %v2478_v36 = vmul.f32 %v15892_v48, %v15814_v4  ;;  %v1711_v59 = vadd.f32 %v1679_v1, %v1611_v28  ;;  %v1111_v22 = vmul.f32 %v15859_v40, %v1075_v51  ;;  %v2579_v20 = vmul.f32 %v15894_v34, %v8978_v50  ;;  %v15897_v1 = vld [vmem:[#allocation79_spill] sm:$0xff] }
 0x1d7   : > { %7753 = vmatmul.mubr.msk.f32.gmra.mrb[36].mxu0 %vm965_vm1, %v3771_v47  ;;  %v3111_v39 = vadd.f32 %v3079_v57, %v3010_v30  ;;  %v2410_v58 = vadd.f32 %v2378_v23, %v2310_v32  ;;  %v2679_v6 = vmul.f32 %v15895_v9, %v8981_v27  ;;  %v1179_v15 = vmul.f32 %v15860_v10, %v1143_v53  ;;  %v15896_v47 = vld [vmem:[#allocation54_spill] sm:$0xff]  ;;  %v9887_v30 = vld [vmem:[#allocation2 + $0xc8] sm:$0xff] }
 0x1d8   : > { %v2779_v57 = vmul.f32 %v15896_v47, %v15763_v61  ;;  %v1811_v28 = vadd.f32 %v1779_v21, %v1711_v59  ;;  %v1879_v51 = vmul.f32 %v15897_v1, %v15795_v24  ;;  %v1343_v52 = vld [vmem:[#allocation2 + $0x83] sm:$0xff]  ;;  %v1279_v9 = vmul.f32 %v15861_v7, %v1243_v41 }
 0x1d9   : > { %v3211_v48 = vadd.f32 %v3179_v26, %v3111_v39  ;;  %v2510_v32 = vadd.f32 %v2478_v36, %v2410_v58  ;;  %v15898_v23 = vld [vmem:[#allocation48_spill] sm:$0xff]  ;;  %v1211_v0 = vadd.f32 %v1179_v15, %v1111_v22  ;;  %v2979_v26 = vmul.f32 %v9792_v54, %v15769_v13 }
 0x1da   : > { %v2879_v34 = vmul.f32 %v15898_v23, %v15765_v11  ;;  %v1911_v53 = vadd.f32 %v1879_v51, %v1811_v28  ;;  %v1979_v39 = vmul.f32 %v15885_v12, %v15799_v29  ;;  %v1443_v59 = vld [vmem:[#allocation2 + $0x84] sm:$0xff]  ;;  %v3080_v58 = vmul.f32 %v15772_v56, %v9887_v30 }
 0x1db   : > { %v3311_v27 = vadd.f32 %v3279_v3, %v3211_v48  ;;  %v8088_v21 = vpop.eup %8087  ;;  %v2611_v47 = vadd.f32 %v2579_v20, %v2510_v32  ;;  %v9900_v36 = vld [vmem:[#allocation2 + $0xc9] sm:$0xff]  ;;  %v1311_v1 = vadd.f32 %v1279_v9, %v1211_v0  ;;  %v1379_v15 = vmul.f32 %v15865_v2, %v1343_v52 }
 0x1dc   : > { %15899 = vst [vmem:[#allocation65_spill] sm:$0xff] %v9900_v36  ;;  %v8090_v41 = vpop.eup %8089  ;;  %v15900_v3 = vld [vmem:[#allocation73_spill] sm:$0xff]  ;;  %v2011_v54 = vadd.f32 %v1979_v39, %v1911_v53  ;;  %v2079_v28 = vmul.f32 %v9703_v38, %v15873_v42  ;;  %v1479_v32 = vmul.f32 %v15867_v5, %v1443_v59  ;;  %v3180_v9 = vmul.f32 %v15773_v63, %v9900_v36 }
 0x1dd   : > { %v3772_v48 = vmul.f32 %v8088_v21, %v15900_v3  ;;  %v3411_v22 = vadd.f32 %v3379_v18, %v3311_v27  ;;  %v3677_v12 = vadd.f32 1.0, %v8090_v41  ;;  %v2711_v51 = vadd.f32 %v2679_v6, %v2611_v47  ;;  %v9906_v23 = vld [vmem:[#allocation2 + $0xca] sm:$0xff] }
 0x1de   : > { %v1411_v20 = vadd.f32 %v1379_v15, %v1311_v1  ;;  %v9912_v52 = vld [vmem:[#allocation2 + $0xcb] sm:$0xff]  ;;  %v2111_v27 = vadd.f32 %v2079_v28, %v2011_v54  ;;  %v2179_v18 = vmul.f32 %v9709_v55, %v15876_v46  ;;  %v1580_v39 = vmul.f32 %v9650_v33, %v15815_v49 }
 0x1df   : > { %7755 = vmatprep.mubr.msk.f32.mxu0 %vm965_vm1, %v3772_v48  ;;  %v3511_v0 = vadd.f32 %v3479_v14, %v3411_v22  ;;  %15901 = vst [vmem:[#allocation66_spill] sm:$0xff] %v9912_v52  ;;  %8091 = vrcp.f32 %v3677_v12  ;;  %v2811_v53 = vadd.f32 %v2779_v57, %v2711_v51  ;;  %v9916_v6 = vld [vmem:[#allocation2 + $0xcc] sm:$0xff]  ;;  %v9923_v14 = vld [vmem:[%s14993_s4] ss:$0 sm:$0xff]  ;;  %v3280_v54 = vmul.f32 %v15777_v19, %v9906_v23 }
 0x1e0   : > { %15902 = vst [vmem:[#allocation14_spill] sm:$0xff] %v9916_v6  ;;  %v1511_v47 = vadd.f32 %v1479_v32, %v1411_v20  ;;  %v2211_v21 = vadd.f32 %v2179_v18, %v2111_v27  ;;  %v2279_v57 = vmul.f32 %v9718_v62, %v8924_v37  ;;  %v3380_v15 = vmul.f32 %v15782_v44, %v9912_v52  ;;  %v1076_v3 = vld [vmem:[#allocation2 + $0x90] sm:$0xff] }
 0x1e1   : > { %v9926_v59 = vadd.f32 %v9923_v14, %v3511_v0  ;;  %v2911_v1 = vadd.f32 %v2879_v34, %v2811_v53  ;;  %v1680_v41 = vmul.f32 %v9654_v31, %v15818_v8  ;;  %v1144_v48 = vld [vmem:[#allocation2 + $0x91] sm:$0xff]  ;;  %v3480_v28 = vmul.f32 %v9868_v17, %v9916_v6 }
 0x1e2   : > { %v1612_v33 = vadd.f32 %v1580_v39, %v1511_v47  ;;  %v2311_v12 = vadd.f32 %v2279_v57, %v2211_v21  ;;  %v2379_v51 = vmul.f32 %v9726_v16, %v15807_v35  ;;  %v2479_v34 = vmul.f32 %v9739_v45, %v15814_v4  ;;  %v1244_v31 = vld [vmem:[#allocation2 + $0x92] sm:$0xff] }
 0x1e3   : > { %15903 = vst [vmem:[#allocation15_spill] sm:$0xff] %v9926_v59  ;;  %v7492_v22 = vmul.f32 -1.442695, %v9926_v59  ;;  %v3011_v20 = vadd.f32 %v2979_v26, %v2911_v1  ;;  %v1780_v0 = vmul.f32 %v9660_v25, %v15789_v43  ;;  %v1112_v18 = vmul.f32 %v15859_v40, %v1076_v3  ;;  %v15904_v26 = vld [vmem:[#allocation67_spill] sm:$0xff]  ;;  %v1344_v1 = vld [vmem:[#allocation2 + $0x93] sm:$0xff] }
 0x1e4   : > { %v1712_v32 = vadd.f32 %v1680_v41, %v1612_v33  ;;  %v2411_v27 = vadd.f32 %v2379_v51, %v2311_v12  ;;  %v1180_v53 = vmul.f32 %v15860_v10, %v1144_v48  ;;  %v2580_v39 = vmul.f32 %v9825_v60, %v8978_v50  ;;  %v15905_v41 = vld [vmem:[#allocation45_spill] sm:$0xff]  ;;  %v15907_v3 = vld [vmem:[#allocation87_spill] sm:$0xff]  ;;  %v15908_v51 = vld [vmem:[#allocation70_spill] sm:$0xff] }
 0x1e5   : > { %8093 = vpow2.f32 %v7492_v22  ;;  %v3112_v47 = vadd.f32 %v3080_v58, %v3011_v20  ;;  %v1880_v57 = vmul.f32 %v15904_v26, %v15795_v24  ;;  %v15906_v59 = vld [vmem:[#allocation85_spill] sm:$0xff]  ;;  %v1280_v22 = vmul.f32 %v15861_v7, %v1244_v31  ;;  %v15909_v26 = vld [vmem:[#allocation88_spill] sm:$0xff] }
 0x1e6   : > { %v1812_v21 = vadd.f32 %v1780_v0, %v1712_v32  ;;  %v2511_v33 = vadd.f32 %v2479_v34, %v2411_v27  ;;  %v2680_v25 = vmul.f32 %v15906_v59, %v15905_v41  ;;  %v1212_v6 = vadd.f32 %v1180_v53, %v1112_v18  ;;  %v1444_v32 = vld [vmem:[#allocation2 + $0x94] sm:$0xff] }
 0x1e7   : > { %v3212_v12 = vadd.f32 %v3180_v9, %v3112_v47  ;;  %v2780_v48 = vmul.f32 %v15907_v3, %v15763_v61  ;;  %v1980_v20 = vmul.f32 %v15908_v51, %v15799_v29  ;;  %v2880_v52 = vmul.f32 %v15909_v26, %v15765_v11  ;;  %v9960_v34 = vld [vmem:[#allocation2 + $0xd8] sm:$0xff]  ;;  %v15910_v9 = vld [vmem:[#allocation44_spill] sm:$0xff] }
 0x1e8   : > { %v1912_v58 = vadd.f32 %v1880_v57, %v1812_v21  ;;  %v2612_v0 = vadd.f32 %v2580_v39, %v2511_v33  ;;  %v1312_v27 = vadd.f32 %v1280_v22, %v1212_v6  ;;  %v1380_v18 = vmul.f32 %v15865_v2, %v1344_v1  ;;  %v9965_v3 = vld [vmem:[#allocation2 + $0xd9] sm:$0xff]  ;;  %v15911_v57 = vld [vmem:[#allocation64_spill] sm:$0xff] }
 0x1e9   : > { %v8092_v53 = vpop.eup %8091  ;;  %v3312_v31 = vadd.f32 %v3280_v54, %v3212_v12  ;;  %v2980_v47 = vmul.f32 %v15910_v9, %v15769_v13  ;;  %v2080_v51 = vmul.f32 %v15911_v57, %v15873_v42  ;;  %v15912_v39 = vld [vmem:[#allocation83_spill] sm:$0xff]  ;;  %v1480_v6 = vmul.f32 %v15867_v5, %v1444_v32 }
 0x1ea   : > { %v2012_v21 = vadd.f32 %v1980_v20, %v1912_v58  ;;  %v3773_v33 = vmul.f32 %v8092_v53, %v15912_v39  ;;  %v2712_v59 = vadd.f32 %v2680_v25, %v2612_v0  ;;  %v9970_v26 = vld [vmem:[#allocation2 + $0xda] sm:$0xff]  ;;  %v1412_v11 = vadd.f32 %v1380_v18, %v1312_v27  ;;  %v15915_v58 = vld [vmem:[#allocation53_spill] sm:$0xff] }
 0x1eb   : > { %15913 = vst [vmem:[#allocation16_spill] sm:$0xff] %v9970_v26  ;;  %v3412_v1 = vadd.f32 %v3380_v15, %v3312_v31  ;;  %v3081_v54 = vmul.f32 %v15772_v56, %v9960_v34  ;;  %v9975_v22 = vld [vmem:[#allocation2 + $0xdb] sm:$0xff]  ;;  %v2180_v20 = vmul.f32 %v15915_v58, %v15876_v46  ;;  %v3181_v25 = vmul.f32 %v15773_v63, %v9965_v3 }
 0x1ec   : > { %15914 = vst [vmem:[#allocation41_spill] sm:$0xff] %v9975_v22  ;;  %v2112_v12 = vadd.f32 %v2080_v51, %v2012_v21  ;;  %7756 = vmatmul.mubr.msk.f32.gmra.mrb[38].mxu0 %vm965_vm1, %v3773_v33  ;;  %v2812_v9 = vadd.f32 %v2780_v48, %v2712_v59  ;;  %v1512_v0 = vadd.f32 %v1480_v6, %v1412_v11  ;;  %v15916_v53 = vld [vmem:[#allocation54_spill] sm:$0xff]  ;;  %v15918_v33 = vld [vmem:[#allocation48_spill] sm:$0xff] }
 0x1ed   : > { %v1581_v32 = vmul.f32 %v9703_v38, %v15815_v49  ;;  %v3512_v15 = vadd.f32 %v3480_v28, %v3412_v1  ;;  %v3281_v27 = vmul.f32 %v15777_v19, %v9970_v26  ;;  %v2280_v31 = vmul.f32 %v15916_v53, %v8924_v37  ;;  %v1077_v1 = vld [vmem:[#allocation2 + $0x98] sm:$0xff] }
 0x1ee   : > { %v2212_v18 = vadd.f32 %v2180_v20, %v2112_v12  ;;  %v2912_v51 = vadd.f32 %v2880_v52, %v2812_v9  ;;  %v3381_v59 = vmul.f32 %v15782_v44, %v9975_v22  ;;  %v1681_v11 = vmul.f32 %v9709_v55, %v15818_v8  ;;  %v1145_v12 = vld [vmem:[#allocation2 + $0x99] sm:$0xff]  ;;  %v15919_v52 = vld [vmem:[#allocation61_spill] sm:$0xff] }
 0x1ef   : > { %v8094_v21 = vpop.eup %8093  ;;  %v1613_v48 = vadd.f32 %v1581_v32, %v1512_v0  ;;  %v9993_v38 = vadd.f32 %v9923_v14, %v3512_v15  ;;  %v2380_v6 = vmul.f32 %v15918_v33, %v15807_v35  ;;  %v2480_v9 = vmul.f32 %v15919_v52, %v15814_v4 }
 0x1f0   : > { %v3678_v39 = vadd.f32 1.0, %v8094_v21  ;;  %v2312_v28 = vadd.f32 %v2280_v31, %v2212_v18  ;;  %v3012_v20 = vadd.f32 %v2980_v47, %v2912_v51  ;;  %v1781_v0 = vmul.f32 %v9718_v62, %v15789_v43  ;;  %v1245_v18 = vld [vmem:[#allocation2 + $0x9a] sm:$0xff] }
 0x1f1   : > { %15917 = vst [vmem:[#allocation38_spill] sm:$0xff] %v9993_v38  ;;  %v1713_v26 = vadd.f32 %v1681_v11, %v1613_v48  ;;  %v7493_v55 = vmul.f32 -1.442695, %v9993_v38  ;;  %v1881_v15 = vmul.f32 %v9726_v16, %v15795_v24  ;;  %v10004_v21 = vld [vmem:[#allocation2 + $0xdc] sm:$0xff]  ;;  %v1113_v47 = vmul.f32 %v15859_v40, %v1077_v1 }
 0x1f2   : > { %8095 = vrcp.f32 %v3678_v39  ;;  %v2412_v32 = vadd.f32 %v2380_v6, %v2312_v28  ;;  %v3113_v31 = vadd.f32 %v3081_v54, %v3012_v20  ;;  %v1181_v51 = vmul.f32 %v15860_v10, %v1145_v12  ;;  %v1345_v39 = vld [vmem:[#allocation2 + $0x9b] sm:$0xff] }
 0x1f3   : > { %v1813_v22 = vadd.f32 %v1781_v0, %v1713_v26  ;;  %8097 = vpow2.f32 %v7493_v55  ;;  %v2581_v62 = vmul.f32 %v9887_v30, %v8978_v50  ;;  %v1981_v11 = vmul.f32 %v9739_v45, %v15799_v29  ;;  %v10019_v55 = vld [vmem:[#allocation2 + $0xe0] sm:$0xff] }
 0x1f4   : > { %v2512_v48 = vadd.f32 %v2480_v9, %v2412_v32  ;;  %v3213_v28 = vadd.f32 %v3181_v25, %v3113_v31  ;;  %v1213_v6 = vadd.f32 %v1181_v51, %v1113_v47  ;;  %v1281_v54 = vmul.f32 %v15861_v7, %v1245_v18  ;;  %v1445_v9 = vld [vmem:[#allocation2 + $0x9c] sm:$0xff]  ;;  %15920 = vst [vmem:[#allocation19_spill] sm:$0xff] %v10019_v55  ;;  %v15923_v51 = vld [vmem:[#allocation85_spill] sm:$0xff] }
 0x1f5   : > { %v1913_v16 = vadd.f32 %v1881_v15, %v1813_v22  ;;  %v3481_v26 = vmul.f32 %v9868_v17, %v10004_v21  ;;  %v2681_v12 = vmul.f32 %v9900_v36, %v15905_v41  ;;  %v2081_v20 = vmul.f32 %v9825_v60, %v15873_v42  ;;  %v15921_v18 = vld [vmem:[#allocation42_spill] sm:$0xff]  ;;  %v10028_v38 = vld [vmem:[#allocation2 + $0xe1] sm:$0xff] }
 0x1f6   : > { %v2613_v1 = vadd.f32 %v2581_v62, %v2512_v48  ;;  %v3313_v0 = vadd.f32 %v3281_v27, %v3213_v28  ;;  %v1313_v25 = vadd.f32 %v1281_v54, %v1213_v6  ;;  %v1381_v22 = vmul.f32 %v15865_v2, %v1345_v39  ;;  %v15922_v31 = vld [vmem:[#allocation66_spill] sm:$0xff]  ;;  %15924 = vst [vmem:[#allocation40_spill] sm:$0xff] %v10028_v38  ;;  %v10037_v60 = vld [vmem:[#allocation2 + $0xe2] sm:$0xff] }
 0x1f7   : > { %v2013_v45 = vadd.f32 %v1981_v11, %v1913_v16  ;;  %v2781_v15 = vmul.f32 %v9906_v23, %v15763_v61  ;;  %v2881_v47 = vmul.f32 %v15922_v31, %v15921_v18  ;;  %v2181_v48 = vmul.f32 %v15923_v51, %v15876_v46  ;;  %v15925_v39 = vld [vmem:[#allocation14_spill] sm:$0xff]  ;;  %15927 = vst [vmem:[#allocation20_spill] sm:$0xff] %v10037_v60 }
 0x1f8   : > { %v2713_v32 = vadd.f32 %v2681_v12, %v2613_v1  ;;  %v3413_v62 = vadd.f32 %v3381_v59, %v3313_v0  ;;  %v1413_v28 = vadd.f32 %v1381_v22, %v1313_v25  ;;  %v1481_v11 = vmul.f32 %v15867_v5, %v1445_v9  ;;  %v15926_v1 = vld [vmem:[#allocation87_spill] sm:$0xff]  ;;  %v15928_v22 = vld [vmem:[#allocation88_spill] sm:$0xff] }
 0x1f9   : > { %v2113_v27 = vadd.f32 %v2081_v20, %v2013_v45  ;;  %v2981_v6 = vmul.f32 %v15925_v39, %v15769_v13  ;;  %v3082_v54 = vmul.f32 %v15772_v56, %v10019_v55  ;;  %v2281_v12 = vmul.f32 %v15926_v1, %v8924_v37  ;;  %v15929_v55 = vld [vmem:[#allocation15_spill] sm:$0xff] }
 0x1fa   : > { %v2813_v16 = vadd.f32 %v2781_v15, %v2713_v32  ;;  %v3513_v31 = vadd.f32 %v3481_v26, %v3413_v62  ;;  %v1513_v0 = vadd.f32 %v1481_v11, %v1413_v28  ;;  %v1582_v20 = vmul.f32 %v15911_v57, %v15815_v49  ;;  %v1078_v28 = vld [vmem:[#allocation2 + $0xa8] sm:$0xff] }
 0x1fb   : > { %v2213_v59 = vadd.f32 %v2181_v48, %v2113_v27  ;;  %v3182_v25 = vmul.f32 %v15773_v63, %v10028_v38  ;;  %v2381_v32 = vmul.f32 %v15928_v22, %v15807_v35  ;;  %v1682_v15 = vmul.f32 %v15915_v58, %v15818_v8  ;;  %v1146_v58 = vld [vmem:[#allocation2 + $0xa9] sm:$0xff] }
 0x1fc   : > { %v8096_v45 = vpop.eup %8095  ;;  %v2913_v9 = vadd.f32 %v2881_v47, %v2813_v16  ;;  %v10049_v62 = vadd.f32 %v9923_v14, %v3513_v31  ;;  %v1614_v27 = vadd.f32 %v1582_v20, %v1513_v0  ;;  %v3282_v47 = vmul.f32 %v15777_v19, %v10037_v60  ;;  %v15931_v16 = vld [vmem:[#allocation44_spill] sm:$0xff] }
 0x1fd   : > { %v3774_v26 = vmul.f32 %v8096_v45, %v15929_v55  ;;  %v2313_v48 = vadd.f32 %v2281_v12, %v2213_v59  ;;  %v8098_v57 = vpop.eup %8097  ;;  %v2481_v38 = vmul.f32 %v15931_v16, %v15814_v4  ;;  %v1782_v22 = vmul.f32 %v15916_v53, %v15789_v43  ;;  %v10064_v53 = vld [vmem:[#allocation2 + $0xe3] sm:$0xff] }
 0x1fe   : > { %15930 = vst [vmem:[#allocation50_spill] sm:$0xff] %v10049_v62  ;;  %v3013_v11 = vadd.f32 %v2981_v6, %v2913_v9  ;;  %v3679_v55 = vadd.f32 1.0, %v8098_v57  ;;  %v7494_v31 = vmul.f32 -1.442695, %v10049_v62  ;;  %v1714_v59 = vadd.f32 %v1682_v15, %v1614_v27  ;;  %v1246_v9 = vld [vmem:[#allocation2 + $0xaa] sm:$0xff] }
 0x1ff   : > { %7758 = vmatprep.mubr.msk.f32.mxu0 %vm965_vm1, %v3774_v26  ;;  %v2413_v12 = vadd.f32 %v2381_v32, %v2313_v48  ;;  %v2582_v6 = vmul.f32 %v9960_v34, %v8978_v50  ;;  %v1882_v20 = vmul.f32 %v15918_v33, %v15795_v24  ;;  %v1114_v45 = vmul.f32 %v15859_v40, %v1078_v28  ;;  %v1346_v48 = vld [vmem:[#allocation2 + $0xab] sm:$0xff] }
 0x200   : > { %v3114_v0 = vadd.f32 %v3082_v54, %v3013_v11  ;;  %8099 = vrcp.f32 %v3679_v55  ;;  %v1814_v26 = vadd.f32 %v1782_v22, %v1714_v59  ;;  %v1182_v57 = vmul.f32 %v15860_v10, %v1146_v58  ;;  %v10071_v33 = vld [vmem:[#allocation2 + $0xe4] sm:$0xff]  ;;  %v10080_v59 = vld [vmem:[#allocation2 + $0xf0] sm:$0xff] }
 0x201   : > { %v2513_v60 = vadd.f32 %v2481_v38, %v2413_v12  ;;  %8101 = vpow2.f32 %v7494_v31  ;;  %v2682_v54 = vmul.f32 %v9965_v3, %v15905_v41  ;;  %v1982_v15 = vmul.f32 %v15919_v52, %v15799_v29  ;;  %15932 = vst [vmem:[#allocation58_spill] sm:$0xff] %v10071_v33  ;;  %v1446_v12 = vld [vmem:[#allocation2 + $0xac] sm:$0xff]  ;;  %15934 = vst [vmem:[#allocation27_spill] sm:$0xff] %v10080_v59 }
 0x202   : > { %v3214_v32 = vadd.f32 %v3182_v25, %v3114_v0  ;;  %v1914_v28 = vadd.f32 %v1882_v20, %v1814_v26  ;;  %v1214_v11 = vadd.f32 %v1182_v57, %v1114_v45  ;;  %v1282_v55 = vmul.f32 %v15861_v7, %v1246_v9  ;;  %v15933_v25 = vld [vmem:[#allocation16_spill] sm:$0xff]  ;;  %v15935_v45 = vld [vmem:[#allocation41_spill] sm:$0xff] }
 0x203   : > { %v2614_v27 = vadd.f32 %v2582_v6, %v2513_v60  ;;  %v3382_v22 = vmul.f32 %v15782_v44, %v10064_v53  ;;  %v2782_v58 = vmul.f32 %v15933_v25, %v15763_v61  ;;  %v2082_v31 = vmul.f32 %v9887_v30, %v15873_v42 }
 0x204   : > { %v3314_v38 = vadd.f32 %v3282_v47, %v3214_v32  ;;  %v2014_v0 = vadd.f32 %v1982_v15, %v1914_v28  ;;  %v1314_v60 = vadd.f32 %v1282_v55, %v1214_v11  ;;  %v1382_v6 = vmul.f32 %v15865_v2, %v1346_v48  ;;  %v10089_v32 = vld [vmem:[#allocation2 + $0xf1] sm:$0xff] }
 0x205   : > { %v2714_v52 = vadd.f32 %v2682_v54, %v2614_v27  ;;  %v3482_v47 = vmul.f32 %v9868_v17, %v10071_v33  ;;  %v2882_v9 = vmul.f32 %v15935_v45, %v15921_v18  ;;  %v2182_v26 = vmul.f32 %v9900_v36, %v15876_v46  ;;  %15936 = vst [vmem:[#allocation23_spill] sm:$0xff] %v10089_v32  ;;  %v10091_v54 = vld [vmem:[#allocation2 + $0xf2] sm:$0xff]  ;;  %v15938_v36 = vld [vmem:[#allocation52_spill] sm:$0xff] }
 0x206   : > { %v3414_v20 = vadd.f32 %v3382_v22, %v3314_v38  ;;  %15937 = vst [vmem:[#allocation34_spill] sm:$0xff] %v10091_v54  ;;  %v2114_v27 = vadd.f32 %v2082_v31, %v2014_v0  ;;  %v1414_v15 = vadd.f32 %v1382_v6, %v1314_v60  ;;  %v1482_v28 = vmul.f32 %v15867_v5, %v1446_v12  ;;  %v15940_v60 = vld [vmem:[#allocation66_spill] sm:$0xff] }
 0x207   : > { %v2814_v57 = vadd.f32 %v2782_v58, %v2714_v52  ;;  %v2982_v11 = vmul.f32 %v10004_v21, %v15769_v13  ;;  %v3083_v55 = vmul.f32 %v15772_v56, %v10080_v59  ;;  %v2282_v38 = vmul.f32 %v9906_v23, %v8924_v37 }
 0x208   : > { %v3514_v48 = vadd.f32 %v3482_v47, %v3414_v20  ;;  %v2214_v58 = vadd.f32 %v2182_v26, %v2114_v27  ;;  %v1514_v52 = vadd.f32 %v1482_v28, %v1414_v15  ;;  %v1583_v62 = vmul.f32 %v15938_v36, %v15815_v49  ;;  %v1079_v36 = vld [vmem:[#allocation2 + $0xb0] sm:$0xff]  ;;  %v15941_v15 = vld [vmem:[#allocation38_spill] sm:$0xff] }
 0x209   : > { %v2914_v22 = vadd.f32 %v2882_v9, %v2814_v57  ;;  %v3183_v12 = vmul.f32 %v15773_v63, %v10089_v32  ;;  %v3283_v0 = vmul.f32 %v15777_v19, %v10091_v54  ;;  %v2382_v6 = vmul.f32 %v15940_v60, %v15807_v35 }
 0x20a   : > { %v10103_v31 = vadd.f32 %v9923_v14, %v3514_v48  ;;  %v8100_v20 = vpop.eup %8099  ;;  %v2314_v9 = vadd.f32 %v2282_v38, %v2214_v58  ;;  %v1615_v26 = vadd.f32 %v1583_v62, %v1514_v52  ;;  %v1683_v57 = vmul.f32 %v15923_v51, %v15818_v8  ;;  %v10121_v62 = vld [vmem:[#allocation2 + $0xf4] sm:$0xff]  ;;  %v15944_v58 = vld [vmem:[#allocation19_spill] sm:$0xff] }
 0x20b   : > { %v3014_v47 = vadd.f32 %v2982_v11, %v2914_v22  ;;  %v8102_v27 = vpop.eup %8101  ;;  %v3775_v28 = vmul.f32 %v8100_v20, %v15941_v15  ;;  %v2482_v32 = vmul.f32 %v15925_v39, %v15814_v4  ;;  %v1783_v54 = vmul.f32 %v15926_v1, %v15789_v43  ;;  %v10119_v11 = vld [vmem:[#allocation2 + $0xf3] sm:$0xff]  ;;  %15943 = vst [vmem:[#allocation56_spill] sm:$0xff] %v10121_v62  ;;  %v15945_v20 = vld [vmem:[#allocation88_spill] sm:$0xff] }
 0x20c   : > { %15939 = vst [vmem:[#allocation24_spill] sm:$0xff] %v10103_v31  ;;  %v7495_v48 = vmul.f32 -1.442695, %v10103_v31  ;;  %v3680_v60 = vadd.f32 1.0, %v8102_v27  ;;  %15942 = vst [vmem:[#allocation69_spill] sm:$0xff] %v10119_v11  ;;  %v2414_v38 = vadd.f32 %v2382_v6, %v2314_v9  ;;  %v1715_v51 = vadd.f32 %v1683_v57, %v1615_v26  ;;  %v1147_v22 = vld [vmem:[#allocation2 + $0xb1] sm:$0xff] }
 0x20d   : > { %v3115_v59 = vadd.f32 %v3083_v55, %v3014_v47  ;;  %7759 = vmatmul.mubr.msk.f32.gmra.mrb[40].mxu0 %vm965_vm1, %v3775_v28  ;;  %v2583_v52 = vmul.f32 %v15944_v58, %v8978_v50  ;;  %v1883_v15 = vmul.f32 %v15945_v20, %v15795_v24  ;;  %v1115_v1 = vmul.f32 %v15859_v40, %v1079_v36  ;;  %v1247_v31 = vld [vmem:[#allocation2 + $0xb2] sm:$0xff]  ;;  %v15946_v26 = vld [vmem:[#allocation40_spill] sm:$0xff] }
 0x20e   : > { %8103 = vpow2.f32 %v7495_v48  ;;  %v2514_v47 = vadd.f32 %v2482_v32, %v2414_v38  ;;  %v1815_v27 = vadd.f32 %v1783_v54, %v1715_v51  ;;  %v3383_v6 = vmul.f32 %v15782_v44, %v10119_v11  ;;  %v10136_v58 = vld [vmem:[#allocation2 + $0xf8] sm:$0xff]  ;;  %v15948_v54 = vld [vmem:[#allocation20_spill] sm:$0xff] }
 0x20f   : > { %8105 = vrcp.f32 %v3680_v60  ;;  %v3215_v55 = vadd.f32 %v3183_v12, %v3115_v59  ;;  %v3483_v9 = vmul.f32 %v9868_v17, %v10121_v62  ;;  %v2683_v57 = vmul.f32 %v15946_v26, %v15905_v41  ;;  %15947 = vst [vmem:[#allocation76_spill] sm:$0xff] %v10136_v58  ;;  %v1347_v32 = vld [vmem:[#allocation2 + $0xb3] sm:$0xff] }
 0x210   : > { %v1183_v28 = vmul.f32 %v15860_v10, %v1147_v22  ;;  %v2615_v20 = vadd.f32 %v2583_v52, %v2514_v47  ;;  %v1915_v60 = vadd.f32 %v1883_v15, %v1815_v27  ;;  %v1983_v59 = vmul.f32 %v15931_v16, %v15799_v29  ;;  %v10147_v52 = vld [vmem:[#allocation2 + $0xfa] sm:$0xff] }
 0x211   : > { %v3315_v48 = vadd.f32 %v3283_v0, %v3215_v55  ;;  %v2783_v12 = vmul.f32 %v15948_v54, %v15763_v61  ;;  %v2883_v36 = vmul.f32 %v10064_v53, %v15921_v18  ;;  %v1283_v51 = vmul.f32 %v15861_v7, %v1247_v31  ;;  %v10145_v0 = vld [vmem:[#allocation2 + $0xf9] sm:$0xff]  ;;  %15950 = vst [vmem:[#allocation47_spill] sm:$0xff] %v10147_v52 }
 0x212   : > { %v1215_v38 = vadd.f32 %v1183_v28, %v1115_v1  ;;  %v2715_v22 = vadd.f32 %v2683_v57, %v2615_v20  ;;  %15949 = vst [vmem:[#allocation43_spill] sm:$0xff] %v10145_v0  ;;  %v2015_v15 = vadd.f32 %v1983_v59, %v1915_v60  ;;  %v2083_v16 = vmul.f32 %v9960_v34, %v15873_v42  ;;  %v1447_v55 = vld [vmem:[#allocation2 + $0xb4] sm:$0xff] }
 0x213   : > { %v3415_v26 = vadd.f32 %v3383_v6, %v3315_v48  ;;  %v2983_v47 = vmul.f32 %v10071_v33, %v15769_v13  ;;  %v3084_v27 = vmul.f32 %v15772_v56, %v10136_v58  ;;  %v1383_v31 = vmul.f32 %v15865_v2, %v1347_v32  ;;  %v10156_v28 = vld [vmem:[#allocation2 + $0xfb] sm:$0xff] }
 0x214   : > { %v1315_v1 = vadd.f32 %v1283_v51, %v1215_v38  ;;  %v2815_v57 = vadd.f32 %v2783_v12, %v2715_v22  ;;  %15951 = vst [vmem:[#allocation79_spill] sm:$0xff] %v10156_v28  ;;  %v2115_v48 = vadd.f32 %v2083_v16, %v2015_v15  ;;  %v2183_v20 = vmul.f32 %v9965_v3, %v15876_v46 }
 0x215   : > { %v3515_v6 = vadd.f32 %v3483_v9, %v3415_v26  ;;  %v3184_v60 = vmul.f32 %v15773_v63, %v10145_v0  ;;  %v3284_v59 = vmul.f32 %v15777_v19, %v10147_v52  ;;  %v1483_v58 = vmul.f32 %v15867_v5, %v1447_v55  ;;  %v10168_v26 = vld [vmem:[#allocation2 + $0xfc] sm:$0xff] }
 0x216   : > { %v1415_v33 = vadd.f32 %v1383_v31, %v1315_v1  ;;  %v2915_v9 = vadd.f32 %v2883_v36, %v2815_v57  ;;  %v2215_v32 = vadd.f32 %v2183_v20, %v2115_v48  ;;  %v2283_v12 = vmul.f32 %v15933_v25, %v8924_v37  ;;  %v1080_v48 = vld [vmem:[#allocation2 + $0xc0] sm:$0xff]  ;;  %v15952_v20 = vld [vmem:[#allocation50_spill] sm:$0xff]  ;;  %v15953_v25 = vld [vmem:[#allocation65_spill] sm:$0xff] }
 0x217   : > { %v10166_v38 = vadd.f32 %v9923_v14, %v3515_v6  ;;  %v3384_v22 = vmul.f32 %v15782_v44, %v10156_v28  ;;  %v2383_v15 = vmul.f32 %v15935_v45, %v15807_v35  ;;  %v1584_v55 = vmul.f32 %v9887_v30, %v15815_v49 }
 0x218   : > { %v8104_v51 = vpop.eup %8103  ;;  %v1515_v16 = vadd.f32 %v1483_v58, %v1415_v33  ;;  %v3015_v6 = vadd.f32 %v2983_v47, %v2915_v9  ;;  %v2315_v57 = vadd.f32 %v2283_v12, %v2215_v32  ;;  %v3484_v0 = vmul.f32 %v9868_v17, %v10168_v26  ;;  %v1148_v33 = vld [vmem:[#allocation2 + $0xc1] sm:$0xff] }
 0x219   : > { %v8106_v1 = vpop.eup %8105  ;;  %v3681_v31 = vadd.f32 1.0, %v8104_v51  ;;  %v7496_v36 = vmul.f32 -1.442695, %v10166_v38  ;;  %v1684_v45 = vmul.f32 %v15953_v25, %v15818_v8  ;;  %v2483_v51 = vmul.f32 %v10004_v21, %v15814_v4  ;;  %v1248_v12 = vld [vmem:[#allocation2 + $0xc2] sm:$0xff] }
 0x21a   : > { %v3776_v52 = vmul.f32 %v8106_v1, %v15952_v20  ;;  %v1616_v28 = vadd.f32 %v1584_v55, %v1515_v16  ;;  %v3116_v58 = vadd.f32 %v3084_v27, %v3015_v6  ;;  %v2415_v30 = vadd.f32 %v2383_v15, %v2315_v57  ;;  %v15954_v25 = vld [vmem:[#allocation27_spill] sm:$0xff]  ;;  %v10201_v20 = vld [vmem:[#allocation2 + $0x109] sm:$0xff] }
 0x21b   : > { %8107 = vrcp.f32 %v3681_v31  ;;  %v1784_v9 = vmul.f32 %v9906_v23, %v15789_v43  ;;  %v1116_v32 = vmul.f32 %v15859_v40, %v1080_v48  ;;  %v2584_v1 = vmul.f32 %v15954_v25, %v8978_v50  ;;  %v15955_v15 = vld [vmem:[#allocation23_spill] sm:$0xff]  ;;  %15959 = vst [vmem:[#allocation67_spill] sm:$0xff] %v10201_v20 }
 0x21c   : > { %7761 = vmatprep.mubr.msk.f32.mxu0 %vm965_vm1, %v3776_v52  ;;  %8109 = vpow2.f32 %v7496_v36  ;;  %v1716_v47 = vadd.f32 %v1684_v45, %v1616_v28  ;;  %v3216_v16 = vadd.f32 %v3184_v60, %v3116_v58  ;;  %v2515_v55 = vadd.f32 %v2483_v51, %v2415_v30  ;;  %v15956_v52 = vld [vmem:[#allocation34_spill] sm:$0xff]  ;;  %v1348_v6 = vld [vmem:[#allocation2 + $0xc3] sm:$0xff] }
 0x21d   : > { %v1184_v27 = vmul.f32 %v15860_v10, %v1148_v33  ;;  %v2684_v31 = vmul.f32 %v15955_v15, %v15905_v41  ;;  %v2784_v36 = vmul.f32 %v15956_v52, %v15763_v61  ;;  %v15957_v28 = vld [vmem:[#allocation66_spill] sm:$0xff]  ;;  %v10199_v60 = vld [vmem:[#allocation2 + $0x108] sm:$0xff]  ;;  %v1284_v33 = vmul.f32 %v15861_v7, %v1248_v12 }
 0x21e   : > { %v1816_v45 = vadd.f32 %v1784_v9, %v1716_v47  ;;  %v1884_v23 = vmul.f32 %v15957_v28, %v15795_v24  ;;  %v3316_v57 = vadd.f32 %v3284_v59, %v3216_v16  ;;  %v2616_v48 = vadd.f32 %v2584_v1, %v2515_v55  ;;  %15958 = vst [vmem:[#allocation73_spill] sm:$0xff] %v10199_v60  ;;  %v1448_v28 = vld [vmem:[#allocation2 + $0xc4] sm:$0xff] }
 0x21f   : > { %v1216_v58 = vadd.f32 %v1184_v27, %v1116_v32  ;;  %v2884_v30 = vmul.f32 %v10119_v11, %v15921_v18  ;;  %v2984_v51 = vmul.f32 %v10121_v62, %v15769_v13  ;;  %v1984_v9 = vmul.f32 %v15925_v39, %v15799_v29  ;;  %v10210_v55 = vld [vmem:[#allocation2 + $0x10a] sm:$0xff] }
 0x220   : > { %v1916_v47 = vadd.f32 %v1884_v23, %v1816_v45  ;;  %v3416_v59 = vadd.f32 %v3384_v22, %v3316_v57  ;;  %v2716_v16 = vadd.f32 %v2684_v31, %v2616_v48  ;;  %15960 = vst [vmem:[#allocation45_spill] sm:$0xff] %v10210_v55  ;;  %v10212_v1 = vld [vmem:[#allocation2 + $0x10b] sm:$0xff]  ;;  %v1384_v12 = vmul.f32 %v15865_v2, %v1348_v6  ;;  %v15962_v23 = vld [vmem:[#allocation19_spill] sm:$0xff] }
 0x221   : > { %15961 = vst [vmem:[#allocation70_spill] sm:$0xff] %v10212_v1  ;;  %v1316_v32 = vadd.f32 %v1284_v33, %v1216_v58  ;;  %v3085_v27 = vmul.f32 %v15772_v56, %v10199_v60  ;;  %v3185_v62 = vmul.f32 %v15773_v63, %v10201_v20  ;;  %v2084_v39 = vmul.f32 %v15962_v23, %v15873_v42  ;;  %v15963_v33 = vld [vmem:[#allocation40_spill] sm:$0xff] }
 0x222   : > { %v2016_v45 = vadd.f32 %v1984_v9, %v1916_v47  ;;  %v3516_v11 = vadd.f32 %v3484_v0, %v3416_v59  ;;  %v2816_v22 = vadd.f32 %v2784_v36, %v2716_v16  ;;  %v1484_v57 = vmul.f32 %v15867_v5, %v1448_v28  ;;  %v10231_v0 = vld [vmem:[#allocation2 + $0x10c] sm:$0xff] }
 0x223   : > { %v1416_v31 = vadd.f32 %v1384_v12, %v1316_v32  ;;  %v3285_v48 = vmul.f32 %v15777_v19, %v10210_v55  ;;  %v3385_v6 = vmul.f32 %v15782_v44, %v10212_v1  ;;  %v2184_v60 = vmul.f32 %v15963_v33, %v15876_v46  ;;  %15965 = vst [vmem:[#allocation83_spill] sm:$0xff] %v10231_v0  ;;  %v15966_v16 = vld [vmem:[#allocation24_spill] sm:$0xff] }
 0x224   : > { %v2116_v58 = vadd.f32 %v2084_v39, %v2016_v45  ;;  %v10229_v47 = vadd.f32 %v9923_v14, %v3516_v11  ;;  %v2916_v9 = vadd.f32 %v2884_v30, %v2816_v22  ;;  %v1585_v28 = vmul.f32 %v9960_v34, %v15815_v49  ;;  %v1081_v55 = vld [vmem:[#allocation2 + $0xc8] sm:$0xff] }
 0x225   : > { %v8108_v20 = vpop.eup %8107  ;;  %v1516_v36 = vadd.f32 %v1484_v57, %v1416_v31  ;;  %v2284_v45 = vmul.f32 %v15948_v54, %v8924_v37  ;;  %v1685_v39 = vmul.f32 %v9965_v3, %v15818_v8  ;;  %v1149_v31 = vld [vmem:[#allocation2 + $0xc9] sm:$0xff]  ;;  %v3485_v34 = vmul.f32 %v9868_v17, %v10231_v0  ;;  %v15967_v57 = vld [vmem:[#allocation58_spill] sm:$0xff] }
 0x226   : > { %15964 = vst [vmem:[#allocation64_spill] sm:$0xff] %v10229_v47  ;;  %v8110_v59 = vpop.eup %8109  ;;  %v3777_v32 = vmul.f32 %v8108_v20, %v15966_v16  ;;  %v2216_v12 = vadd.f32 %v2184_v60, %v2116_v58  ;;  %v7497_v11 = vmul.f32 -1.442695, %v10229_v47  ;;  %v3016_v30 = vadd.f32 %v2984_v51, %v2916_v9  ;;  %v15968_v51 = vld [vmem:[#allocation16_spill] sm:$0xff] }
 0x227   : > { %v3682_v1 = vadd.f32 1.0, %v8110_v59  ;;  %v1617_v22 = vadd.f32 %v1585_v28, %v1516_v36  ;;  %v2384_v60 = vmul.f32 %v10064_v53, %v15807_v35  ;;  %v2484_v58 = vmul.f32 %v15967_v57, %v15814_v4  ;;  %v1249_v36 = vld [vmem:[#allocation2 + $0xca] sm:$0xff] }
 0x228   : > { %7762 = vmatmul.mubr.msk.f32.gmra.mrb[42].mxu0 %vm965_vm1, %v3777_v32  ;;  %v2316_v20 = vadd.f32 %v2284_v45, %v2216_v12  ;;  %v3117_v3 = vadd.f32 %v3085_v27, %v3016_v30  ;;  %v1785_v9 = vmul.f32 %v15968_v51, %v15789_v43  ;;  %v1117_v16 = vmul.f32 %v15859_v40, %v1081_v55  ;;  %v15969_v45 = vld [vmem:[#allocation76_spill] sm:$0xff]  ;;  %v15970_v57 = vld [vmem:[#allocation41_spill] sm:$0xff]  ;;  %v15971_v30 = vld [vmem:[#allocation43_spill] sm:$0xff] }
 0x229   : > { %8111 = vrcp.f32 %v3682_v1  ;;  %v1717_v59 = vadd.f32 %v1685_v39, %v1617_v22  ;;  %v1185_v32 = vmul.f32 %v15860_v10, %v1149_v31  ;;  %v2585_v47 = vmul.f32 %v15969_v45, %v8978_v50  ;;  %v1349_v27 = vld [vmem:[#allocation2 + $0xcb] sm:$0xff]  ;;  %v15972_v55 = vld [vmem:[#allocation47_spill] sm:$0xff] }
 0x22a   : > { %8113 = vpow2.f32 %v7497_v11  ;;  %v2416_v28 = vadd.f32 %v2384_v60, %v2316_v20  ;;  %v3217_v12 = vadd.f32 %v3185_v62, %v3117_v3  ;;  %v1885_v1 = vmul.f32 %v15970_v57, %v15795_v24  ;;  %v10261_v62 = vld [vmem:[#allocation2 + $0x110] sm:$0xff] }
 0x22b   : > { %v1817_v0 = vadd.f32 %v1785_v9, %v1717_v59  ;;  %v2685_v22 = vmul.f32 %v15971_v30, %v15905_v41  ;;  %v1217_v51 = vadd.f32 %v1185_v32, %v1117_v16  ;;  %v1285_v11 = vmul.f32 %v15861_v7, %v1249_v36  ;;  %15973 = vst [vmem:[#allocation53_spill] sm:$0xff] %v10261_v62  ;;  %v1449_v59 = vld [vmem:[#allocation2 + $0xcc] sm:$0xff] }
 0x22c   : > { %v2516_v39 = vadd.f32 %v2484_v58, %v2416_v28  ;;  %v3317_v20 = vadd.f32 %v3285_v48, %v3217_v12  ;;  %v2785_v31 = vmul.f32 %v15972_v55, %v15763_v61  ;;  %v1985_v3 = vmul.f32 %v10004_v21, %v15799_v29  ;;  %v15974_v58 = vld [vmem:[#allocation79_spill] sm:$0xff]  ;;  %v10267_v28 = vld [vmem:[#allocation2 + $0x111] sm:$0xff] }
 0x22d   : > { %v1917_v60 = vadd.f32 %v1885_v1, %v1817_v0  ;;  %v2885_v9 = vmul.f32 %v15974_v58, %v15921_v18  ;;  %15975 = vst [vmem:[#allocation54_spill] sm:$0xff] %v10267_v28  ;;  %v1317_v16 = vadd.f32 %v1285_v11, %v1217_v51  ;;  %v1385_v36 = vmul.f32 %v15865_v2, %v1349_v27  ;;  %v10272_v12 = vld [vmem:[#allocation2 + $0x112] sm:$0xff] }
 0x22e   : > { %v2617_v57 = vadd.f32 %v2585_v47, %v2516_v39  ;;  %v3417_v48 = vadd.f32 %v3385_v6, %v3317_v20  ;;  %v2985_v32 = vmul.f32 %v10168_v26, %v15769_v13  ;;  %15976 = vst [vmem:[#allocation48_spill] sm:$0xff] %v10272_v12  ;;  %v2085_v21 = vmul.f32 %v15954_v25, %v15873_v42  ;;  %v10278_v39 = vld [vmem:[#allocation2 + $0x113] sm:$0xff] }
 0x22f   : > { %v2017_v0 = vadd.f32 %v1985_v3, %v1917_v60  ;;  %v3086_v47 = vmul.f32 %v15772_v56, %v10261_v62  ;;  %15977 = vst [vmem:[#allocation61_spill] sm:$0xff] %v10278_v39  ;;  %v1417_v58 = vadd.f32 %v1385_v36, %v1317_v16  ;;  %v1485_v51 = vmul.f32 %v15867_v5, %v1449_v59 }
 0x230   : > { %v2717_v1 = vadd.f32 %v2685_v22, %v2617_v57  ;;  %v3517_v27 = vadd.f32 %v3485_v34, %v3417_v48  ;;  %v3186_v6 = vmul.f32 %v15773_v63, %v10267_v28  ;;  %v2185_v20 = vmul.f32 %v15955_v15, %v15876_v46  ;;  %v10303_v28 = vld [vmem:[#allocation2 + $0x114] sm:$0xff] }
 0x231   : > { %v2117_v11 = vadd.f32 %v2085_v21, %v2017_v0  ;;  %v3286_v22 = vmul.f32 %v15777_v19, %v10272_v12  ;;  %v1517_v3 = vadd.f32 %v1485_v51, %v1417_v58  ;;  %v1586_v57 = vmul.f32 %v15962_v23, %v15815_v49  ;;  %v1082_v23 = vld [vmem:[#allocation2 + $0xd8] sm:$0xff]  ;;  %v15979_v12 = vld [vmem:[#allocation69_spill] sm:$0xff]  ;;  %15980 = vst [vmem:[#allocation85_spill] sm:$0xff] %v10303_v28 }
 0x232   : > { %v2817_v60 = vadd.f32 %v2785_v31, %v2717_v1  ;;  %v10290_v16 = vadd.f32 %v9923_v14, %v3517_v27  ;;  %v3386_v34 = vmul.f32 %v15782_v44, %v10278_v39  ;;  %v2285_v36 = vmul.f32 %v15956_v52, %v8924_v37 }
 0x233   : > { %v8112_v62 = vpop.eup %8111  ;;  %v2217_v59 = vadd.f32 %v2185_v20, %v2117_v11  ;;  %v1618_v21 = vadd.f32 %v1586_v57, %v1517_v3  ;;  %v1686_v58 = vmul.f32 %v15963_v33, %v15818_v8  ;;  %v2385_v39 = vmul.f32 %v15979_v12, %v15807_v35  ;;  %v1150_v11 = vld [vmem:[#allocation2 + $0xd9] sm:$0xff] }
 0x234   : > { %15978 = vst [vmem:[#allocation42_spill] sm:$0xff] %v10290_v16  ;;  %v8114_v48 = vpop.eup %8113  ;;  %v3778_v31 = vmul.f32 %v8112_v62, %v10166_v38  ;;  %v2917_v0 = vadd.f32 %v2885_v9, %v2817_v60  ;;  %v7498_v51 = vmul.f32 -1.442695, %v10290_v16  ;;  %v15981_v38 = vld [vmem:[#allocation56_spill] sm:$0xff]  ;;  %v1786_v33 = vmul.f32 %v15948_v54, %v15789_v43  ;;  %v10326_v16 = vld [vmem:[#allocation2 + $0x120] sm:$0xff] }
 0x235   : > { %v3683_v1 = vadd.f32 1.0, %v8114_v48  ;;  %v2317_v27 = vadd.f32 %v2285_v36, %v2217_v59  ;;  %v2485_v62 = vmul.f32 %v15981_v38, %v15814_v4  ;;  %v1718_v9 = vadd.f32 %v1686_v58, %v1618_v21  ;;  %v1250_v59 = vld [vmem:[#allocation2 + $0xda] sm:$0xff]  ;;  %v15982_v21 = vld [vmem:[#allocation73_spill] sm:$0xff] }
 0x236   : > { %7764 = vmatprep.mubr.msk.f32.mxu0 %vm965_vm1, %v3778_v31  ;;  %v3017_v20 = vadd.f32 %v2985_v32, %v2917_v0  ;;  %v1886_v3 = vmul.f32 %v10064_v53, %v15795_v24  ;;  %v1118_v57 = vmul.f32 %v15859_v40, %v1082_v23  ;;  %v1186_v48 = vmul.f32 %v15860_v10, %v1150_v11 }
 0x237   : > { %8115 = vrcp.f32 %v3683_v1  ;;  %v2417_v60 = vadd.f32 %v2385_v39, %v2317_v27  ;;  %v1818_v32 = vadd.f32 %v1786_v33, %v1718_v9  ;;  %v3486_v31 = vmul.f32 %v9868_v17, %v10303_v28  ;;  %v15983_v39 = vld [vmem:[#allocation58_spill] sm:$0xff]  ;;  %v15985_v9 = vld [vmem:[#allocation45_spill] sm:$0xff] }
 0x238   : > { %8117 = vpow2.f32 %v7498_v51  ;;  %v3118_v36 = vadd.f32 %v3086_v47, %v3017_v20  ;;  %v2586_v54 = vmul.f32 %v15982_v21, %v8978_v50  ;;  %v1986_v58 = vmul.f32 %v15983_v39, %v15799_v29  ;;  %v1350_v1 = vld [vmem:[#allocation2 + $0xdb] sm:$0xff] }
 0x239   : > { %v2517_v0 = vadd.f32 %v2485_v62, %v2417_v60  ;;  %v1918_v27 = vadd.f32 %v1886_v3, %v1818_v32  ;;  %v1218_v23 = vadd.f32 %v1186_v48, %v1118_v57  ;;  %v1286_v51 = vmul.f32 %v15861_v7, %v1250_v59  ;;  %v15984_v20 = vld [vmem:[#allocation67_spill] sm:$0xff] }
 0x23a   : > { %v3218_v53 = vadd.f32 %v3186_v6, %v3118_v36  ;;  %v2686_v11 = vmul.f32 %v15984_v20, %v15905_v41  ;;  %v2786_v17 = vmul.f32 %v15985_v9, %v15763_v61  ;;  %v2086_v62 = vmul.f32 %v15969_v45, %v15873_v42  ;;  %v1450_v33 = vld [vmem:[#allocation2 + $0xdc] sm:$0xff] }
 0x23b   : > { %v2618_v47 = vadd.f32 %v2586_v54, %v2517_v0  ;;  %v10328_v39 = vld [vmem:[#allocation2 + $0x121] sm:$0xff]  ;;  %v2018_v6 = vadd.f32 %v1986_v58, %v1918_v27  ;;  %v1318_v3 = vadd.f32 %v1286_v51, %v1218_v23  ;;  %v1386_v57 = vmul.f32 %v15865_v2, %v1350_v1  ;;  %v15987_v36 = vld [vmem:[#allocation70_spill] sm:$0xff] }
 0x23c   : > { %v3318_v60 = vadd.f32 %v3286_v22, %v3218_v53  ;;  %15986 = vst [vmem:[#allocation14_spill] sm:$0xff] %v10328_v39  ;;  %v2886_v32 = vmul.f32 %v15987_v36, %v15921_v18  ;;  %v15988_v48 = vld [vmem:[#allocation83_spill] sm:$0xff]  ;;  %v2186_v54 = vmul.f32 %v15971_v30, %v15876_v46  ;;  %v1486_v58 = vmul.f32 %v15867_v5, %v1450_v33 }
 0x23d   : > { %v2718_v59 = vadd.f32 %v2686_v11, %v2618_v47  ;;  %v2986_v0 = vmul.f32 %v15988_v48, %v15769_v13  ;;  %v10337_v22 = vld [vmem:[#allocation2 + $0x122] sm:$0xff]  ;;  %v2118_v53 = vadd.f32 %v2086_v62, %v2018_v6  ;;  %v1418_v9 = vadd.f32 %v1386_v57, %v1318_v3 }
 0x23e   : > { %v3418_v45 = vadd.f32 %v3386_v34, %v3318_v60  ;;  %15989 = vst [vmem:[#allocation87_spill] sm:$0xff] %v10337_v22  ;;  %v3087_v1 = vmul.f32 %v15772_v56, %v10326_v16  ;;  %v3187_v23 = vmul.f32 %v15773_v63, %v10328_v39  ;;  %v2286_v51 = vmul.f32 %v15972_v55, %v8924_v37  ;;  %v15990_v33 = vld [vmem:[#allocation79_spill] sm:$0xff] }
 0x23f   : > { %v2818_v27 = vadd.f32 %v2786_v17, %v2718_v59  ;;  %v2218_v11 = vadd.f32 %v2186_v54, %v2118_v53  ;;  %v1518_v48 = vadd.f32 %v1486_v58, %v1418_v9  ;;  %v1587_v34 = vmul.f32 %v15954_v25, %v15815_v49  ;;  %v15991_v59 = vld [vmem:[#allocation64_spill] sm:$0xff]  ;;  %v1083_v25 = vld [vmem:[#allocation2 + $0xe0] sm:$0xff]  ;;  %v15993_v58 = vld [vmem:[#allocation53_spill] sm:$0xff] }
 0x240   : > { %v3518_v47 = vadd.f32 %v3486_v31, %v3418_v45  ;;  %v3287_v17 = vmul.f32 %v15777_v19, %v10337_v22  ;;  %v2386_v6 = vmul.f32 %v15990_v33, %v15807_v35  ;;  %v1687_v3 = vmul.f32 %v15955_v15, %v15818_v8  ;;  %v1151_v22 = vld [vmem:[#allocation2 + $0xe1] sm:$0xff] }
 0x241   : > { %v8116_v62 = vpop.eup %8115  ;;  %v2918_v60 = vadd.f32 %v2886_v32, %v2818_v27  ;;  %v2318_v31 = vadd.f32 %v2286_v51, %v2218_v11  ;;  %v1619_v9 = vadd.f32 %v1587_v34, %v1518_v48  ;;  %v2486_v53 = vmul.f32 %v10168_v26, %v15814_v4  ;;  %v1251_v34 = vld [vmem:[#allocation2 + $0xe2] sm:$0xff] }
 0x242   : > { %v8118_v57 = vpop.eup %8117  ;;  %v3779_v39 = vmul.f32 %v8116_v62, %v15991_v59  ;;  %v10356_v45 = vadd.f32 %v9923_v14, %v3518_v47  ;;  %v2587_v27 = vmul.f32 %v15993_v58, %v8978_v50  ;;  %v10364_v62 = vld [vmem:[#allocation2 + $0x123] sm:$0xff]  ;;  %v1787_v48 = vmul.f32 %v15956_v52, %v15789_v43  ;;  %v15995_v52 = vld [vmem:[#allocation54_spill] sm:$0xff] }
 0x243   : > { %v3684_v54 = vadd.f32 1.0, %v8118_v57  ;;  %v3018_v32 = vadd.f32 %v2986_v0, %v2918_v60  ;;  %v2418_v14 = vadd.f32 %v2386_v6, %v2318_v31  ;;  %v1719_v47 = vadd.f32 %v1687_v3, %v1619_v9  ;;  %v10371_v60 = vld [vmem:[#allocation2 + $0x124] sm:$0xff] }
 0x244   : > { %15992 = vst [vmem:[#allocation15_spill] sm:$0xff] %v10356_v45  ;;  %7765 = vmatmul.mubr.msk.f32.gmra.mrb[44].mxu0 %vm965_vm1, %v3779_v39  ;;  %v7499_v15 = vmul.f32 -1.442695, %v10356_v45  ;;  %v1887_v51 = vmul.f32 %v15979_v12, %v15795_v24  ;;  %v1119_v11 = vmul.f32 %v15859_v40, %v1083_v25  ;;  %15994 = vst [vmem:[#allocation44_spill] sm:$0xff] %v10371_v60  ;;  %v1351_v31 = vld [vmem:[#allocation2 + $0xe3] sm:$0xff] }
 0x245   : > { %8119 = vrcp.f32 %v3684_v54  ;;  %v3119_v0 = vadd.f32 %v3087_v1, %v3018_v32  ;;  %v2518_v39 = vadd.f32 %v2486_v53, %v2418_v14  ;;  %v1819_v57 = vadd.f32 %v1787_v48, %v1719_v47  ;;  %v10392_v48 = vld [vmem:[#allocation2 + $0x128] sm:$0xff] }
 0x246   : > { %8121 = vpow2.f32 %v7499_v15  ;;  %v1187_v59 = vmul.f32 %v15860_v10, %v1151_v22  ;;  %v3387_v3 = vmul.f32 %v15782_v44, %v10364_v62  ;;  %v2687_v1 = vmul.f32 %v15995_v52, %v15905_v41  ;;  %v10384_v22 = vld [vmem:[%s14992_s3 + $0x18] ss:$0 sm:$0xff]  ;;  %v15996_v15 = vld [vmem:[#allocation48_spill] sm:$0xff]  ;;  %15997 = vst [vmem:[#allocation52_spill] sm:$0xff] %v10392_v48 }
 0x247   : > { %v3219_v6 = vadd.f32 %v3187_v23, %v3119_v0  ;;  %v1987_v12 = vmul.f32 %v15981_v38, %v15799_v29  ;;  %v2619_v9 = vadd.f32 %v2587_v27, %v2518_v39  ;;  %v1919_v25 = vadd.f32 %v1887_v51, %v1819_v57  ;;  %v1451_v27 = vld [vmem:[#allocation2 + $0xe4] sm:$0xff]  ;;  %v15999_v39 = vld [vmem:[#allocation61_spill] sm:$0xff] }
 0x248   : > { %v1219_v54 = vadd.f32 %v1187_v59, %v1119_v11  ;;  %v1287_v32 = vmul.f32 %v15861_v7, %v1251_v34  ;;  %v3487_v23 = vmul.f32 %v10384_v22, %v10371_v60  ;;  %v2787_v14 = vmul.f32 %v15996_v15, %v15763_v61  ;;  %v10394_v0 = vld [vmem:[#allocation2 + $0x129] sm:$0xff] }
 0x249   : > { %v3319_v53 = vadd.f32 %v3287_v17, %v3219_v6  ;;  %v2087_v38 = vmul.f32 %v15982_v21, %v15873_v42  ;;  %v2719_v47 = vadd.f32 %v2687_v1, %v2619_v9  ;;  %15998 = vst [vmem:[#allocation38_spill] sm:$0xff] %v10394_v0  ;;  %v2019_v17 = vadd.f32 %v1987_v12, %v1919_v25  ;;  %v10403_v1 = vld [vmem:[#allocation2 + $0x12a] sm:$0xff] }
 0x24a   : > { %v1319_v51 = vadd.f32 %v1287_v32, %v1219_v54  ;;  %v1387_v11 = vmul.f32 %v15865_v2, %v1351_v31  ;;  %v2887_v57 = vmul.f32 %v15999_v39, %v15921_v18  ;;  %v2987_v59 = vmul.f32 %v10303_v28, %v15769_v13  ;;  %16000 = vst [vmem:[#allocation88_spill] sm:$0xff] %v10403_v1  ;;  %v16001_v54 = vld [vmem:[#allocation45_spill] sm:$0xff] }
 0x24b   : > { %v3419_v34 = vadd.f32 %v3387_v3, %v3319_v53  ;;  %v2187_v6 = vmul.f32 %v15984_v20, %v15876_v46  ;;  %v2819_v45 = vadd.f32 %v2787_v14, %v2719_v47  ;;  %v2119_v9 = vadd.f32 %v2087_v38, %v2019_v17  ;;  %v16002_v14 = vld [vmem:[#allocation76_spill] sm:$0xff] }
 0x24c   : > { %v1419_v15 = vadd.f32 %v1387_v11, %v1319_v51  ;;  %v1487_v12 = vmul.f32 %v15867_v5, %v1451_v27  ;;  %v3088_v3 = vmul.f32 %v15772_v56, %v10392_v48  ;;  %v3188_v31 = vmul.f32 %v15773_v63, %v10394_v0  ;;  %v16003_v11 = vld [vmem:[#allocation42_spill] sm:$0xff]  ;;  %v16004_v48 = vld [vmem:[#allocation83_spill] sm:$0xff] }
 0x24d   : > { %v3519_v25 = vadd.f32 %v3487_v23, %v3419_v34  ;;  %v2287_v32 = vmul.f32 %v16001_v54, %v8924_v37  ;;  %v2919_v53 = vadd.f32 %v2887_v57, %v2819_v45  ;;  %v2219_v28 = vadd.f32 %v2187_v6, %v2119_v9  ;;  %v10417_v23 = vld [vmem:[%s14993_s4] ss:$0 sm:$0xff]  ;;  %v10435_v54 = vld [vmem:[#allocation2 + $0x12b] sm:$0xff] }
 0x24e   : > { %v1519_v20 = vadd.f32 %v1487_v12, %v1419_v15  ;;  %v1588_v47 = vmul.f32 %v16002_v14, %v15815_v49  ;;  %v3288_v17 = vmul.f32 %v15777_v19, %v10403_v1  ;;  %v2387_v45 = vmul.f32 %v15987_v36, %v15807_v35  ;;  %v1084_v12 = vld [vmem:[#allocation2 + $0xf0] sm:$0xff] }
 0x24f   : > { %v8120_v38 = vpop.eup %8119  ;;  %v10420_v27 = vadd.f32 %v10417_v23, %v3519_v25  ;;  %v1688_v15 = vmul.f32 %v15971_v30, %v15818_v8  ;;  %v3019_v57 = vadd.f32 %v2987_v59, %v2919_v53  ;;  %v2319_v6 = vadd.f32 %v2287_v32, %v2219_v28  ;;  %v1152_v14 = vld [vmem:[#allocation2 + $0xf1] sm:$0xff] }
 0x250   : > { %v8122_v51 = vpop.eup %8121  ;;  %v3780_v34 = vmul.f32 %v8120_v38, %v16003_v11  ;;  %v1620_v9 = vadd.f32 %v1588_v47, %v1519_v20  ;;  %v2487_v1 = vmul.f32 %v16004_v48, %v15814_v4  ;;  %v2588_v36 = vmul.f32 %v10326_v16, %v8978_v50  ;;  %v1252_v20 = vld [vmem:[#allocation2 + $0xf2] sm:$0xff] }
 0x251   : > { %v3685_v0 = vadd.f32 1.0, %v8122_v51  ;;  %v7500_v25 = vmul.f32 -1.442695, %v10420_v27  ;;  %v3120_v30 = vadd.f32 %v3088_v3, %v3019_v57  ;;  %v2419_v38 = vadd.f32 %v2387_v45, %v2319_v6  ;;  %v10443_v11 = vld [vmem:[#allocation2 + $0x12c] sm:$0xff] }
 0x252   : > { %7767 = vmatprep.mubr.msk.f32.mxu1 %vm965_vm1, %v3780_v34  ;;  %v1720_v59 = vadd.f32 %v1688_v15, %v1620_v9  ;;  %v1788_v28 = vmul.f32 %v15972_v55, %v15789_v43  ;;  %v1888_v32 = vmul.f32 %v15990_v33, %v15795_v24  ;;  %v1120_v53 = vmul.f32 %v15859_v40, %v1084_v12  ;;  %v1352_v45 = vld [vmem:[#allocation2 + $0xf3] sm:$0xff] }
 0x253   : > { %8123 = vrcp.f32 %v3685_v0  ;;  %v1188_v47 = vmul.f32 %v15860_v10, %v1152_v14  ;;  %v3220_v51 = vadd.f32 %v3188_v31, %v3120_v30  ;;  %v2519_v3 = vadd.f32 %v2487_v1, %v2419_v38  ;;  %v16005_v55 = vld [vmem:[#allocation14_spill] sm:$0xff] }
 0x254   : > { %8125 = vpow2.f32 %v7500_v25  ;;  %v1820_v34 = vadd.f32 %v1788_v28, %v1720_v59  ;;  %v3388_v15 = vmul.f32 %v15782_v44, %v10435_v54  ;;  %v2688_v0 = vmul.f32 %v16005_v55, %v15905_v41  ;;  %v1452_v14 = vld [vmem:[#allocation2 + $0xf4] sm:$0xff]  ;;  %v16006_v25 = vld [vmem:[#allocation87_spill] sm:$0xff] }
 0x255   : > { %v1220_v57 = vadd.f32 %v1188_v47, %v1120_v53  ;;  %v1288_v33 = vmul.f32 %v15861_v7, %v1252_v20  ;;  %v3320_v6 = vadd.f32 %v3288_v17, %v3220_v51  ;;  %v2620_v9 = vadd.f32 %v2588_v36, %v2519_v3  ;;  %v10457_v47 = vld [vmem:[#allocation2 + $0x138] sm:$0xff] }
 0x256   : > { %v1920_v12 = vadd.f32 %v1888_v32, %v1820_v34  ;;  %v1988_v31 = vmul.f32 %v10168_v26, %v15799_v29  ;;  %v3488_v1 = vmul.f32 %v10384_v22, %v10443_v11  ;;  %v2788_v30 = vmul.f32 %v16006_v25, %v15763_v61  ;;  %16007 = vst [vmem:[#allocation20_spill] sm:$0xff] %v10457_v47  ;;  %v10459_v17 = vld [vmem:[#allocation2 + $0x139] sm:$0xff] }
 0x257   : > { %v1320_v38 = vadd.f32 %v1288_v33, %v1220_v57  ;;  %v1388_v59 = vmul.f32 %v15865_v2, %v1352_v45  ;;  %v3420_v28 = vadd.f32 %v3388_v15, %v3320_v6  ;;  %v2720_v53 = vadd.f32 %v2688_v0, %v2620_v9  ;;  %16008 = vst [vmem:[#allocation50_spill] sm:$0xff] %v10459_v17  ;;  %v10468_v15 = vld [vmem:[#allocation2 + $0x13a] sm:$0xff] }
 0x258   : > { %v2020_v36 = vadd.f32 %v1988_v31, %v1920_v12  ;;  %v2088_v26 = vmul.f32 %v15993_v58, %v15873_v42  ;;  %v2888_v20 = vmul.f32 %v10364_v62, %v15921_v18  ;;  %v2988_v32 = vmul.f32 %v10371_v60, %v15769_v13  ;;  %16009 = vst [vmem:[#allocation65_spill] sm:$0xff] %v10468_v15  ;;  %v16015_v60 = vld [vmem:[#allocation45_spill] sm:$0xff] }
 0x259   : > { %v1420_v51 = vadd.f32 %v1388_v59, %v1320_v38  ;;  %v1488_v3 = vmul.f32 %v15867_v5, %v1452_v14  ;;  %v3520_v34 = vadd.f32 %v3488_v1, %v3420_v28  ;;  %v2820_v45 = vadd.f32 %v2788_v30, %v2720_v53  ;;  %v10481_v1 = vld [vmem:[#allocation2 + $0x13b] sm:$0xff]  ;;  %v16012_v38 = vld [vmem:[#allocation48_spill] sm:$0xff] }
 0x25a   : > { %v2120_v0 = vadd.f32 %v2088_v26, %v2020_v36  ;;  %v2188_v57 = vmul.f32 %v15995_v52, %v15876_v46  ;;  %v3089_v33 = vmul.f32 %v15772_v56, %v10457_v47  ;;  %v3189_v6 = vmul.f32 %v15773_v63, %v10459_v17  ;;  %16011 = vst [vmem:[#allocation23_spill] sm:$0xff] %v10481_v1  ;;  %v1085_v17 = vld [vmem:[#allocation2 + $0xf8] sm:$0xff] }
 0x25b   : > { %v1520_v9 = vadd.f32 %v1488_v3, %v1420_v51  ;;  %v1589_v12 = vmul.f32 %v15982_v21, %v15815_v49  ;;  %v10479_v31 = vadd.f32 %v10417_v23, %v3520_v34  ;;  %v2920_v14 = vadd.f32 %v2888_v20, %v2820_v45  ;;  %v16013_v21 = vld [vmem:[#allocation67_spill] sm:$0xff] }
 0x25c   : > { %v2220_v30 = vadd.f32 %v2188_v57, %v2120_v0  ;;  %v2288_v59 = vmul.f32 %v16012_v38, %v8924_v37  ;;  %v3289_v53 = vmul.f32 %v15777_v19, %v10468_v15  ;;  %v2388_v36 = vmul.f32 %v15999_v39, %v15807_v35  ;;  %v16014_v34 = vld [vmem:[#allocation15_spill] sm:$0xff] }
 0x25d   : > { %16010 = vst [vmem:[#allocation27_spill] sm:$0xff] %v10479_v31  ;;  %v8124_v28 = vpop.eup %8123  ;;  %v1621_v26 = vadd.f32 %v1589_v12, %v1520_v9  ;;  %v1689_v51 = vmul.f32 %v16013_v21, %v15818_v8  ;;  %v7501_v45 = vmul.f32 -1.442695, %v10479_v31  ;;  %v3020_v0 = vadd.f32 %v2988_v32, %v2920_v14  ;;  %v1153_v9 = vld [vmem:[#allocation2 + $0xf9] sm:$0xff]  ;;  %v16017_v32 = vld [vmem:[#allocation85_spill] sm:$0xff] }
 0x25e   : > { %v8126_v3 = vpop.eup %8125  ;;  %v3781_v20 = vmul.f32 %v8124_v28, %v16014_v34  ;;  %v2320_v57 = vadd.f32 %v2288_v59, %v2220_v30  ;;  %v3389_v38 = vmul.f32 %v15782_v44, %v10481_v1  ;;  %v1789_v39 = vmul.f32 %v16015_v60, %v15789_v43  ;;  %v10498_v21 = vld [vmem:[#allocation2 + $0x13c] sm:$0xff] }
 0x25f   : > { %v3686_v47 = vadd.f32 1.0, %v8126_v3  ;;  %v1721_v15 = vadd.f32 %v1689_v51, %v1621_v26  ;;  %8127 = vpow2.f32 %v7501_v45  ;;  %v3121_v12 = vadd.f32 %v3089_v33, %v3020_v0  ;;  %16016 = vst [vmem:[#allocation34_spill] sm:$0xff] %v10498_v21  ;;  %v8193_v30 = vld [vmem:[%s14994_s5] sm:$0xf]  ;;  %v16018_v60 = vld [vmem:[#allocation70_spill] sm:$0xff] }
 0x260   : > { %7768 = vmatmul.mubr.msk.f32.vlgmr.msra.gmra.mrb[0].mxu1 %vm965_vm1, %v3781_v20  ;;  %v2420_v28 = vadd.f32 %v2388_v36, %v2320_v57  ;;  %v2488_v14 = vmul.f32 %v16017_v32, %v15814_v4  ;;  %v1889_v26 = vmul.f32 %v16018_v60, %v15795_v24  ;;  %v1121_v51 = vmul.f32 %v15859_v40, %v1085_v17  ;;  %v1253_v33 = vld [vmem:[#allocation2 + $0xfa] sm:$0xff]  ;;  %v16019_v36 = vld [vmem:[#allocation52_spill] sm:$0xff] }
 0x261   : > { %7795 = vmatpush3.msk.msra.mxu1 %vm3896_vm3, %v8193_v30  ;;  %8129 = vrcp.f32 %v3686_v47  ;;  %v1821_v59 = vadd.f32 %v1789_v39, %v1721_v15  ;;  %v3221_v3 = vadd.f32 %v3189_v6, %v3121_v12  ;;  %v2589_v20 = vmul.f32 %v16019_v36, %v8978_v50  ;;  %v16020_v57 = vld [vmem:[#allocation38_spill] sm:$0xff]  ;;  %v10518_v6 = vld [vmem:[#allocation2 + $0x140] sm:$0xff] }
 0x262   : > { %v2520_v34 = vadd.f32 %v2488_v14, %v2420_v28  ;;  %v1189_v45 = vmul.f32 %v15860_v10, %v1153_v9  ;;  %v3489_v0 = vmul.f32 %v10384_v22, %v10498_v21  ;;  %v2689_v47 = vmul.f32 %v16020_v57, %v15905_v41  ;;  %v1353_v30 = vld [vmem:[#allocation2 + $0xfb] sm:$0xff]  ;;  %16021 = vst [vmem:[#allocation66_spill] sm:$0xff] %v10518_v6  ;;  %v16022_v9 = vld [vmem:[#allocation88_spill] sm:$0xff] }
 0x263   : > { %v1921_v39 = vadd.f32 %v1889_v26, %v1821_v59  ;;  %v1989_v15 = vmul.f32 %v16004_v48, %v15799_v29  ;;  %v3321_v17 = vadd.f32 %v3289_v53, %v3221_v3  ;;  %v1289_v28 = vmul.f32 %v15861_v7, %v1253_v33  ;;  %v1453_v26 = vld [vmem:[#allocation2 + $0xfc] sm:$0xff] }
 0x264   : > { %v2621_v60 = vadd.f32 %v2589_v20, %v2520_v34  ;;  %v1221_v12 = vadd.f32 %v1189_v45, %v1121_v51  ;;  %v2789_v14 = vmul.f32 %v16022_v9, %v15763_v61  ;;  %v2889_v31 = vmul.f32 %v10435_v54, %v15921_v18  ;;  %v10527_v53 = vld [vmem:[#allocation2 + $0x141] sm:$0xff] }
 0x265   : > { %v2021_v36 = vadd.f32 %v1989_v15, %v1921_v39  ;;  %v2089_v59 = vmul.f32 %v10326_v16, %v15873_v42  ;;  %v3421_v48 = vadd.f32 %v3389_v38, %v3321_v17  ;;  %v10529_v3 = vld [vmem:[#allocation2 + $0x142] sm:$0xff]  ;;  %v1389_v33 = vmul.f32 %v15865_v2, %v1353_v30 }
 0x266   : > { %v2721_v57 = vadd.f32 %v2689_v47, %v2621_v60  ;;  %16023 = vst [vmem:[#allocation19_spill] sm:$0xff] %v10529_v3  ;;  %v1321_v51 = vadd.f32 %v1289_v28, %v1221_v12  ;;  %v2989_v34 = vmul.f32 %v10443_v11, %v15769_v13  ;;  %v3090_v20 = vmul.f32 %v15772_v56, %v10518_v6 }
 0x267   : > { %v2121_v45 = vadd.f32 %v2089_v59, %v2021_v36  ;;  %v2189_v39 = vmul.f32 %v16005_v55, %v15876_v46  ;;  %v3521_v15 = vadd.f32 %v3489_v0, %v3421_v48  ;;  %v1489_v17 = vmul.f32 %v15867_v5, %v1453_v26  ;;  %v10548_v0 = vld [vmem:[#allocation2 + $0x143] sm:$0xff] }
 0x268   : > { %v2821_v38 = vadd.f32 %v2789_v14, %v2721_v57  ;;  %v1421_v47 = vadd.f32 %v1389_v33, %v1321_v51  ;;  %v3190_v60 = vmul.f32 %v15773_v63, %v10527_v53  ;;  %v3290_v30 = vmul.f32 %v15777_v19, %v10529_v3  ;;  %16025 = vst [vmem:[#allocation24_spill] sm:$0xff] %v10548_v0  ;;  %v1086_v3 = vld [vmem:[#allocation2 + $0x108] sm:$0xff] }
 0x269   : > { %v2221_v12 = vadd.f32 %v2189_v39, %v2121_v45  ;;  %v2289_v28 = vmul.f32 %v16006_v25, %v8924_v37  ;;  %v8128_v6 = vpop.eup %8127  ;;  %v10546_v36 = vadd.f32 %v10417_v23, %v3521_v15  ;;  %v1590_v14 = vmul.f32 %v15993_v58, %v15815_v49 }
 0x26a   : > { %v2921_v59 = vadd.f32 %v2889_v31, %v2821_v38  ;;  %v1521_v57 = vadd.f32 %v1489_v17, %v1421_v47  ;;  %v3687_v48 = vadd.f32 1.0, %v8128_v6  ;;  %v2389_v33 = vmul.f32 %v10364_v62, %v15807_v35  ;;  %v1154_v47 = vld [vmem:[#allocation2 + $0x109] sm:$0xff] }
 0x26b   : > { %16024 = vst [vmem:[#allocation40_spill] sm:$0xff] %v10546_v36  ;;  %v8130_v26 = vpop.eup %8129  ;;  %v2321_v51 = vadd.f32 %v2289_v28, %v2221_v12  ;;  %v1690_v45 = vmul.f32 %v15995_v52, %v15818_v8  ;;  %v7502_v15 = vmul.f32 -1.442695, %v10546_v36  ;;  %v3390_v58 = vmul.f32 %v15782_v44, %v10548_v0  ;;  %v10560_v6 = vld [vmem:[#allocation2 + $0x144] sm:$0xff] }
 0x26c   : > { %v3782_v39 = vmul.f32 %v8130_v26, %v10420_v27  ;;  %v3021_v31 = vadd.f32 %v2989_v34, %v2921_v59  ;;  %v1622_v38 = vadd.f32 %v1590_v14, %v1521_v57  ;;  %8131 = vrcp.f32 %v3687_v48  ;;  %16026 = vst [vmem:[#allocation16_spill] sm:$0xff] %v10560_v6  ;;  %v16027_v12 = vld [vmem:[#allocation44_spill] sm:$0xff] }
 0x26d   : > { %v2421_v17 = vadd.f32 %v2389_v33, %v2321_v51  ;;  %v2489_v28 = vmul.f32 %v16027_v12, %v15814_v4  ;;  %8133 = vpow2.f32 %v7502_v15  ;;  %v16028_v34 = vld [vmem:[#allocation48_spill] sm:$0xff]  ;;  %v1122_v36 = vmul.f32 %v15859_v40, %v1086_v3  ;;  %v16032_v3 = vld [vmem:[#allocation65_spill] sm:$0xff] }
 0x26e   : > { %7770 = vmatprep.mubr.msk.f32.mxu1 %vm965_vm1, %v3782_v39  ;;  %v3122_v52 = vadd.f32 %v3090_v20, %v3021_v31  ;;  %v1722_v27 = vadd.f32 %v1690_v45, %v1622_v38  ;;  %v1790_v59 = vmul.f32 %v16028_v34, %v15789_v43  ;;  %v1254_v57 = vld [vmem:[#allocation2 + $0x10a] sm:$0xff]  ;;  %v1190_v51 = vmul.f32 %v15860_v10, %v1154_v47  ;;  %v16031_v38 = vld [vmem:[#allocation50_spill] sm:$0xff] }
 0x26f   : > { %v2521_v14 = vadd.f32 %v2489_v28, %v2421_v17  ;;  %v16029_v26 = vld [vmem:[#allocation20_spill] sm:$0xff]  ;;  %v3490_v0 = vmul.f32 %v10384_v22, %v10560_v6  ;;  %v16030_v20 = vld [vmem:[#allocation61_spill] sm:$0xff]  ;;  %v2690_v17 = vmul.f32 %v16031_v38, %v15905_v41  ;;  %v1290_v34 = vmul.f32 %v15861_v7, %v1254_v57 }
 0x270   : > { %v2590_v48 = vmul.f32 %v16029_v26, %v8978_v50  ;;  %v3222_v33 = vadd.f32 %v3190_v60, %v3122_v52  ;;  %v1822_v39 = vadd.f32 %v1790_v59, %v1722_v27  ;;  %v1890_v45 = vmul.f32 %v16030_v20, %v15795_v24  ;;  %v1354_v15 = vld [vmem:[#allocation2 + $0x10b] sm:$0xff] }
 0x271   : > { %v1222_v28 = vadd.f32 %v1190_v51, %v1122_v36  ;;  %v2790_v47 = vmul.f32 %v16032_v3, %v15763_v61  ;;  %v10580_v60 = vld [vmem:[#allocation2 + $0x150] sm:$0xff]  ;;  %v1990_v27 = vmul.f32 %v16017_v32, %v15799_v29  ;;  %v1390_v57 = vmul.f32 %v15865_v2, %v1354_v15  ;;  %v16036_v15 = vld [vmem:[#allocation38_spill] sm:$0xff] }
 0x272   : > { %v2622_v31 = vadd.f32 %v2590_v48, %v2521_v14  ;;  %v3322_v26 = vadd.f32 %v3290_v30, %v3222_v33  ;;  %v1922_v52 = vadd.f32 %v1890_v45, %v1822_v39  ;;  %v1454_v59 = vld [vmem:[#allocation2 + $0x10c] sm:$0xff]  ;;  %v2890_v14 = vmul.f32 %v10481_v1, %v15921_v18 }
 0x273   : > { %v10586_v48 = vld [vmem:[#allocation2 + $0x151] sm:$0xff]  ;;  %v1322_v36 = vadd.f32 %v1290_v34, %v1222_v28  ;;  %v2990_v51 = vmul.f32 %v10498_v21, %v15769_v13  ;;  %v16035_v45 = vld [vmem:[#allocation52_spill] sm:$0xff]  ;;  %v1490_v1 = vmul.f32 %v15867_v5, %v1454_v59  ;;  %v2190_v34 = vmul.f32 %v16036_v15, %v15876_v46 }
 0x274   : > { %v2722_v20 = vadd.f32 %v2690_v17, %v2622_v31  ;;  %16033 = vst [vmem:[#allocation41_spill] sm:$0xff] %v10586_v48  ;;  %v3422_v30 = vadd.f32 %v3390_v58, %v3322_v26  ;;  %v10591_v33 = vld [vmem:[#allocation2 + $0x152] sm:$0xff]  ;;  %v2022_v39 = vadd.f32 %v1990_v27, %v1922_v52  ;;  %v2090_v32 = vmul.f32 %v16035_v45, %v15873_v42 }
 0x275   : > { %16034 = vst [vmem:[#allocation43_spill] sm:$0xff] %v10591_v33  ;;  %v3091_v31 = vmul.f32 %v15772_v56, %v10580_v60  ;;  %v1422_v17 = vadd.f32 %v1390_v57, %v1322_v36  ;;  %v3191_v58 = vmul.f32 %v15773_v63, %v10586_v48  ;;  %v3291_v27 = vmul.f32 %v15777_v19, %v10591_v33 }
 0x276   : > { %v2822_v3 = vadd.f32 %v2790_v47, %v2722_v20  ;;  %v3522_v28 = vadd.f32 %v3490_v0, %v3422_v30  ;;  %v2122_v26 = vadd.f32 %v2090_v32, %v2022_v39  ;;  %v8132_v21 = vpop.eup %8131  ;;  %v10604_v47 = vld [vmem:[#allocation2 + $0x153] sm:$0xff]  ;;  %v1591_v36 = vmul.f32 %v10326_v16, %v15815_v49  ;;  %v16038_v0 = vld [vmem:[#allocation27_spill] sm:$0xff] }
 0x277   : > { %16037 = vst [vmem:[#allocation47_spill] sm:$0xff] %v10604_v47  ;;  %v1522_v20 = vadd.f32 %v1490_v1, %v1422_v17  ;;  %v8134_v59 = vpop.eup %8133  ;;  %v3783_v57 = vmul.f32 %v8132_v21, %v16038_v0  ;;  %v2290_v32 = vmul.f32 %v16022_v9, %v8924_v37  ;;  %v1691_v33 = vmul.f32 %v16005_v55, %v15818_v8  ;;  %v1255_v0 = vld [vmem:[#allocation2 + $0x112] sm:$0xff] }
 0x278   : > { %v2922_v52 = vadd.f32 %v2890_v14, %v2822_v3  ;;  %v10610_v30 = vadd.f32 %v10417_v23, %v3522_v28  ;;  %v2222_v39 = vadd.f32 %v2190_v34, %v2122_v26  ;;  %v3688_v3 = vadd.f32 1.0, %v8134_v59  ;;  %v1087_v28 = vld [vmem:[#allocation2 + $0x110] sm:$0xff] }
 0x279   : > { %v1623_v48 = vadd.f32 %v1591_v36, %v1522_v20  ;;  %7771 = vmatmul.mubr.msk.f32.gmra.mrb[2].mxu1 %vm965_vm1, %v3783_v57  ;;  %v3391_v1 = vmul.f32 %v15782_v44, %v10604_v47  ;;  %v2390_v17 = vmul.f32 %v10435_v54, %v15807_v35  ;;  %v1155_v26 = vld [vmem:[#allocation2 + $0x111] sm:$0xff]  ;;  %v1791_v55 = vmul.f32 %v16006_v25, %v15789_v43 }
 0x27a   : > { %16039 = vst [vmem:[#allocation69_spill] sm:$0xff] %v10610_v30  ;;  %v3022_v14 = vadd.f32 %v2990_v51, %v2922_v52  ;;  %v7503_v16 = vmul.f32 -1.442695, %v10610_v30  ;;  %v2322_v21 = vadd.f32 %v2290_v32, %v2222_v39  ;;  %8135 = vrcp.f32 %v3688_v3  ;;  %v10622_v51 = vld [vmem:[#allocation2 + $0x154] sm:$0xff] }
 0x27b   : > { %16040 = vst [vmem:[#allocation56_spill] sm:$0xff] %v10622_v51  ;;  %v1723_v52 = vadd.f32 %v1691_v33, %v1623_v48  ;;  %v2490_v36 = vmul.f32 %v10443_v11, %v15814_v4  ;;  %v1891_v59 = vmul.f32 %v10364_v62, %v15795_v24  ;;  %v1123_v32 = vmul.f32 %v15859_v40, %v1087_v28  ;;  %v16041_v25 = vld [vmem:[#allocation66_spill] sm:$0xff] }
 0x27c   : > { %v3123_v34 = vadd.f32 %v3091_v31, %v3022_v14  ;;  %8137 = vpow2.f32 %v7503_v16  ;;  %v2422_v20 = vadd.f32 %v2390_v17, %v2322_v21  ;;  %v1191_v31 = vmul.f32 %v15860_v10, %v1155_v26  ;;  %v1355_v16 = vld [vmem:[#allocation2 + $0x113] sm:$0xff]  ;;  %v16042_v26 = vld [vmem:[#allocation19_spill] sm:$0xff] }
 0x27d   : > { %v1823_v39 = vadd.f32 %v1791_v55, %v1723_v52  ;;  %v3491_v48 = vmul.f32 %v10384_v22, %v10622_v51  ;;  %v2591_v3 = vmul.f32 %v16041_v25, %v8978_v50  ;;  %v1991_v14 = vmul.f32 %v16027_v12, %v15799_v29  ;;  %v16043_v55 = vld [vmem:[#allocation20_spill] sm:$0xff]  ;;  %v10645_v51 = vld [vmem:[#allocation2 + $0x158] sm:$0xff] }
 0x27e   : > { %v3223_v57 = vadd.f32 %v3191_v58, %v3123_v34  ;;  %v2522_v33 = vadd.f32 %v2490_v36, %v2422_v20  ;;  %v1223_v17 = vadd.f32 %v1191_v31, %v1123_v32  ;;  %v1291_v58 = vmul.f32 %v15861_v7, %v1255_v0  ;;  %v1455_v36 = vld [vmem:[#allocation2 + $0x114] sm:$0xff]  ;;  %16044 = vst [vmem:[#allocation73_spill] sm:$0xff] %v10645_v51 }
 0x27f   : > { %v1923_v62 = vadd.f32 %v1891_v59, %v1823_v39  ;;  %v2691_v28 = vmul.f32 %v10527_v53, %v15905_v41  ;;  %v2791_v52 = vmul.f32 %v16042_v26, %v15763_v61  ;;  %v2091_v20 = vmul.f32 %v16043_v55, %v15873_v42  ;;  %v10647_v12 = vld [vmem:[#allocation2 + $0x159] sm:$0xff]  ;;  %v16046_v39 = vld [vmem:[#allocation24_spill] sm:$0xff] }
 0x280   : > { %v3323_v21 = vadd.f32 %v3291_v27, %v3223_v57  ;;  %v2623_v34 = vadd.f32 %v2591_v3, %v2522_v33  ;;  %16045 = vst [vmem:[#allocation58_spill] sm:$0xff] %v10647_v12  ;;  %v1323_v59 = vadd.f32 %v1291_v58, %v1223_v17  ;;  %v1391_v0 = vmul.f32 %v15865_v2, %v1355_v16 }
 0x281   : > { %v2023_v27 = vadd.f32 %v1991_v14, %v1923_v62  ;;  %v2891_v32 = vmul.f32 %v16046_v39, %v15921_v18  ;;  %v2991_v31 = vmul.f32 %v10560_v6, %v15769_v13  ;;  %v2191_v33 = vmul.f32 %v16031_v38, %v15876_v46  ;;  %v16047_v62 = vld [vmem:[#allocation65_spill] sm:$0xff] }
 0x282   : > { %v3423_v30 = vadd.f32 %v3391_v1, %v3323_v21  ;;  %v2723_v57 = vadd.f32 %v2691_v28, %v2623_v34  ;;  %v1423_v21 = vadd.f32 %v1391_v0, %v1323_v59  ;;  %v1491_v55 = vmul.f32 %v15867_v5, %v1455_v36  ;;  %v10666_v28 = vld [vmem:[#allocation2 + $0x15a] sm:$0xff] }
 0x283   : > { %v2123_v1 = vadd.f32 %v2091_v20, %v2023_v27  ;;  %v3092_v14 = vmul.f32 %v15772_v56, %v10645_v51  ;;  %v3192_v16 = vmul.f32 %v15773_v63, %v10647_v12  ;;  %v2291_v17 = vmul.f32 %v16047_v62, %v8924_v37  ;;  %v16049_v27 = vld [vmem:[#allocation40_spill] sm:$0xff] }
 0x284   : > { %v3523_v3 = vadd.f32 %v3491_v48, %v3423_v30  ;;  %v2823_v26 = vadd.f32 %v2791_v52, %v2723_v57  ;;  %v8136_v58 = vpop.eup %8135  ;;  %v10668_v30 = vld [vmem:[#allocation2 + $0x15b] sm:$0xff]  ;;  %v1523_v20 = vadd.f32 %v1491_v55, %v1423_v21  ;;  %v1592_v52 = vmul.f32 %v16035_v45, %v15815_v49 }
 0x285   : > { %v2223_v48 = vadd.f32 %v2191_v33, %v2123_v1  ;;  %v3784_v59 = vmul.f32 %v8136_v58, %v16049_v27  ;;  %v16050_v57 = vld [vmem:[#allocation23_spill] sm:$0xff]  ;;  %v3292_v45 = vmul.f32 %v15777_v19, %v10666_v28 }
 0x286   : > { %v10664_v34 = vadd.f32 %v10417_v23, %v3523_v3  ;;  %v8138_v36 = vpop.eup %8137  ;;  %v2923_v0 = vadd.f32 %v2891_v32, %v2823_v26  ;;  %v2391_v12 = vmul.f32 %v16050_v57, %v15807_v35  ;;  %v1692_v3 = vmul.f32 %v16036_v15, %v15818_v8  ;;  %v1088_v33 = vld [vmem:[#allocation2 + $0x120] sm:$0xff]  ;;  %v16051_v32 = vld [vmem:[#allocation34_spill] sm:$0xff] }
 0x287   : > { %v3689_v51 = vadd.f32 1.0, %v8138_v36  ;;  %v2323_v6 = vadd.f32 %v2291_v17, %v2223_v48  ;;  %v1624_v38 = vadd.f32 %v1592_v52, %v1523_v20  ;;  %7773 = vmatprep.mubr.msk.f32.mxu1 %vm965_vm1, %v3784_v59  ;;  %v3392_v26 = vmul.f32 %v15782_v44, %v10668_v30  ;;  %v1156_v21 = vld [vmem:[#allocation2 + $0x121] sm:$0xff] }
 0x288   : > { %16048 = vst [vmem:[#allocation79_spill] sm:$0xff] %v10664_v34  ;;  %v7504_v62 = vmul.f32 -1.442695, %v10664_v34  ;;  %v3023_v55 = vadd.f32 %v2991_v31, %v2923_v0  ;;  %v2491_v1 = vmul.f32 %v16051_v32, %v15814_v4  ;;  %v10685_v15 = vld [vmem:[#allocation2 + $0x15c] sm:$0xff]  ;;  %v1792_v48 = vmul.f32 %v16022_v9, %v15789_v43  ;;  %v16052_v9 = vld [vmem:[#allocation41_spill] sm:$0xff] }
 0x289   : > { %8139 = vrcp.f32 %v3689_v51  ;;  %v2423_v58 = vadd.f32 %v2391_v12, %v2323_v6  ;;  %v1724_v17 = vadd.f32 %v1692_v3, %v1624_v38  ;;  %v2592_v20 = vmul.f32 %v10580_v60, %v8978_v50  ;;  %v1256_v36 = vld [vmem:[#allocation2 + $0x122] sm:$0xff] }
 0x28a   : > { %8141 = vpow2.f32 %v7504_v62  ;;  %v3124_v31 = vadd.f32 %v3092_v14, %v3023_v55  ;;  %v1124_v52 = vmul.f32 %v15859_v40, %v1088_v33  ;;  %v1892_v51 = vmul.f32 %v10435_v54, %v15795_v24  ;;  %v1356_v62 = vld [vmem:[#allocation2 + $0x123] sm:$0xff] }
 0x28b   : > { %v2523_v27 = vadd.f32 %v2491_v1, %v2423_v58  ;;  %v1824_v59 = vadd.f32 %v1792_v48, %v1724_v17  ;;  %v1192_v0 = vmul.f32 %v15860_v10, %v1156_v21  ;;  %v3492_v38 = vmul.f32 %v10384_v22, %v10685_v15  ;;  %v10701_v33 = vld [vmem:[#allocation2 + $0x168] sm:$0xff] }
 0x28c   : > { %v3224_v6 = vadd.f32 %v3192_v16, %v3124_v31  ;;  %v2692_v12 = vmul.f32 %v16052_v9, %v15905_v41  ;;  %v1992_v14 = vmul.f32 %v10443_v11, %v15799_v29  ;;  %16053 = vst [vmem:[#allocation64_spill] sm:$0xff] %v10701_v33  ;;  %v1292_v54 = vmul.f32 %v15861_v7, %v1256_v36  ;;  %v16054_v16 = vld [vmem:[#allocation43_spill] sm:$0xff]  ;;  %v10710_v34 = vld [vmem:[#allocation2 + $0x169] sm:$0xff] }
 0x28d   : > { %v2624_v3 = vadd.f32 %v2592_v20, %v2523_v27  ;;  %v1924_v55 = vadd.f32 %v1892_v51, %v1824_v59  ;;  %v1224_v1 = vadd.f32 %v1192_v0, %v1124_v52  ;;  %v2792_v21 = vmul.f32 %v16054_v16, %v15763_v61  ;;  %v1456_v31 = vld [vmem:[#allocation2 + $0x124] sm:$0xff]  ;;  %16055 = vst [vmem:[#allocation53_spill] sm:$0xff] %v10710_v34 }
 0x28e   : > { %v3324_v58 = vadd.f32 %v3292_v45, %v3224_v6  ;;  %v2892_v17 = vmul.f32 %v10604_v47, %v15921_v18  ;;  %v2092_v48 = vmul.f32 %v16041_v25, %v15873_v42  ;;  %v10712_v20 = vld [vmem:[#allocation2 + $0x16a] sm:$0xff]  ;;  %v1392_v36 = vmul.f32 %v15865_v2, %v1356_v62  ;;  %v16058_v62 = vld [vmem:[#allocation19_spill] sm:$0xff] }
 0x28f   : > { %v2724_v11 = vadd.f32 %v2692_v12, %v2624_v3  ;;  %16056 = vst [vmem:[#allocation54_spill] sm:$0xff] %v10712_v20  ;;  %v2024_v27 = vadd.f32 %v1992_v14, %v1924_v55  ;;  %v1324_v52 = vadd.f32 %v1292_v54, %v1224_v1  ;;  %v16057_v59 = vld [vmem:[#allocation56_spill] sm:$0xff]  ;;  %v3093_v0 = vmul.f32 %v15772_v56, %v10701_v33 }
 0x290   : > { %v3424_v45 = vadd.f32 %v3392_v26, %v3324_v58  ;;  %v2992_v51 = vmul.f32 %v16057_v59, %v15769_v13  ;;  %v2192_v6 = vmul.f32 %v10527_v53, %v15876_v46  ;;  %v1492_v16 = vmul.f32 %v15867_v5, %v1456_v31  ;;  %v10728_v58 = vld [vmem:[#allocation2 + $0x16b] sm:$0xff] }
 0x291   : > { %v2824_v47 = vadd.f32 %v2792_v21, %v2724_v11  ;;  %v2124_v12 = vadd.f32 %v2092_v48, %v2024_v27  ;;  %v1424_v3 = vadd.f32 %v1392_v36, %v1324_v52  ;;  %v3193_v14 = vmul.f32 %v15773_v63, %v10710_v34  ;;  %16059 = vst [vmem:[#allocation76_spill] sm:$0xff] %v10728_v58  ;;  %v16060_v48 = vld [vmem:[#allocation20_spill] sm:$0xff] }
 0x292   : > { %v3524_v25 = vadd.f32 %v3492_v38, %v3424_v45  ;;  %v3293_v26 = vmul.f32 %v15777_v19, %v10712_v20  ;;  %v2292_v55 = vmul.f32 %v16058_v62, %v8924_v37  ;;  %v1593_v11 = vmul.f32 %v16060_v48, %v15815_v49  ;;  %v16061_v38 = vld [vmem:[#allocation69_spill] sm:$0xff]  ;;  %v16063_v45 = vld [vmem:[#allocation50_spill] sm:$0xff] }
 0x293   : > { %v8140_v1 = vpop.eup %8139  ;;  %v2924_v54 = vadd.f32 %v2892_v17, %v2824_v47  ;;  %v2224_v33 = vadd.f32 %v2192_v6, %v2124_v12  ;;  %v1524_v21 = vadd.f32 %v1492_v16, %v1424_v3  ;;  %v2392_v36 = vmul.f32 %v16046_v39, %v15807_v35  ;;  %v1089_v16 = vld [vmem:[#allocation2 + $0x128] sm:$0xff] }
 0x294   : > { %v8142_v31 = vpop.eup %8141  ;;  %v3785_v27 = vmul.f32 %v8140_v1, %v16061_v38  ;;  %v10734_v52 = vadd.f32 %v10417_v23, %v3524_v25  ;;  %v1693_v20 = vmul.f32 %v16063_v45, %v15818_v8  ;;  %v1157_v12 = vld [vmem:[#allocation2 + $0x129] sm:$0xff]  ;;  %v3393_v25 = vmul.f32 %v15782_v44, %v10728_v58 }
 0x295   : > { %v3690_v47 = vadd.f32 1.0, %v8142_v31  ;;  %v3024_v17 = vadd.f32 %v2992_v51, %v2924_v54  ;;  %v2324_v34 = vadd.f32 %v2292_v55, %v2224_v33  ;;  %v1625_v6 = vadd.f32 %v1593_v11, %v1524_v21  ;;  %v16064_v1 = vld [vmem:[#allocation16_spill] sm:$0xff]  ;;  %v16065_v38 = vld [vmem:[#allocation65_spill] sm:$0xff] }
 0x296   : > { %16062 = vst [vmem:[#allocation42_spill] sm:$0xff] %v10734_v52  ;;  %7774 = vmatmul.mubr.msk.f32.gmra.mrb[4].mxu1 %vm965_vm1, %v3785_v27  ;;  %v7505_v3 = vmul.f32 -1.442695, %v10734_v52  ;;  %v2492_v48 = vmul.f32 %v16064_v1, %v15814_v4  ;;  %v1793_v39 = vmul.f32 %v16065_v38, %v15789_v43  ;;  %v10748_v51 = vld [vmem:[#allocation2 + $0x16c] sm:$0xff]  ;;  %v1125_v27 = vmul.f32 %v15859_v40, %v1089_v16 }
 0x297   : > { %8143 = vrcp.f32 %v3690_v47  ;;  %v3125_v31 = vadd.f32 %v3093_v0, %v3024_v17  ;;  %v2424_v33 = vadd.f32 %v2392_v36, %v2324_v34  ;;  %v1725_v55 = vadd.f32 %v1693_v20, %v1625_v6  ;;  %v1257_v54 = vld [vmem:[#allocation2 + $0x12a] sm:$0xff]  ;;  %v16067_v20 = vld [vmem:[#allocation58_spill] sm:$0xff] }
 0x298   : > { %8145 = vpow2.f32 %v7505_v3  ;;  %v16066_v21 = vld [vmem:[#allocation73_spill] sm:$0xff]  ;;  %v1193_v45 = vmul.f32 %v15860_v10, %v1157_v12  ;;  %v1893_v47 = vmul.f32 %v16050_v57, %v15795_v24  ;;  %v3493_v34 = vmul.f32 %v10384_v22, %v10748_v51 }
 0x299   : > { %v2593_v11 = vmul.f32 %v16066_v21, %v8978_v50  ;;  %v3225_v52 = vadd.f32 %v3193_v14, %v3125_v31  ;;  %v2524_v58 = vadd.f32 %v2492_v48, %v2424_v33  ;;  %v1825_v1 = vadd.f32 %v1793_v39, %v1725_v55  ;;  %v1357_v0 = vld [vmem:[#allocation2 + $0x12b] sm:$0xff] }
 0x29a   : > { %v2693_v36 = vmul.f32 %v16067_v20, %v15905_v41  ;;  %v1225_v17 = vadd.f32 %v1193_v45, %v1125_v27  ;;  %v1293_v6 = vmul.f32 %v15861_v7, %v1257_v54  ;;  %v10761_v38 = vld [vmem:[#allocation2 + $0x170] sm:$0xff]  ;;  %v1993_v39 = vmul.f32 %v16051_v32, %v15799_v29 }
 0x29b   : > { %v3325_v3 = vadd.f32 %v3293_v26, %v3225_v52  ;;  %v2625_v16 = vadd.f32 %v2593_v11, %v2524_v58  ;;  %16068 = vst [vmem:[#allocation83_spill] sm:$0xff] %v10761_v38  ;;  %v1925_v14 = vadd.f32 %v1893_v47, %v1825_v1  ;;  %v1457_v12 = vld [vmem:[#allocation2 + $0x12c] sm:$0xff]  ;;  %v2793_v57 = vmul.f32 %v10666_v28, %v15763_v61 }
 0x29c   : > { %v2893_v48 = vmul.f32 %v10668_v30, %v15921_v18  ;;  %v1325_v31 = vadd.f32 %v1293_v6, %v1225_v17  ;;  %v1393_v33 = vmul.f32 %v15865_v2, %v1357_v0  ;;  %v10770_v26 = vld [vmem:[#allocation2 + $0x171] sm:$0xff]  ;;  %v2093_v32 = vmul.f32 %v10580_v60, %v15873_v42 }
 0x29d   : > { %v3425_v55 = vadd.f32 %v3393_v25, %v3325_v3  ;;  %v2725_v54 = vadd.f32 %v2693_v36, %v2625_v16  ;;  %16069 = vst [vmem:[#allocation14_spill] sm:$0xff] %v10770_v26  ;;  %v10772_v58 = vld [vmem:[#allocation2 + $0x172] sm:$0xff]  ;;  %v2025_v52 = vadd.f32 %v1993_v39, %v1925_v14  ;;  %v2993_v1 = vmul.f32 %v10685_v15, %v15769_v13 }
 0x29e   : > { %16070 = vst [vmem:[#allocation87_spill] sm:$0xff] %v10772_v58  ;;  %v3094_v11 = vmul.f32 %v15772_v56, %v10761_v38  ;;  %v1425_v27 = vadd.f32 %v1393_v33, %v1325_v31  ;;  %v1493_v45 = vmul.f32 %v15867_v5, %v1457_v12  ;;  %v2193_v36 = vmul.f32 %v16052_v9, %v15876_v46  ;;  %v16071_v16 = vld [vmem:[#allocation66_spill] sm:$0xff]  ;;  %v16074_v33 = vld [vmem:[#allocation43_spill] sm:$0xff] }
 0x29f   : > { %v3525_v47 = vadd.f32 %v3493_v34, %v3425_v55  ;;  %v2825_v25 = vadd.f32 %v2793_v57, %v2725_v54  ;;  %v2125_v0 = vadd.f32 %v2093_v32, %v2025_v52  ;;  %v3194_v17 = vmul.f32 %v15773_v63, %v10770_v26  ;;  %v10792_v12 = vld [vmem:[#allocation2 + $0x173] sm:$0xff]  ;;  %v16075_v52 = vld [vmem:[#allocation79_spill] sm:$0xff] }
 0x2a0   : > { %v3294_v6 = vmul.f32 %v15777_v19, %v10772_v58  ;;  %v1525_v3 = vadd.f32 %v1493_v45, %v1425_v27  ;;  %v1594_v14 = vmul.f32 %v16071_v16, %v15815_v49  ;;  %16073 = vst [vmem:[#allocation15_spill] sm:$0xff] %v10792_v12  ;;  %v2293_v55 = vmul.f32 %v16074_v33, %v8924_v37  ;;  %v16076_v58 = vld [vmem:[#allocation47_spill] sm:$0xff]  ;;  %v1090_v38 = vld [vmem:[#allocation2 + $0x138] sm:$0xff] }
 0x2a1   : > { %v8144_v39 = vpop.eup %8143  ;;  %v10790_v31 = vadd.f32 %v10417_v23, %v3525_v47  ;;  %v2925_v34 = vadd.f32 %v2893_v48, %v2825_v25  ;;  %v2225_v57 = vadd.f32 %v2193_v36, %v2125_v0  ;;  %v2393_v27 = vmul.f32 %v16076_v58, %v15807_v35  ;;  %v1158_v0 = vld [vmem:[#allocation2 + $0x139] sm:$0xff] }
 0x2a2   : > { %v8146_v54 = vpop.eup %8145  ;;  %v3786_v32 = vmul.f32 %v8144_v39, %v16075_v52  ;;  %v1626_v45 = vadd.f32 %v1594_v14, %v1525_v3  ;;  %v1694_v16 = vmul.f32 %v10527_v53, %v15818_v8  ;;  %v3394_v36 = vmul.f32 %v15782_v44, %v10792_v12  ;;  %v10805_v39 = vld [vmem:[#allocation2 + $0x174] sm:$0xff] }
 0x2a3   : > { %16072 = vst [vmem:[#allocation67_spill] sm:$0xff] %v10790_v31  ;;  %v3691_v26 = vadd.f32 1.0, %v8146_v54  ;;  %v7506_v47 = vmul.f32 -1.442695, %v10790_v31  ;;  %v3025_v48 = vadd.f32 %v2993_v1, %v2925_v34  ;;  %v2325_v25 = vadd.f32 %v2293_v55, %v2225_v57  ;;  %16077 = vst [vmem:[#allocation45_spill] sm:$0xff] %v10805_v39  ;;  %v16078_v34 = vld [vmem:[#allocation24_spill] sm:$0xff] }
 0x2a4   : > { %7776 = vmatprep.mubr.msk.f32.mxu1 %vm965_vm1, %v3786_v32  ;;  %v2493_v3 = vmul.f32 %v16057_v59, %v15814_v4  ;;  %v1726_v14 = vadd.f32 %v1694_v16, %v1626_v45  ;;  %v1794_v53 = vmul.f32 %v16058_v62, %v15789_v43  ;;  %v1894_v57 = vmul.f32 %v16078_v34, %v15795_v24  ;;  %v1258_v55 = vld [vmem:[#allocation2 + $0x13a] sm:$0xff]  ;;  %v16079_v62 = vld [vmem:[#allocation64_spill] sm:$0xff] }
 0x2a5   : > { %8147 = vrcp.f32 %v3691_v26  ;;  %v3126_v54 = vadd.f32 %v3094_v11, %v3025_v48  ;;  %v2425_v1 = vadd.f32 %v2393_v27, %v2325_v25  ;;  %v1126_v32 = vmul.f32 %v15859_v40, %v1090_v38  ;;  %v1358_v11 = vld [vmem:[#allocation2 + $0x13b] sm:$0xff]  ;;  %v16080_v48 = vld [vmem:[#allocation16_spill] sm:$0xff] }
 0x2a6   : > { %8149 = vpow2.f32 %v7506_v47  ;;  %v1826_v52 = vadd.f32 %v1794_v53, %v1726_v14  ;;  %v1194_v31 = vmul.f32 %v15860_v10, %v1158_v0  ;;  %v3494_v45 = vmul.f32 %v10384_v22, %v10805_v39  ;;  %v16081_v0 = vld [vmem:[#allocation53_spill] sm:$0xff]  ;;  %v16082_v53 = vld [vmem:[#allocation54_spill] sm:$0xff] }
 0x2a7   : > { %v3226_v12 = vadd.f32 %v3194_v17, %v3126_v54  ;;  %v2525_v16 = vadd.f32 %v2493_v3, %v2425_v1  ;;  %v2594_v26 = vmul.f32 %v16079_v62, %v8978_v50  ;;  %v1994_v25 = vmul.f32 %v16080_v48, %v15799_v29  ;;  %v1458_v3 = vld [vmem:[#allocation2 + $0x13c] sm:$0xff] }
 0x2a8   : > { %v1926_v27 = vadd.f32 %v1894_v57, %v1826_v52  ;;  %v1226_v34 = vadd.f32 %v1194_v31, %v1126_v32  ;;  %v1294_v47 = vmul.f32 %v15861_v7, %v1258_v55  ;;  %v2694_v17 = vmul.f32 %v16081_v0, %v15905_v41  ;;  %v10826_v54 = vld [vmem:[#allocation2 + $0x180] sm:$0xff]  ;;  %v16084_v32 = vld [vmem:[#allocation76_spill] sm:$0xff] }
 0x2a9   : > { %v3326_v14 = vadd.f32 %v3294_v6, %v3226_v12  ;;  %v2626_v38 = vadd.f32 %v2594_v26, %v2525_v16  ;;  %v2794_v22 = vmul.f32 %v16082_v53, %v15763_v61  ;;  %v10828_v1 = vld [vmem:[#allocation2 + $0x181] sm:$0xff]  ;;  %v2094_v52 = vmul.f32 %v16066_v21, %v15873_v42 }
 0x2aa   : > { %16083 = vst [vmem:[#allocation85_spill] sm:$0xff] %v10828_v1  ;;  %v2026_v57 = vadd.f32 %v1994_v25, %v1926_v27  ;;  %v1326_v31 = vadd.f32 %v1294_v47, %v1226_v34  ;;  %v1394_v55 = vmul.f32 %v15865_v2, %v1358_v11  ;;  %v2894_v16 = vmul.f32 %v16084_v32, %v15921_v18  ;;  %v10837_v48 = vld [vmem:[#allocation2 + $0x182] sm:$0xff] }
 0x2ab   : > { %v3426_v6 = vadd.f32 %v3394_v36, %v3326_v14  ;;  %v2726_v12 = vadd.f32 %v2694_v17, %v2626_v38  ;;  %v2994_v26 = vmul.f32 %v10748_v51, %v15769_v13  ;;  %16085 = vst [vmem:[#allocation70_spill] sm:$0xff] %v10837_v48  ;;  %v2194_v27 = vmul.f32 %v16067_v20, %v15876_v46 }
 0x2ac   : > { %v2126_v53 = vadd.f32 %v2094_v52, %v2026_v57  ;;  %v1426_v25 = vadd.f32 %v1394_v55, %v1326_v31  ;;  %v1494_v21 = vmul.f32 %v15867_v5, %v1458_v3  ;;  %v3095_v36 = vmul.f32 %v15772_v56, %v10826_v54 }
 0x2ad   : > { %v3526_v34 = vadd.f32 %v3494_v45, %v3426_v6  ;;  %v2826_v47 = vadd.f32 %v2794_v22, %v2726_v12  ;;  %v3195_v11 = vmul.f32 %v15773_v63, %v10828_v1  ;;  %v2294_v38 = vmul.f32 %v10666_v28, %v8924_v37 }
 0x2ae   : > { %v2226_v14 = vadd.f32 %v2194_v27, %v2126_v53  ;;  %v1526_v17 = vadd.f32 %v1494_v21, %v1426_v25  ;;  %v1595_v57 = vmul.f32 %v10580_v60, %v15815_v49  ;;  %v3295_v22 = vmul.f32 %v15777_v19, %v10837_v48  ;;  %v16087_v53 = vld [vmem:[#allocation42_spill] sm:$0xff]  ;;  %v1091_v60 = vld [vmem:[#allocation2 + $0x140] sm:$0xff] }
 0x2af   : > { %v8148_v52 = vpop.eup %8147  ;;  %v10851_v31 = vadd.f32 %v10417_v23, %v3526_v34  ;;  %v2926_v45 = vadd.f32 %v2894_v16, %v2826_v47  ;;  %v2394_v3 = vmul.f32 %v10668_v30, %v15807_v35  ;;  %v1695_v21 = vmul.f32 %v16052_v9, %v15818_v8  ;;  %v1159_v47 = vld [vmem:[#allocation2 + $0x141] sm:$0xff] }
 0x2b0   : > { %v8150_v55 = vpop.eup %8149  ;;  %v3787_v6 = vmul.f32 %v8148_v52, %v16087_v53  ;;  %v2326_v12 = vadd.f32 %v2294_v38, %v2226_v14  ;;  %v1627_v27 = vadd.f32 %v1595_v57, %v1526_v17  ;;  %v2494_v16 = vmul.f32 %v10685_v15, %v15814_v4  ;;  %v10864_v48 = vld [vmem:[#allocation2 + $0x183] sm:$0xff] }
 0x2b1   : > { %16086 = vst [vmem:[#allocation88_spill] sm:$0xff] %v10851_v31  ;;  %v3692_v25 = vadd.f32 1.0, %v8150_v55  ;;  %v7507_v23 = vmul.f32 -1.442695, %v10851_v31  ;;  %v3026_v34 = vadd.f32 %v2994_v26, %v2926_v45  ;;  %v16088_v14 = vld [vmem:[#allocation83_spill] sm:$0xff]  ;;  %v1795_v9 = vmul.f32 %v16074_v33, %v15789_v43  ;;  %v16089_v33 = vld [vmem:[#allocation14_spill] sm:$0xff] }
 0x2b2   : > { %7777 = vmatmul.mubr.msk.f32.gmra.mrb[6].mxu1 %vm965_vm1, %v3787_v6  ;;  %v2426_v1 = vadd.f32 %v2394_v3, %v2326_v12  ;;  %v2595_v38 = vmul.f32 %v16088_v14, %v8978_v50  ;;  %v1727_v17 = vadd.f32 %v1695_v21, %v1627_v27  ;;  %v1895_v26 = vmul.f32 %v16076_v58, %v15795_v24  ;;  %v1259_v45 = vld [vmem:[#allocation2 + $0x142] sm:$0xff] }
 0x2b3   : > { %8151 = vrcp.f32 %v3692_v25  ;;  %v3127_v57 = vadd.f32 %v3095_v36, %v3026_v34  ;;  %v1127_v52 = vmul.f32 %v15859_v40, %v1091_v60  ;;  %v10873_v55 = vld [vmem:[#allocation2 + $0x184] sm:$0xff]  ;;  %v1195_v6 = vmul.f32 %v15860_v10, %v1159_v47 }
 0x2b4   : > { %8153 = vpow2.f32 %v7507_v23  ;;  %v2526_v53 = vadd.f32 %v2494_v16, %v2426_v1  ;;  %v1827_v3 = vadd.f32 %v1795_v9, %v1727_v17  ;;  %v3395_v27 = vmul.f32 %v15782_v44, %v10864_v48  ;;  %v1359_v21 = vld [vmem:[#allocation2 + $0x143] sm:$0xff] }
 0x2b5   : > { %v3227_v12 = vadd.f32 %v3195_v11, %v3127_v57  ;;  %v2695_v36 = vmul.f32 %v16089_v33, %v15905_v41  ;;  %v1995_v58 = vmul.f32 %v16057_v59, %v15799_v29  ;;  %v1227_v23 = vadd.f32 %v1195_v6, %v1127_v52  ;;  %v10886_v11 = vld [vmem:[%s14992_s3 + $0x18] ss:$0 sm:$0xff]  ;;  %v16090_v47 = vld [vmem:[#allocation87_spill] sm:$0xff]  ;;  %v10894_v57 = vld [vmem:[#allocation2 + $0x188] sm:$0xff] }
 0x2b6   : > { %v2627_v60 = vadd.f32 %v2595_v38, %v2526_v53  ;;  %v1927_v25 = vadd.f32 %v1895_v26, %v1827_v3  ;;  %v1295_v34 = vmul.f32 %v15861_v7, %v1259_v45  ;;  %v3495_v16 = vmul.f32 %v10886_v11, %v10873_v55  ;;  %v1459_v38 = vld [vmem:[#allocation2 + $0x144] sm:$0xff]  ;;  %16091 = vst [vmem:[#allocation44_spill] sm:$0xff] %v10894_v57 }
 0x2b7   : > { %v3327_v1 = vadd.f32 %v3295_v22, %v3227_v12  ;;  %v2795_v17 = vmul.f32 %v16090_v47, %v15763_v61  ;;  %v2095_v59 = vmul.f32 %v16079_v62, %v15873_v42  ;;  %v10896_v26 = vld [vmem:[#allocation2 + $0x189] sm:$0xff]  ;;  %v1395_v45 = vmul.f32 %v15865_v2, %v1359_v21  ;;  %v16093_v3 = vld [vmem:[#allocation15_spill] sm:$0xff] }
 0x2b8   : > { %v2727_v9 = vadd.f32 %v2695_v36, %v2627_v60  ;;  %16092 = vst [vmem:[#allocation48_spill] sm:$0xff] %v10896_v26  ;;  %v2027_v22 = vadd.f32 %v1995_v58, %v1927_v25  ;;  %v1327_v52 = vadd.f32 %v1295_v34, %v1227_v23  ;;  %v2895_v6 = vmul.f32 %v16093_v3, %v15921_v18  ;;  %v10905_v36 = vld [vmem:[#allocation2 + $0x18a] sm:$0xff]  ;;  %v16095_v23 = vld [vmem:[#allocation54_spill] sm:$0xff] }
 0x2b9   : > { %v3427_v53 = vadd.f32 %v3395_v27, %v3327_v1  ;;  %v2995_v12 = vmul.f32 %v10805_v39, %v15769_v13  ;;  %v2195_v31 = vmul.f32 %v16081_v0, %v15876_v46  ;;  %16094 = vst [vmem:[#allocation61_spill] sm:$0xff] %v10905_v36  ;;  %v1495_v58 = vmul.f32 %v15867_v5, %v1459_v38 }
 0x2ba   : > { %v2827_v47 = vadd.f32 %v2795_v17, %v2727_v9  ;;  %v2127_v60 = vadd.f32 %v2095_v59, %v2027_v22  ;;  %v1427_v62 = vadd.f32 %v1395_v45, %v1327_v52  ;;  %v3096_v27 = vmul.f32 %v15772_v56, %v10894_v57  ;;  %v16096_v17 = vld [vmem:[#allocation73_spill] sm:$0xff]  ;;  %v16097_v52 = vld [vmem:[#allocation67_spill] sm:$0xff] }
 0x2bb   : > { %v3527_v25 = vadd.f32 %v3495_v16, %v3427_v53  ;;  %v3196_v21 = vmul.f32 %v15773_v63, %v10896_v26  ;;  %v2295_v34 = vmul.f32 %v16095_v23, %v8924_v37  ;;  %v1596_v9 = vmul.f32 %v16096_v17, %v15815_v49  ;;  %v10919_v16 = vld [vmem:[%s14993_s4] ss:$0 sm:$0xff]  ;;  %v1160_v17 = vld [vmem:[#allocation2 + $0x151] sm:$0xff] }
 0x2bc   : > { %v2927_v1 = vadd.f32 %v2895_v6, %v2827_v47  ;;  %v2227_v39 = vadd.f32 %v2195_v31, %v2127_v60  ;;  %v1527_v0 = vadd.f32 %v1495_v58, %v1427_v62  ;;  %v3296_v22 = vmul.f32 %v15777_v19, %v10905_v36  ;;  %v1092_v58 = vld [vmem:[#allocation2 + $0x150] sm:$0xff] }
 0x2bd   : > { %v8152_v59 = vpop.eup %8151  ;;  %v10922_v38 = vadd.f32 %v10919_v16, %v3527_v25  ;;  %v2395_v47 = vmul.f32 %v16084_v32, %v15807_v35  ;;  %v1696_v62 = vmul.f32 %v16067_v20, %v15818_v8  ;;  %v2495_v36 = vmul.f32 %v10748_v51, %v15814_v4  ;;  %v10937_v32 = vld [vmem:[#allocation2 + $0x18b] sm:$0xff] }
 0x2be   : > { %v8154_v31 = vpop.eup %8153  ;;  %v3788_v45 = vmul.f32 %v8152_v59, %v16097_v52  ;;  %v3027_v53 = vadd.f32 %v2995_v12, %v2927_v1  ;;  %v2327_v6 = vadd.f32 %v2295_v34, %v2227_v39  ;;  %v1628_v60 = vadd.f32 %v1596_v9, %v1527_v0  ;;  %v1260_v0 = vld [vmem:[#allocation2 + $0x152] sm:$0xff] }
 0x2bf   : > { %v3693_v26 = vadd.f32 1.0, %v8154_v31  ;;  %v7508_v25 = vmul.f32 -1.442695, %v10922_v38  ;;  %v2596_v57 = vmul.f32 %v10826_v54, %v8978_v50  ;;  %v1796_v39 = vmul.f32 %v10666_v28, %v15789_v43  ;;  %v10945_v52 = vld [vmem:[#allocation2 + $0x18c] sm:$0xff] }
 0x2c0   : > { %7779 = vmatprep.mubr.msk.f32.mxu1 %vm965_vm1, %v3788_v45  ;;  %v3128_v20 = vadd.f32 %v3096_v27, %v3027_v53  ;;  %v2427_v59 = vadd.f32 %v2395_v47, %v2327_v6  ;;  %v1728_v12 = vadd.f32 %v1696_v62, %v1628_v60  ;;  %v1896_v34 = vmul.f32 %v10668_v30, %v15795_v24  ;;  %v1360_v47 = vld [vmem:[#allocation2 + $0x153] sm:$0xff]  ;;  %v1563_v6 = vld [vmem:[#allocation2 + $0x180] sm:$0xff] }
 0x2c1   : > { %8155 = vrcp.f32 %v3693_v26  ;;  %v1128_v1 = vmul.f32 %v15859_v40, %v1092_v58  ;;  %v1196_v9 = vmul.f32 %v15860_v10, %v1160_v17  ;;  %v3396_v62 = vmul.f32 %v15782_v44, %v10937_v32  ;;  %v16098_v28 = vld [vmem:[#allocation85_spill] sm:$0xff] }
 0x2c2   : > { %8157 = vpow2.f32 %v7508_v25  ;;  %v3228_v31 = vadd.f32 %v3196_v21, %v3128_v20  ;;  %v2527_v27 = vadd.f32 %v2495_v36, %v2427_v59  ;;  %v1828_v45 = vadd.f32 %v1796_v39, %v1728_v12  ;;  %v1460_v25 = vld [vmem:[#allocation2 + $0x154] sm:$0xff] }
 0x2c3   : > { %v2696_v26 = vmul.f32 %v16098_v28, %v15905_v41  ;;  %v1228_v53 = vadd.f32 %v1196_v9, %v1128_v1  ;;  %v1296_v30 = vmul.f32 %v15861_v7, %v1260_v0  ;;  %v1996_v21 = vmul.f32 %v10685_v15, %v15799_v29  ;;  %v16099_v20 = vld [vmem:[#allocation70_spill] sm:$0xff] }
 0x2c4   : > { %v3328_v60 = vadd.f32 %v3296_v22, %v3228_v31  ;;  %v2628_v58 = vadd.f32 %v2596_v57, %v2527_v27  ;;  %v1928_v17 = vadd.f32 %v1896_v34, %v1828_v45  ;;  %v3496_v36 = vmul.f32 %v10886_v11, %v10945_v52  ;;  %v10959_v0 = vld [vmem:[#allocation2 + $0x198] sm:$0xff] }
 0x2c5   : > { %v2796_v59 = vmul.f32 %v16099_v20, %v15763_v61  ;;  %v1328_v12 = vadd.f32 %v1296_v30, %v1228_v53  ;;  %v1396_v39 = vmul.f32 %v15865_v2, %v1360_v47  ;;  %16100 = vst [vmem:[#allocation52_spill] sm:$0xff] %v10959_v0  ;;  %v2096_v57 = vmul.f32 %v16088_v14, %v15873_v42  ;;  %v10969_v47 = vld [vmem:[#allocation2 + $0x199] sm:$0xff] }
 0x2c6   : > { %v3428_v1 = vadd.f32 %v3396_v62, %v3328_v60  ;;  %v2728_v9 = vadd.f32 %v2696_v26, %v2628_v58  ;;  %v2028_v22 = vadd.f32 %v1996_v21, %v1928_v17  ;;  %v10964_v15 = vmul.f32 %v15815_v49, %v1563_v6  ;;  %16102 = vst [vmem:[#allocation27_spill] sm:$0xff] %v10969_v47  ;;  %v16103_v58 = vld [vmem:[#allocation64_spill] sm:$0xff] }
 0x2c7   : > { %v2896_v34 = vmul.f32 %v10864_v48, %v15921_v18  ;;  %v1428_v31 = vadd.f32 %v1396_v39, %v1328_v12  ;;  %v1496_v27 = vmul.f32 %v15867_v5, %v1460_v25  ;;  %v2196_v26 = vmul.f32 %v16089_v33, %v15876_v46  ;;  %v16106_v12 = vld [vmem:[#allocation87_spill] sm:$0xff] }
 0x2c8   : > { %16101 = vst [vmem:[#allocation38_spill] sm:$0xff] %v10964_v15  ;;  %v3528_v45 = vadd.f32 %v3496_v36, %v3428_v1  ;;  %v2828_v53 = vadd.f32 %v2796_v59, %v2728_v9  ;;  %v2128_v62 = vadd.f32 %v2096_v57, %v2028_v22  ;;  %v2996_v30 = vmul.f32 %v10873_v55, %v15769_v13  ;;  %v10982_v36 = vld [vmem:[#allocation2 + $0x19a] sm:$0xff] }
 0x2c9   : > { %v3097_v6 = vmul.f32 %v15772_v56, %v10959_v0  ;;  %v1528_v60 = vadd.f32 %v1496_v27, %v1428_v31  ;;  %v1597_v17 = vmul.f32 %v16103_v58, %v15815_v49  ;;  %16105 = vst [vmem:[#allocation23_spill] sm:$0xff] %v10982_v36  ;;  %v2296_v39 = vmul.f32 %v16106_v12, %v8924_v37  ;;  %v16107_v31 = vld [vmem:[#allocation53_spill] sm:$0xff]  ;;  %v16108_v58 = vld [vmem:[#allocation88_spill] sm:$0xff]  ;;  %v1093_v15 = vld [vmem:[#allocation2 + $0x158] sm:$0xff] }
 0x2ca   : > { %v10980_v21 = vadd.f32 %v10919_v16, %v3528_v45  ;;  %v2928_v25 = vadd.f32 %v2896_v34, %v2828_v53  ;;  %v2228_v59 = vadd.f32 %v2196_v26, %v2128_v62  ;;  %v3197_v9 = vmul.f32 %v15773_v63, %v10969_v47 }
 0x2cb   : > { %v8156_v1 = vpop.eup %8155  ;;  %v2396_v22 = vmul.f32 %v16093_v3, %v15807_v35  ;;  %v1629_v57 = vadd.f32 %v1597_v17, %v1528_v60  ;;  %v1697_v27 = vmul.f32 %v16107_v31, %v15818_v8  ;;  %v3297_v12 = vmul.f32 %v15777_v19, %v10982_v36  ;;  %v1161_v60 = vld [vmem:[#allocation2 + $0x159] sm:$0xff] }
 0x2cc   : > { %16104 = vst [vmem:[#allocation40_spill] sm:$0xff] %v10980_v21  ;;  %v8158_v45 = vpop.eup %8157  ;;  %v3789_v34 = vmul.f32 %v8156_v1, %v16108_v58  ;;  %v7509_v53 = vmul.f32 -1.442695, %v10980_v21  ;;  %v3028_v62 = vadd.f32 %v2996_v30, %v2928_v25  ;;  %v2328_v26 = vadd.f32 %v2296_v39, %v2228_v59  ;;  %v10999_v31 = vld [vmem:[#allocation2 + $0x19b] sm:$0xff]  ;;  %v16110_v30 = vld [vmem:[#allocation45_spill] sm:$0xff]  ;;  %v16111_v39 = vld [vmem:[#allocation76_spill] sm:$0xff] }
 0x2cd   : > { %v3694_v0 = vadd.f32 1.0, %v8158_v45  ;;  %v1729_v47 = vadd.f32 %v1697_v27, %v1629_v57  ;;  %v1797_v3 = vmul.f32 %v16095_v23, %v15789_v43  ;;  %16109 = vst [vmem:[#allocation34_spill] sm:$0xff] %v10999_v31  ;;  %v2496_v25 = vmul.f32 %v16110_v30, %v15814_v4  ;;  %v1261_v27 = vld [vmem:[#allocation2 + $0x15a] sm:$0xff]  ;;  %v16115_v21 = vld [vmem:[#allocation61_spill] sm:$0xff] }
 0x2ce   : > { %7780 = vmatmul.mubr.msk.f32.gmra.mrb[8].mxu1 %vm965_vm1, %v3789_v34  ;;  %8159 = vpow2.f32 %v7509_v53  ;;  %v3129_v17 = vadd.f32 %v3097_v6, %v3028_v62  ;;  %v2428_v1 = vadd.f32 %v2396_v22, %v2328_v26  ;;  %v1897_v45 = vmul.f32 %v16111_v39, %v15795_v24  ;;  %v11006_v58 = vld [vmem:[#allocation2 + $0x19c] sm:$0xff]  ;;  %v16113_v6 = vld [vmem:[#allocation44_spill] sm:$0xff] }
 0x2cf   : > { %8161 = vrcp.f32 %v3694_v0  ;;  %v1829_v59 = vadd.f32 %v1797_v3, %v1729_v47  ;;  %v1129_v57 = vmul.f32 %v15859_v40, %v1093_v15  ;;  %16112 = vst [vmem:[#allocation41_spill] sm:$0xff] %v11006_v58  ;;  %v2597_v53 = vmul.f32 %v16113_v6, %v8978_v50  ;;  %v16114_v3 = vld [vmem:[#allocation48_spill] sm:$0xff]  ;;  %v1361_v26 = vld [vmem:[#allocation2 + $0x15b] sm:$0xff] }
 0x2d0   : > { %v3229_v23 = vadd.f32 %v3197_v9, %v3129_v17  ;;  %v2528_v34 = vadd.f32 %v2496_v25, %v2428_v1  ;;  %v1197_v22 = vmul.f32 %v15860_v10, %v1161_v60  ;;  %v3397_v62 = vmul.f32 %v15782_v44, %v10999_v31  ;;  %v1663_v9 = vld [vmem:[#allocation2 + $0x181] sm:$0xff] }
 0x2d1   : > { %v2697_v0 = vmul.f32 %v16114_v3, %v15905_v41  ;;  %v1929_v47 = vadd.f32 %v1897_v45, %v1829_v59  ;;  %v1997_v15 = vmul.f32 %v10748_v51, %v15799_v29  ;;  %v1297_v25 = vmul.f32 %v15861_v7, %v1261_v27  ;;  %v1461_v45 = vld [vmem:[#allocation2 + $0x15c] sm:$0xff] }
 0x2d2   : > { %v3329_v17 = vadd.f32 %v3297_v12, %v3229_v23  ;;  %v2629_v39 = vadd.f32 %v2597_v53, %v2528_v34  ;;  %v1229_v1 = vadd.f32 %v1197_v22, %v1129_v57  ;;  %v3497_v60 = vmul.f32 %v10886_v11, %v11006_v58  ;;  %v11024_v36 = vld [vmem:[#allocation2 + $0x1a0] sm:$0xff] }
 0x2d3   : > { %v2797_v31 = vmul.f32 %v16115_v21, %v15763_v61  ;;  %v2029_v6 = vadd.f32 %v1997_v15, %v1929_v47  ;;  %v2097_v59 = vmul.f32 %v10826_v54, %v15873_v42  ;;  %v1397_v57 = vmul.f32 %v15865_v2, %v1361_v26 }
 0x2d4   : > { %v3429_v3 = vadd.f32 %v3397_v62, %v3329_v17  ;;  %v2729_v51 = vadd.f32 %v2697_v0, %v2629_v39  ;;  %v1329_v12 = vadd.f32 %v1297_v25, %v1229_v1  ;;  %v11028_v27 = vmul.f32 %v15818_v8, %v1663_v9 }
 0x2d5   : > { %v2897_v23 = vmul.f32 %v10937_v32, %v15921_v18  ;;  %v2129_v34 = vadd.f32 %v2097_v59, %v2029_v6  ;;  %v2197_v53 = vmul.f32 %v16098_v28, %v15876_v46  ;;  %v1497_v62 = vmul.f32 %v15867_v5, %v1461_v45 }
 0x2d6   : > { %v3529_v22 = vadd.f32 %v3497_v60, %v3429_v3  ;;  %v2829_v54 = vadd.f32 %v2797_v31, %v2729_v51  ;;  %v1429_v47 = vadd.f32 %v1397_v57, %v1329_v12  ;;  %v2997_v0 = vmul.f32 %v10945_v52, %v15769_v13  ;;  %v11044_v3 = vld [vmem:[#allocation2 + $0x1a1] sm:$0xff] }
 0x2d7   : > { %v3098_v15 = vmul.f32 %v15772_v56, %v11024_v36  ;;  %v2229_v26 = vadd.f32 %v2197_v53, %v2129_v34  ;;  %v2297_v9 = vmul.f32 %v16099_v20, %v8924_v37  ;;  %v1598_v39 = vmul.f32 %v16088_v14, %v15815_v49  ;;  %v1162_v34 = vld [vmem:[#allocation2 + $0x169] sm:$0xff] }
 0x2d8   : > { %v8160_v17 = vpop.eup %8159  ;;  %v11042_v6 = vadd.f32 %v10919_v16, %v3529_v22  ;;  %v2929_v28 = vadd.f32 %v2897_v23, %v2829_v54  ;;  %v1529_v31 = vadd.f32 %v1497_v62, %v1429_v47  ;;  %v2397_v59 = vmul.f32 %v10864_v48, %v15807_v35  ;;  %v1094_v23 = vld [vmem:[#allocation2 + $0x168] sm:$0xff]  ;;  %v16117_v47 = vld [vmem:[#allocation87_spill] sm:$0xff] }
 0x2d9   : > { %v8162_v1 = vpop.eup %8161  ;;  %v3695_v25 = vadd.f32 1.0, %v8160_v17  ;;  %v2329_v60 = vadd.f32 %v2297_v9, %v2229_v26  ;;  %v1698_v20 = vmul.f32 %v16089_v33, %v15818_v8  ;;  %v3198_v14 = vmul.f32 %v15773_v63, %v11044_v3  ;;  %v11056_v53 = vld [vmem:[#allocation2 + $0x1a2] sm:$0xff] }
 0x2da   : > { %16116 = vst [vmem:[#allocation56_spill] sm:$0xff] %v11042_v6  ;;  %v3790_v45 = vmul.f32 %v8162_v1, %v10922_v38  ;;  %v7510_v51 = vmul.f32 -1.442695, %v11042_v6  ;;  %v3029_v12 = vadd.f32 %v2997_v0, %v2929_v28  ;;  %v1630_v57 = vadd.f32 %v1598_v39, %v1529_v31  ;;  %v1262_v0 = vld [vmem:[#allocation2 + $0x16a] sm:$0xff] }
 0x2db   : > { %8163 = vrcp.f32 %v3695_v25  ;;  %v2429_v22 = vadd.f32 %v2397_v59, %v2329_v60  ;;  %v2497_v54 = vmul.f32 %v10873_v55, %v15814_v4  ;;  %v1798_v62 = vmul.f32 %v16117_v47, %v15789_v43  ;;  %v11063_v26 = vld [vmem:[#allocation2 + $0x1a3] sm:$0xff] }
 0x2dc   : > { %7782 = vmatprep.mubr.msk.f32.mxu1 %vm965_vm1, %v3790_v45  ;;  %8165 = vpow2.f32 %v7510_v51  ;;  %v3130_v33 = vadd.f32 %v3098_v15, %v3029_v12  ;;  %v1730_v38 = vadd.f32 %v1698_v20, %v1630_v57  ;;  %v16118_v17 = vld [vmem:[#allocation52_spill] sm:$0xff]  ;;  %v1130_v31 = vmul.f32 %v15859_v40, %v1094_v23  ;;  %v16119_v60 = vld [vmem:[#allocation15_spill] sm:$0xff] }
 0x2dd   : > { %v2529_v9 = vadd.f32 %v2497_v54, %v2429_v22  ;;  %v2598_v28 = vmul.f32 %v16118_v17, %v8978_v50  ;;  %v1198_v39 = vmul.f32 %v15860_v10, %v1162_v34  ;;  %v3298_v25 = vmul.f32 %v15777_v19, %v11056_v53  ;;  %v1362_v20 = vld [vmem:[#allocation2 + $0x16b] sm:$0xff]  ;;  %v16120_v12 = vld [vmem:[#allocation27_spill] sm:$0xff] }
 0x2de   : > { %v3230_v1 = vadd.f32 %v3198_v14, %v3130_v33  ;;  %v1830_v15 = vadd.f32 %v1798_v62, %v1730_v38  ;;  %v1898_v59 = vmul.f32 %v16119_v60, %v15795_v24  ;;  %v11073_v45 = vld [vmem:[#allocation2 + $0x1a4] sm:$0xff]  ;;  %v2698_v57 = vmul.f32 %v16120_v12, %v15905_v41  ;;  %v1462_v38 = vld [vmem:[#allocation2 + $0x16c] sm:$0xff] }
 0x2df   : > { %v2630_v51 = vadd.f32 %v2598_v28, %v2529_v9  ;;  %v1230_v22 = vadd.f32 %v1198_v39, %v1130_v31  ;;  %v1298_v23 = vmul.f32 %v15861_v7, %v1262_v0  ;;  %v3398_v34 = vmul.f32 %v15782_v44, %v11063_v26  ;;  %v16121_v62 = vld [vmem:[#allocation23_spill] sm:$0xff]  ;;  %v16122_v39 = vld [vmem:[#allocation44_spill] sm:$0xff] }
 0x2e0   : > { %v3330_v54 = vadd.f32 %v3298_v25, %v3230_v1  ;;  %v1930_v14 = vadd.f32 %v1898_v59, %v1830_v15  ;;  %v1998_v33 = vmul.f32 %v16110_v30, %v15799_v29  ;;  %v2798_v60 = vmul.f32 %v16121_v62, %v15763_v61  ;;  %v16123_v15 = vld [vmem:[#allocation34_spill] sm:$0xff] }
 0x2e1   : > { %v2730_v47 = vadd.f32 %v2698_v57, %v2630_v51  ;;  %v1330_v9 = vadd.f32 %v1298_v23, %v1230_v22  ;;  %v1398_v28 = vmul.f32 %v15865_v2, %v1362_v20  ;;  %v3498_v0 = vmul.f32 %v10886_v11, %v11073_v45  ;;  %v11094_v20 = vld [vmem:[#allocation2 + $0x1b0] sm:$0xff] }
 0x2e2   : > { %v3430_v6 = vadd.f32 %v3398_v34, %v3330_v54  ;;  %v2030_v31 = vadd.f32 %v1998_v33, %v1930_v14  ;;  %v2098_v1 = vmul.f32 %v16122_v39, %v15873_v42  ;;  %v2898_v30 = vmul.f32 %v16123_v15, %v15921_v18  ;;  %16124 = vst [vmem:[#allocation19_spill] sm:$0xff] %v11094_v20  ;;  %v11096_v23 = vld [vmem:[#allocation2 + $0x1b1] sm:$0xff]  ;;  %v16126_v34 = vld [vmem:[#allocation48_spill] sm:$0xff] }
 0x2e3   : > { %v2830_v25 = vadd.f32 %v2798_v60, %v2730_v47  ;;  %v1430_v59 = vadd.f32 %v1398_v28, %v1330_v9  ;;  %v1498_v51 = vmul.f32 %v15867_v5, %v1462_v38  ;;  %v2998_v22 = vmul.f32 %v11006_v58, %v15769_v13  ;;  %16125 = vst [vmem:[#allocation20_spill] sm:$0xff] %v11096_v23  ;;  %v1763_v28 = vld [vmem:[#allocation2 + $0x182] sm:$0xff]  ;;  %v1163_v15 = vld [vmem:[#allocation2 + $0x171] sm:$0xff] }
 0x2e4   : > { %v3530_v57 = vadd.f32 %v3498_v0, %v3430_v6  ;;  %v2130_v54 = vadd.f32 %v2098_v1, %v2030_v31  ;;  %v2198_v14 = vmul.f32 %v16126_v34, %v15876_v46  ;;  %v3099_v60 = vmul.f32 %v15772_v56, %v11094_v20  ;;  %v16127_v0 = vld [vmem:[#allocation40_spill] sm:$0xff]  ;;  %v11108_v31 = vld [vmem:[#allocation2 + $0x1b2] sm:$0xff] }
 0x2e5   : > { %v8164_v33 = vpop.eup %8163  ;;  %v2930_v47 = vadd.f32 %v2898_v30, %v2830_v25  ;;  %v3199_v38 = vmul.f32 %v15773_v63, %v11096_v23  ;;  %v1530_v6 = vadd.f32 %v1498_v51, %v1430_v59  ;;  %v2298_v25 = vmul.f32 %v16115_v21, %v8924_v37  ;;  %v16129_v23 = vld [vmem:[#allocation38_spill] sm:$0xff]  ;;  %v1095_v51 = vld [vmem:[#allocation2 + $0x170] sm:$0xff] }
 0x2e6   : > { %v8166_v9 = vpop.eup %8165  ;;  %v3791_v39 = vmul.f32 %v8164_v33, %v16127_v0  ;;  %v11106_v58 = vadd.f32 %v10919_v16, %v3530_v57  ;;  %v2230_v1 = vadd.f32 %v2198_v14, %v2130_v54  ;;  %v3299_v20 = vmul.f32 %v15777_v19, %v11108_v31 }
 0x2e7   : > { %v3696_v30 = vadd.f32 1.0, %v8166_v9  ;;  %v3030_v34 = vadd.f32 %v2998_v22, %v2930_v47  ;;  %v1631_v59 = vadd.f32 %v16129_v23, %v1530_v6  ;;  %v2398_v54 = vmul.f32 %v10937_v32, %v15807_v35  ;;  %v1263_v23 = vld [vmem:[#allocation2 + $0x172] sm:$0xff] }
 0x2e8   : > { %16128 = vst [vmem:[#allocation69_spill] sm:$0xff] %v11106_v58  ;;  %7783 = vmatmul.mubr.msk.f32.gmra.mrb[10].mxu1 %vm965_vm1, %v3791_v39  ;;  %v7511_v57 = vmul.f32 -1.442695, %v11106_v58  ;;  %v2330_v33 = vadd.f32 %v2298_v25, %v2230_v1  ;;  %v2498_v21 = vmul.f32 %v10945_v52, %v15814_v4  ;;  %v1799_v47 = vmul.f32 %v15789_v43, %v1763_v28  ;;  %v11123_v6 = vld [vmem:[#allocation2 + $0x1b3] sm:$0xff] }
 0x2e9   : > { %8167 = vrcp.f32 %v3696_v30  ;;  %v3131_v22 = vadd.f32 %v3099_v60, %v3030_v34  ;;  %v1731_v14 = vadd.f32 %v11028_v27, %v1631_v59  ;;  %v1131_v0 = vmul.f32 %v15859_v40, %v1095_v51  ;;  %v1363_v27 = vld [vmem:[#allocation2 + $0x173] sm:$0xff]  ;;  %v1564_v30 = vld [vmem:[#allocation2 + $0x188] sm:$0xff] }
 0x2ea   : > { %8169 = vpow2.f32 %v7511_v57  ;;  %v2430_v9 = vadd.f32 %v2398_v54, %v2330_v33  ;;  %v1199_v39 = vmul.f32 %v15860_v10, %v1163_v15  ;;  %v3399_v25 = vmul.f32 %v15782_v44, %v11123_v6  ;;  %v11131_v28 = vld [vmem:[#allocation2 + $0x1b4] sm:$0xff]  ;;  %v1664_v33 = vld [vmem:[#allocation2 + $0x189] sm:$0xff] }
 0x2eb   : > { %v3231_v1 = vadd.f32 %v3199_v38, %v3131_v22  ;;  %v1831_v58 = vadd.f32 %v1799_v47, %v1731_v14  ;;  %v1899_v60 = vmul.f32 %v10864_v48, %v15795_v24  ;;  %v2599_v59 = vmul.f32 %v11024_v36, %v8978_v50  ;;  %v1463_v48 = vld [vmem:[#allocation2 + $0x174] sm:$0xff] }
 0x2ec   : > { %v2530_v34 = vadd.f32 %v2498_v21, %v2430_v9  ;;  %v1231_v57 = vadd.f32 %v1199_v39, %v1131_v0  ;;  %v1299_v40 = vmul.f32 %v15861_v7, %v1263_v23  ;;  %v3499_v15 = vmul.f32 %v10886_v11, %v11131_v28 }
 0x2ed   : > { %v3331_v10 = vadd.f32 %v3299_v20, %v3231_v1  ;;  %v1931_v38 = vadd.f32 %v1899_v60, %v1831_v58  ;;  %v1999_v51 = vmul.f32 %v10873_v55, %v15799_v29  ;;  %v2699_v21 = vmul.f32 %v11044_v3, %v15905_v41 }
 0x2ee   : > { %v2631_v54 = vadd.f32 %v2599_v59, %v2530_v34  ;;  %v1331_v22 = vadd.f32 %v1299_v40, %v1231_v57  ;;  %v1399_v14 = vmul.f32 %v15865_v2, %v1363_v27  ;;  %v1600_v47 = vmul.f32 %v15815_v49, %v1564_v30  ;;  %v11156_v27 = vld [vmem:[#allocation2 + $0x1b8] sm:$0xff]  ;;  %v1764_v59 = vld [vmem:[#allocation2 + $0x18a] sm:$0xff] }
 0x2ef   : > { %v3431_v7 = vadd.f32 %v3399_v25, %v3331_v10  ;;  %v2031_v20 = vadd.f32 %v1999_v51, %v1931_v38  ;;  %v2099_v23 = vmul.f32 %v16118_v17, %v15873_v42  ;;  %v2799_v55 = vmul.f32 %v11056_v53, %v15763_v61  ;;  %v11163_v57 = vld [vmem:[#allocation2 + $0x1b9] sm:$0xff] }
 0x2f0   : > { %v2731_v58 = vadd.f32 %v2699_v21, %v2631_v54  ;;  %v1431_v9 = vadd.f32 %v1399_v14, %v1331_v22  ;;  %v1499_v0 = vmul.f32 %v15867_v5, %v1463_v48  ;;  %v1700_v39 = vmul.f32 %v15818_v8, %v1664_v33  ;;  %v11171_v22 = vld [vmem:[#allocation2 + $0x1ba] sm:$0xff] }
 0x2f1   : > { %v3531_v1 = vadd.f32 %v3499_v15, %v3431_v7  ;;  %v2131_v60 = vadd.f32 %v2099_v23, %v2031_v20  ;;  %v2199_v2 = vmul.f32 %v16120_v12, %v15876_v46  ;;  %v2899_v25 = vmul.f32 %v11063_v26, %v15921_v18  ;;  %v16130_v15 = vld [vmem:[#allocation56_spill] sm:$0xff]  ;;  %v16131_v7 = vld [vmem:[#allocation34_spill] sm:$0xff] }
 0x2f2   : > { %v2831_v49 = vadd.f32 %v2799_v55, %v2731_v58  ;;  %v2999_v17 = vmul.f32 %v11073_v45, %v15769_v13  ;;  %v1531_v30 = vadd.f32 %v1499_v0, %v1431_v9  ;;  %v3100_v8 = vmul.f32 %v15772_v56, %v11156_v27  ;;  %v16132_v9 = vld [vmem:[#allocation41_spill] sm:$0xff] }
 0x2f3   : > { %v8168_v34 = vpop.eup %8167  ;;  %v11159_v5 = vadd.f32 %v10919_v16, %v3531_v1  ;;  %v2231_v12 = vadd.f32 %v2199_v2, %v2131_v60  ;;  %v2299_v40 = vmul.f32 %v16121_v62, %v8924_v37  ;;  %v3200_v48 = vmul.f32 %v15773_v63, %v11163_v57  ;;  %v16133_v1 = vld [vmem:[#allocation19_spill] sm:$0xff] }
 0x2f4   : > { %v8170_v10 = vpop.eup %8169  ;;  %v3792_v38 = vmul.f32 %v8168_v34, %v16130_v15  ;;  %v2931_v51 = vadd.f32 %v2899_v25, %v2831_v49  ;;  %v1632_v33 = vadd.f32 %v1600_v47, %v1531_v30  ;;  %v2399_v20 = vmul.f32 %v16131_v7, %v15807_v35 }
 0x2f5   : > { %v3697_v54 = vadd.f32 1.0, %v8170_v10  ;;  %v7512_v21 = vmul.f32 -1.442695, %v11159_v5  ;;  %v2331_v14 = vadd.f32 %v2299_v40, %v2231_v12  ;;  %v3300_v23 = vmul.f32 %v15777_v19, %v11171_v22  ;;  %v11193_v10 = vpop.f32.mrb[32].mxu0 }
 0x2f6   : > { %7785 = vmatprep.mubr.msk.f32.mxu1 %vm965_vm1, %v3792_v38  ;;  %v3031_v62 = vadd.f32 %v2999_v17, %v2931_v51  ;;  %v1732_v58 = vadd.f32 %v1700_v39, %v1632_v33  ;;  %v1800_v55 = vmul.f32 %v15789_v43, %v1764_v59  ;;  %v2499_v0 = vmul.f32 %v16132_v9, %v15814_v4  ;;  %v11185_v17 = vld [vmem:[#allocation2 + $0x1bb] sm:$0xff]  ;;  %v16134_v39 = vld [vmem:[#allocation20_spill] sm:$0xff] }
 0x2f7   : > { %8171 = vrcp.f32 %v3697_v54  ;;  %v2431_v47 = vadd.f32 %v2399_v20, %v2331_v14  ;;  %v2600_v60 = vmul.f32 %v16133_v1, %v8978_v50  ;;  %v1900_v25 = vmul.f32 %v10937_v32, %v15795_v24  ;;  %v11199_v32 = vpop.f32.mrb[33].mxu0 }
 0x2f8   : > { %8173 = vpow2.f32 %v7512_v21  ;;  %v3132_v2 = vadd.f32 %v3100_v8, %v3031_v62  ;;  %v1832_v49 = vadd.f32 %v1800_v55, %v1732_v58  ;;  %v2700_v43 = vmul.f32 %v16134_v39, %v15905_v41  ;;  %v11195_v8 = vld [vmem:[#allocation2 + $0x1bc] sm:$0xff]  ;;  %v11205_v54 = vpop.f32.mrb[34].mxu0  ;;  %v3165_v55 = vld [vmem:[#allocation2 + $0x1c9] sm:$0xff] }
 0x2f9   : > { %v2531_v30 = vadd.f32 %v2499_v0, %v2431_v47  ;;  %v3400_v59 = vmul.f32 %v15782_v44, %v11185_v17  ;;  %v2000_v40 = vmul.f32 %v10945_v52, %v15799_v29  ;;  %v2800_v24 = vmul.f32 %v11108_v31, %v15763_v61  ;;  %v11209_v21 = vpop.f32.mrb[35].mxu0  ;;  %v3065_v31 = vld [vmem:[#allocation2 + $0x1c8] sm:$0xff] }
 0x2fa   : > { %v3232_v34 = vadd.f32 %v3200_v48, %v3132_v2  ;;  %v1932_v12 = vadd.f32 %v1900_v25, %v1832_v49  ;;  %v3500_v51 = vmul.f32 %v10886_v11, %v11195_v8  ;;  %v2100_v33 = vmul.f32 %v11024_v36, %v15873_v42  ;;  %v11213_v62 = vpop.f32.mrb[36].mxu0  ;;  %v16135_v2 = vld [vmem:[#allocation69_spill] sm:$0xff] }
 0x2fb   : > { %v2632_v15 = vadd.f32 %v2600_v60, %v2531_v30  ;;  %v2900_v52 = vmul.f32 %v11123_v6, %v15921_v18  ;;  %v2200_v20 = vmul.f32 %v11044_v3, %v15876_v46  ;;  %v3000_v42 = vmul.f32 %v11131_v28, %v15769_v13  ;;  %v11217_v36 = vpop.f32.mrb[37].mxu0  ;;  %v3265_v25 = vld [vmem:[#allocation2 + $0x1ca] sm:$0xff] }
 0x2fc   : > { %v3332_v38 = vadd.f32 %v3300_v23, %v3232_v34  ;;  %v2032_v48 = vadd.f32 %v2000_v40, %v1932_v12  ;;  %v2300_v6 = vmul.f32 %v11056_v53, %v8924_v37  ;;  %v11221_v9 = vpop.f32.mrb[38].mxu0  ;;  %v3101_v46 = vmul.f32 %v15772_v56, %v3065_v31  ;;  %v3365_v40 = vld [vmem:[#allocation2 + $0x1cb] sm:$0xff] }
 0x2fd   : > { %v2732_v29 = vadd.f32 %v2700_v43, %v2632_v15  ;;  %v11224_v3 = vpop.f32.mrb[39].mxu0  ;;  %v2400_v39 = vmul.f32 %v11063_v26, %v15807_v35  ;;  %v3201_v34 = vmul.f32 %v15773_v63, %v3165_v55  ;;  %v2601_v35 = vmul.f32 %v11156_v27, %v8978_v50  ;;  %v3166_v55 = vld [vmem:[#allocation2 + $0x1d1] sm:$0xff] }
 0x2fe   : > { %v3432_v14 = vadd.f32 %v3400_v59, %v3332_v38  ;;  %v2132_v7 = vadd.f32 %v2100_v33, %v2032_v48  ;;  %v11232_v37 = vpop.f32.mrb[40].mxu0  ;;  %v3465_v33 = vld [vmem:[#allocation2 + $0x1cc] sm:$0xff]  ;;  %v2801_v50 = vmul.f32 %v11171_v22, %v15763_v61 }
 0x2ff   : > { %v2832_v23 = vadd.f32 %v2800_v24, %v2732_v29  ;;  %v11235_v59 = vpop.f32.mrb[41].mxu0  ;;  %v2500_v24 = vmul.f32 %v11073_v45, %v15814_v4  ;;  %v3401_v4 = vmul.f32 %v15782_v44, %v3365_v40  ;;  %v3501_v31 = vmul.f32 %v10886_v11, %v3465_v33  ;;  %v3266_v22 = vld [vmem:[#allocation2 + $0x1d2] sm:$0xff] }
 0x300   : > { %v3532_v58 = vadd.f32 %v3500_v51, %v3432_v14  ;;  %v2232_v47 = vadd.f32 %v2200_v20, %v2132_v7  ;;  %v11243_v26 = vpop.f32.mrb[42].mxu0  ;;  %v3301_v51 = vmul.f32 %v15777_v19, %v3265_v25  ;;  %v2901_v20 = vmul.f32 %v11185_v17, %v15921_v18 }
 0x301   : > { %v8172_v0 = vpop.eup %8171  ;;  %v2932_v1 = vadd.f32 %v2900_v52, %v2832_v23  ;;  %v11246_v48 = vpop.f32.mrb[43].mxu0  ;;  %v2701_v52 = vmul.f32 %v11163_v57, %v15905_v41  ;;  %v3001_v41 = vmul.f32 %v11195_v8, %v15769_v13  ;;  %v3202_v18 = vmul.f32 %v15773_v63, %v3166_v55  ;;  %v16152_v55 = vld [vmem:[#allocation39_spill] sm:$0xff] }
 0x302   : > { %v8174_v60 = vpop.eup %8173  ;;  %v3793_v49 = vmul.f32 %v8172_v0, %v16135_v2  ;;  %v11228_v28 = vadd.f32 %v10919_v16, %v3532_v58  ;;  %v2332_v30 = vadd.f32 %v2300_v6, %v2232_v47  ;;  %v3302_v8 = vmul.f32 %v15777_v19, %v3266_v22  ;;  %v16157_v22 = vld [vmem:[#allocation81_spill] sm:$0xff] }
 0x303   : > { %v3698_v53 = vadd.f32 1.0, %v8174_v60  ;;  %v3032_v43 = vadd.f32 %v3000_v42, %v2932_v1  ;;  %v3066_v42 = vld [vmem:[#allocation2 + $0x1d0] sm:$0xff] }
 0x304   : > { %7786 = vmatmul.mubr.msk.f32.gmra.mrb[12].mxu1 %vm965_vm1, %v3793_v49  ;;  %v7513_v12 = vmul.f32 -1.442695, %v11228_v28  ;;  %v2432_v15 = vadd.f32 %v2400_v39, %v2332_v30  ;;  %v3102_v6 = vmul.f32 %v15772_v56, %v3066_v42  ;;  %v3366_v49 = vld [vmem:[#allocation2 + $0x1d3] sm:$0xff]  ;;  %v16148_v42 = vld [vmem:[#allocation72_spill] sm:$0xff] }
 0x305   : > { %8175 = vrcp.f32 %v3698_v53  ;;  %v3133_v38 = vadd.f32 %v3101_v46, %v3032_v43  ;;  %v3466_v56 = vld [vmem:[#allocation2 + $0x1d4] sm:$0xff]  ;;  %v3402_v30 = vmul.f32 %v15782_v44, %v3366_v49 }
 0x306   : > { %8177 = vpow2.f32 %v7513_v12  ;;  %v2532_v29 = vadd.f32 %v2500_v24, %v2432_v15  ;;  %v16164_v49 = vld [vmem:[#allocation77_spill] sm:$0xff] }
 0x307   : > { %v3233_v14 = vadd.f32 %v3201_v34, %v3133_v38 }
 0x308   : > { %v2633_v45 = vadd.f32 %v2601_v35, %v2532_v29 }
 0x309   : > { %v3333_v27 = vadd.f32 %v3301_v51, %v3233_v14  ;;  %v16139_v14 = vld [vmem:[#allocation32_spill] sm:$0xff] }
 0x30a   : > { %v2733_v7 = vadd.f32 %v2701_v52, %v2633_v45  ;;  %v16138_v52 = vld [vmem:[#allocation33_spill] sm:$0xff]  ;;  %v16141_v45 = vld [vmem:[#allocation35_spill] sm:$0xff] }
 0x30b   : > { %v3433_v23 = vadd.f32 %v3401_v4, %v3333_v27  ;;  %v16140_v4 = vld [vmem:[#allocation36_spill] sm:$0xff]  ;;  %v16143_v27 = vld [vmem:[#allocation57_spill] sm:$0xff] }
 0x30c   : > { %v2833_v58 = vadd.f32 %v2801_v50, %v2733_v7  ;;  %v16142_v50 = vld [vmem:[#allocation59_spill] sm:$0xff]  ;;  %v16145_v7 = vld [vmem:[#allocation60_spill] sm:$0xff] }
 0x30d   : > { %v3533_v57 = vadd.f32 %v3501_v31, %v3433_v23  ;;  %v16144_v31 = vld [vmem:[#allocation62_spill] sm:$0xff]  ;;  %v16147_v23 = vld [vmem:[#allocation63_spill] sm:$0xff] }
 0x30e   : > { %v2933_v47 = vadd.f32 %v2901_v20, %v2833_v58  ;;  %v16146_v20 = vld [vmem:[#allocation68_spill] sm:$0xff]  ;;  %v16149_v58 = vld [vmem:[#allocation71_spill] sm:$0xff] }
 0x30f   : > { %v8176_v0 = vpop.eup %8175  ;;  %v3572_v61 = vadd.f32 %v10919_v16, %v3533_v57  ;;  %v16151_v57 = vld [vmem:[#allocation74_spill] sm:$0xff] }
 0x310   : > { %v8178_v1 = vpop.eup %8177  ;;  %v3794_v46 = vmul.f32 %v8176_v0, %v11159_v5  ;;  %v3033_v60 = vadd.f32 %v3001_v41, %v2933_v47  ;;  %v3502_v5 = vmul.f32 %v10886_v11, %v3466_v56  ;;  %v16150_v41 = vld [vmem:[#allocation75_spill] sm:$0xff]  ;;  %v16153_v47 = vld [vmem:[#allocation49_spill] sm:$0xff]  ;;  %v16155_v0 = vld [vmem:[#allocation46_spill] sm:$0xff] }
 0x311   : > { %v3699_v17 = vadd.f32 1.0, %v8178_v1  ;;  %v7514_v2 = vmul.f32 -1.442695, %v3572_v61  ;;  %v16158_v1 = vld [vmem:[#allocation26_spill] sm:$0xff]  ;;  %v16167_v56 = vld [vmem:[#allocation37_spill] sm:$0xff] }
 0x312   : > { %7788 = vmatprep.mubr.msk.f32.mxu1 %vm965_vm1, %v3794_v46  ;;  %v3134_v13 = vadd.f32 %v3102_v6, %v3033_v60  ;;  %v16154_v6 = vld [vmem:[#allocation80_spill] sm:$0xff]  ;;  %v16159_v46 = vld [vmem:[#allocation82_spill] sm:$0xff] }
 0x313   : > { %8179 = vrcp.f32 %v3699_v17  ;;  %v16160_v60 = vld [vmem:[#allocation28_spill] sm:$0xff]  ;;  %v16162_v17 = vld [vmem:[#allocation29_spill] sm:$0xff] }
 0x314   : > { %8181 = vpow2.f32 %v7514_v2  ;;  %v3234_v25 = vadd.f32 %v3202_v18, %v3134_v13  ;;  %v16161_v18 = vld [vmem:[#allocation84_spill] sm:$0xff]  ;;  %v16163_v2 = vld [vmem:[#allocation86_spill] sm:$0xff]  ;;  %v16165_v13 = vld [vmem:[#allocation55_spill] sm:$0xff] }
 0x316   : > { %v3334_v39 = vadd.f32 %v3302_v8, %v3234_v25  ;;  %v16166_v8 = vld [vmem:[#allocation78_spill] sm:$0xff]  ;;  %v16168_v25 = vmov 0.0  }
 0x317   : > { %v11266_v53 = vpop.f32.mrb[44].mxu0  ;;  %4497 = vst.msk [vmem:[#allocation3 + $0x38] sm:$0xff] %vm4488_vm4, %v16168_v25  ;;  %4489 = vst.msk [vmem:[#allocation3] sm:$0xff] %vm4488_vm4, %v16168_v25 }
 0x318   : > { %v3434_v63 = vadd.f32 %v3402_v30, %v3334_v39  ;;  %v11268_v43 = vpop.f32.mrb[45].mxu0  ;;  %4498 = vst.msk [vmem:[#allocation3 + $0x40] sm:$0xf] %vm4491_vm5, %v16168_v25  ;;  %4492 = vst.msk [vmem:[#allocation3 + $0x10] sm:$0xf] %vm4491_vm5, %v16168_v25  ;;  %v4583_v30 = vld [vmem:[%s14997_s8] sm:$0xff] }
 0x319   : > { %4490 = vst.msk [vmem:[#allocation3 + $0x8] sm:$0xff] %vm4488_vm4, %v16168_v25  ;;  %4493 = vst.msk [vmem:[#allocation3 + $0x18] sm:$0xff] %vm4488_vm4, %v16168_v25  ;;  %v16169_v39 = vld [vmem:[#allocation11_spill] sm:$0xff] }
 0x31a   : > { %v3534_v34 = vadd.f32 %v3502_v5, %v3434_v63  ;;  %4494 = vst.msk [vmem:[#allocation3 + $0x20] sm:$0xff] %vm4488_vm4, %v16168_v25  ;;  %4496 = vst.msk [vmem:[#allocation3 + $0x30] sm:$0xff] %vm4488_vm4, %v16168_v25  ;;  %v11463_v5 = vrot.slane %v4583_v30, %v16169_v39  ;;  %v16171_v63 = vld [vmem:[#allocation12_spill] sm:$0xff] }
 0x31b   : > { %4495 = vst.msk [vmem:[#allocation3 + $0x28] sm:$0xf] %vm4491_vm5, %v16168_v25  ;;  %4501 = vst.msk [vmem:[#allocation3 + $0x58] sm:$0xf] %vm4491_vm5, %v16168_v25 }
 0x31c   : > { %v3573_v12 = vadd.f32 %v10919_v16, %v3534_v34  ;;  %v16136_v16 = vld [vmem:[#allocation31_spill] sm:$0xff]  ;;  %4499 = vst.msk [vmem:[#allocation3 + $0x48] sm:$0xff] %vm4488_vm4, %v16168_v25  ;;  %4500 = vst.msk [vmem:[#allocation3 + $0x50] sm:$0xff] %vm4488_vm4, %v16168_v25  ;;  %v11466_v34 = vrot.slane %v4583_v30, %v16171_v63 }
 0x31d   : > { %v8180_v40 = vpop.eup %8179  ;;  %4502 = vst.msk [vmem:[#allocation3 + $0x60] sm:$0xff] %vm4488_vm4, %v16168_v25  ;;  %4503 = vst.msk [vmem:[#allocation3 + $0x68] sm:$0xff] %vm4488_vm4, %v16168_v25 }
 0x31e   : > { %v8182_v15 = vpop.eup %8181  ;;  %v3795_v19 = vmul.f32 %v8180_v40, %v11228_v28  ;;  %v7515_v24 = vmul.f32 -1.442695, %v3573_v12  ;;  %v16137_v28 = vld [vmem:[#allocation30_spill] sm:$0xff]  ;;  %4504 = vst.msk [vmem:[#allocation3 + $0x70] sm:$0xf] %vm4491_vm5, %v16168_v25  ;;  %16170 = vst [vmem:[#allocation50_spill] sm:$0xff] %v11463_v5 }
 0x31f   : > { %v3700_v35 = vadd.f32 1.0, %v8182_v15  ;;  %4505 = vst.msk [vmem:[#allocation3 + $0x78] sm:$0xff] %vm4488_vm4, %v16168_v25  ;;  %4506 = vst.msk [vmem:[#allocation3 + $0x80] sm:$0xff] %vm4488_vm4, %v16168_v25 }
 0x320   : > { %7789 = vmatmul.mubr.msk.f32.gmra.mrb[14].mxu1 %vm965_vm1, %v3795_v19  ;;  %8183 = vpow2.f32 %v7515_v24  ;;  %4507 = vst.msk [vmem:[#allocation3 + $0x88] sm:$0xf] %vm4491_vm5, %v16168_v25  ;;  %4510 = vst.msk [vmem:[#allocation3 + $0xa0] sm:$0xf] %vm4491_vm5, %v16168_v25  ;;  %v4655_v40 = vld [vmem:[#allocation3 + $0x1] sm:$0xff]  ;;  %v4656_v19 = vld [vmem:[#allocation3 + $0x9] sm:$0xff] }
 0x321   : > { %8185 = vrcp.f32 %v3700_v35  ;;  %4508 = vst.msk [vmem:[#allocation3 + $0x90] sm:$0xff] %vm4488_vm4, %v16168_v25  ;;  %4509 = vst.msk [vmem:[#allocation3 + $0x98] sm:$0xff] %vm4488_vm4, %v16168_v25  ;;  %v4588_v15 = vld [vmem:[#allocation3 + $0x8] sm:$0xff]  ;;  %v16173_v24 = vld [vmem:[#allocation13_spill] sm:$0xff] }
 0x322   : > { %4511 = vst.msk [vmem:[#allocation3 + $0xa8] sm:$0xff] %vm4488_vm4, %v16168_v25  ;;  %4512 = vst.msk [vmem:[#allocation3 + $0xb0] sm:$0xff] %vm4488_vm4, %v16168_v25  ;;  %v11469_v35 = vrot.slane %v4583_v30, %v16173_v24 }
 0x323   : > { %4513 = vst.msk [vmem:[#allocation3 + $0xb8] sm:$0xf] %vm4491_vm5, %v16168_v25  ;;  %4516 = vst.msk [vmem:[#allocation3 + $0xd0] sm:$0xf] %vm4491_vm5, %v16168_v25 }
 0x324   : > { %4514 = vst.msk [vmem:[#allocation3 + $0xc0] sm:$0xff] %vm4488_vm4, %v16168_v25  ;;  %4515 = vst.msk [vmem:[#allocation3 + $0xc8] sm:$0xff] %vm4488_vm4, %v16168_v25 }
 0x325   : > { %4517 = vst.msk [vmem:[#allocation3 + $0xd8] sm:$0xff] %vm4488_vm4, %v16168_v25  ;;  %4518 = vst.msk [vmem:[#allocation3 + $0xe0] sm:$0xff] %vm4488_vm4, %v16168_v25 }
 0x326   : > { %4519 = vst.msk [vmem:[#allocation3 + $0xe8] sm:$0xf] %vm4491_vm5, %v16168_v25  ;;  %4522 = vst.msk [vmem:[#allocation3 + $0x100] sm:$0xf] %vm4491_vm5, %v16168_v25 }
 0x327   : > { %4520 = vst.msk [vmem:[#allocation3 + $0xf0] sm:$0xff] %vm4488_vm4, %v16168_v25  ;;  %4521 = vst.msk [vmem:[#allocation3 + $0xf8] sm:$0xff] %vm4488_vm4, %v16168_v25 }
 0x328   : > { %4523 = vst.msk [vmem:[#allocation3 + $0x108] sm:$0xff] %vm4488_vm4, %v16168_v25  ;;  %4524 = vst.msk [vmem:[#allocation3 + $0x110] sm:$0xff] %vm4488_vm4, %v16168_v25 }
 0x329   : > { %4525 = vst.msk [vmem:[#allocation3 + $0x118] sm:$0xf] %vm4491_vm5, %v16168_v25  ;;  %4528 = vst.msk [vmem:[#allocation3 + $0x130] sm:$0xf] %vm4491_vm5, %v16168_v25 }
 0x32a   : > { %v8184_v44 = vpop.eup %8183  ;;  %4526 = vst.msk [vmem:[#allocation3 + $0x120] sm:$0xff] %vm4488_vm4, %v16168_v25  ;;  %4527 = vst.msk [vmem:[#allocation3 + $0x128] sm:$0xff] %vm4488_vm4, %v16168_v25 }
 0x32b   : > { %v8186_v11 = vpop.eup %8185  ;;  %v3701_v38 = vadd.f32 1.0, %v8184_v44  ;;  %4529 = vst.msk [vmem:[#allocation3 + $0x138] sm:$0xff] %vm4488_vm4, %v16168_v25  ;;  %4530 = vst.msk [vmem:[#allocation3 + $0x140] sm:$0xff] %vm4488_vm4, %v16168_v25 }
 0x32c   : > { %v3796_v51 = vmul.f32 %v8186_v11, %v3572_v61  ;;  %v16156_v61 = vld [vmem:[#allocation51_spill] sm:$0xff]  ;;  %4531 = vst.msk [vmem:[#allocation3 + $0x148] sm:$0xf] %vm4491_vm5, %v16168_v25  ;;  %4534 = vst.msk [vmem:[#allocation3 + $0x160] sm:$0xf] %vm4491_vm5, %v16168_v25  ;;  %v4691_v11 = vmul.f32 %v11466_v34, %v4655_v40  ;;  %v16181_v40 = vld [vmem:[#allocation25_spill] sm:$0xff] }
 0x32d   : > { %8187 = vrcp.f32 %v3701_v38  ;;  %4532 = vst.msk [vmem:[#allocation3 + $0x150] sm:$0xff] %vm4488_vm4, %v16168_v25  ;;  %4533 = vst.msk [vmem:[#allocation3 + $0x158] sm:$0xff] %vm4488_vm4, %v16168_v25  ;;  %v4755_v38 = vld [vmem:[#allocation3 + $0x2] sm:$0xff] }
 0x32e   : > { %7791 = vmatprep.mubr.msk.f32.mxu1 %vm965_vm1, %v3796_v51  ;;  %4535 = vst.msk [vmem:[#allocation3 + $0x168] sm:$0xff] %vm4488_vm4, %v16168_v25  ;;  %4536 = vst.msk [vmem:[#allocation3 + $0x170] sm:$0xff] %vm4488_vm4, %v16168_v25  ;;  %v4624_v51 = vmul.f32 %v11463_v5, %v4588_v15  ;;  %v11497_v15 = vrot.slane %v4583_v30, %v16181_v40 }
 0x32f   : > { %4537 = vst.msk [vmem:[#allocation3 + $0x178] sm:$0xf] %vm4491_vm5, %v16168_v25  ;;  %4540 = vst.msk [vmem:[#allocation3 + $0x190] sm:$0xf] %vm4491_vm5, %v16168_v25 }
 0x330   : > { %4538 = vst.msk [vmem:[#allocation3 + $0x180] sm:$0xff] %vm4488_vm4, %v16168_v25  ;;  %4539 = vst.msk [vmem:[#allocation3 + $0x188] sm:$0xff] %vm4488_vm4, %v16168_v25 }
 0x331   : > { %4541 = vst.msk [vmem:[#allocation3 + $0x198] sm:$0xff] %vm4488_vm4, %v16168_v25  ;;  %4542 = vst.msk [vmem:[#allocation3 + $0x1a0] sm:$0xff] %vm4488_vm4, %v16168_v25 }
 0x332   : > { %4543 = vst.msk [vmem:[#allocation3 + $0x1a8] sm:$0xf] %vm4491_vm5, %v16168_v25  ;;  %4546 = vst.msk [vmem:[#allocation3 + $0x1c0] sm:$0xf] %vm4491_vm5, %v16168_v25 }
 0x333   : > { %4544 = vst.msk [vmem:[#allocation3 + $0x1b0] sm:$0xff] %vm4488_vm4, %v16168_v25  ;;  %4545 = vst.msk [vmem:[#allocation3 + $0x1b8] sm:$0xff] %vm4488_vm4, %v16168_v25 }
 0x334   : > { %4547 = vst.msk [vmem:[#allocation3 + $0x1c8] sm:$0xff] %vm4488_vm4, %v16168_v25  ;;  %4548 = vst.msk [vmem:[#allocation3 + $0x1d0] sm:$0xff] %vm4488_vm4, %v16168_v25 }
 0x335   : > { %4549 = vst.msk [vmem:[#allocation3 + $0x1d8] sm:$0xf] %vm4491_vm5, %v16168_v25  ;;  %16172 = vst [vmem:[#allocation65_spill] sm:$0xff] %v11466_v34 }
 0x336   : > { %16174 = vst [vmem:[#allocation58_spill] sm:$0xff] %v11469_v35 }
 0x337   : > { %v8188_v33 = vpop.eup %8187 }
 0x338   : > { %v3797_v29 = vmul.f32 %v8188_v33, %v3573_v12  ;;  %v4587_v12 = vld [vmem:[#allocation3] sm:$0xff]  ;;  %v4692_v33 = vmul.f32 %v11466_v34, %v4656_v19  ;;  %v11502_v19 = vld [vmem:[%s14997_s8 + $0x8] sm:$0xff] }
 0x339   : > { %v4623_v44 = vmul.f32 %v11463_v5, %v4587_v12 }
 0x33a   : > { %7792 = vmatmul.mubr.msk.f32.gmra.mrb[16].mxu1 %vm965_vm1, %v3797_v29  ;;  %v4756_v29 = vld [vmem:[#allocation3 + $0xa] sm:$0xff] }
 0x33b   : > { %7796 = vmatprep.mubr.msk.f32.mxu1 %vm965_vm1, %v16136_v16  ;;  %v16175_v16 = vld [vmem:[#allocation17_spill] sm:$0xff] }
 0x33e   : > { %7797 = vmatmul.mubr.msk.f32.vlgmr.msra.gmra.mrb[18].mxu1 %vm965_vm1, %v16137_v28  ;;  %v11476_v28 = vrot.slane %v4583_v30, %v16175_v16 }
 0x33f   : > { %7799 = vmatprep.mubr.msk.f32.mxu1 %vm965_vm1, %v16138_v52  ;;  %v4723_v52 = vadd.f32 %v4691_v11, %v4623_v44  ;;  %v5256_v44 = vld [vmem:[#allocation3 + $0x1a] sm:$0xff] }
 0x340   : > { %16176 = vst [vmem:[#allocation66_spill] sm:$0xff] %v11476_v28 }
 0x342   : > { %7800 = vmatmul.mubr.msk.f32.gmra.mrb[20].mxu1 %vm965_vm1, %v16139_v14  ;;  %v4791_v14 = vmul.f32 %v11469_v35, %v4755_v38 }
 0x343   : > { %7802 = vmatprep.mubr.msk.f32.mxu1 %vm965_vm1, %v16140_v4  ;;  %v4855_v4 = vld [vmem:[#allocation3 + $0x3] sm:$0xff] }
 0x346   : > { %7803 = vmatmul.mubr.msk.f32.gmra.mrb[22].mxu1 %vm965_vm1, %v16141_v45  ;;  %v4724_v45 = vadd.f32 %v4692_v33, %v4624_v51  ;;  %v5257_v51 = vld [vmem:[#allocation3 + $0x22] sm:$0xff] }
 0x347   : > { %7805 = vmatprep.mubr.msk.f32.mxu1 %vm965_vm1, %v16142_v50  ;;  %v4792_v50 = vmul.f32 %v11469_v35, %v4756_v29  ;;  %v5292_v29 = vmul.f32 %v11497_v15, %v5256_v44 }
 0x34a   : > { %7806 = vmatmul.mubr.msk.f32.gmra.mrb[24].mxu1 %vm965_vm1, %v16143_v27  ;;  %v4856_v27 = vld [vmem:[#allocation3 + $0xb] sm:$0xff] }
 0x34b   : > { %7808 = vmatprep.mubr.msk.f32.mxu1 %vm965_vm1, %v16144_v31  ;;  %v4823_v31 = vadd.f32 %v4791_v14, %v4723_v52  ;;  %v11508_v52 = vrot.slane %v11502_v19, %v16169_v39  ;;  %v5356_v14 = vld [vmem:[#allocation3 + $0x1b] sm:$0xff] }
 0x34e   : > { %7809 = vmatmul.mubr.msk.f32.gmra.mrb[26].mxu1 %vm965_vm1, %v16145_v7  ;;  %v4891_v7 = vmul.f32 %v11476_v28, %v4855_v4  ;;  %v5293_v4 = vmul.f32 %v11497_v15, %v5257_v51 }
 0x34f   : > { %7811 = vmatprep.mubr.msk.f32.mxu1 %vm965_vm1, %v16146_v20  ;;  %v16177_v20 = vld [vmem:[#allocation18_spill] sm:$0xff] }
 0x352   : > { %7812 = vmatmul.mubr.msk.f32.gmra.mrb[28].mxu1 %vm965_vm1, %v16147_v23  ;;  %v11482_v23 = vrot.slane %v4583_v30, %v16177_v20 }
 0x353   : > { %7814 = vmatprep.mubr.msk.f32.mxu1 %vm965_vm1, %v16148_v42  ;;  %v4955_v42 = vld [vmem:[#allocation3 + $0x4] sm:$0xff] }
 0x354   : > { %16178 = vst [vmem:[#allocation43_spill] sm:$0xff] %v11482_v23 }
 0x356   : > { %7815 = vmatmul.mubr.msk.f32.gmra.mrb[30].mxu1 %vm965_vm1, %v16149_v58  ;;  %v4824_v58 = vadd.f32 %v4792_v50, %v4724_v45 }
 0x357   : > { %7817 = vmatprep.mubr.msk.f32.mxu1 %vm965_vm1, %v16150_v41  ;;  %v4892_v41 = vmul.f32 %v11476_v28, %v4856_v27 }
 0x35a   : > { %7818 = vmatmul.mubr.msk.f32.gmra.mrb[0].mxu1 %vm965_vm1, %v16151_v57  ;;  %v4956_v57 = vld [vmem:[#allocation3 + $0xc] sm:$0xff] }
 0x35b   : > { %7820 = vmatprep.mubr.msk.f32.mxu1 %vm965_vm1, %v16152_v55  ;;  %v4923_v55 = vadd.f32 %v4891_v7, %v4823_v31  ;;  %v11516_v31 = vld [vmem:[%s14996_s7] ss:$0 sm:$0xff]  ;;  %v5357_v7 = vld [vmem:[#allocation3 + $0x23] sm:$0xff] }
 0x35e   : > { %7821 = vmatmul.mubr.msk.f32.gmra.mrb[2].mxu1 %vm965_vm1, %v16153_v47  ;;  %v4991_v47 = vmul.f32 %v11482_v23, %v4955_v42 }
 0x35f   : > { %7823 = vmatprep.mubr.msk.f32.mxu1 %vm965_vm1, %v16154_v6  ;;  %v16179_v6 = vld [vmem:[#allocation21_spill] sm:$0xff] }
 0x362   : > { %7824 = vmatmul.mubr.msk.f32.gmra.mrb[4].mxu1 %vm965_vm1, %v16155_v0  ;;  %v11487_v0 = vrot.slane %v4583_v30, %v16179_v6 }
 0x363   : > { %7826 = vmatprep.mubr.msk.f32.mxu1 %vm965_vm1, %v16156_v61  ;;  %v5056_v61 = vld [vmem:[#allocation3 + $0x18] sm:$0xff] }
 0x364   : > { %v4625_v45 = vmul.f32 %v5056_v61, %v11463_v5 }
 0x366   : > { %7827 = vmatmul.mubr.msk.f32.gmra.mrb[6].mxu1 %vm965_vm1, %v16157_v22  ;;  %v4924_v22 = vadd.f32 %v4892_v41, %v4824_v58 }
 0x367   : > { %7829 = vmatprep.mubr.msk.f32.mxu1 %vm965_vm1, %v16158_v1  ;;  %v4992_v1 = vmul.f32 %v11482_v23, %v4956_v57 }
 0x36a   : > { %7830 = vmatmul.mubr.msk.f32.gmra.mrb[8].mxu1 %vm965_vm1, %v16159_v46  ;;  %v5057_v46 = vld [vmem:[#allocation3 + $0x20] sm:$0xff] }
 0x36b   : > { %7832 = vmatprep.mubr.msk.f32.mxu1 %vm965_vm1, %v16160_v60  ;;  %v5023_v60 = vadd.f32 %v4991_v47, %v4923_v55  ;;  %v4626_v42 = vmul.f32 %v5057_v46, %v11463_v5 }
 0x36e   : > { %7833 = vmatmul.mubr.msk.f32.gmra.mrb[10].mxu1 %vm965_vm1, %v16161_v18  ;;  %v5092_v18 = vmul.f32 %v11487_v0, %v5056_v61  ;;  %v5392_v61 = vmul.f32 %v11508_v52, %v5356_v14 }
 0x36f   : > { %7835 = vmatprep.mubr.msk.f32.mxu1 %vm965_vm1, %v16162_v17  ;;  %v16180_v17 = vld [vmem:[#allocation22_spill] sm:$0xff] }
 0x370   : > { %v5124_v25 = vadd.f32 %v5092_v18, %v5023_v60  ;;  %v5456_v60 = vld [vmem:[#allocation3 + $0x1c] sm:$0xff] }
 0x372   : > { %7836 = vmatmul.mubr.msk.f32.gmra.mrb[12].mxu1 %vm965_vm1, %v16163_v2  ;;  %v11492_v2 = vrot.slane %v4583_v30, %v16180_v17 }
 0x373   : > { %7838 = vmatprep.mubr.msk.f32.mxu1 %vm965_vm1, %v16164_v49  ;;  %v5156_v49 = vld [vmem:[#allocation3 + $0x19] sm:$0xff] }
 0x374   : > { %v5192_v12 = vmul.f32 %v11492_v2, %v5156_v49  ;;  %v4693_v50 = vmul.f32 %v5156_v49, %v11466_v34 }
 0x376   : > { %7839 = vmatmul.mubr.msk.f32.gmra.mrb[14].mxu1 %vm965_vm1, %v16165_v13  ;;  %v5024_v13 = vadd.f32 %v4992_v1, %v4924_v22  ;;  %v5224_v33 = vadd.f32 %v5192_v12, %v5124_v25  ;;  %v11525_v22 = vrot.slane %v11502_v19, %v16171_v63  ;;  %v4725_v49 = vadd.f32 %v4693_v50, %v4625_v45 }
 0x377   : > { %7841 = vmatprep.mubr.msk.f32.mxu1 %vm965_vm1, %v16166_v8  ;;  %v5093_v8 = vmul.f32 %v11487_v0, %v5057_v46  ;;  %v5393_v46 = vmul.f32 %v11508_v52, %v5357_v7  ;;  %v4794_v25 = vmul.f32 %v5257_v51, %v11469_v35 }
 0x378   : > { %v5324_v47 = vadd.f32 %v5292_v29, %v5224_v33  ;;  %16182 = vst [vmem:[#allocation79_spill] sm:$0xff] %v11525_v22  ;;  %v5492_v29 = vmul.f32 %v11525_v22, %v5456_v60 }
 0x379   : > { %v5125_v11 = vadd.f32 %v5093_v8, %v5024_v13  ;;  %v4793_v8 = vmul.f32 %v5256_v44, %v11469_v35 }
 0x37a   : > { %7842 = vmatmul.mubr.msk.f32.gmra.mrb[16].mxu1 %vm965_vm1, %v16167_v56  ;;  %v5157_v56 = vld [vmem:[#allocation3 + $0x21] sm:$0xff]  ;;  %v5424_v33 = vadd.f32 %v5392_v61, %v5324_v47  ;;  %v11577_v47 = vrot.slane %v11502_v19, %v16179_v6 }
 0x37b   : > { %v5193_v38 = vmul.f32 %v11492_v2, %v5157_v56  ;;  %v4694_v58 = vmul.f32 %v5157_v56, %v11466_v34  ;;  %v4825_v50 = vadd.f32 %v4793_v8, %v4725_v49 }
 0x37d   : > { %v5225_v30 = vadd.f32 %v5193_v38, %v5125_v11  ;;  %v4726_v56 = vadd.f32 %v4694_v58, %v4626_v42  ;;  %v4894_v42 = vmul.f32 %v5357_v7, %v11476_v28  ;;  %v4585_v7 = vld [vmem:[%s14997_s8 + $0x10] sm:$0xff] }
 0x37f   : > { %v5325_v18 = vadd.f32 %v5293_v4, %v5225_v30  ;;  %v4893_v4 = vmul.f32 %v5356_v14, %v11476_v28  ;;  %v11561_v14 = vrot.slane %v11502_v19, %v16177_v20 }
 0x381   : > { %v5425_v44 = vadd.f32 %v5393_v46, %v5325_v18  ;;  %v4993_v46 = vmul.f32 %v5456_v60, %v11482_v23  ;;  %v4925_v8 = vadd.f32 %v4893_v4, %v4825_v50  ;;  %v11602_v60 = vrot.slane %v4585_v7, %v16173_v24 }
 0x382   : > { %v11632_v50 = vrot.slane %v4585_v7, %v16177_v20 }
 0x411   : > { %v7798_v27 = vpop.f32.mrb[18].mxu1 }
 0x412   : > { %v4296_v41 = vadd.f32 %v7798_v27, %v11193_v10  ;;  %v4290_v57 = vpop.f32.mrb[19].mxu1  ;;  %v4826_v27 = vadd.f32 %v4794_v25, %v4726_v56 }
 0x413   : > { %v4291_v55 = vadd.f32 %v4290_v57, %v11199_v32  ;;  %v5457_v32 = vld [vmem:[#allocation3 + $0x24] sm:$0xff] }
 0x414   : > { %v11528_v1 = vadd.f32 %v11516_v31, %v4296_v41  ;;  %v5493_v51 = vmul.f32 %v11525_v22, %v5457_v32  ;;  %v11557_v41 = vrot.slane %v11502_v19, %v16173_v24  ;;  %v4926_v56 = vadd.f32 %v4894_v42, %v4826_v27 }
 0x415   : > { %v11532_v10 = vadd.f32 %v11516_v31, %v4291_v55  ;;  %v7801_v13 = vpop.f32.mrb[20].mxu1  ;;  %v11569_v55 = vadd.f32 %v5492_v29, %v5424_v33  ;;  %v4994_v25 = vmul.f32 %v5457_v32, %v11482_v23  ;;  %v11599_v33 = vrot.slane %v4585_v7, %v16171_v63 }
 0x416   : > { %16183 = vst [vmem:[#allocation47_spill] sm:$0xff] %v11528_v1  ;;  %4552 = vst.msk [vmem:[#allocation3 + $0x3a] sm:$0xff] %vm4488_vm4, %v11528_v1  ;;  %v4306_v12 = vadd.f32 %v7801_v13, %v11205_v54  ;;  %v4300_v11 = vpop.f32.mrb[21].mxu1  ;;  %v11586_v18 = vadd.f32 %v5493_v51, %v5425_v44  ;;  %v11605_v29 = vrot.slane %v4585_v7, %v16175_v16 }
 0x417   : > { %16184 = vst [vmem:[#allocation24_spill] sm:$0xff] %v11532_v10  ;;  %4551 = vst.msk [vmem:[#allocation3 + $0x32] sm:$0xff] %vm4488_vm4, %v11532_v10  ;;  %v4301_v38 = vadd.f32 %v4300_v11, %v11209_v21  ;;  %v11619_v63 = vrot.slane %v4585_v7, %v16169_v39  ;;  %v11622_v24 = vrot.slane %v4585_v7, %v16180_v17 }
 0x418   : > { %v11544_v30 = vadd.f32 %v11516_v31, %v4306_v12 }
 0x419   : > { %v11549_v45 = vadd.f32 %v11516_v31, %v4301_v38  ;;  %v7804_v54 = vpop.f32.mrb[22].mxu1  ;;  %16191 = vst [vmem:[#allocation67_spill] sm:$0xff] %v11619_v63 }
 0x41a   : > { %16185 = vst [vmem:[#allocation16_spill] sm:$0xff] %v11544_v30  ;;  %4554 = vst.msk [vmem:[#allocation3 + $0x52] sm:$0xff] %vm4488_vm4, %v11544_v30  ;;  %v4316_v21 = vadd.f32 %v7804_v54, %v11213_v62  ;;  %v4310_v58 = vpop.f32.mrb[23].mxu1  ;;  %v11573_v62 = vrot.slane %v11502_v19, %v16175_v16 }
 0x41b   : > { %16186 = vst [vmem:[#allocation42_spill] sm:$0xff] %v11549_v45  ;;  %4553 = vst.msk [vmem:[#allocation3 + $0x4a] sm:$0xff] %vm4488_vm4, %v11549_v45  ;;  %v4311_v57 = vadd.f32 %v4310_v58, %v11217_v36  ;;  %v11584_v36 = vrot.slane %v11502_v19, %v16180_v17  ;;  %v11651_v58 = vadd.f32 %v4993_v46, %v4925_v8 }
 0x41c   : > { %v11580_v61 = vadd.f32 %v11516_v31, %v4316_v21 }
 0x41d   : > { %v11590_v49 = vadd.f32 %v11516_v31, %v4311_v57  ;;  %v7807_v13 = vpop.f32.mrb[24].mxu1  ;;  %v11607_v44 = vld [vmem:[#allocation3 + $0x3a] sm:$0xff] }
 0x41e   : > { %16187 = vst [vmem:[#allocation83_spill] sm:$0xff] %v11580_v61  ;;  %v11593_v12 = vld [vmem:[#allocation3 + $0x30] sm:$0xff]  ;;  %4556 = vst.msk [vmem:[#allocation3 + $0x6a] sm:$0xff] %vm4488_vm4, %v11580_v61  ;;  %v4326_v11 = vadd.f32 %v7807_v13, %v11221_v9  ;;  %v4320_v38 = vpop.f32.mrb[25].mxu1  ;;  %v11609_v32 = vld [vmem:[#allocation3 + $0x3b] sm:$0xff]  ;;  %v11616_v9 = vrot.slane %v11502_v19, %v16181_v40  ;;  %v11638_v19 = vrot.slane %v4585_v7, %v16181_v40 }
 0x41f   : > { %16188 = vst [vmem:[#allocation14_spill] sm:$0xff] %v11590_v49  ;;  %16189 = vst [vmem:[#allocation54_spill] sm:$0xff] %v11607_v44  ;;  %v4321_v51 = vadd.f32 %v4320_v38, %v11224_v3  ;;  %v11624_v16 = vld [vmem:[#allocation3 + $0x38] sm:$0xff]  ;;  %v11635_v3 = vrot.slane %v4585_v7, %v16179_v6  ;;  %v5592_v20 = vmul.f32 %v11557_v41, %v11593_v12 }
 0x420   : > { %16190 = vst [vmem:[#allocation73_spill] sm:$0xff] %v11609_v32  ;;  %4555 = vst.msk [vmem:[#allocation3 + $0x62] sm:$0xff] %vm4488_vm4, %v11590_v49  ;;  %v11626_v4 = vld [vmem:[#allocation3 + $0x31] sm:$0xff]  ;;  %v11629_v54 = vadd.f32 %v11516_v31, %v4326_v11  ;;  %v11640_v39 = vld [vmem:[#allocation3 + $0x39] sm:$0xff]  ;;  %v11653_v6 = vadd.f32 %v4994_v25, %v4926_v56  ;;  %v11657_v40 = vmul.f32 %v11469_v35, %v11607_v44 }
 0x421   : > { %16193 = vst [vmem:[#allocation70_spill] sm:$0xff] %v11638_v19  ;;  %v11642_v17 = vld [vmem:[#allocation3 + $0x32] sm:$0xff]  ;;  %v11647_v42 = vadd.f32 %v11516_v31, %v4321_v51  ;;  %v7810_v21 = vpop.f32.mrb[26].mxu1  ;;  %v11661_v57 = vmul.f32 %v11476_v28, %v11609_v32  ;;  %v11670_v46 = vmul.f32 %v11561_v14, %v11607_v44  ;;  %v4627_v8 = vmul.f32 %v11463_v5, %v11593_v12 }
 0x422   : > { %16192 = vst [vmem:[#allocation85_spill] sm:$0xff] %v11629_v54  ;;  %v11644_v27 = vld [vmem:[#allocation3 + $0x33] sm:$0xff]  ;;  %16195 = vst [vmem:[#allocation53_spill] sm:$0xff] %v11653_v6  ;;  %v11663_v7 = vld [vmem:[#allocation3 + $0x48] sm:$0xff]  ;;  %v4336_v13 = vadd.f32 %v7810_v21, %v11232_v37  ;;  %v4330_v11 = vpop.f32.mrb[27].mxu1  ;;  %v4628_v56 = vmul.f32 %v11463_v5, %v11624_v16  ;;  %v4695_v25 = vmul.f32 %v11466_v34, %v11626_v4 }
 0x423   : > { %16194 = vst [vmem:[#allocation64_spill] sm:$0xff] %v11647_v42  ;;  %16196 = vst [vmem:[#allocation88_spill] sm:$0xff] %v11657_v40  ;;  %v11678_v38 = vld [vmem:[#allocation3 + $0x50] sm:$0xff]  ;;  %v4331_v37 = vadd.f32 %v4330_v11, %v11235_v59  ;;  %v4696_v21 = vmul.f32 %v11466_v34, %v11640_v39  ;;  %v11691_v49 = vmul.f32 %v11469_v35, %v11642_v17 }
 0x424   : > { %16197 = vst [vmem:[#allocation45_spill] sm:$0xff] %v11661_v57  ;;  %16198 = vst [vmem:[#allocation76_spill] sm:$0xff] %v11663_v7  ;;  %v11680_v51 = vld [vmem:[#allocation3 + $0x49] sm:$0xff]  ;;  %v11695_v61 = vmul.f32 %v11476_v28, %v11644_v27  ;;  %v11698_v30 = vadd.f32 %v11516_v31, %v4336_v13  ;;  %v11700_v45 = vld [vmem:[#allocation3 + $0x52] sm:$0xff]  ;;  %v4629_v59 = vmul.f32 %v11463_v5, %v11663_v7 }
 0x425   : > { %4558 = vst.msk [vmem:[#allocation3 + $0x82] sm:$0xff] %vm4488_vm4, %v11629_v54  ;;  %v11682_v54 = vld [vmem:[#allocation3 + $0x51] sm:$0xff]  ;;  %4557 = vst.msk [vmem:[#allocation3 + $0x7a] sm:$0xff] %vm4488_vm4, %v11647_v42  ;;  %v11707_v11 = vadd.f32 %v11516_v31, %v4331_v37  ;;  %v7813_v42 = vpop.f32.mrb[28].mxu1  ;;  %v5624_v10 = vadd.f32 %v5592_v20, %v11569_v55  ;;  %v4630_v13 = vmul.f32 %v11463_v5, %v11678_v38 }
 0x426   : > { %16199 = vst [vmem:[#allocation61_spill] sm:$0xff] %v11682_v54  ;;  %16200 = vst [vmem:[#allocation87_spill] sm:$0xff] %v11691_v49  ;;  %v11702_v1 = vld [vmem:[#allocation3 + $0x53] sm:$0xff]  ;;  %v5692_v49 = vmul.f32 %v11573_v62, %v11626_v4  ;;  %v4698_v23 = vmul.f32 %v11466_v34, %v11682_v54  ;;  %v11718_v57 = vld [vmem:[#allocation3 + $0x4a] sm:$0xff]  ;;  %v4346_v37 = vadd.f32 %v7813_v42, %v11243_v26  ;;  %v4340_v55 = vpop.f32.mrb[29].mxu1 }
 0x427   : > { %16201 = vst [vmem:[#allocation52_spill] sm:$0xff] %v11695_v61  ;;  %16202 = vst [vmem:[#allocation15_spill] sm:$0xff] %v11698_v30  ;;  %v4697_v61 = vmul.f32 %v11466_v34, %v11680_v51  ;;  %v11723_v20 = vadd.f32 %v4695_v25, %v4627_v8  ;;  %v11725_v40 = vld [vmem:[#allocation3 + $0x4b] sm:$0xff]  ;;  %v4341_v5 = vadd.f32 %v4340_v55, %v11246_v48  ;;  %v11734_v22 = vld [vmem:[#allocation3 + $0x34] sm:$0xff] }
 0x428   : > { %16203 = vst [vmem:[#allocation27_spill] sm:$0xff] %v11700_v45  ;;  %16204 = vst [vmem:[#allocation23_spill] sm:$0xff] %v11702_v1  ;;  %v5724_v44 = vadd.f32 %v5692_v49, %v5624_v10  ;;  %v5792_v34 = vmul.f32 %v11561_v14, %v11642_v17  ;;  %v11732_v6 = vadd.f32 %v4696_v21, %v4628_v56 }
 0x429   : > { %16205 = vst [vmem:[#allocation44_spill] sm:$0xff] %v11707_v11  ;;  %16206 = vst [vmem:[#allocation48_spill] sm:$0xff] %v11718_v57  ;;  %v11738_v26 = vmul.f32 %v11469_v35, %v11700_v45  ;;  %v11742_v42 = vmul.f32 %v11476_v28, %v11702_v1  ;;  %v11745_v8 = vadd.f32 %v11516_v31, %v4346_v37  ;;  %v7816_v49 = vpop.f32.mrb[30].mxu1 }
 0x42a   : > { %4560 = vst.msk [vmem:[#allocation3 + $0x9a] sm:$0xff] %vm4488_vm4, %v11698_v30  ;;  %16207 = vst [vmem:[#allocation40_spill] sm:$0xff] %v11723_v20  ;;  %v11749_v48 = vmul.f32 %v11469_v35, %v11718_v57  ;;  %v11752_v10 = vadd.f32 %v11516_v31, %v4341_v5  ;;  %v5824_v56 = vadd.f32 %v5792_v34, %v5724_v44  ;;  %v4350_v5 = vpop.f32.mrb[31].mxu1  ;;  %v11767_v30 = vld [vmem:[#allocation3 + $0x4c] sm:$0xff]  ;;  %v11774_v44 = vld [vmem:[#allocation3 + $0x60] sm:$0xff] }
 0x42b   : > { %16208 = vst [vmem:[#allocation38_spill] sm:$0xff] %v11725_v40  ;;  %4559 = vst.msk [vmem:[#allocation3 + $0x92] sm:$0xff] %vm4488_vm4, %v11707_v11  ;;  %v5892_v25 = vmul.f32 %v11577_v47, %v11644_v27  ;;  %v11756_v21 = vadd.f32 %v4697_v61, %v4629_v59  ;;  %v11758_v55 = vadd.f32 %v4698_v23, %v4630_v13  ;;  %v11801_v35 = vld [vmem:[#allocation3 + $0x64] sm:$0xff] }
 0x42c   : > { %16209 = vst [vmem:[#allocation56_spill] sm:$0xff] %v11732_v6  ;;  %16210 = vst [vmem:[#allocation34_spill] sm:$0xff] %v11734_v22  ;;  %v11762_v37 = vmul.f32 %v11476_v28, %v11725_v40  ;;  %v4356_v11 = vadd.f32 %v7816_v49, %v11266_v53  ;;  %v4351_v34 = vadd.f32 %v4350_v5, %v11268_v43  ;;  %v11784_v53 = vld [vmem:[%s14997_s8 + $0x18] ss:$0 sm:$0xff]  ;;  %v11799_v28 = vld [vmem:[#allocation3 + $0x63] sm:$0xff] }
 0x42d   : > { %16211 = vst [vmem:[#allocation41_spill] sm:$0xff] %v11738_v26  ;;  %16212 = vst [vmem:[#allocation19_spill] sm:$0xff] %v11742_v42  ;;  %v5924_v61 = vadd.f32 %v5892_v25, %v5824_v56  ;;  %v5992_v23 = vmul.f32 %v11584_v36, %v11734_v22  ;;  %v5593_v59 = vmul.f32 %v11557_v41, %v11624_v16  ;;  %v11792_v25 = vld [vmem:[#allocation3 + $0x61] sm:$0xff] }
 0x42e   : > { %16213 = vst [vmem:[#allocation20_spill] sm:$0xff] %v11745_v8  ;;  %16214 = vst [vmem:[#allocation69_spill] sm:$0xff] %v11749_v48  ;;  %v11779_v13 = vadd.f32 %v11516_v31, %v4356_v11  ;;  %v6093_v43 = vmul.f32 %v11616_v9, %v11663_v7  ;;  %v6193_v49 = vmul.f32 %v11619_v63, %v11680_v51  ;;  %v7819_v11 = vpop.f32.mrb[0].mxu1  ;;  %v11851_v6 = vld [vmem:[#allocation3 + $0x68] sm:$0xff] }
 0x42f   : > { %16215 = vst [vmem:[#allocation31_spill] sm:$0xff] %v11752_v10  ;;  %16216 = vst [vmem:[#allocation30_spill] sm:$0xff] %v11756_v21  ;;  %v6293_v56 = vmul.f32 %v11599_v33, %v11718_v57  ;;  %v11795_v5 = vadd.f32 %v11516_v31, %v4351_v34  ;;  %v5693_v48 = vmul.f32 %v11573_v62, %v11640_v39  ;;  %v11806_v21 = vld [vmem:[#allocation3 + $0x3c] sm:$0xff] }
 0x430   : > { %16217 = vst [vmem:[#allocation33_spill] sm:$0xff] %v11758_v55  ;;  %16218 = vst [vmem:[#allocation32_spill] sm:$0xff] %v11762_v37  ;;  %v5625_v37 = vadd.f32 %v5593_v59, %v11586_v18  ;;  %v11811_v34 = vadd.f32 %v7819_v11, %v11516_v31  ;;  %v6493_v42 = vmul.f32 %v11605_v29, %v11767_v30 }
 0x431   : > { %4562 = vst.msk [vmem:[#allocation3 + $0xb2] sm:$0xff] %vm4488_vm4, %v11745_v8  ;;  %16219 = vst [vmem:[#allocation36_spill] sm:$0xff] %v11767_v30  ;;  %v11797_v8 = vld [vmem:[#allocation3 + $0x62] sm:$0xff]  ;;  %v6594_v18 = vmul.f32 %v11632_v50, %v11774_v44  ;;  %v11826_v11 = vmul.f32 %v11635_v3, %v11792_v25  ;;  %v11836_v20 = vmul.f32 %v11638_v19, %v11799_v28 }
 0x432   : > { %4561 = vst.msk [vmem:[#allocation3 + $0xaa] sm:$0xff] %vm4488_vm4, %v11752_v10  ;;  %16220 = vst [vmem:[#allocation35_spill] sm:$0xff] %v11774_v44  ;;  %v6024_v10 = vadd.f32 %v5992_v23, %v5924_v61  ;;  %v4360_v61 = vpop.f32.mrb[1].mxu1  ;;  %v6393_v23 = vmul.f32 %v11602_v60, %v11725_v40  ;;  %v5725_v26 = vadd.f32 %v5693_v48, %v5625_v37 }
 0x433   : > { %16221 = vst [vmem:[#allocation59_spill] sm:$0xff] %v11779_v13  ;;  %16222 = vst [vmem:[#allocation57_spill] sm:$0xff] %v11792_v25  ;;  %v11822_v59 = vadd.f32 %v11516_v31, %v4360_v61  ;;  %v11832_v55 = vmul.f32 %v11622_v24, %v11797_v8  ;;  %v11840_v61 = vmul.f32 %v11784_v53, %v11801_v35  ;;  %v7822_v48 = vpop.f32.mrb[2].mxu1 }
 0x434   : > { %16223 = vst [vmem:[#allocation62_spill] sm:$0xff] %v11795_v5  ;;  %16224 = vst [vmem:[#allocation60_spill] sm:$0xff] %v11797_v8 }
 0x435   : > { %16225 = vst [vmem:[#allocation68_spill] sm:$0xff] %v11799_v28  ;;  %16226 = vst [vmem:[#allocation63_spill] sm:$0xff] %v11801_v35  ;;  %v11856_v35 = vadd.f32 %v7822_v48, %v11516_v31  ;;  %v6094_v28 = vmul.f32 %v11616_v9, %v11678_v38 }
 0x436   : > { %16227 = vst [vmem:[#allocation72_spill] sm:$0xff] %v11806_v21  ;;  %4564 = vst.msk [vmem:[#allocation3 + $0xca] sm:$0xff] %vm4488_vm4, %v11779_v13  ;;  %v6125_v13 = vadd.f32 %v6093_v43, %v6024_v10  ;;  %v5893_v10 = vmul.f32 %v11577_v47, %v11609_v32  ;;  %v11844_v43 = vld [vmem:[#allocation3 + $0x54] sm:$0xff]  ;;  %v4370_v32 = vpop.f32.mrb[3].mxu1 }
 0x437   : > { %16228 = vst [vmem:[#allocation71_spill] sm:$0xff] %v11811_v34  ;;  %4563 = vst.msk [vmem:[#allocation3 + $0xc2] sm:$0xff] %vm4488_vm4, %v11795_v5  ;;  %v5993_v5 = vmul.f32 %v11584_v36, %v11806_v21  ;;  %v11867_v21 = vld [vmem:[#allocation3 + $0x69] sm:$0xff] }
 0x438   : > { %16229 = vst [vmem:[#allocation75_spill] sm:$0xff] %v11822_v59  ;;  %4566 = vst.msk [vmem:[#allocation3 + $0xe2] sm:$0xff] %vm4488_vm4, %v11811_v34  ;;  %v6225_v37 = vadd.f32 %v6193_v49, %v6125_v13  ;;  %v5825_v34 = vadd.f32 %v11670_v46, %v5725_v26  ;;  %v6194_v13 = vmul.f32 %v11619_v63, %v11682_v54 }
 0x439   : > { %16230 = vst [vmem:[#allocation74_spill] sm:$0xff] %v11840_v61  ;;  %16231 = vst [vmem:[#allocation39_spill] sm:$0xff] %v11844_v43  ;;  %v5094_v61 = vmul.f32 %v11487_v0, %v11593_v12  ;;  %v5194_v46 = vmul.f32 %v11492_v2, %v11626_v4  ;;  %v11865_v26 = vadd.f32 %v11516_v31, %v4370_v32  ;;  %v11869_v12 = vld [vmem:[#allocation3 + $0x6a] sm:$0xff] }
 0x43a   : > { %4565 = vst.msk [vmem:[#allocation3 + $0xda] sm:$0xff] %vm4488_vm4, %v11822_v59  ;;  %16232 = vst [vmem:[#allocation49_spill] sm:$0xff] %v11851_v6  ;;  %v6325_v49 = vadd.f32 %v6293_v56, %v6225_v37  ;;  %v5925_v59 = vadd.f32 %v5893_v10, %v5825_v34  ;;  %v6294_v54 = vmul.f32 %v11599_v33, %v11700_v45  ;;  %v11886_v10 = vld [vmem:[#allocation3 + $0x6b] sm:$0xff] }
 0x43b   : > { %16233 = vst [vmem:[#allocation80_spill] sm:$0xff] %v11856_v35  ;;  %16234 = vst [vmem:[#allocation46_spill] sm:$0xff] %v11865_v26  ;;  %v5126_v48 = vadd.f32 %v5094_v61, %v11651_v58  ;;  %v6394_v4 = vmul.f32 %v11602_v60, %v11702_v1  ;;  %v6494_v32 = vmul.f32 %v11605_v29, %v11844_v43  ;;  %v7825_v58 = vpop.f32.mrb[4].mxu1  ;;  %v11888_v37 = vld [vmem:[#allocation3 + $0x6c] sm:$0xff] }
 0x43c   : > { %4568 = vst.msk [vmem:[#allocation3 + $0xfa] sm:$0xff] %vm4488_vm4, %v11856_v35  ;;  %v11882_v56 = vmul.f32 %v11632_v50, %v11851_v6  ;;  %4567 = vst.msk [vmem:[#allocation3 + $0xf2] sm:$0xff] %vm4488_vm4, %v11865_v26  ;;  %v6425_v34 = vadd.f32 %v6393_v23, %v6325_v49  ;;  %v6025_v61 = vadd.f32 %v5993_v5, %v5925_v59  ;;  %v4380_v45 = vpop.f32.mrb[5].mxu1  ;;  %v16239_v26 = vld [vmem:[#allocation79_spill] sm:$0xff] }
 0x43d   : > { %16235 = vst [vmem:[#allocation51_spill] sm:$0xff] %v11886_v10  ;;  %16236 = vst [vmem:[#allocation81_spill] sm:$0xff] %v11888_v37  ;;  %v5226_v35 = vadd.f32 %v5194_v46, %v5126_v48  ;;  %v5294_v1 = vmul.f32 %v11497_v15, %v11642_v17  ;;  %v11893_v43 = vadd.f32 %v7825_v58, %v11516_v31 }
 0x43e   : > { %v11897_v6 = vmul.f32 %v11635_v3, %v11867_v21  ;;  %v11901_v23 = vmul.f32 %v11622_v24, %v11869_v12  ;;  %v5394_v5 = vmul.f32 %v11508_v52, %v11644_v27  ;;  %v11906_v59 = vadd.f32 %v11516_v31, %v4380_v45 }
 0x43f   : > { %16237 = vst [vmem:[#allocation26_spill] sm:$0xff] %v11893_v43  ;;  %v6525_v46 = vadd.f32 %v6493_v42, %v6425_v34  ;;  %v6126_v17 = vadd.f32 %v6094_v28, %v6025_v61  ;;  %v5326_v49 = vadd.f32 %v5294_v1, %v5226_v35  ;;  %4570 = vst.msk [vmem:[#allocation3 + $0x112] sm:$0xff] %vm4488_vm4, %v11893_v43  ;;  %v7828_v35 = vpop.f32.mrb[6].mxu1 }
 0x440   : > { %16238 = vst [vmem:[#allocation82_spill] sm:$0xff] %v11906_v59  ;;  %v11912_v48 = vmul.f32 %v11638_v19, %v11886_v10  ;;  %v11916_v58 = vmul.f32 %v11784_v53, %v11888_v37  ;;  %v5494_v27 = vmul.f32 %v16239_v26, %v11734_v22  ;;  %v5594_v45 = vmul.f32 %v11557_v41, %v11663_v7  ;;  %v4390_v43 = vpop.f32.mrb[7].mxu1 }
 0x441   : > { %4569 = vst.msk [vmem:[#allocation3 + $0x10a] sm:$0xff] %vm4488_vm4, %v11906_v59  ;;  %v6626_v28 = vadd.f32 %v6594_v18, %v6525_v46  ;;  %v6226_v1 = vadd.f32 %v6194_v13, %v6126_v17  ;;  %v5426_v42 = vadd.f32 %v5394_v5, %v5326_v49  ;;  %v5694_v34 = vmul.f32 %v11573_v62, %v11680_v51 }
 0x442   : > { %v11927_v61 = vadd.f32 %v7828_v35, %v11516_v31  ;;  %v5794_v22 = vmul.f32 %v11561_v14, %v11718_v57  ;;  %v5894_v7 = vmul.f32 %v11577_v47, %v11725_v40  ;;  %v5095_v59 = vmul.f32 %v11487_v0, %v11624_v16  ;;  %v16242_v35 = vld [vmem:[#allocation53_spill] sm:$0xff] }
 0x443   : > { %v11936_v18 = vadd.f32 %v11516_v31, %v4390_v43  ;;  %v6726_v13 = vadd.f32 %v11826_v11, %v6626_v28  ;;  %v6326_v5 = vadd.f32 %v6294_v54, %v6226_v1  ;;  %v5526_v46 = vadd.f32 %v5494_v27, %v5426_v42  ;;  %v7831_v54 = vpop.f32.mrb[8].mxu1 }
 0x444   : > { %16240 = vst [vmem:[#allocation28_spill] sm:$0xff] %v11927_v61  ;;  %4572 = vst.msk [vmem:[#allocation3 + $0x12a] sm:$0xff] %vm4488_vm4, %v11927_v61  ;;  %v5994_v17 = vmul.f32 %v11584_v36, %v11767_v30  ;;  %v11945_v49 = vmul.f32 %v11774_v44, %v11616_v9  ;;  %v5127_v40 = vadd.f32 %v5095_v59, %v16242_v35  ;;  %v4400_v42 = vpop.f32.mrb[9].mxu1  ;;  %v16267_v44 = vld [vmem:[#allocation49_spill] sm:$0xff] }
 0x445   : > { %16241 = vst [vmem:[#allocation84_spill] sm:$0xff] %v11936_v18  ;;  %v5195_v16 = vmul.f32 %v11492_v2, %v11640_v39  ;;  %4571 = vst.msk [vmem:[#allocation3 + $0x122] sm:$0xff] %vm4488_vm4, %v11936_v18  ;;  %v6826_v11 = vadd.f32 %v11832_v55, %v6726_v13  ;;  %v6426_v43 = vadd.f32 %v6394_v4, %v6326_v5  ;;  %v11964_v39 = vld [vmem:[#allocation3 + $0x78] sm:$0xff] }
 0x446   : > { %v5626_v27 = vadd.f32 %v5594_v45, %v5526_v46  ;;  %v11955_v28 = vmul.f32 %v11792_v25, %v11619_v63  ;;  %v11958_v1 = vadd.f32 %v7831_v54, %v11516_v31  ;;  %v11962_v59 = vmul.f32 %v11797_v8, %v11599_v33  ;;  %16244 = vst [vmem:[#allocation86_spill] sm:$0xff] %v11964_v39  ;;  %v16245_v18 = vld [vmem:[#allocation54_spill] sm:$0xff]  ;;  %v11979_v54 = vld [vmem:[%s14998_s9] ss:$0 sm:$0xff] }
 0x447   : > { %v5227_v35 = vadd.f32 %v5195_v16, %v5127_v40  ;;  %v5295_v55 = vmul.f32 %v11497_v15, %v16245_v18  ;;  %v11969_v4 = vadd.f32 %v11516_v31, %v4400_v42  ;;  %v6926_v45 = vadd.f32 %v11836_v20, %v6826_v11  ;;  %v11972_v46 = vld [vmem:[#allocation3 + $0x79] sm:$0xff]  ;;  %v16248_v40 = vld [vmem:[#allocation68_spill] sm:$0xff]  ;;  %v7834_v11 = vpop.f32.mrb[10].mxu1 }
 0x448   : > { %16243 = vst [vmem:[#allocation29_spill] sm:$0xff] %v11958_v1  ;;  %v6526_v13 = vadd.f32 %v6494_v32, %v6426_v43  ;;  %v5726_v5 = vadd.f32 %v5694_v34, %v5626_v27  ;;  %16247 = vst [vmem:[#allocation55_spill] sm:$0xff] %v11972_v46  ;;  %v11983_v18 = vmul.f32 %v16248_v40, %v11602_v60  ;;  %v16249_v16 = vld [vmem:[#allocation63_spill] sm:$0xff]  ;;  %v16250_v32 = vld [vmem:[#allocation73_spill] sm:$0xff] }
 0x449   : > { %16246 = vst [vmem:[#allocation77_spill] sm:$0xff] %v11969_v4  ;;  %4574 = vst.msk [vmem:[#allocation3 + $0x142] sm:$0xff] %vm4488_vm4, %v11958_v1  ;;  %v11987_v42 = vmul.f32 %v16249_v16, %v11605_v29  ;;  %v5327_v20 = vadd.f32 %v5295_v55, %v5227_v35  ;;  %v5395_v34 = vmul.f32 %v11508_v52, %v16250_v32  ;;  %v16251_v43 = vld [vmem:[#allocation74_spill] sm:$0xff]  ;;  %v4410_v55 = vpop.f32.mrb[11].mxu1 }
 0x44a   : > { %4573 = vst.msk [vmem:[#allocation3 + $0x13a] sm:$0xff] %vm4488_vm4, %v11969_v4  ;;  %v7026_v27 = vadd.f32 %v16251_v43, %v6926_v45  ;;  %v6627_v1 = vadd.f32 %v11882_v56, %v6526_v13  ;;  %v5826_v61 = vadd.f32 %v5794_v22, %v5726_v5  ;;  %v11997_v40 = vmul.f32 %v11632_v50, %v11964_v39  ;;  %v11999_v8 = vld [vmem:[#allocation3 + $0x7a] sm:$0xff]  ;;  %v16256_v22 = vld [vmem:[#allocation72_spill] sm:$0xff] }
 0x44b   : > { %16252 = vst [vmem:[#allocation78_spill] sm:$0xff] %v11999_v8  ;;  %v12001_v16 = vld [vmem:[#allocation3 + $0x7b] sm:$0xff]  ;;  %v12004_v35 = vadd.f32 %v7834_v11, %v11516_v31  ;;  %v12008_v32 = vmul.f32 %v11635_v3, %v11972_v46  ;;  %v5427_v56 = vadd.f32 %v5395_v34, %v5327_v20  ;;  %v5495_v13 = vmul.f32 %v16239_v26, %v16256_v22 }
 0x44c   : > { %16253 = vst [vmem:[#allocation37_spill] sm:$0xff] %v12001_v16  ;;  %v12010_v45 = vld [vmem:[#allocation3 + $0x7c] sm:$0xff]  ;;  %v7065_v5 = vadd.f32 %v11979_v54, %v7026_v27  ;;  %v12016_v43 = vadd.f32 %v11516_v31, %v4410_v55  ;;  %v6727_v4 = vadd.f32 %v11897_v6, %v6627_v1  ;;  %v5926_v11 = vadd.f32 %v5894_v7, %v5826_v61  ;;  %v7837_v6 = vpop.f32.mrb[12].mxu1  ;;  %v16259_v55 = vld [vmem:[#allocation61_spill] sm:$0xff] }
 0x44d   : > { %16254 = vst [vmem:[#allocation11_spill] sm:$0xff] %v12004_v35  ;;  %16255 = vst [vmem:[#allocation12_spill] sm:$0xff] %v12010_v45  ;;  %v12023_v46 = vmul.f32 %v11622_v24, %v11999_v8  ;;  %v12027_v20 = vmul.f32 %v11638_v19, %v12001_v16  ;;  %v5527_v34 = vadd.f32 %v5495_v13, %v5427_v56 }
 0x44e   : > { %16257 = vst [vmem:[#allocation13_spill] sm:$0xff] %v12016_v43  ;;  %4576 = vst.msk [vmem:[#allocation3 + $0x15a] sm:$0xff] %vm4488_vm4, %v12004_v35  ;;  %v5595_v27 = vmul.f32 %v11557_v41, %v11678_v38  ;;  %7129 = vrot.lane.b32.xlu0 %v7065_v5, %s8336_s12  ;;  %v6827_v7 = vadd.f32 %v11901_v23, %v6727_v4  ;;  %v6026_v61 = vadd.f32 %v5994_v17, %v5926_v11  ;;  %v4420_v35 = vpop.f32.mrb[13].mxu1  ;;  %v16261_v5 = vld [vmem:[#allocation27_spill] sm:$0xff]  ;;  %v16264_v11 = vld [vmem:[#allocation56_spill] sm:$0xff] }
 0x44f   : > { %4575 = vst.msk [vmem:[#allocation3 + $0x152] sm:$0xff] %vm4488_vm4, %v12016_v43  ;;  %v12037_v1 = vmul.f32 %v11784_v53, %v12010_v45  ;;  %v5695_v56 = vmul.f32 %v11573_v62, %v16259_v55  ;;  %v12042_v13 = vadd.f32 %v7837_v6, %v11516_v31  ;;  %v5795_v8 = vmul.f32 %v11561_v14, %v16261_v5  ;;  %v16262_v43 = vld [vmem:[#allocation23_spill] sm:$0xff]  ;;  %v16265_v45 = vld [vmem:[#allocation88_spill] sm:$0xff] }
 0x450   : > { %v5627_v16 = vadd.f32 %v5595_v27, %v5527_v34  ;;  %v5895_v39 = vmul.f32 %v11577_v47, %v16262_v43  ;;  %v6927_v23 = vadd.f32 %v11912_v48, %v6827_v7  ;;  %v12050_v17 = vadd.f32 %v11516_v31, %v4420_v35  ;;  %v16266_v27 = vld [vmem:[#allocation39_spill] sm:$0xff] }
 0x451   : > { %16258 = vst [vmem:[#allocation17_spill] sm:$0xff] %v12037_v1  ;;  %16260 = vst [vmem:[#allocation18_spill] sm:$0xff] %v12042_v13  ;;  %v6127_v4 = vadd.f32 %v11945_v49, %v6026_v61  ;;  %v4828_v25 = vadd.f32 %v16265_v45, %v16264_v11  ;;  %v5995_v6 = vmul.f32 %v11584_v36, %v16266_v27  ;;  %v7840_v49 = vpop.f32.mrb[14].mxu1  ;;  %v12067_v7 = vld [vmem:[#allocation3 + $0x80] sm:$0xff] }
 0x452   : > { %16263 = vst [vmem:[#allocation21_spill] sm:$0xff] %v12050_v17  ;;  %4578 = vst.msk [vmem:[#allocation3 + $0x172] sm:$0xff] %vm4488_vm4, %v12042_v13  ;;  %v5727_v34 = vadd.f32 %v5695_v56, %v5627_v16  ;;  %v6096_v30 = vmul.f32 %v16267_v44, %v11616_v9  ;;  %v6196_v48 = vmul.f32 %v11867_v21, %v11619_v63  ;;  %v16269_v16 = vld [vmem:[#allocation45_spill] sm:$0xff]  ;;  %v16270_v56 = vld [vmem:[#allocation43_spill] sm:$0xff]  ;;  %v4430_v57 = vpop.f32.mrb[15].mxu1 }
 0x453   : > { %v7027_v35 = vadd.f32 %v11916_v58, %v6927_v23  ;;  %4577 = vst.msk [vmem:[#allocation3 + $0x16a] sm:$0xff] %vm4488_vm4, %v12050_v17  ;;  %v6227_v45 = vadd.f32 %v11955_v28, %v6127_v4  ;;  %16268 = vst [vmem:[#allocation22_spill] sm:$0xff] %v12067_v7  ;;  %v4928_v61 = vadd.f32 %v16269_v16, %v4828_v25  ;;  %v12077_v23 = vld [vmem:[#allocation3 + $0x81] sm:$0xff] }
 0x454   : > { %v4996_v11 = vmul.f32 %v16270_v56, %v16256_v22  ;;  %v12073_v13 = vadd.f32 %v7840_v49, %v11516_v31  ;;  %v5827_v1 = vadd.f32 %v5795_v8, %v5727_v34  ;;  %v6296_v58 = vmul.f32 %v11869_v12, %v11599_v33  ;;  %16272 = vst [vmem:[#allocation79_spill] sm:$0xff] %v12077_v23  ;;  %v12086_v16 = vld [vmem:[#allocation3 + $0x82] sm:$0xff] }
 0x455   : > { %v5097_v28 = vmul.f32 %v11487_v0, %v11678_v38  ;;  %v7066_v4 = vadd.f32 %v11979_v54, %v7027_v35  ;;  %v12083_v25 = vadd.f32 %v11516_v31, %v4430_v57  ;;  %v6327_v22 = vadd.f32 %v11962_v59, %v6227_v45  ;;  %16274 = vst [vmem:[#allocation54_spill] sm:$0xff] %v12086_v16  ;;  %v12088_v49 = vld [vmem:[#allocation3 + $0x83] sm:$0xff]  ;;  %v7843_v35 = vpop.f32.mrb[16].mxu1 }
 0x456   : > { %16271 = vst [vmem:[#allocation25_spill] sm:$0xff] %v12073_v13  ;;  %16275 = vst [vmem:[#allocation73_spill] sm:$0xff] %v12088_v49  ;;  %v5028_v8 = vadd.f32 %v4996_v11, %v4928_v61  ;;  %v5927_v34 = vadd.f32 %v5895_v39, %v5827_v1  ;;  %v6396_v17 = vmul.f32 %v11886_v10, %v11602_v60  ;;  %v12108_v1 = vld [vmem:[#allocation3 + $0x84] sm:$0xff] }
 0x457   : > { %16273 = vst [vmem:[#allocation53_spill] sm:$0xff] %v12083_v25  ;;  %4580 = vst.msk [vmem:[#allocation3 + $0x18a] sm:$0xff] %vm4488_vm4, %v12073_v13  ;;  %v6496_v38 = vmul.f32 %v11888_v37, %v11605_v29  ;;  %v12098_v57 = vmul.f32 %v11632_v50, %v12067_v7  ;;  %7131 = vrot.lane.b32.xlu0 %v7066_v4, %s8336_s12  ;;  %v6427_v59 = vadd.f32 %v11983_v18, %v6327_v22  ;;  %v4440_v4 = vpop.f32.mrb[17].mxu1 }
 0x458   : > { %4579 = vst.msk [vmem:[#allocation3 + $0x182] sm:$0xff] %vm4488_vm4, %v12083_v25  ;;  %v12106_v39 = vmul.f32 %v11635_v3, %v12077_v23  ;;  %16276 = vst [vmem:[#allocation74_spill] sm:$0xff] %v12108_v1  ;;  %v5129_v45 = vadd.f32 %v5097_v28, %v5028_v8  ;;  %v5197_v61 = vmul.f32 %v11492_v2, %v16259_v55 }
 0x459   : > { %v12113_v11 = vadd.f32 %v7843_v35, %v11516_v31  ;;  %v6027_v13 = vadd.f32 %v5995_v6, %v5927_v34  ;;  %v12117_v25 = vmul.f32 %v11622_v24, %v12086_v16  ;;  %v12121_v18 = vmul.f32 %v11638_v19, %v12088_v49 }
 0x45a   : > { %v6527_v22 = vadd.f32 %v11987_v42, %v6427_v59  ;;  %v12125_v28 = vadd.f32 %v11516_v31, %v4440_v4  ;;  %v5229_v8 = vadd.f32 %v5197_v61, %v5129_v45  ;;  %v5297_v55 = vmul.f32 %v11497_v15, %v16261_v5  ;;  %v16279_v61 = vld [vmem:[#allocation40_spill] sm:$0xff]  ;;  %v16280_v4 = vld [vmem:[#allocation87_spill] sm:$0xff] }
 0x45b   : > { %16277 = vst [vmem:[#allocation72_spill] sm:$0xff] %v12113_v11  ;;  %4582 = vst.msk [vmem:[#allocation3 + $0x1a2] sm:$0xff] %vm4488_vm4, %v12113_v11  ;;  %v6128_v6 = vadd.f32 %v6096_v30, %v6027_v13  ;;  %v12133_v34 = vmul.f32 %v11784_v53, %v12108_v1  ;;  %v5397_v35 = vmul.f32 %v11508_v52, %v16262_v43  ;;  %v12163_v11 = vld [vmem:[#allocation3 + $0x98] sm:$0xff] }
 0x45c   : > { %16278 = vst [vmem:[#allocation61_spill] sm:$0xff] %v12125_v28  ;;  %v5497_v42 = vmul.f32 %v16239_v26, %v16266_v27  ;;  %v6628_v31 = vadd.f32 %v11997_v40, %v6527_v22  ;;  %4581 = vst.msk [vmem:[#allocation3 + $0x19a] sm:$0xff] %vm4488_vm4, %v12125_v28  ;;  %v5329_v5 = vadd.f32 %v5297_v55, %v5229_v8 }
 0x45d   : > { %v5597_v59 = vmul.f32 %v16267_v44, %v11557_v41  ;;  %v5697_v30 = vmul.f32 %v11867_v21, %v11573_v62  ;;  %v6228_v13 = vadd.f32 %v6196_v48, %v6128_v6  ;;  %v5797_v45 = vmul.f32 %v11869_v12, %v11561_v14  ;;  %16281 = vst [vmem:[#allocation27_spill] sm:$0xff] %v12163_v11 }
 0x45e   : > { %v5897_v43 = vmul.f32 %v11886_v10, %v11577_v47  ;;  %v4827_v40 = vadd.f32 %v16280_v4, %v16279_v61  ;;  %v6728_v22 = vadd.f32 %v12008_v32, %v6628_v31  ;;  %v5429_v28 = vadd.f32 %v5397_v35, %v5329_v5  ;;  %v12165_v10 = vld [vmem:[#allocation3 + $0x99] sm:$0xff]  ;;  %v16283_v61 = vld [vmem:[#allocation52_spill] sm:$0xff] }
 0x45f   : > { %v5997_v8 = vmul.f32 %v11888_v37, %v11584_v36  ;;  %v12157_v55 = vmul.f32 %v12067_v7, %v11616_v9  ;;  %v6328_v48 = vadd.f32 %v6296_v58, %v6228_v13  ;;  %v12161_v6 = vmul.f32 %v12077_v23, %v11619_v63  ;;  %16282 = vst [vmem:[#allocation23_spill] sm:$0xff] %v12165_v10  ;;  %v16284_v32 = vld [vmem:[#allocation34_spill] sm:$0xff] }
 0x460   : > { %v4927_v4 = vadd.f32 %v16283_v61, %v4827_v40  ;;  %v4995_v35 = vmul.f32 %v16270_v56, %v16284_v32  ;;  %v6828_v31 = vadd.f32 %v12023_v46, %v6728_v22  ;;  %v5529_v5 = vadd.f32 %v5497_v42, %v5429_v28  ;;  %v12179_v13 = vld [vmem:[#allocation3 + $0x9a] sm:$0xff]  ;;  %v16289_v28 = vld [vmem:[#allocation76_spill] sm:$0xff] }
 0x461   : > { %v12173_v7 = vmul.f32 %v12086_v16, %v11599_v33  ;;  %v12177_v58 = vmul.f32 %v12088_v49, %v11602_v60  ;;  %16285 = vst [vmem:[#allocation56_spill] sm:$0xff] %v12179_v13  ;;  %v6428_v23 = vadd.f32 %v6396_v17, %v6328_v48  ;;  %v12183_v40 = vmul.f32 %v12108_v1, %v11605_v29  ;;  %v12185_v61 = vld [vmem:[#allocation3 + $0x9b] sm:$0xff] }
 0x462   : > { %16287 = vst [vmem:[#allocation39_spill] sm:$0xff] %v12185_v61  ;;  %v12187_v32 = vld [vmem:[#allocation3 + $0x9c] sm:$0xff]  ;;  %v5027_v46 = vadd.f32 %v4995_v35, %v4927_v4  ;;  %v5096_v42 = vmul.f32 %v11487_v0, %v16289_v28  ;;  %v6928_v22 = vadd.f32 %v12027_v20, %v6828_v31  ;;  %v5629_v16 = vadd.f32 %v5597_v59, %v5529_v5  ;;  %v16293_v28 = vld [vmem:[#allocation17_spill] sm:$0xff] }
 0x463   : > { %16286 = vst [vmem:[#allocation88_spill] sm:$0xff] %v12183_v40  ;;  %16288 = vst [vmem:[#allocation49_spill] sm:$0xff] %v12187_v32  ;;  %v12194_v49 = vmul.f32 %v11632_v50, %v12163_v11  ;;  %v12198_v17 = vmul.f32 %v11635_v3, %v12165_v10  ;;  %v6528_v48 = vadd.f32 %v6496_v38, %v6428_v23 }
 0x464   : > { %v12202_v40 = vmul.f32 %v11622_v24, %v12179_v13  ;;  %v5128_v4 = vadd.f32 %v5096_v42, %v5027_v46  ;;  %v5196_v35 = vmul.f32 %v11492_v2, %v11680_v51  ;;  %v7028_v20 = vadd.f32 %v16293_v28, %v6928_v22  ;;  %v16297_v42 = vld [vmem:[#allocation38_spill] sm:$0xff] }
 0x465   : > { %16290 = vst [vmem:[#allocation45_spill] sm:$0xff] %v12194_v49  ;;  %16291 = vst [vmem:[#allocation43_spill] sm:$0xff] %v12198_v17  ;;  %v5729_v59 = vadd.f32 %v5697_v30, %v5629_v16  ;;  %v12209_v31 = vmul.f32 %v11638_v19, %v12185_v61  ;;  %v12213_v5 = vmul.f32 %v11784_v53, %v12187_v32  ;;  %v16296_v17 = vld [vmem:[#allocation48_spill] sm:$0xff]  ;;  %v16304_v32 = vld [vmem:[#allocation33_spill] sm:$0xff] }
 0x466   : > { %16292 = vst [vmem:[#allocation40_spill] sm:$0xff] %v12202_v40  ;;  %v6629_v23 = vadd.f32 %v12098_v57, %v6528_v48  ;;  %v5228_v38 = vadd.f32 %v5196_v35, %v5128_v4  ;;  %v5296_v46 = vmul.f32 %v11497_v15, %v16296_v17  ;;  %v5396_v51 = vmul.f32 %v11508_v52, %v16297_v42  ;;  %v16298_v30 = vld [vmem:[#allocation36_spill] sm:$0xff]  ;;  %v16300_v57 = vld [vmem:[#allocation57_spill] sm:$0xff] }
 0x467   : > { %16294 = vst [vmem:[#allocation87_spill] sm:$0xff] %v12209_v31  ;;  %16295 = vst [vmem:[#allocation52_spill] sm:$0xff] %v12213_v5  ;;  %v7067_v22 = vadd.f32 %v11979_v54, %v7028_v20  ;;  %v5829_v16 = vadd.f32 %v5797_v45, %v5729_v59  ;;  %v5496_v28 = vmul.f32 %v16239_v26, %v16298_v30  ;;  %v16299_v31 = vld [vmem:[#allocation35_spill] sm:$0xff]  ;;  %v16301_v17 = vld [vmem:[#allocation60_spill] sm:$0xff] }
 0x468   : > { %v5596_v40 = vmul.f32 %v16299_v31, %v11557_v41  ;;  %v6729_v5 = vadd.f32 %v12106_v39, %v6629_v23  ;;  %v5328_v49 = vadd.f32 %v5296_v46, %v5228_v38  ;;  %v5696_v48 = vmul.f32 %v16300_v57, %v11573_v62  ;;  %v16302_v45 = vld [vmem:[#allocation68_spill] sm:$0xff]  ;;  %v16303_v59 = vld [vmem:[#allocation63_spill] sm:$0xff]  ;;  %v16305_v31 = vld [vmem:[#allocation41_spill] sm:$0xff] }
 0x469   : > { %v5796_v4 = vmul.f32 %v16301_v17, %v11561_v14  ;;  %7133 = vrot.lane.b32.xlu1 %v7067_v22, %s8336_s12  ;;  %v5929_v35 = vadd.f32 %v5897_v43, %v5829_v16  ;;  %v5896_v20 = vmul.f32 %v16302_v45, %v11577_v47  ;;  %v5996_v42 = vmul.f32 %v16303_v59, %v11584_v36  ;;  %v16306_v38 = vld [vmem:[#allocation86_spill] sm:$0xff]  ;;  %v16307_v17 = vld [vmem:[#allocation55_spill] sm:$0xff]  ;;  %v12246_v43 = vld [vmem:[#allocation3 + $0x90] sm:$0xff] }
 0x46a   : > { %v4830_v61 = vadd.f32 %v16305_v31, %v16304_v32  ;;  %v6829_v39 = vadd.f32 %v12117_v25, %v6729_v5  ;;  %v5428_v23 = vadd.f32 %v5396_v51, %v5328_v49  ;;  %v12240_v46 = vmul.f32 %v16306_v38, %v11616_v9  ;;  %v16308_v45 = vld [vmem:[#allocation78_spill] sm:$0xff]  ;;  %v16311_v25 = vld [vmem:[#allocation19_spill] sm:$0xff] }
 0x46b   : > { %v12244_v22 = vmul.f32 %v16307_v17, %v11619_v63  ;;  %v6029_v16 = vadd.f32 %v5997_v8, %v5929_v35  ;;  %v12250_v59 = vmul.f32 %v16308_v45, %v11599_v33  ;;  %v12252_v57 = vld [vmem:[#allocation3 + $0x91] sm:$0xff]  ;;  %v4998_v31 = vmul.f32 %v16270_v56, %v16266_v27  ;;  %v16313_v8 = vld [vmem:[#allocation12_spill] sm:$0xff] }
 0x46c   : > { %v12254_v32 = vld [vmem:[#allocation3 + $0x92] sm:$0xff]  ;;  %v4930_v49 = vadd.f32 %v16311_v25, %v4830_v61  ;;  %v6929_v5 = vadd.f32 %v12121_v18, %v6829_v39  ;;  %v5528_v51 = vadd.f32 %v5496_v28, %v5428_v23  ;;  %v12266_v35 = vmul.f32 %v16313_v8, %v11605_v29 }
 0x46d   : > { %16309 = vst [vmem:[#allocation34_spill] sm:$0xff] %v12250_v59  ;;  %16310 = vst [vmem:[#allocation76_spill] sm:$0xff] %v12254_v32  ;;  %v16312_v17 = vld [vmem:[#allocation37_spill] sm:$0xff]  ;;  %v6130_v59 = vadd.f32 %v12157_v55, %v6029_v16  ;;  %v12273_v61 = vmul.f32 %v11632_v50, %v12246_v43  ;;  %v5099_v28 = vmul.f32 %v16267_v44, %v11487_v0 }
 0x46e   : > { %v12262_v38 = vmul.f32 %v16312_v17, %v11602_v60  ;;  %v12268_v45 = vld [vmem:[#allocation3 + $0x93] sm:$0xff]  ;;  %v5030_v18 = vadd.f32 %v4998_v31, %v4930_v49  ;;  %v7029_v39 = vadd.f32 %v12133_v34, %v6929_v5  ;;  %v5628_v23 = vadd.f32 %v5596_v40, %v5528_v51 }
 0x46f   : > { %16314 = vst [vmem:[#allocation17_spill] sm:$0xff] %v12268_v45  ;;  %16315 = vst [vmem:[#allocation48_spill] sm:$0xff] %v12273_v61  ;;  %v12275_v27 = vld [vmem:[#allocation3 + $0x94] sm:$0xff]  ;;  %v12282_v25 = vmul.f32 %v11635_v3, %v12252_v57  ;;  %v12286_v55 = vmul.f32 %v11622_v24, %v12254_v32  ;;  %v6230_v16 = vadd.f32 %v12161_v6, %v6130_v59 }
 0x470   : > { %16316 = vst [vmem:[#allocation38_spill] sm:$0xff] %v12275_v27  ;;  %v12291_v61 = vmul.f32 %v11638_v19, %v12268_v45  ;;  %v5131_v49 = vadd.f32 %v5099_v28, %v5030_v18  ;;  %v5199_v31 = vmul.f32 %v11867_v21, %v11492_v2  ;;  %v7068_v34 = vadd.f32 %v11979_v54, %v7029_v39  ;;  %v16326_v45 = vld [vmem:[#allocation30_spill] sm:$0xff] }
 0x471   : > { %16317 = vst [vmem:[#allocation36_spill] sm:$0xff] %v12282_v25  ;;  %16318 = vst [vmem:[#allocation33_spill] sm:$0xff] %v12286_v55  ;;  %v5728_v40 = vadd.f32 %v5696_v48, %v5628_v23  ;;  %v12298_v5 = vmul.f32 %v11784_v53, %v12275_v27  ;;  %v5299_v51 = vmul.f32 %v11869_v12, %v11497_v15  ;;  %v16321_v55 = vld [vmem:[#allocation51_spill] sm:$0xff]  ;;  %v16322_v48 = vld [vmem:[#allocation22_spill] sm:$0xff] }
 0x472   : > { %16319 = vst [vmem:[#allocation41_spill] sm:$0xff] %v12291_v61  ;;  %v6330_v6 = vadd.f32 %v12173_v7, %v6230_v16  ;;  %v5231_v59 = vadd.f32 %v5199_v31, %v5131_v49  ;;  %v5399_v61 = vmul.f32 %v16321_v55, %v11508_v52  ;;  %v5499_v18 = vmul.f32 %v11888_v37, %v16239_v26  ;;  %v16323_v23 = vld [vmem:[#allocation79_spill] sm:$0xff]  ;;  %v16324_v25 = vld [vmem:[#allocation54_spill] sm:$0xff]  ;;  %v16325_v49 = vld [vmem:[#allocation73_spill] sm:$0xff] }
 0x473   : > { %16320 = vst [vmem:[#allocation19_spill] sm:$0xff] %v12298_v5  ;;  %7135 = vrot.lane.b32.xlu1 %v7068_v34, %s8336_s12  ;;  %v5828_v28 = vadd.f32 %v5796_v4, %v5728_v40  ;;  %v5599_v39 = vmul.f32 %v16322_v48, %v11557_v41  ;;  %v5699_v5 = vmul.f32 %v16323_v23, %v11573_v62  ;;  %v16327_v37 = vld [vmem:[#allocation69_spill] sm:$0xff] }
 0x474   : > { %v5799_v27 = vmul.f32 %v16324_v25, %v11561_v14  ;;  %v6430_v7 = vadd.f32 %v12177_v58, %v6330_v6  ;;  %v5331_v16 = vadd.f32 %v5299_v51, %v5231_v59  ;;  %v5899_v31 = vmul.f32 %v16325_v49, %v11577_v47  ;;  %v16328_v58 = vld [vmem:[#allocation88_spill] sm:$0xff]  ;;  %v12330_v59 = vld [vmem:[#allocation3 + $0xb0] sm:$0xff] }
 0x475   : > { %v4829_v55 = vadd.f32 %v16327_v37, %v16326_v45  ;;  %v5928_v34 = vadd.f32 %v5896_v20, %v5828_v28  ;;  %v5999_v4 = vmul.f32 %v12108_v1, %v11584_v36  ;;  %v12323_v40 = vmul.f32 %v12163_v11, %v11616_v9  ;;  %16329 = vst [vmem:[#allocation37_spill] sm:$0xff] %v12330_v59  ;;  %v12332_v49 = vld [vmem:[#allocation3 + $0xb1] sm:$0xff]  ;;  %v16332_v45 = vld [vmem:[#allocation32_spill] sm:$0xff] }
 0x476   : > { %v12327_v25 = vmul.f32 %v12165_v10, %v11619_v63  ;;  %v6530_v51 = vadd.f32 %v16328_v58, %v6430_v7  ;;  %v5431_v6 = vadd.f32 %v5399_v61, %v5331_v16  ;;  %16330 = vst [vmem:[#allocation12_spill] sm:$0xff] %v12332_v49  ;;  %v12334_v37 = vld [vmem:[#allocation3 + $0xb2] sm:$0xff]  ;;  %v4997_v28 = vmul.f32 %v16270_v56, %v16298_v30  ;;  %v16333_v10 = vld [vmem:[#allocation39_spill] sm:$0xff] }
 0x477   : > { %16331 = vst [vmem:[#allocation30_spill] sm:$0xff] %v12334_v37  ;;  %v4929_v20 = vadd.f32 %v16332_v45, %v4829_v55  ;;  %v6028_v11 = vadd.f32 %v5996_v42, %v5928_v34  ;;  %v12341_v1 = vmul.f32 %v12179_v13, %v11599_v33  ;;  %v12345_v7 = vmul.f32 %v16333_v10, %v11602_v60  ;;  %v16334_v61 = vld [vmem:[#allocation49_spill] sm:$0xff]  ;;  %v16338_v42 = vld [vmem:[#allocation35_spill] sm:$0xff] }
 0x478   : > { %v12349_v16 = vmul.f32 %v16334_v61, %v11605_v29  ;;  %v16335_v58 = vld [vmem:[#allocation45_spill] sm:$0xff]  ;;  %v5531_v48 = vadd.f32 %v5499_v18, %v5431_v6  ;;  %v5098_v34 = vmul.f32 %v16338_v42, %v11487_v0  ;;  %v12361_v10 = vmul.f32 %v11632_v50, %v12330_v59  ;;  %v16353_v59 = vld [vmem:[#allocation87_spill] sm:$0xff] }
 0x479   : > { %v6631_v23 = vadd.f32 %v16335_v58, %v6530_v51  ;;  %v12352_v55 = vld [vmem:[#allocation3 + $0xb3] sm:$0xff]  ;;  %v5029_v30 = vadd.f32 %v4997_v28, %v4929_v20  ;;  %v6129_v13 = vadd.f32 %v12240_v46, %v6028_v11  ;;  %v12365_v61 = vmul.f32 %v11635_v3, %v12332_v49  ;;  %v16342_v51 = vld [vmem:[#allocation43_spill] sm:$0xff]  ;;  %v16347_v49 = vld [vmem:[#allocation40_spill] sm:$0xff] }
 0x47a   : > { %16336 = vst [vmem:[#allocation69_spill] sm:$0xff] %v12352_v55  ;;  %v12354_v45 = vld [vmem:[#allocation3 + $0xb4] sm:$0xff]  ;;  %16339 = vst [vmem:[#allocation32_spill] sm:$0xff] %v12361_v10  ;;  %v12369_v18 = vmul.f32 %v11622_v24, %v12334_v37  ;;  %v5631_v20 = vadd.f32 %v5599_v39, %v5531_v48  ;;  %v12377_v46 = vmul.f32 %v11638_v19, %v12352_v55  ;;  %v16346_v37 = vld [vmem:[#allocation60_spill] sm:$0xff] }
 0x47b   : > { %16337 = vst [vmem:[#allocation88_spill] sm:$0xff] %v12354_v45  ;;  %16340 = vst [vmem:[#allocation45_spill] sm:$0xff] %v12365_v61  ;;  %v6731_v6 = vadd.f32 %v16342_v51, %v6631_v23  ;;  %v5130_v28 = vadd.f32 %v5098_v34, %v5029_v30  ;;  %v16343_v58 = vld [vmem:[#allocation57_spill] sm:$0xff]  ;;  %v6229_v11 = vadd.f32 %v12244_v22, %v6129_v13  ;;  %v16348_v30 = vld [vmem:[#allocation68_spill] sm:$0xff] }
 0x47c   : > { %16341 = vst [vmem:[#allocation35_spill] sm:$0xff] %v12369_v18  ;;  %v5198_v42 = vmul.f32 %v16343_v58, %v11492_v2  ;;  %16344 = vst [vmem:[#allocation43_spill] sm:$0xff] %v12377_v46  ;;  %v12381_v61 = vmul.f32 %v11784_v53, %v12354_v45  ;;  %v5298_v18 = vmul.f32 %v16346_v37, %v11497_v15  ;;  %v16349_v51 = vld [vmem:[#allocation34_spill] sm:$0xff]  ;;  %v16350_v22 = vld [vmem:[#allocation63_spill] sm:$0xff] }
 0x47d   : > { %v6831_v23 = vadd.f32 %v16347_v49, %v6731_v6  ;;  %v5731_v48 = vadd.f32 %v5699_v5, %v5631_v20  ;;  %v5398_v34 = vmul.f32 %v16348_v30, %v11508_v52  ;;  %v6329_v13 = vadd.f32 %v16349_v51, %v6229_v11  ;;  %v16351_v46 = vld [vmem:[#allocation86_spill] sm:$0xff]  ;;  %v16356_v30 = vld [vmem:[#allocation65_spill] sm:$0xff] }
 0x47e   : > { %16345 = vst [vmem:[#allocation57_spill] sm:$0xff] %v12381_v61  ;;  %v5230_v39 = vadd.f32 %v5198_v42, %v5130_v28  ;;  %v5498_v58 = vmul.f32 %v16350_v22, %v16239_v26  ;;  %v5598_v55 = vmul.f32 %v16351_v46, %v11557_v41  ;;  %v16352_v61 = vld [vmem:[#allocation55_spill] sm:$0xff]  ;;  %v16354_v5 = vld [vmem:[#allocation78_spill] sm:$0xff]  ;;  %v5898_v28 = vmul.f32 %v16312_v17, %v11577_v47  ;;  %v16357_v22 = vld [vmem:[#allocation52_spill] sm:$0xff] }
 0x47f   : > { %v5698_v45 = vmul.f32 %v16352_v61, %v11573_v62  ;;  %v6931_v37 = vadd.f32 %v16353_v59, %v6831_v23  ;;  %v5831_v10 = vadd.f32 %v5799_v27, %v5731_v48  ;;  %v5798_v6 = vmul.f32 %v16354_v5, %v11561_v14  ;;  %v16355_v42 = vld [vmem:[#allocation50_spill] sm:$0xff] }
 0x480   : > { %v5330_v49 = vadd.f32 %v5298_v18, %v5230_v39  ;;  %v6429_v20 = vadd.f32 %v12262_v38, %v6329_v13  ;;  %v4632_v11 = vmul.f32 %v16267_v44, %v16355_v42  ;;  %v4700_v51 = vmul.f32 %v11867_v21, %v16356_v30  ;;  %v16358_v48 = vld [vmem:[#allocation58_spill] sm:$0xff] }
 0x481   : > { %v7031_v61 = vadd.f32 %v16357_v22, %v6931_v37  ;;  %v5931_v46 = vadd.f32 %v5899_v31, %v5831_v10  ;;  %v5998_v27 = vmul.f32 %v16313_v8, %v11584_v36  ;;  %v6099_v38 = vmul.f32 %v12246_v43, %v11616_v9  ;;  %v12418_v31 = vld [vmem:[#allocation3 + $0xa8] sm:$0xff] }
 0x482   : > { %v5430_v59 = vadd.f32 %v5398_v34, %v5330_v49  ;;  %v6529_v18 = vadd.f32 %v12266_v35, %v6429_v20  ;;  %v4732_v23 = vadd.f32 %v4700_v51, %v4632_v11  ;;  %v4800_v39 = vmul.f32 %v11869_v12, %v16358_v48  ;;  %16359 = vst [vmem:[#allocation60_spill] sm:$0xff] %v12418_v31  ;;  %v16360_v34 = vld [vmem:[#allocation48_spill] sm:$0xff]  ;;  %v16365_v51 = vld [vmem:[#allocation17_spill] sm:$0xff] }
 0x483   : > { %v7070_v44 = vadd.f32 %v11979_v54, %v7031_v61  ;;  %v6031_v13 = vadd.f32 %v5999_v4, %v5931_v46  ;;  %v12416_v10 = vmul.f32 %v12252_v57, %v11619_v63  ;;  %v12423_v35 = vmul.f32 %v12254_v32, %v11599_v33  ;;  %v12425_v49 = vld [vmem:[#allocation3 + $0xa9] sm:$0xff]  ;;  %v16363_v61 = vld [vmem:[#allocation66_spill] sm:$0xff]  ;;  %v16364_v4 = vld [vmem:[#allocation51_spill] sm:$0xff] }
 0x484   : > { %v5530_v21 = vadd.f32 %v5498_v58, %v5430_v59  ;;  %v6630_v37 = vadd.f32 %v16360_v34, %v6529_v18  ;;  %16361 = vst [vmem:[#allocation40_spill] sm:$0xff] %v12425_v49  ;;  %v12427_v20 = vld [vmem:[#allocation3 + $0xaa] sm:$0xff]  ;;  %v4832_v12 = vadd.f32 %v4800_v39, %v4732_v23  ;;  %v4900_v46 = vmul.f32 %v16364_v4, %v16363_v61  ;;  %v16366_v59 = vld [vmem:[#allocation38_spill] sm:$0xff] }
 0x485   : > { %16362 = vst [vmem:[#allocation68_spill] sm:$0xff] %v12427_v20  ;;  %7139 = vrot.lane.b32.xlu1 %v7070_v44, %s8336_s12  ;;  %v6132_v58 = vadd.f32 %v12323_v40, %v6031_v13  ;;  %v12435_v22 = vmul.f32 %v16365_v51, %v11602_v60  ;;  %v12439_v18 = vmul.f32 %v16366_v59, %v11605_v29  ;;  %v12441_v34 = vld [vmem:[#allocation3 + $0xab] sm:$0xff] }
 0x486   : > { %v5630_v11 = vadd.f32 %v5598_v55, %v5530_v21  ;;  %16367 = vst [vmem:[#allocation34_spill] sm:$0xff] %v12441_v34  ;;  %v16368_v32 = vld [vmem:[#allocation36_spill] sm:$0xff]  ;;  %v12446_v39 = vmul.f32 %v11632_v50, %v12418_v31  ;;  %v4932_v40 = vadd.f32 %v4900_v46, %v4832_v12  ;;  %v16371_v55 = vld [vmem:[#allocation81_spill] sm:$0xff]  ;;  %v12455_v59 = vmul.f32 %v11635_v3, %v12425_v49  ;;  %v16376_v46 = vld [vmem:[#allocation22_spill] sm:$0xff] }
 0x487   : > { %v6730_v23 = vadd.f32 %v16368_v32, %v6630_v37  ;;  %v12448_v44 = vld [vmem:[#allocation3 + $0xac] sm:$0xff]  ;;  %v5000_v13 = vmul.f32 %v16371_v55, %v16270_v56  ;;  %v6232_v21 = vadd.f32 %v12327_v25, %v6132_v58  ;;  %v12459_v32 = vmul.f32 %v11622_v24, %v12427_v20  ;;  %v4595_v49 = vld [vmem:[#allocation3 + $0x60] sm:$0xff] }
 0x488   : > { %16369 = vst [vmem:[#allocation63_spill] sm:$0xff] %v12446_v39  ;;  %16370 = vst [vmem:[#allocation87_spill] sm:$0xff] %v12448_v44  ;;  %v5730_v4 = vadd.f32 %v5698_v45, %v5630_v11  ;;  %v16374_v37 = vld [vmem:[#allocation33_spill] sm:$0xff]  ;;  %v12464_v51 = vmul.f32 %v11638_v19, %v12441_v34  ;;  %v5101_v55 = vmul.f32 %v16376_v46, %v11487_v0  ;;  %v16378_v11 = vld [vmem:[#allocation79_spill] sm:$0xff] }
 0x489   : > { %16372 = vst [vmem:[#allocation78_spill] sm:$0xff] %v12455_v59  ;;  %16373 = vst [vmem:[#allocation50_spill] sm:$0xff] %v12459_v32  ;;  %v6830_v31 = vadd.f32 %v16374_v37, %v6730_v23  ;;  %v5032_v12 = vadd.f32 %v5000_v13, %v4932_v40  ;;  %v6332_v25 = vadd.f32 %v12341_v1, %v6232_v21  ;;  %v16379_v32 = vld [vmem:[#allocation41_spill] sm:$0xff]  ;;  %v16380_v34 = vld [vmem:[#allocation54_spill] sm:$0xff] }
 0x48a   : > { %16375 = vst [vmem:[#allocation65_spill] sm:$0xff] %v12464_v51  ;;  %v5830_v45 = vadd.f32 %v5798_v6, %v5730_v4  ;;  %v12471_v58 = vmul.f32 %v11784_v53, %v12448_v44  ;;  %v5201_v20 = vmul.f32 %v16378_v11, %v11492_v2  ;;  %v5301_v51 = vmul.f32 %v16380_v34, %v11497_v15  ;;  %v16381_v40 = vld [vmem:[#allocation73_spill] sm:$0xff]  ;;  %v16382_v21 = vld [vmem:[#allocation74_spill] sm:$0xff]  ;;  %v4663_v59 = vld [vmem:[#allocation3 + $0x61] sm:$0xff] }
 0x48b   : > { %v6930_v23 = vadd.f32 %v16379_v32, %v6830_v31  ;;  %v5133_v37 = vadd.f32 %v5101_v55, %v5032_v12  ;;  %v5401_v13 = vmul.f32 %v16381_v40, %v11508_v52  ;;  %v6432_v1 = vadd.f32 %v12345_v7, %v6332_v25  ;;  %v16384_v11 = vld [vmem:[#allocation19_spill] sm:$0xff]  ;;  %v16386_v34 = vld [vmem:[#allocation56_spill] sm:$0xff] }
 0x48c   : > { %16377 = vst [vmem:[#allocation52_spill] sm:$0xff] %v12471_v58  ;;  %v5930_v6 = vadd.f32 %v5898_v28, %v5830_v45  ;;  %v5501_v4 = vmul.f32 %v16382_v21, %v16239_v26  ;;  %v16383_v58 = vld [vmem:[#allocation27_spill] sm:$0xff]  ;;  %v5801_v40 = vmul.f32 %v16386_v34, %v11561_v14  ;;  %v4631_v45 = vmul.f32 %v16355_v42, %v4595_v49 }
 0x48d   : > { %v5601_v44 = vmul.f32 %v16383_v58, %v11557_v41  ;;  %v7030_v31 = vadd.f32 %v16384_v11, %v6930_v23  ;;  %v5233_v32 = vadd.f32 %v5201_v20, %v5133_v37  ;;  %v16385_v12 = vld [vmem:[#allocation23_spill] sm:$0xff]  ;;  %v6532_v46 = vadd.f32 %v12349_v16, %v6432_v1  ;;  %v16388_v20 = vld [vmem:[#allocation49_spill] sm:$0xff]  ;;  %v16389_v37 = vld [vmem:[#allocation32_spill] sm:$0xff] }
 0x48e   : > { %v5701_v55 = vmul.f32 %v16385_v12, %v11573_v62  ;;  %v6030_v7 = vadd.f32 %v5998_v27, %v5930_v6  ;;  %v16387_v28 = vld [vmem:[#allocation39_spill] sm:$0xff]  ;;  %v12497_v11 = vmul.f32 %v16388_v20, %v11584_v36  ;;  %v4699_v23 = vmul.f32 %v16356_v30, %v4663_v59  ;;  %v16390_v16 = vld [vmem:[#allocation37_spill] sm:$0xff]  ;;  %v16391_v1 = vld [vmem:[#allocation12_spill] sm:$0xff] }
 0x48f   : > { %v5901_v25 = vmul.f32 %v16387_v28, %v11577_v47  ;;  %v4763_v21 = vld [vmem:[#allocation3 + $0x62] sm:$0xff]  ;;  %v7069_v58 = vadd.f32 %v11979_v54, %v7030_v31  ;;  %v5333_v39 = vadd.f32 %v5301_v51, %v5233_v32  ;;  %v6633_v34 = vadd.f32 %v16389_v37, %v6532_v46  ;;  %v16394_v32 = vld [vmem:[#allocation30_spill] sm:$0xff]  ;;  %v16399_v28 = vld [vmem:[#allocation69_spill] sm:$0xff] }
 0x490   : > { %v6131_v12 = vadd.f32 %v6099_v38, %v6030_v7  ;;  %v12503_v27 = vmul.f32 %v16390_v16, %v11616_v9  ;;  %v12507_v49 = vmul.f32 %v16391_v1, %v11619_v63  ;;  %v12509_v6 = vld [vmem:[#allocation3 + $0xc8] sm:$0xff]  ;;  %v12514_v59 = vmul.f32 %v16394_v32, %v11599_v33  ;;  %v16398_v16 = vld [vmem:[#allocation45_spill] sm:$0xff] }
 0x491   : > { %16393 = vst [vmem:[#allocation48_spill] sm:$0xff] %v12509_v6  ;;  %v4863_v51 = vld [vmem:[#allocation3 + $0x63] sm:$0xff]  ;;  %7137 = vrot.lane.b32.xlu0 %v7069_v58, %s8336_s12  ;;  %v5433_v31 = vadd.f32 %v5401_v13, %v5333_v39  ;;  %v4731_v7 = vadd.f32 %v4699_v23, %v4631_v45  ;;  %v4799_v37 = vmul.f32 %v16358_v48, %v4763_v21  ;;  %v12531_v13 = vld [vmem:[#allocation3 + $0xcb] sm:$0xff] }
 0x492   : > { %16392 = vst [vmem:[#allocation58_spill] sm:$0xff] %v12507_v49  ;;  %16395 = vst [vmem:[#allocation66_spill] sm:$0xff] %v12514_v59  ;;  %v12516_v46 = vld [vmem:[#allocation3 + $0xc9] sm:$0xff]  ;;  %v6733_v1 = vadd.f32 %v16398_v16, %v6633_v34  ;;  %v6231_v20 = vadd.f32 %v12416_v10, %v6131_v12  ;;  %v12525_v49 = vmul.f32 %v16399_v28, %v11602_v60  ;;  %v16404_v12 = vld [vmem:[#allocation35_spill] sm:$0xff] }
 0x493   : > { %16396 = vst [vmem:[#allocation51_spill] sm:$0xff] %v12516_v46  ;;  %v12518_v38 = vld [vmem:[#allocation3 + $0xca] sm:$0xff]  ;;  %16401 = vst [vmem:[#allocation81_spill] sm:$0xff] %v12531_v13  ;;  %v5533_v59 = vadd.f32 %v5501_v4, %v5433_v31  ;;  %v12535_v45 = vmul.f32 %v11632_v50, %v12509_v6  ;;  %v4831_v34 = vadd.f32 %v4799_v37, %v4731_v7  ;;  %v16408_v37 = vld [vmem:[#allocation43_spill] sm:$0xff] }
 0x494   : > { %16397 = vst [vmem:[#allocation36_spill] sm:$0xff] %v12518_v38  ;;  %v16400_v39 = vld [vmem:[#allocation88_spill] sm:$0xff]  ;;  %v4899_v10 = vmul.f32 %v16363_v61, %v4863_v51  ;;  %v6833_v23 = vadd.f32 %v16404_v12, %v6733_v1  ;;  %v6331_v16 = vadd.f32 %v12423_v35, %v6231_v20  ;;  %v12548_v4 = vmul.f32 %v11622_v24, %v12518_v38  ;;  %v16410_v12 = vld [vmem:[#allocation86_spill] sm:$0xff] }
 0x495   : > { %v12529_v58 = vmul.f32 %v16400_v39, %v11605_v29  ;;  %v4963_v32 = vld [vmem:[#allocation3 + $0x64] sm:$0xff]  ;;  %16402 = vst [vmem:[#allocation33_spill] sm:$0xff] %v12535_v45  ;;  %v12537_v21 = vld [vmem:[#allocation3 + $0xcc] sm:$0xff]  ;;  %v12544_v39 = vmul.f32 %v11635_v3, %v12516_v46  ;;  %v5633_v31 = vadd.f32 %v5601_v44, %v5533_v59  ;;  %v12552_v45 = vmul.f32 %v11638_v19, %v12531_v13 }
 0x496   : > { %16403 = vst [vmem:[#allocation41_spill] sm:$0xff] %v12537_v21  ;;  %16406 = vst [vmem:[#allocation32_spill] sm:$0xff] %v12548_v4  ;;  %v4931_v7 = vadd.f32 %v4899_v10, %v4831_v34  ;;  %v4999_v51 = vmul.f32 %v16270_v56, %v4963_v32  ;;  %v6933_v1 = vadd.f32 %v16408_v37, %v6833_v23  ;;  %v16411_v59 = vld [vmem:[#allocation55_spill] sm:$0xff]  ;;  %v16412_v32 = vld [vmem:[#allocation57_spill] sm:$0xff] }
 0x497   : > { %16405 = vst [vmem:[#allocation19_spill] sm:$0xff] %v12544_v39  ;;  %16407 = vst [vmem:[#allocation45_spill] sm:$0xff] %v12552_v45  ;;  %v6431_v35 = vadd.f32 %v12435_v22, %v6331_v16  ;;  %v12559_v20 = vmul.f32 %v11784_v53, %v12537_v21  ;;  %v5100_v39 = vmul.f32 %v16410_v12, %v11487_v0  ;;  %v16417_v12 = vld [vmem:[#allocation79_spill] sm:$0xff] }
 0x498   : > { %v5733_v4 = vadd.f32 %v5701_v55, %v5633_v31  ;;  %v5031_v44 = vadd.f32 %v4999_v51, %v4931_v7  ;;  %v5200_v13 = vmul.f32 %v16411_v59, %v11492_v2  ;;  %v5300_v34 = vmul.f32 %v16354_v5, %v11497_v15  ;;  %v16413_v7 = vld [vmem:[#allocation63_spill] sm:$0xff]  ;;  %v16418_v59 = vld [vmem:[#allocation78_spill] sm:$0xff] }
 0x499   : > { %16409 = vst [vmem:[#allocation35_spill] sm:$0xff] %v12559_v20  ;;  %v7033_v10 = vadd.f32 %v16412_v32, %v6933_v1  ;;  %v6531_v23 = vadd.f32 %v12439_v18, %v6431_v35  ;;  %v5400_v22 = vmul.f32 %v16312_v17, %v11508_v52  ;;  %v5500_v53 = vmul.f32 %v16313_v8, %v16239_v26  ;;  %v16414_v18 = vld [vmem:[#allocation76_spill] sm:$0xff]  ;;  %v16415_v17 = vld [vmem:[#allocation17_spill] sm:$0xff] }
 0x49a   : > { %v5833_v16 = vadd.f32 %v5801_v40, %v5733_v4  ;;  %v5132_v37 = vadd.f32 %v5100_v39, %v5031_v44  ;;  %v5600_v55 = vmul.f32 %v12246_v43, %v11557_v41  ;;  %v5700_v31 = vmul.f32 %v12252_v57, %v11573_v62  ;;  %v16416_v39 = vld [vmem:[#allocation22_spill] sm:$0xff] }
 0x49b   : > { %v7072_v5 = vadd.f32 %v11979_v54, %v7033_v10  ;;  %v6632_v51 = vadd.f32 %v16413_v7, %v6531_v23  ;;  %v5800_v1 = vmul.f32 %v16414_v18, %v11561_v14  ;;  %v12583_v35 = vmul.f32 %v16415_v17, %v11577_v47  ;;  %v16419_v10 = vld [vmem:[#allocation38_spill] sm:$0xff]  ;;  %v16420_v7 = vld [vmem:[#allocation60_spill] sm:$0xff] }
 0x49c   : > { %v5933_v8 = vadd.f32 %v5901_v25, %v5833_v16  ;;  %v5232_v40 = vadd.f32 %v5200_v13, %v5132_v37  ;;  %v4634_v4 = vmul.f32 %v16416_v39, %v16355_v42  ;;  %v4702_v44 = vmul.f32 %v16417_v12, %v16356_v30  ;;  %v16421_v25 = vld [vmem:[#allocation40_spill] sm:$0xff]  ;;  %v12604_v39 = vld [vmem:[#allocation3 + $0xc0] sm:$0xff]  ;;  %v16427_v17 = vld [vmem:[#allocation50_spill] sm:$0xff] }
 0x49d   : > { %7143 = vrot.lane.b32.xlu1 %v7072_v5, %s8336_s12  ;;  %v6732_v32 = vadd.f32 %v16418_v59, %v6632_v51  ;;  %v12593_v23 = vmul.f32 %v16419_v10, %v11584_v36  ;;  %v12597_v20 = vmul.f32 %v16420_v7, %v11616_v9  ;;  %v12601_v13 = vmul.f32 %v16421_v25, %v11619_v63  ;;  %v12606_v5 = vld [vmem:[#allocation3 + $0xc1] sm:$0xff]  ;;  %v16426_v59 = vld [vmem:[#allocation54_spill] sm:$0xff] }
 0x49e   : > { %v6033_v16 = vadd.f32 %v12497_v11, %v5933_v8  ;;  %v5332_v37 = vadd.f32 %v5300_v34, %v5232_v40  ;;  %16423 = vst [vmem:[#allocation86_spill] sm:$0xff] %v12604_v39  ;;  %16424 = vst [vmem:[#allocation55_spill] sm:$0xff] %v12606_v5  ;;  %v12608_v51 = vld [vmem:[#allocation3 + $0xc2] sm:$0xff]  ;;  %v4734_v12 = vadd.f32 %v4702_v44, %v4634_v4  ;;  %v16430_v25 = vld [vmem:[#allocation34_spill] sm:$0xff] }
 0x49f   : > { %16422 = vst [vmem:[#allocation43_spill] sm:$0xff] %v12601_v13  ;;  %16425 = vst [vmem:[#allocation57_spill] sm:$0xff] %v12608_v51  ;;  %v4802_v10 = vmul.f32 %v16426_v59, %v16358_v48  ;;  %v6832_v7 = vadd.f32 %v16427_v17, %v6732_v32  ;;  %v16428_v18 = vld [vmem:[#allocation68_spill] sm:$0xff]  ;;  %v12619_v11 = vmul.f32 %v16430_v25, %v11602_v60  ;;  %v16432_v34 = vld [vmem:[#allocation87_spill] sm:$0xff] }
 0x4a0   : > { %v12615_v45 = vmul.f32 %v16428_v18, %v11599_v33  ;;  %v12623_v8 = vmul.f32 %v16432_v34, %v11605_v29  ;;  %v6134_v40 = vadd.f32 %v12503_v27, %v6033_v16  ;;  %v5432_v4 = vadd.f32 %v5400_v22, %v5332_v37  ;;  %v12626_v44 = vld [vmem:[#allocation3 + $0xc3] sm:$0xff]  ;;  %v16436_v32 = vld [vmem:[#allocation73_spill] sm:$0xff]  ;;  %v16441_v22 = vld [vmem:[#allocation58_spill] sm:$0xff] }
 0x4a1   : > { %16431 = vst [vmem:[#allocation22_spill] sm:$0xff] %v12619_v11  ;;  %16434 = vst [vmem:[#allocation78_spill] sm:$0xff] %v12626_v44  ;;  %v12628_v59 = vld [vmem:[#allocation3 + $0xc4] sm:$0xff]  ;;  %v4834_v17 = vadd.f32 %v4802_v10, %v4734_v12  ;;  %v4902_v18 = vmul.f32 %v16436_v32, %v16363_v61  ;;  %v12635_v11 = vmul.f32 %v11632_v50, %v12604_v39  ;;  %v16442_v12 = vld [vmem:[#allocation74_spill] sm:$0xff] }
 0x4a2   : > { %16429 = vst [vmem:[#allocation63_spill] sm:$0xff] %v12615_v45  ;;  %16433 = vst [vmem:[#allocation79_spill] sm:$0xff] %v12623_v8  ;;  %v16437_v45 = vld [vmem:[#allocation65_spill] sm:$0xff]  ;;  %v12639_v8 = vmul.f32 %v11635_v3, %v12606_v5  ;;  %v12643_v27 = vmul.f32 %v11622_v24, %v12608_v51  ;;  %v6234_v16 = vadd.f32 %v16441_v22, %v6134_v40  ;;  %v16447_v40 = vld [vmem:[#allocation66_spill] sm:$0xff] }
 0x4a3   : > { %16435 = vst [vmem:[#allocation54_spill] sm:$0xff] %v12628_v59  ;;  %v6932_v13 = vadd.f32 %v16437_v45, %v6832_v7  ;;  %16438 = vst [vmem:[#allocation50_spill] sm:$0xff] %v12635_v11  ;;  %v5532_v10 = vadd.f32 %v5500_v53, %v5432_v4  ;;  %v4934_v37 = vadd.f32 %v4902_v18, %v4834_v17  ;;  %v16443_v45 = vld [vmem:[#allocation52_spill] sm:$0xff]  ;;  %v16446_v53 = vld [vmem:[#allocation27_spill] sm:$0xff] }
 0x4a4   : > { %16439 = vst [vmem:[#allocation73_spill] sm:$0xff] %v12639_v8  ;;  %16440 = vst [vmem:[#allocation65_spill] sm:$0xff] %v12643_v27  ;;  %v5002_v32 = vmul.f32 %v16442_v12, %v16270_v56  ;;  %v12651_v11 = vmul.f32 %v11638_v19, %v12626_v44  ;;  %v12656_v8 = vld [vmem:[%s14997_s8 + $0x18] ss:$0 sm:$0xff]  ;;  %v5103_v18 = vmul.f32 %v16446_v53, %v11487_v0  ;;  %v16448_v22 = vld [vmem:[#allocation23_spill] sm:$0xff] }
 0x4a5   : > { %v7032_v7 = vadd.f32 %v16443_v45, %v6932_v13  ;;  %v12660_v27 = vmul.f32 %v12656_v8, %v12628_v59  ;;  %v6334_v4 = vadd.f32 %v16447_v40, %v6234_v16  ;;  %v5632_v17 = vadd.f32 %v5600_v55, %v5532_v10  ;;  %v4597_v45 = vld [vmem:[#allocation3 + $0x78] sm:$0xff]  ;;  %v16449_v44 = vld [vmem:[#allocation56_spill] sm:$0xff]  ;;  %v16450_v5 = vld [vmem:[#allocation39_spill] sm:$0xff] }
 0x4a6   : > { %16444 = vst [vmem:[#allocation58_spill] sm:$0xff] %v12651_v11  ;;  %v5034_v13 = vadd.f32 %v5002_v32, %v4934_v37  ;;  %v5203_v12 = vmul.f32 %v16448_v22, %v11492_v2  ;;  %v5303_v51 = vmul.f32 %v16449_v44, %v11497_v15  ;;  %v5403_v59 = vmul.f32 %v16450_v5, %v11508_v52  ;;  %v4665_v53 = vld [vmem:[#allocation3 + $0x79] sm:$0xff]  ;;  %v16452_v37 = vld [vmem:[#allocation37_spill] sm:$0xff] }
 0x4a7   : > { %16445 = vst [vmem:[#allocation74_spill] sm:$0xff] %v12660_v27  ;;  %v7071_v11 = vadd.f32 %v11979_v54, %v7032_v7  ;;  %v16451_v27 = vld [vmem:[#allocation49_spill] sm:$0xff]  ;;  %v6434_v16 = vadd.f32 %v12525_v49, %v6334_v4  ;;  %v5732_v55 = vadd.f32 %v5700_v31, %v5632_v17  ;;  %v5603_v32 = vmul.f32 %v16452_v37, %v11557_v41  ;;  %v4765_v40 = vld [vmem:[#allocation3 + $0x7a] sm:$0xff]  ;;  %v16453_v7 = vld [vmem:[#allocation12_spill] sm:$0xff] }
 0x4a8   : > { %v5503_v39 = vmul.f32 %v16451_v27, %v16239_v26  ;;  %v5135_v10 = vadd.f32 %v5103_v18, %v5034_v13  ;;  %v5703_v44 = vmul.f32 %v16453_v7, %v11573_v62  ;;  %v16454_v22 = vld [vmem:[#allocation30_spill] sm:$0xff]  ;;  %v12684_v27 = vmul.f32 %v16399_v28, %v11577_v47 }
 0x4a9   : > { %7141 = vrot.lane.b32.xlu0 %v7071_v11, %s8336_s12  ;;  %v5803_v5 = vmul.f32 %v16454_v22, %v11561_v14  ;;  %v4633_v49 = vmul.f32 %v16355_v42, %v4597_v45  ;;  %v6534_v31 = vadd.f32 %v12529_v58, %v6434_v16  ;;  %v5832_v18 = vadd.f32 %v5800_v1, %v5732_v55  ;;  %v4865_v13 = vld [vmem:[#allocation3 + $0x7b] sm:$0xff]  ;;  %v16455_v11 = vld [vmem:[#allocation88_spill] sm:$0xff]  ;;  %v16458_v1 = vld [vmem:[#allocation33_spill] sm:$0xff] }
 0x4aa   : > { %v5235_v4 = vadd.f32 %v5203_v12, %v5135_v10  ;;  %v4701_v17 = vmul.f32 %v16356_v30, %v4665_v53  ;;  %v12691_v37 = vmul.f32 %v16455_v11, %v11584_v36  ;;  %v12695_v22 = vmul.f32 %v12509_v6, %v11616_v9  ;;  %v12701_v45 = vld [vmem:[#allocation3 + $0xe0] sm:$0xff] }
 0x4ab   : > { %v12699_v28 = vmul.f32 %v12516_v46, %v11619_v63  ;;  %16457 = vst [vmem:[#allocation27_spill] sm:$0xff] %v12701_v45  ;;  %v4801_v58 = vmul.f32 %v16358_v48, %v4765_v40  ;;  %v6635_v12 = vadd.f32 %v16458_v1, %v6534_v31  ;;  %v5932_v53 = vadd.f32 %v12583_v35, %v5832_v18  ;;  %v12706_v55 = vld [vmem:[#allocation3 + $0xe1] sm:$0xff]  ;;  %v16461_v46 = vld [vmem:[#allocation81_spill] sm:$0xff] }
 0x4ac   : > { %v5335_v16 = vadd.f32 %v5303_v51, %v5235_v4  ;;  %16459 = vst [vmem:[#allocation66_spill] sm:$0xff] %v12706_v55  ;;  %v12708_v10 = vld [vmem:[#allocation3 + $0xe2] sm:$0xff]  ;;  %v4733_v11 = vadd.f32 %v4701_v17, %v4633_v49  ;;  %v12712_v7 = vmul.f32 %v12518_v38, %v11599_v33  ;;  %v12720_v40 = vmul.f32 %v12537_v21, %v11605_v29 }
 0x4ad   : > { %16456 = vst [vmem:[#allocation52_spill] sm:$0xff] %v12699_v28  ;;  %16460 = vst [vmem:[#allocation23_spill] sm:$0xff] %v12708_v10  ;;  %v4965_v6 = vld [vmem:[#allocation3 + $0x7c] sm:$0xff]  ;;  %v12716_v28 = vmul.f32 %v16461_v46, %v11602_v60  ;;  %v4901_v35 = vmul.f32 %v16363_v61, %v4865_v13  ;;  %v6032_v18 = vadd.f32 %v12593_v23, %v5932_v53  ;;  %v12727_v17 = vld [vmem:[#allocation3 + $0xe4] sm:$0xff] }
 0x4ae   : > { %v16462_v51 = vld [vmem:[#allocation19_spill] sm:$0xff]  ;;  %v5435_v49 = vadd.f32 %v5403_v59, %v5335_v16  ;;  %16464 = vst [vmem:[#allocation39_spill] sm:$0xff] %v12727_v17  ;;  %v4833_v1 = vadd.f32 %v4801_v58, %v4733_v11  ;;  %v12731_v46 = vmul.f32 %v11632_v50, %v12701_v45  ;;  %v12735_v21 = vmul.f32 %v11635_v3, %v12706_v55  ;;  %v16468_v59 = vld [vmem:[#allocation32_spill] sm:$0xff] }
 0x4af   : > { %v6735_v31 = vadd.f32 %v16462_v51, %v6635_v12  ;;  %v12725_v4 = vld [vmem:[#allocation3 + $0xe3] sm:$0xff]  ;;  %v12739_v13 = vmul.f32 %v11622_v24, %v12708_v10  ;;  %v5001_v23 = vmul.f32 %v16270_v56, %v4965_v6  ;;  %v6133_v53 = vadd.f32 %v12597_v20, %v6032_v18  ;;  %v4600_v18 = vld [vmem:[#allocation3 + $0x98] sm:$0xff] }
 0x4b0   : > { %16463 = vst [vmem:[#allocation56_spill] sm:$0xff] %v12725_v4  ;;  %16465 = vst [vmem:[#allocation49_spill] sm:$0xff] %v12731_v46  ;;  %v5535_v16 = vadd.f32 %v5503_v39, %v5435_v49  ;;  %v4933_v11 = vadd.f32 %v4901_v35, %v4833_v1  ;;  %v12746_v58 = vmul.f32 %v11638_v19, %v12725_v4  ;;  %v16473_v49 = vld [vmem:[#allocation76_spill] sm:$0xff] }
 0x4b1   : > { %16466 = vst [vmem:[#allocation33_spill] sm:$0xff] %v12735_v21  ;;  %16467 = vst [vmem:[#allocation19_spill] sm:$0xff] %v12739_v13  ;;  %v6835_v12 = vadd.f32 %v16468_v59, %v6735_v31  ;;  %v12750_v51 = vmul.f32 %v12656_v8, %v12727_v17  ;;  %v5102_v21 = vmul.f32 %v12246_v43, %v11487_v0  ;;  %v16471_v13 = vld [vmem:[#allocation45_spill] sm:$0xff]  ;;  %v16472_v59 = vld [vmem:[#allocation43_spill] sm:$0xff] }
 0x4b2   : > { %16469 = vst [vmem:[#allocation32_spill] sm:$0xff] %v12746_v58  ;;  %v5202_v6 = vmul.f32 %v12252_v57, %v11492_v2  ;;  %v6233_v20 = vadd.f32 %v16472_v59, %v6133_v53  ;;  %v5635_v39 = vadd.f32 %v5603_v32, %v5535_v16  ;;  %v5033_v35 = vadd.f32 %v5001_v23, %v4933_v11  ;;  %v16474_v58 = vld [vmem:[#allocation17_spill] sm:$0xff]  ;;  %v16476_v43 = vld [vmem:[#allocation60_spill] sm:$0xff]  ;;  %v16477_v57 = vld [vmem:[#allocation35_spill] sm:$0xff] }
 0x4b3   : > { %16470 = vst [vmem:[#allocation89_spill] sm:$0xff] %v12750_v51  ;;  %v6935_v31 = vadd.f32 %v16471_v13, %v6835_v12  ;;  %v5302_v1 = vmul.f32 %v16473_v49, %v11497_v15  ;;  %v5402_v17 = vmul.f32 %v16474_v58, %v11508_v52  ;;  %v16475_v51 = vld [vmem:[#allocation38_spill] sm:$0xff]  ;;  %v5602_v46 = vmul.f32 %v16476_v43, %v11557_v41  ;;  %v16478_v13 = vld [vmem:[#allocation63_spill] sm:$0xff]  ;;  %v16479_v16 = vld [vmem:[#allocation40_spill] sm:$0xff] }
 0x4b4   : > { %v5502_v4 = vmul.f32 %v16475_v51, %v16239_v26  ;;  %v6333_v12 = vadd.f32 %v16478_v13, %v6233_v20  ;;  %v5735_v53 = vadd.f32 %v5703_v44, %v5635_v39  ;;  %v5134_v32 = vadd.f32 %v5102_v21, %v5033_v35  ;;  %v4668_v23 = vld [vmem:[#allocation3 + $0x99] sm:$0xff]  ;;  %v16480_v59 = vld [vmem:[#allocation68_spill] sm:$0xff] }
 0x4b5   : > { %v7035_v10 = vadd.f32 %v16477_v57, %v6935_v31  ;;  %v5702_v11 = vmul.f32 %v16479_v16, %v11573_v62  ;;  %v12772_v49 = vmul.f32 %v16480_v59, %v11561_v14  ;;  %v12776_v58 = vmul.f32 %v16430_v25, %v11577_v47  ;;  %v16481_v57 = vld [vmem:[#allocation22_spill] sm:$0xff]  ;;  %v16483_v25 = vld [vmem:[#allocation55_spill] sm:$0xff] }
 0x4b6   : > { %v4636_v51 = vmul.f32 %v16355_v42, %v4600_v18  ;;  %v6433_v20 = vadd.f32 %v16481_v57, %v6333_v12  ;;  %v5835_v44 = vadd.f32 %v5803_v5, %v5735_v53  ;;  %v5234_v21 = vadd.f32 %v5202_v6, %v5134_v32  ;;  %v4768_v39 = vld [vmem:[#allocation3 + $0x9a] sm:$0xff]  ;;  %v16486_v53 = vld [vmem:[#allocation57_spill] sm:$0xff] }
 0x4b7   : > { %v7074_v31 = vadd.f32 %v11979_v54, %v7035_v10  ;;  %v12783_v35 = vmul.f32 %v16432_v34, %v11584_v36  ;;  %v16482_v13 = vld [vmem:[#allocation86_spill] sm:$0xff]  ;;  %v12791_v16 = vmul.f32 %v16483_v25, %v11619_v63  ;;  %v4704_v54 = vmul.f32 %v16356_v30, %v4668_v23  ;;  %v16485_v5 = vld [vmem:[#allocation79_spill] sm:$0xff] }
 0x4b8   : > { %v12787_v59 = vmul.f32 %v16482_v13, %v11616_v9  ;;  %v12793_v18 = vld [vmem:[#allocation3 + $0xd8] sm:$0xff]  ;;  %v6533_v10 = vadd.f32 %v16485_v5, %v6433_v20  ;;  %v5935_v6 = vadd.f32 %v12684_v27, %v5835_v44  ;;  %v5334_v12 = vadd.f32 %v5302_v1, %v5234_v21 }
 0x4b9   : > { %16484 = vst [vmem:[#allocation45_spill] sm:$0xff] %v12793_v18  ;;  %7147 = vrot.lane.b32.xlu1 %v7074_v31, %s8336_s12  ;;  %v12801_v32 = vmul.f32 %v16486_v53, %v11599_v33  ;;  %v12803_v57 = vld [vmem:[#allocation3 + $0xd9] sm:$0xff]  ;;  %v4736_v27 = vadd.f32 %v4704_v54, %v4636_v51  ;;  %v4804_v1 = vmul.f32 %v16358_v48, %v4768_v39 }
 0x4ba   : > { %16488 = vst [vmem:[#allocation76_spill] sm:$0xff] %v12803_v57  ;;  %v12805_v13 = vld [vmem:[#allocation3 + $0xda] sm:$0xff]  ;;  %v6035_v5 = vadd.f32 %v12691_v37, %v5935_v6  ;;  %v5434_v53 = vadd.f32 %v5402_v17, %v5334_v12  ;;  %v16498_v37 = vld [vmem:[#allocation73_spill] sm:$0xff] }
 0x4bb   : > { %16487 = vst [vmem:[#allocation43_spill] sm:$0xff] %v12801_v32  ;;  %16489 = vst [vmem:[#allocation17_spill] sm:$0xff] %v12805_v13  ;;  %v4868_v25 = vld [vmem:[#allocation3 + $0x9b] sm:$0xff]  ;;  %v12822_v32 = vmul.f32 %v11632_v50, %v12793_v18  ;;  %v12832_v51 = vmul.f32 %v11622_v24, %v12805_v13  ;;  %v4836_v39 = vadd.f32 %v4804_v1, %v4736_v27  ;;  %v16501_v27 = vld [vmem:[#allocation37_spill] sm:$0xff] }
 0x4bc   : > { %v16490_v34 = vld [vmem:[#allocation78_spill] sm:$0xff]  ;;  %v4904_v54 = vmul.f32 %v16363_v61, %v4868_v25  ;;  %v5534_v6 = vadd.f32 %v5502_v4, %v5434_v53  ;;  %v5105_v1 = vmul.f32 %v16501_v27, %v11487_v0  ;;  %v16502_v25 = vld [vmem:[#allocation65_spill] sm:$0xff]  ;;  %v16504_v4 = vld [vmem:[#allocation12_spill] sm:$0xff] }
 0x4bd   : > { %v12809_v43 = vmul.f32 %v16490_v34, %v11602_v60  ;;  %v16492_v23 = vld [vmem:[#allocation54_spill] sm:$0xff]  ;;  %16497 = vst [vmem:[#allocation79_spill] sm:$0xff] %v12832_v51  ;;  %v5205_v53 = vmul.f32 %v16504_v4, %v11492_v2 }
 0x4be   : > { %v12813_v31 = vmul.f32 %v16492_v23, %v11605_v29  ;;  %v12815_v20 = vld [vmem:[#allocation3 + $0xdb] sm:$0xff]  ;;  %v12828_v23 = vmul.f32 %v11635_v3, %v12803_v57 }
 0x4bf   : > { %16491 = vst [vmem:[#allocation38_spill] sm:$0xff] %v12809_v43  ;;  %16493 = vst [vmem:[#allocation35_spill] sm:$0xff] %v12815_v20  ;;  %v16494_v44 = vld [vmem:[#allocation50_spill] sm:$0xff]  ;;  %v12839_v12 = vmul.f32 %v11638_v19, %v12815_v20 }
 0x4c0   : > { %v6634_v21 = vadd.f32 %v16494_v44, %v6533_v10  ;;  %v12824_v34 = vld [vmem:[#allocation3 + $0xdc] sm:$0xff]  ;;  %16496 = vst [vmem:[#allocation22_spill] sm:$0xff] %v12828_v23  ;;  %v6136_v10 = vadd.f32 %v12695_v22, %v6035_v5  ;;  %v4936_v23 = vadd.f32 %v4904_v54, %v4836_v39  ;;  %v5634_v22 = vadd.f32 %v5602_v46, %v5534_v6  ;;  %v16509_v46 = vld [vmem:[#allocation48_spill] sm:$0xff] }
 0x4c1   : > { %16495 = vst [vmem:[#allocation63_spill] sm:$0xff] %v12824_v34  ;;  %v4968_v43 = vld [vmem:[#allocation3 + $0x9c] sm:$0xff]  ;;  %16499 = vst [vmem:[#allocation50_spill] sm:$0xff] %v12839_v12  ;;  %v12843_v44 = vmul.f32 %v12656_v8, %v12824_v34  ;;  %v4599_v34 = vld [vmem:[#allocation3 + $0x90] sm:$0xff]  ;;  %v5605_v6 = vmul.f32 %v16509_v46, %v11557_v41 }
 0x4c2   : > { %v6734_v17 = vadd.f32 %v16498_v37, %v6634_v21  ;;  %v5004_v13 = vmul.f32 %v16270_v56, %v4968_v43  ;;  %v16503_v21 = vld [vmem:[#allocation52_spill] sm:$0xff]  ;;  %v16505_v12 = vld [vmem:[#allocation30_spill] sm:$0xff] }
 0x4c3   : > { %16500 = vst [vmem:[#allocation73_spill] sm:$0xff] %v12843_v44  ;;  %v6236_v37 = vadd.f32 %v16503_v21, %v6136_v10  ;;  %v5305_v20 = vmul.f32 %v16505_v12, %v11497_v15  ;;  %v16506_v44 = vld [vmem:[#allocation69_spill] sm:$0xff]  ;;  %v16507_v43 = vld [vmem:[#allocation88_spill] sm:$0xff]  ;;  %v16508_v27 = vld [vmem:[#allocation58_spill] sm:$0xff]  ;;  %v5734_v10 = vadd.f32 %v5702_v11, %v5634_v22 }
 0x4c4   : > { %v6834_v51 = vadd.f32 %v16502_v25, %v6734_v17  ;;  %v5036_v5 = vadd.f32 %v5004_v13, %v4936_v23  ;;  %v5405_v39 = vmul.f32 %v16506_v44, %v11508_v52  ;;  %v5505_v54 = vmul.f32 %v16507_v43, %v16239_v26  ;;  %v4667_v25 = vld [vmem:[#allocation3 + $0x91] sm:$0xff]  ;;  %v16510_v23 = vld [vmem:[#allocation51_spill] sm:$0xff] }
 0x4c5   : > { %v6336_v17 = vadd.f32 %v12712_v7, %v6236_v37  ;;  %v5705_v12 = vmul.f32 %v16510_v23, %v11573_v62  ;;  %v12866_v44 = vmul.f32 %v12518_v38, %v11561_v14  ;;  %v16511_v21 = vld [vmem:[#allocation81_spill] sm:$0xff]  ;;  %v5834_v11 = vadd.f32 %v12772_v49, %v5734_v10 }
 0x4c6   : > { %v6934_v57 = vadd.f32 %v16508_v27, %v6834_v51  ;;  %v5137_v13 = vadd.f32 %v5105_v1, %v5036_v5  ;;  %v12870_v4 = vmul.f32 %v16511_v21, %v11577_v47  ;;  %v16512_v51 = vld [vmem:[#allocation74_spill] sm:$0xff]  ;;  %v4635_v37 = vmul.f32 %v16355_v42, %v4599_v34  ;;  %v16513_v5 = vld [vmem:[#allocation41_spill] sm:$0xff] }
 0x4c7   : > { %v6436_v7 = vadd.f32 %v12716_v28, %v6336_v17  ;;  %v4767_v1 = vld [vmem:[#allocation3 + $0x92] sm:$0xff]  ;;  %v12878_v27 = vmul.f32 %v16513_v5, %v11584_v36  ;;  %v12882_v38 = vmul.f32 %v12701_v45, %v11616_v9  ;;  %v4703_v21 = vmul.f32 %v16356_v30, %v4667_v25  ;;  %v12888_v28 = vld [vmem:[%s14998_s9] ss:$0 sm:$0xff] }
 0x4c8   : > { %v7034_v43 = vadd.f32 %v16512_v51, %v6934_v57  ;;  %v5237_v22 = vadd.f32 %v5205_v53, %v5137_v13  ;;  %v5934_v57 = vadd.f32 %v12776_v58, %v5834_v11  ;;  %v12895_v53 = vmul.f32 %v12706_v55, %v11619_v63  ;;  %v12897_v17 = vld [vmem:[#allocation3 + $0xf8] sm:$0xff]  ;;  %v16515_v25 = vld [vmem:[#allocation23_spill] sm:$0xff]  ;;  %v16519_v58 = vld [vmem:[#allocation49_spill] sm:$0xff] }
 0x4c9   : > { %v6536_v34 = vadd.f32 %v12720_v40, %v6436_v7  ;;  %16514 = vst [vmem:[#allocation37_spill] sm:$0xff] %v12897_v17  ;;  %v4867_v10 = vld [vmem:[#allocation3 + $0x93] sm:$0xff]  ;;  %v12901_v51 = vmul.f32 %v16515_v25, %v11599_v33  ;;  %v4803_v40 = vmul.f32 %v16358_v48, %v4767_v1  ;;  %v16520_v55 = vld [vmem:[#allocation56_spill] sm:$0xff]  ;;  %v12925_v1 = vld [vmem:[#allocation3 + $0xfc] sm:$0xff] }
 0x4ca   : > { %v7073_v49 = vadd.f32 %v12888_v28, %v7034_v43  ;;  %v5337_v13 = vadd.f32 %v5305_v20, %v5237_v22  ;;  %v12903_v45 = vld [vmem:[#allocation3 + $0xf9] sm:$0xff]  ;;  %v4735_v43 = vadd.f32 %v4703_v21, %v4635_v37  ;;  %v6034_v11 = vadd.f32 %v12783_v35, %v5934_v57  ;;  %16525 = vst [vmem:[#allocation58_spill] sm:$0xff] %v12925_v1 }
 0x4cb   : > { %16516 = vst [vmem:[#allocation65_spill] sm:$0xff] %v12901_v51  ;;  %16517 = vst [vmem:[#allocation52_spill] sm:$0xff] %v12903_v45  ;;  %v12905_v5 = vld [vmem:[#allocation3 + $0xfa] sm:$0xff]  ;;  %v6637_v7 = vadd.f32 %v16519_v58, %v6536_v34  ;;  %v12913_v20 = vmul.f32 %v16520_v55, %v11602_v60  ;;  %v12923_v37 = vmul.f32 %v11632_v50, %v12897_v17  ;;  %v16526_v34 = vld [vmem:[#allocation33_spill] sm:$0xff] }
 0x4cc   : > { %16518 = vst [vmem:[#allocation12_spill] sm:$0xff] %v12905_v5  ;;  %7145 = vrot.lane.b32.xlu0 %v7073_v49, %s8336_s12  ;;  %v16521_v22 = vld [vmem:[#allocation39_spill] sm:$0xff]  ;;  %v4967_v23 = vld [vmem:[#allocation3 + $0x94] sm:$0xff]  ;;  %v5437_v21 = vadd.f32 %v5405_v39, %v5337_v13  ;;  %v4835_v49 = vadd.f32 %v4803_v40, %v4735_v43  ;;  %v4903_v35 = vmul.f32 %v16363_v61, %v4867_v10 }
 0x4cd   : > { %v12917_v25 = vmul.f32 %v16521_v22, %v11605_v29  ;;  %v12919_v51 = vld [vmem:[#allocation3 + $0xfb] sm:$0xff]  ;;  %16524 = vst [vmem:[#allocation88_spill] sm:$0xff] %v12923_v37  ;;  %v6737_v57 = vadd.f32 %v16526_v34, %v6637_v7  ;;  %v6135_v58 = vadd.f32 %v12787_v59, %v6034_v11  ;;  %v12936_v39 = vmul.f32 %v11622_v24, %v12905_v5  ;;  %v16532_v34 = vld [vmem:[#allocation60_spill] sm:$0xff]  ;;  %v4602_v5 = vld [vmem:[#allocation3 + $0xb0] sm:$0xff] }
 0x4ce   : > { %16523 = vst [vmem:[#allocation69_spill] sm:$0xff] %v12919_v51  ;;  %v5537_v13 = vadd.f32 %v5505_v54, %v5437_v21  ;;  %v12940_v37 = vmul.f32 %v11638_v19, %v12919_v51  ;;  %v4935_v43 = vadd.f32 %v4903_v35, %v4835_v49  ;;  %v5003_v10 = vmul.f32 %v16270_v56, %v4967_v23  ;;  %v16530_v40 = vld [vmem:[#allocation19_spill] sm:$0xff]  ;;  %v16533_v21 = vld [vmem:[#allocation40_spill] sm:$0xff]  ;;  %v16544_v17 = vld [vmem:[#allocation78_spill] sm:$0xff] }
 0x4cf   : > { %16522 = vst [vmem:[#allocation30_spill] sm:$0xff] %v12917_v25  ;;  %v12932_v25 = vmul.f32 %v11635_v3, %v12903_v45  ;;  %16528 = vst [vmem:[#allocation74_spill] sm:$0xff] %v12936_v39  ;;  %v6837_v7 = vadd.f32 %v16530_v40, %v6737_v57  ;;  %v6235_v59 = vadd.f32 %v12791_v16, %v6135_v58  ;;  %v16534_v49 = vld [vmem:[#allocation68_spill] sm:$0xff]  ;;  %v16536_v57 = vld [vmem:[#allocation43_spill] sm:$0xff] }
 0x4d0   : > { %16529 = vst [vmem:[#allocation49_spill] sm:$0xff] %v12940_v37  ;;  %v12947_v11 = vmul.f32 %v12656_v8, %v12925_v1  ;;  %v5637_v39 = vadd.f32 %v5605_v6, %v5537_v13  ;;  %v5035_v54 = vadd.f32 %v5003_v10, %v4935_v43  ;;  %v5204_v51 = vmul.f32 %v16533_v21, %v11492_v2  ;;  %v16535_v23 = vld [vmem:[#allocation32_spill] sm:$0xff]  ;;  %v16537_v16 = vld [vmem:[#allocation34_spill] sm:$0xff]  ;;  %v16540_v21 = vld [vmem:[#allocation55_spill] sm:$0xff] }
 0x4d1   : > { %16527 = vst [vmem:[#allocation48_spill] sm:$0xff] %v12932_v25  ;;  %v5104_v25 = vmul.f32 %v16532_v34, %v11487_v0  ;;  %v5304_v35 = vmul.f32 %v16534_v49, %v11497_v15  ;;  %v6937_v37 = vadd.f32 %v16535_v23, %v6837_v7  ;;  %v6335_v40 = vadd.f32 %v16536_v57, %v6235_v59  ;;  %v4670_v34 = vld [vmem:[#allocation3 + $0xb1] sm:$0xff] }
 0x4d2   : > { %16531 = vst [vmem:[#allocation33_spill] sm:$0xff] %v12947_v11  ;;  %v5404_v58 = vmul.f32 %v16537_v16, %v11508_v52  ;;  %v16538_v11 = vld [vmem:[#allocation87_spill] sm:$0xff]  ;;  %v5737_v6 = vadd.f32 %v5705_v12, %v5637_v39  ;;  %v16539_v43 = vld [vmem:[#allocation86_spill] sm:$0xff]  ;;  %v5704_v49 = vmul.f32 %v16540_v21, %v11573_v62  ;;  %v16541_v45 = vld [vmem:[#allocation89_spill] sm:$0xff]  ;;  %v4638_v39 = vmul.f32 %v16355_v42, %v4602_v5 }
 0x4d3   : > { %v5504_v1 = vmul.f32 %v16538_v11, %v16239_v26  ;;  %v5136_v13 = vadd.f32 %v5104_v25, %v5035_v54  ;;  %v5604_v10 = vmul.f32 %v16539_v43, %v11557_v41  ;;  %v7037_v7 = vadd.f32 %v16541_v45, %v6937_v37  ;;  %v16542_v23 = vld [vmem:[#allocation38_spill] sm:$0xff]  ;;  %v16543_v57 = vld [vmem:[#allocation57_spill] sm:$0xff] }
 0x4d4   : > { %v6435_v59 = vadd.f32 %v16542_v23, %v6335_v40  ;;  %v5804_v16 = vmul.f32 %v16543_v57, %v11561_v14  ;;  %v12971_v11 = vmul.f32 %v16544_v17, %v11577_v47  ;;  %v4770_v22 = vld [vmem:[#allocation3 + $0xb2] sm:$0xff]  ;;  %v5837_v12 = vadd.f32 %v12866_v44, %v5737_v6 }
 0x4d5   : > { %v5236_v25 = vadd.f32 %v5204_v51, %v5136_v13  ;;  %v4706_v54 = vmul.f32 %v16356_v30, %v4670_v34  ;;  %v7076_v21 = vadd.f32 %v12888_v28, %v7037_v7  ;;  %v16545_v37 = vld [vmem:[#allocation54_spill] sm:$0xff]  ;;  %v12984_v23 = vmul.f32 %v12793_v18, %v11616_v9  ;;  %v12987_v6 = vld [vmem:[#allocation3 + $0xf0] sm:$0xff]  ;;  %v16548_v7 = vld [vmem:[#allocation76_spill] sm:$0xff] }
 0x4d6   : > { %v6535_v45 = vadd.f32 %v12813_v31, %v6435_v59  ;;  %v12980_v40 = vmul.f32 %v16545_v37, %v11584_v36  ;;  %v4870_v17 = vld [vmem:[#allocation3 + $0xb3] sm:$0xff]  ;;  %v5937_v44 = vadd.f32 %v12870_v4, %v5837_v12  ;;  %16546 = vst [vmem:[#allocation19_spill] sm:$0xff] %v12987_v6  ;;  %v4806_v13 = vmul.f32 %v16358_v48, %v4770_v22  ;;  %v16551_v4 = vld [vmem:[#allocation35_spill] sm:$0xff] }
 0x4d7   : > { %v5336_v51 = vadd.f32 %v5304_v35, %v5236_v25  ;;  %v12989_v5 = vld [vmem:[#allocation3 + $0xf1] sm:$0xff]  ;;  %v4738_v34 = vadd.f32 %v4706_v54, %v4638_v39  ;;  %7151 = vrot.lane.b32.xlu1 %v7076_v21, %s8336_s12  ;;  %v12996_v59 = vmul.f32 %v16548_v7, %v11619_v63  ;;  %v13004_v35 = vmul.f32 %v16551_v4, %v11602_v60 }
 0x4d8   : > { %16547 = vst [vmem:[#allocation60_spill] sm:$0xff] %v12989_v5  ;;  %v6636_v31 = vadd.f32 %v12822_v32, %v6535_v45  ;;  %v16549_v18 = vld [vmem:[#allocation17_spill] sm:$0xff]  ;;  %v6037_v25 = vadd.f32 %v12878_v27, %v5937_v44  ;;  %v4906_v45 = vmul.f32 %v16363_v61, %v4870_v17  ;;  %v16555_v7 = vld [vmem:[#allocation22_spill] sm:$0xff]  ;;  %v13021_v4 = vmul.f32 %v11632_v50, %v12987_v6 }
 0x4d9   : > { %v13000_v37 = vmul.f32 %v16549_v18, %v11599_v33  ;;  %v4970_v12 = vld [vmem:[#allocation3 + $0xb4] sm:$0xff]  ;;  %v5436_v22 = vadd.f32 %v5404_v58, %v5336_v51  ;;  %v4838_v54 = vadd.f32 %v4806_v13, %v4738_v34  ;;  %v13025_v27 = vmul.f32 %v11635_v3, %v12989_v5  ;;  %v16558_v34 = vld [vmem:[#allocation79_spill] sm:$0xff] }
 0x4da   : > { %v13007_v39 = vld [vmem:[#allocation3 + $0xf2] sm:$0xff]  ;;  %v6736_v18 = vadd.f32 %v16555_v7, %v6636_v31  ;;  %v6138_v58 = vadd.f32 %v12882_v38, %v6037_v25  ;;  %v5006_v17 = vmul.f32 %v16270_v56, %v4970_v12  ;;  %v5107_v12 = vmul.f32 %v16509_v46, %v11487_v0  ;;  %v4669_v46 = vld [vmem:[#allocation3 + $0xa9] sm:$0xff] }
 0x4db   : > { %16550 = vst [vmem:[#allocation40_spill] sm:$0xff] %v13000_v37  ;;  %16552 = vst [vmem:[#allocation68_spill] sm:$0xff] %v13007_v39  ;;  %v13009_v21 = vld [vmem:[#allocation3 + $0xf3] sm:$0xff]  ;;  %v16556_v37 = vld [vmem:[#allocation63_spill] sm:$0xff]  ;;  %v5536_v44 = vadd.f32 %v5504_v1, %v5436_v22  ;;  %v4938_v51 = vadd.f32 %v4906_v45, %v4838_v54  ;;  %v13032_v31 = vmul.f32 %v11622_v24, %v13007_v39 }
 0x4dc   : > { %16553 = vst [vmem:[#allocation32_spill] sm:$0xff] %v13009_v21  ;;  %v13011_v32 = vld [vmem:[#allocation3 + $0xf4] sm:$0xff]  ;;  %v13017_v57 = vmul.f32 %v16556_v37, %v11605_v29  ;;  %16557 = vst [vmem:[#allocation34_spill] sm:$0xff] %v13025_v27  ;;  %v6836_v13 = vadd.f32 %v16558_v34, %v6736_v18  ;;  %v13036_v7 = vmul.f32 %v11638_v19, %v13009_v21  ;;  %v16563_v54 = vld [vmem:[#allocation51_spill] sm:$0xff] }
 0x4dd   : > { %16554 = vst [vmem:[#allocation43_spill] sm:$0xff] %v13011_v32  ;;  %16559 = vst [vmem:[#allocation87_spill] sm:$0xff] %v13032_v31  ;;  %v13040_v5 = vmul.f32 %v12656_v8, %v13011_v32  ;;  %v6238_v38 = vadd.f32 %v12895_v53, %v6138_v58  ;;  %v5636_v1 = vadd.f32 %v5604_v10, %v5536_v44  ;;  %v16562_v18 = vld [vmem:[#allocation50_spill] sm:$0xff]  ;;  %v16564_v34 = vld [vmem:[#allocation36_spill] sm:$0xff] }
 0x4de   : > { %16560 = vst [vmem:[#allocation86_spill] sm:$0xff] %v13036_v7  ;;  %v5038_v25 = vadd.f32 %v5006_v17, %v4938_v51  ;;  %v6936_v22 = vadd.f32 %v16562_v18, %v6836_v13  ;;  %v5207_v45 = vmul.f32 %v16563_v54, %v11492_v2  ;;  %v5307_v31 = vmul.f32 %v16564_v34, %v11497_v15  ;;  %v16565_v7 = vld [vmem:[#allocation81_spill] sm:$0xff]  ;;  %v4601_v44 = vld [vmem:[#allocation3 + $0xa8] sm:$0xff]  ;;  %v16569_v13 = vld [vmem:[#allocation27_spill] sm:$0xff] }
 0x4df   : > { %16561 = vst [vmem:[#allocation89_spill] sm:$0xff] %v13040_v5  ;;  %v5407_v27 = vmul.f32 %v16565_v7, %v11508_v52  ;;  %v16566_v32 = vld [vmem:[#allocation65_spill] sm:$0xff]  ;;  %v5736_v21 = vadd.f32 %v5704_v49, %v5636_v1  ;;  %v5607_v18 = vmul.f32 %v16569_v13, %v11557_v41  ;;  %v16570_v54 = vld [vmem:[#allocation66_spill] sm:$0xff]  ;;  %v16571_v39 = vld [vmem:[#allocation23_spill] sm:$0xff]  ;;  %v13065_v1 = vmul.f32 %v16520_v55, %v11577_v47 }
 0x4e0   : > { %v6338_v5 = vadd.f32 %v16566_v32, %v6238_v38  ;;  %v5139_v53 = vadd.f32 %v5107_v12, %v5038_v25  ;;  %v16567_v10 = vld [vmem:[#allocation41_spill] sm:$0xff]  ;;  %v5707_v34 = vmul.f32 %v16570_v54, %v11573_v62  ;;  %v5807_v7 = vmul.f32 %v16571_v39, %v11561_v14  ;;  %v16573_v39 = vld [vmem:[#allocation30_spill] sm:$0xff] }
 0x4e1   : > { %v5507_v58 = vmul.f32 %v16567_v10, %v16239_v26  ;;  %v16568_v51 = vld [vmem:[#allocation73_spill] sm:$0xff]  ;;  %v5836_v49 = vadd.f32 %v5804_v16, %v5736_v21  ;;  %v4705_v54 = vmul.f32 %v16356_v30, %v4669_v46 }
 0x4e2   : > { %v7036_v17 = vadd.f32 %v16568_v51, %v6936_v22  ;;  %v6438_v32 = vadd.f32 %v12913_v20, %v6338_v5  ;;  %v5239_v38 = vadd.f32 %v5207_v45, %v5139_v53  ;;  %v4769_v25 = vld [vmem:[#allocation3 + $0xaa] sm:$0xff]  ;;  %v16572_v22 = vld [vmem:[#allocation39_spill] sm:$0xff]  ;;  %v4637_v51 = vmul.f32 %v16355_v42, %v4601_v44 }
 0x4e3   : > { %v13070_v10 = vmul.f32 %v16572_v22, %v11584_v36  ;;  %v5936_v20 = vadd.f32 %v12971_v11, %v5836_v49  ;;  %v16574_v5 = vld [vmem:[#allocation37_spill] sm:$0xff]  ;;  %v16579_v44 = vld [vmem:[#allocation12_spill] sm:$0xff] }
 0x4e4   : > { %v7075_v12 = vadd.f32 %v12888_v28, %v7036_v17  ;;  %v6538_v13 = vadd.f32 %v16573_v39, %v6438_v32  ;;  %v5339_v16 = vadd.f32 %v5307_v31, %v5239_v38  ;;  %v13078_v21 = vmul.f32 %v16574_v5, %v11616_v9  ;;  %v13080_v45 = vld [vmem:[#allocation3 + $0x110] sm:$0xff]  ;;  %v16577_v17 = vld [vmem:[#allocation52_spill] sm:$0xff] }
 0x4e5   : > { %16576 = vst [vmem:[#allocation22_spill] sm:$0xff] %v13080_v45  ;;  %v4869_v53 = vld [vmem:[#allocation3 + $0xab] sm:$0xff]  ;;  %v13085_v22 = vmul.f32 %v16577_v17, %v11619_v63  ;;  %v13089_v46 = vmul.f32 %v16579_v44, %v11599_v33  ;;  %v4737_v11 = vadd.f32 %v4705_v54, %v4637_v51  ;;  %v4805_v31 = vmul.f32 %v16358_v48, %v4769_v25 }
 0x4e6   : > { %16575 = vst [vmem:[#allocation38_spill] sm:$0xff] %v13078_v21  ;;  %7149 = vrot.lane.b32.xlu0 %v7075_v12, %s8336_s12  ;;  %v13091_v39 = vld [vmem:[#allocation3 + $0x111] sm:$0xff]  ;;  %v16582_v32 = vld [vmem:[#allocation88_spill] sm:$0xff]  ;;  %v6036_v38 = vadd.f32 %v12980_v40, %v5936_v20  ;;  %v5439_v5 = vadd.f32 %v5407_v27, %v5339_v16  ;;  %v13110_v54 = vmul.f32 %v11632_v50, %v13080_v45 }
 0x4e7   : > { %16578 = vst [vmem:[#allocation79_spill] sm:$0xff] %v13085_v22  ;;  %16580 = vst [vmem:[#allocation50_spill] sm:$0xff] %v13089_v46  ;;  %v6639_v49 = vadd.f32 %v16582_v32, %v6538_v13  ;;  %v16583_v12 = vld [vmem:[#allocation69_spill] sm:$0xff]  ;;  %v16586_v46 = vld [vmem:[#allocation58_spill] sm:$0xff]  ;;  %v4837_v40 = vadd.f32 %v4805_v31, %v4737_v11  ;;  %v4905_v27 = vmul.f32 %v16363_v61, %v4869_v53 }
 0x4e8   : > { %16581 = vst [vmem:[#allocation51_spill] sm:$0xff] %v13091_v39  ;;  %v13098_v55 = vmul.f32 %v16583_v12, %v11602_v60  ;;  %v13100_v17 = vld [vmem:[#allocation3 + $0x112] sm:$0xff]  ;;  %v13106_v21 = vmul.f32 %v16586_v46, %v11605_v29  ;;  %16587 = vst [vmem:[#allocation65_spill] sm:$0xff] %v13110_v54  ;;  %v16589_v25 = vld [vmem:[#allocation48_spill] sm:$0xff]  ;;  %v6137_v20 = vadd.f32 %v12984_v23, %v6036_v38 }
 0x4e9   : > { %16584 = vst [vmem:[#allocation36_spill] sm:$0xff] %v13100_v17  ;;  %v13102_v22 = vld [vmem:[#allocation3 + $0x113] sm:$0xff]  ;;  %v6739_v51 = vadd.f32 %v16589_v25, %v6639_v49  ;;  %v5539_v16 = vadd.f32 %v5507_v58, %v5439_v5  ;;  %v13119_v32 = vmul.f32 %v11635_v3, %v13091_v39  ;;  %v13123_v46 = vmul.f32 %v11622_v24, %v13100_v17 }
 0x4ea   : > { %16585 = vst [vmem:[#allocation81_spill] sm:$0xff] %v13102_v22  ;;  %v4969_v44 = vld [vmem:[#allocation3 + $0xac] sm:$0xff]  ;;  %v13112_v13 = vld [vmem:[#allocation3 + $0x114] sm:$0xff]  ;;  %v13127_v54 = vmul.f32 %v11638_v19, %v13102_v22  ;;  %v4937_v11 = vadd.f32 %v4905_v27, %v4837_v40  ;;  %v6237_v23 = vadd.f32 %v12996_v59, %v6137_v20  ;;  %v5106_v25 = vmul.f32 %v16539_v43, %v11487_v0 }
 0x4eb   : > { %16588 = vst [vmem:[#allocation41_spill] sm:$0xff] %v13112_v13  ;;  %16590 = vst [vmem:[#allocation73_spill] sm:$0xff] %v13119_v32  ;;  %v5005_v53 = vmul.f32 %v16270_v56, %v4969_v44  ;;  %v16593_v31 = vld [vmem:[#allocation74_spill] sm:$0xff]  ;;  %v5639_v58 = vadd.f32 %v5607_v18, %v5539_v16  ;;  %v13134_v5 = vmul.f32 %v12656_v8, %v13112_v13  ;;  %v16596_v40 = vld [vmem:[#allocation57_spill] sm:$0xff] }
 0x4ec   : > { %16591 = vst [vmem:[#allocation30_spill] sm:$0xff] %v13123_v46  ;;  %16592 = vst [vmem:[#allocation88_spill] sm:$0xff] %v13127_v54  ;;  %v6839_v49 = vadd.f32 %v16593_v31, %v6739_v51  ;;  %v16595_v46 = vld [vmem:[#allocation55_spill] sm:$0xff]  ;;  %v5306_v27 = vmul.f32 %v16596_v40, %v11497_v15  ;;  %v16597_v44 = vld [vmem:[#allocation49_spill] sm:$0xff] }
 0x4ed   : > { %16594 = vst [vmem:[#allocation48_spill] sm:$0xff] %v13134_v5  ;;  %v5037_v38 = vadd.f32 %v5005_v53, %v4937_v11  ;;  %v5206_v32 = vmul.f32 %v16595_v46, %v11492_v2  ;;  %v16598_v51 = vld [vmem:[#allocation40_spill] sm:$0xff]  ;;  %v5739_v59 = vadd.f32 %v5707_v34, %v5639_v58  ;;  %v16599_v18 = vld [vmem:[#allocation78_spill] sm:$0xff]  ;;  %v16601_v13 = vld [vmem:[#allocation45_spill] sm:$0xff] }
 0x4ee   : > { %v6939_v54 = vadd.f32 %v16597_v44, %v6839_v49  ;;  %v6337_v31 = vadd.f32 %v16598_v51, %v6237_v23  ;;  %v5406_v20 = vmul.f32 %v16599_v18, %v11508_v52  ;;  %v4604_v16 = vld [vmem:[#allocation3 + $0xc8] sm:$0xff]  ;;  %v16600_v53 = vld [vmem:[#allocation54_spill] sm:$0xff]  ;;  %v5606_v46 = vmul.f32 %v16601_v13, %v11557_v41  ;;  %v16603_v17 = vld [vmem:[#allocation33_spill] sm:$0xff] }
 0x4ef   : > { %v4672_v5 = vld [vmem:[#allocation3 + $0xc9] sm:$0xff]  ;;  %v5138_v11 = vadd.f32 %v5106_v25, %v5037_v38  ;;  %v5506_v43 = vmul.f32 %v16600_v53, %v16239_v26  ;;  %v5839_v34 = vadd.f32 %v5807_v7, %v5739_v59  ;;  %v16605_v38 = vld [vmem:[#allocation35_spill] sm:$0xff]  ;;  %v4640_v53 = vmul.f32 %v16355_v42, %v4604_v16 }
 0x4f0   : > { %v16602_v22 = vld [vmem:[#allocation76_spill] sm:$0xff]  ;;  %v7039_v49 = vadd.f32 %v16603_v17, %v6939_v54  ;;  %v6437_v23 = vadd.f32 %v13004_v35, %v6337_v31  ;;  %v16604_v58 = vld [vmem:[#allocation17_spill] sm:$0xff]  ;;  %v13158_v25 = vmul.f32 %v16605_v38, %v11577_v47  ;;  %v4708_v13 = vmul.f32 %v16356_v30, %v4672_v5 }
 0x4f1   : > { %v5706_v40 = vmul.f32 %v16602_v22, %v11573_v62  ;;  %v5806_v44 = vmul.f32 %v16604_v58, %v11561_v14  ;;  %v4772_v51 = vld [vmem:[#allocation3 + $0xca] sm:$0xff]  ;;  %v5238_v18 = vadd.f32 %v5206_v32, %v5138_v11  ;;  %v5939_v35 = vadd.f32 %v13065_v1, %v5839_v34 }
 0x4f2   : > { %v7078_v22 = vadd.f32 %v12888_v28, %v7039_v49  ;;  %v6537_v17 = vadd.f32 %v13017_v57, %v6437_v23  ;;  %v13167_v7 = vmul.f32 %v16556_v37, %v11584_v36  ;;  %v4872_v54 = vld [vmem:[#allocation3 + $0xcb] sm:$0xff]  ;;  %v13171_v31 = vmul.f32 %v12987_v6, %v11616_v9  ;;  %v16614_v6 = vld [vmem:[#allocation38_spill] sm:$0xff]  ;;  %v16615_v37 = vld [vmem:[#allocation43_spill] sm:$0xff] }
 0x4f3   : > { %v5338_v32 = vadd.f32 %v5306_v27, %v5238_v18  ;;  %v13173_v59 = vld [vmem:[#allocation3 + $0x108] sm:$0xff]  ;;  %v4740_v16 = vadd.f32 %v4708_v13, %v4640_v53  ;;  %v4808_v5 = vmul.f32 %v16358_v48, %v4772_v51  ;;  %v6039_v1 = vadd.f32 %v13070_v10, %v5939_v35  ;;  %v16613_v35 = vld [vmem:[#allocation34_spill] sm:$0xff] }
 0x4f4   : > { %16606 = vst [vmem:[#allocation74_spill] sm:$0xff] %v13173_v59  ;;  %7155 = vrot.lane.b32.xlu1 %v7078_v22, %s8336_s12  ;;  %v6638_v57 = vadd.f32 %v13021_v4, %v6537_v17  ;;  %v16607_v11 = vld [vmem:[#allocation60_spill] sm:$0xff]  ;;  %v4908_v17 = vmul.f32 %v16363_v61, %v4872_v54  ;;  %v13202_v38 = vmul.f32 %v16615_v37, %v11605_v29 }
 0x4f5   : > { %v13181_v49 = vmul.f32 %v16607_v11, %v11619_v63  ;;  %v16608_v27 = vld [vmem:[#allocation68_spill] sm:$0xff]  ;;  %v5438_v13 = vadd.f32 %v5406_v20, %v5338_v32  ;;  %v4840_v10 = vadd.f32 %v4808_v5, %v4740_v16  ;;  %v13206_v20 = vmul.f32 %v11632_v50, %v13173_v59 }
 0x4f6   : > { %v13185_v23 = vmul.f32 %v16608_v27, %v11599_v33  ;;  %v13187_v34 = vld [vmem:[#allocation3 + $0x109] sm:$0xff]  ;;  %v6738_v11 = vadd.f32 %v16613_v35, %v6638_v57  ;;  %v6140_v27 = vadd.f32 %v16614_v6, %v6039_v1  ;;  %v16619_v57 = vld [vmem:[#allocation87_spill] sm:$0xff] }
 0x4f7   : > { %16609 = vst [vmem:[#allocation55_spill] sm:$0xff] %v13187_v34  ;;  %v4972_v18 = vld [vmem:[#allocation3 + $0xcc] sm:$0xff]  ;;  %16616 = vst [vmem:[#allocation40_spill] sm:$0xff] %v13206_v20  ;;  %v13212_v16 = vmul.f32 %v11635_v3, %v13187_v34  ;;  %v4940_v54 = vadd.f32 %v4908_v17, %v4840_v10  ;;  %v16620_v1 = vld [vmem:[#allocation79_spill] sm:$0xff] }
 0x4f8   : > { %v16610_v51 = vld [vmem:[#allocation32_spill] sm:$0xff]  ;;  %v5008_v5 = vmul.f32 %v16270_v56, %v4972_v18  ;;  %v6838_v6 = vadd.f32 %v16619_v57, %v6738_v11  ;;  %v6240_v35 = vadd.f32 %v16620_v1, %v6140_v27  ;;  %v16624_v18 = vld [vmem:[#allocation27_spill] sm:$0xff]  ;;  %v16625_v11 = vld [vmem:[#allocation86_spill] sm:$0xff] }
 0x4f9   : > { %v13191_v53 = vmul.f32 %v16610_v51, %v11602_v60  ;;  %v13193_v22 = vld [vmem:[#allocation3 + $0x10a] sm:$0xff]  ;;  %v5538_v51 = vadd.f32 %v5506_v43, %v5438_v13  ;;  %16618 = vst [vmem:[#allocation54_spill] sm:$0xff] %v13212_v16  ;;  %v5109_v17 = vmul.f32 %v16624_v18, %v11487_v0  ;;  %v16626_v27 = vld [vmem:[#allocation50_spill] sm:$0xff]  ;;  %v4671_v18 = vld [vmem:[#allocation3 + $0xc1] sm:$0xff] }
 0x4fa   : > { %16611 = vst [vmem:[#allocation57_spill] sm:$0xff] %v13193_v22  ;;  %v13195_v4 = vld [vmem:[#allocation3 + $0x10b] sm:$0xff]  ;;  %v13219_v37 = vmul.f32 %v11622_v24, %v13193_v22  ;;  %v5040_v10 = vadd.f32 %v5008_v5, %v4940_v54  ;;  %v6938_v57 = vadd.f32 %v16625_v11, %v6838_v6  ;;  %v6340_v1 = vadd.f32 %v16626_v27, %v6240_v35  ;;  %v16627_v16 = vld [vmem:[#allocation66_spill] sm:$0xff]  ;;  %v16628_v22 = vld [vmem:[#allocation23_spill] sm:$0xff] }
 0x4fb   : > { %16612 = vst [vmem:[#allocation49_spill] sm:$0xff] %v13195_v4  ;;  %v13208_v32 = vld [vmem:[#allocation3 + $0x10c] sm:$0xff]  ;;  %v13223_v20 = vmul.f32 %v11638_v19, %v13195_v4  ;;  %v5638_v43 = vadd.f32 %v5606_v46, %v5538_v51  ;;  %v5309_v4 = vmul.f32 %v16628_v22, %v11497_v15  ;;  %v16630_v54 = vld [vmem:[#allocation39_spill] sm:$0xff] }
 0x4fc   : > { %16617 = vst [vmem:[#allocation78_spill] sm:$0xff] %v13208_v32  ;;  %16621 = vst [vmem:[#allocation33_spill] sm:$0xff] %v13219_v37  ;;  %v13227_v13 = vmul.f32 %v12656_v8, %v13208_v32  ;;  %v5209_v37 = vmul.f32 %v16627_v16, %v11492_v2  ;;  %v5141_v46 = vadd.f32 %v5109_v17, %v5040_v10  ;;  %v16629_v51 = vld [vmem:[#allocation56_spill] sm:$0xff]  ;;  %v16631_v34 = vld [vmem:[#allocation89_spill] sm:$0xff] }
 0x4fd   : > { %16622 = vst [vmem:[#allocation17_spill] sm:$0xff] %v13223_v20  ;;  %v5738_v20 = vadd.f32 %v5706_v40, %v5638_v43  ;;  %v5409_v32 = vmul.f32 %v16629_v51, %v11508_v52  ;;  %v5509_v5 = vmul.f32 %v16630_v54, %v16239_v26  ;;  %v7038_v6 = vadd.f32 %v16631_v34, %v6938_v57  ;;  %v16632_v11 = vld [vmem:[#allocation37_spill] sm:$0xff]  ;;  %v16633_v27 = vld [vmem:[#allocation52_spill] sm:$0xff] }
 0x4fe   : > { %16623 = vst [vmem:[#allocation34_spill] sm:$0xff] %v13227_v13  ;;  %v4603_v13 = vld [vmem:[#allocation3 + $0xc0] sm:$0xff]  ;;  %v6440_v35 = vadd.f32 %v13098_v55, %v6340_v1  ;;  %v5609_v16 = vmul.f32 %v16632_v11, %v11557_v41  ;;  %v5709_v22 = vmul.f32 %v16633_v27, %v11573_v62  ;;  %v5241_v43 = vadd.f32 %v5209_v37, %v5141_v46  ;;  %v16634_v10 = vld [vmem:[#allocation12_spill] sm:$0xff]  ;;  %v16635_v37 = vld [vmem:[#allocation58_spill] sm:$0xff] }
 0x4ff   : > { %v5838_v40 = vadd.f32 %v5806_v44, %v5738_v20  ;;  %v5809_v17 = vmul.f32 %v16634_v10, %v11561_v14  ;;  %v13251_v51 = vmul.f32 %v16583_v12, %v11577_v47  ;;  %v4771_v54 = vld [vmem:[#allocation3 + $0xc2] sm:$0xff]  ;;  %v7077_v34 = vadd.f32 %v12888_v28, %v7038_v6  ;;  %v16636_v6 = vld [vmem:[#allocation65_spill] sm:$0xff] }
 0x500   : > { %v6540_v55 = vadd.f32 %v13106_v21, %v6440_v35  ;;  %v4639_v57 = vmul.f32 %v16355_v42, %v4603_v13  ;;  %v4707_v1 = vmul.f32 %v16356_v30, %v4671_v18  ;;  %v5341_v44 = vadd.f32 %v5309_v4, %v5241_v43  ;;  %v4871_v12 = vld [vmem:[#allocation3 + $0xc3] sm:$0xff]  ;;  %v16642_v10 = vld [vmem:[#allocation73_spill] sm:$0xff] }
 0x501   : > { %v5938_v27 = vadd.f32 %v13158_v25, %v5838_v40  ;;  %v13260_v20 = vmul.f32 %v16635_v37, %v11584_v36  ;;  %v13264_v46 = vmul.f32 %v13080_v45, %v11616_v9  ;;  %7153 = vrot.lane.b32.xlu0 %v7077_v34, %s8336_s12  ;;  %v13270_v13 = vmul.f32 %v13091_v39, %v11619_v63  ;;  %v13272_v18 = vld [vmem:[#allocation3 + $0x128] sm:$0xff]  ;;  %v16640_v34 = vld [vmem:[#allocation81_spill] sm:$0xff] }
 0x502   : > { %v6641_v21 = vadd.f32 %v16636_v6, %v6540_v55  ;;  %16637 = vst [vmem:[#allocation38_spill] sm:$0xff] %v13272_v18  ;;  %v13274_v25 = vld [vmem:[#allocation3 + $0x129] sm:$0xff]  ;;  %v4739_v4 = vadd.f32 %v4707_v1, %v4639_v57  ;;  %v4807_v35 = vmul.f32 %v16358_v48, %v4771_v54  ;;  %v5441_v43 = vadd.f32 %v5409_v32, %v5341_v44 }
 0x503   : > { %16638 = vst [vmem:[#allocation87_spill] sm:$0xff] %v13274_v25  ;;  %v6038_v40 = vadd.f32 %v13167_v7, %v5938_v27  ;;  %v16639_v45 = vld [vmem:[#allocation36_spill] sm:$0xff]  ;;  %v13284_v55 = vmul.f32 %v16640_v34, %v11602_v60  ;;  %v16643_v57 = vld [vmem:[#allocation41_spill] sm:$0xff]  ;;  %v4907_v27 = vmul.f32 %v16363_v61, %v4871_v12 }
 0x504   : > { %v13280_v37 = vmul.f32 %v16639_v45, %v11599_v33  ;;  %v13286_v6 = vld [vmem:[#allocation3 + $0x12a] sm:$0xff]  ;;  %v6741_v11 = vadd.f32 %v16642_v10, %v6641_v21  ;;  %v13291_v1 = vmul.f32 %v16643_v57, %v11605_v29  ;;  %v4839_v32 = vadd.f32 %v4807_v35, %v4739_v4  ;;  %v16648_v21 = vld [vmem:[#allocation30_spill] sm:$0xff] }
 0x505   : > { %16641 = vst [vmem:[#allocation79_spill] sm:$0xff] %v13286_v6  ;;  %v4971_v39 = vld [vmem:[#allocation3 + $0xc4] sm:$0xff]  ;;  %v13295_v7 = vld [vmem:[#allocation3 + $0x12c] sm:$0xff]  ;;  %v6139_v44 = vadd.f32 %v13171_v31, %v6038_v40  ;;  %v5541_v34 = vadd.f32 %v5509_v5, %v5441_v43  ;;  %v13301_v45 = vmul.f32 %v11632_v50, %v13272_v18  ;;  %v13305_v10 = vmul.f32 %v11635_v3, %v13274_v25 }
 0x506   : > { %16644 = vst [vmem:[#allocation27_spill] sm:$0xff] %v13291_v1  ;;  %v13293_v54 = vld [vmem:[#allocation3 + $0x12b] sm:$0xff]  ;;  %16646 = vst [vmem:[#allocation50_spill] sm:$0xff] %v13295_v7  ;;  %v6841_v57 = vadd.f32 %v16648_v21, %v6741_v11  ;;  %v13310_v1 = vmul.f32 %v11622_v24, %v13286_v6  ;;  %v4939_v4 = vadd.f32 %v4907_v27, %v4839_v32  ;;  %v16655_v27 = vld [vmem:[#allocation35_spill] sm:$0xff] }
 0x507   : > { %16645 = vst [vmem:[#allocation86_spill] sm:$0xff] %v13293_v54  ;;  %16647 = vst [vmem:[#allocation66_spill] sm:$0xff] %v13305_v10  ;;  %v5007_v12 = vmul.f32 %v16270_v56, %v4971_v39  ;;  %v6239_v31 = vadd.f32 %v13181_v49, %v6139_v44  ;;  %v5641_v5 = vadd.f32 %v5609_v16, %v5541_v34  ;;  %v16652_v43 = vld [vmem:[#allocation88_spill] sm:$0xff]  ;;  %v16653_v10 = vld [vmem:[#allocation45_spill] sm:$0xff] }
 0x508   : > { %16649 = vst [vmem:[#allocation23_spill] sm:$0xff] %v13310_v1  ;;  %v13316_v35 = vmul.f32 %v11638_v19, %v13293_v54  ;;  %v13320_v40 = vmul.f32 %v12656_v8, %v13295_v7  ;;  %v6941_v11 = vadd.f32 %v16652_v43, %v6841_v57  ;;  %v5108_v1 = vmul.f32 %v16653_v10, %v11487_v0  ;;  %v16654_v32 = vld [vmem:[#allocation76_spill] sm:$0xff]  ;;  %v16658_v10 = vld [vmem:[#allocation19_spill] sm:$0xff] }
 0x509   : > { %v5039_v21 = vadd.f32 %v5007_v12, %v4939_v4  ;;  %v5208_v39 = vmul.f32 %v16654_v32, %v11492_v2  ;;  %v6339_v49 = vadd.f32 %v13185_v23, %v6239_v31  ;;  %v5741_v16 = vadd.f32 %v5709_v22, %v5641_v5  ;;  %v16657_v4 = vld [vmem:[#allocation63_spill] sm:$0xff]  ;;  %v16659_v31 = vld [vmem:[#allocation60_spill] sm:$0xff] }
 0x50a   : > { %16650 = vst [vmem:[#allocation56_spill] sm:$0xff] %v13316_v35  ;;  %16651 = vst [vmem:[#allocation39_spill] sm:$0xff] %v13320_v40  ;;  %v5308_v34 = vmul.f32 %v16604_v58, %v11497_v15  ;;  %v5408_v44 = vmul.f32 %v16655_v27, %v11508_v52  ;;  %v4606_v35 = vld [vmem:[#allocation3 + $0xe0] sm:$0xff]  ;;  %v16656_v40 = vld [vmem:[#allocation48_spill] sm:$0xff]  ;;  %v5508_v12 = vmul.f32 %v16657_v4, %v16239_v26 }
 0x50b   : > { %v7041_v7 = vadd.f32 %v16656_v40, %v6941_v11  ;;  %v5140_v57 = vadd.f32 %v5108_v1, %v5039_v21  ;;  %v5608_v43 = vmul.f32 %v16658_v10, %v11557_v41  ;;  %v4674_v32 = vld [vmem:[#allocation3 + $0xe1] sm:$0xff]  ;;  %v6439_v23 = vadd.f32 %v13191_v53, %v6339_v49 }
 0x50c   : > { %v5841_v22 = vadd.f32 %v5809_v17, %v5741_v16  ;;  %v5708_v58 = vmul.f32 %v16659_v31, %v11573_v62  ;;  %v16660_v5 = vld [vmem:[#allocation68_spill] sm:$0xff]  ;;  %v4642_v21 = vmul.f32 %v16355_v42, %v4606_v35  ;;  %v16662_v17 = vld [vmem:[#allocation43_spill] sm:$0xff]  ;;  %v16672_v31 = vld [vmem:[#allocation49_spill] sm:$0xff] }
 0x50d   : > { %v5808_v27 = vmul.f32 %v16660_v5, %v11561_v14  ;;  %v7080_v54 = vadd.f32 %v12888_v28, %v7041_v7  ;;  %v5240_v40 = vadd.f32 %v5208_v39, %v5140_v57  ;;  %v16661_v1 = vld [vmem:[#allocation32_spill] sm:$0xff]  ;;  %v6539_v10 = vadd.f32 %v13202_v38, %v6439_v23  ;;  %v13354_v16 = vld [vmem:[#allocation3 + $0x120] sm:$0xff] }
 0x50e   : > { %v13345_v11 = vmul.f32 %v16661_v1, %v11577_v47  ;;  %v4774_v4 = vld [vmem:[#allocation3 + $0xe2] sm:$0xff]  ;;  %v5941_v53 = vadd.f32 %v13251_v51, %v5841_v22  ;;  %v13352_v49 = vmul.f32 %v16662_v17, %v11584_v36  ;;  %16663 = vst [vmem:[#allocation89_spill] sm:$0xff] %v13354_v16  ;;  %v4710_v7 = vmul.f32 %v16356_v30, %v4674_v32  ;;  %v16666_v51 = vld [vmem:[#allocation57_spill] sm:$0xff] }
 0x50f   : > { %7159 = vrot.lane.b32.xlu1 %v7080_v54, %s8336_s12  ;;  %v5340_v39 = vadd.f32 %v5308_v34, %v5240_v40  ;;  %v13360_v57 = vmul.f32 %v13173_v59, %v11616_v9  ;;  %v16664_v35 = vld [vmem:[#allocation55_spill] sm:$0xff]  ;;  %v13368_v23 = vmul.f32 %v16666_v51, %v11599_v33  ;;  %v16668_v17 = vld [vmem:[#allocation40_spill] sm:$0xff]  ;;  %v4810_v59 = vmul.f32 %v16358_v48, %v4774_v4  ;;  %v16673_v51 = vld [vmem:[#allocation78_spill] sm:$0xff] }
 0x510   : > { %v13364_v38 = vmul.f32 %v16664_v35, %v11619_v63  ;;  %v4874_v22 = vld [vmem:[#allocation3 + $0xe3] sm:$0xff]  ;;  %v6640_v1 = vadd.f32 %v16668_v17, %v6539_v10  ;;  %v6041_v32 = vadd.f32 %v13260_v20, %v5941_v53  ;;  %v4742_v40 = vadd.f32 %v4710_v7, %v4642_v21  ;;  %v16675_v53 = vld [vmem:[#allocation54_spill] sm:$0xff] }
 0x511   : > { %16667 = vst [vmem:[#allocation73_spill] sm:$0xff] %v13368_v23  ;;  %v13372_v5 = vld [vmem:[#allocation3 + $0x121] sm:$0xff]  ;;  %v5440_v35 = vadd.f32 %v5408_v44, %v5340_v39  ;;  %v13385_v23 = vmul.f32 %v16673_v51, %v11605_v29  ;;  %v13389_v20 = vmul.f32 %v11632_v50, %v13354_v16  ;;  %v4910_v4 = vmul.f32 %v16363_v61, %v4874_v22 }
 0x512   : > { %16665 = vst [vmem:[#allocation65_spill] sm:$0xff] %v13364_v38  ;;  %16669 = vst [vmem:[#allocation30_spill] sm:$0xff] %v13372_v5  ;;  %v13374_v54 = vld [vmem:[#allocation3 + $0x122] sm:$0xff]  ;;  %v13381_v38 = vmul.f32 %v16672_v31, %v11602_v60  ;;  %v6740_v17 = vadd.f32 %v16675_v53, %v6640_v1  ;;  %v6142_v21 = vadd.f32 %v13264_v46, %v6041_v32  ;;  %v16680_v1 = vld [vmem:[#allocation33_spill] sm:$0xff] }
 0x513   : > { %16670 = vst [vmem:[#allocation88_spill] sm:$0xff] %v13374_v54  ;;  %v13376_v34 = vld [vmem:[#allocation3 + $0x123] sm:$0xff]  ;;  %16674 = vst [vmem:[#allocation76_spill] sm:$0xff] %v13389_v20  ;;  %v4842_v44 = vadd.f32 %v4810_v59, %v4742_v40  ;;  %v5540_v39 = vadd.f32 %v5508_v12, %v5440_v35  ;;  %v13398_v31 = vmul.f32 %v11635_v3, %v13372_v5  ;;  %v16682_v40 = vld [vmem:[#allocation37_spill] sm:$0xff] }
 0x514   : > { %16671 = vst [vmem:[#allocation45_spill] sm:$0xff] %v13376_v34  ;;  %v4974_v10 = vld [vmem:[#allocation3 + $0xe4] sm:$0xff]  ;;  %v13402_v51 = vmul.f32 %v11622_v24, %v13374_v54  ;;  %v13406_v20 = vmul.f32 %v11638_v19, %v13376_v34  ;;  %v6840_v46 = vadd.f32 %v16680_v1, %v6740_v17  ;;  %v6242_v32 = vadd.f32 %v13270_v13, %v6142_v21  ;;  %v16684_v34 = vld [vmem:[#allocation17_spill] sm:$0xff] }
 0x515   : > { %v13393_v7 = vld [vmem:[#allocation3 + $0x124] sm:$0xff]  ;;  %16677 = vst [vmem:[#allocation48_spill] sm:$0xff] %v13398_v31  ;;  %v4942_v59 = vadd.f32 %v4910_v4, %v4842_v44  ;;  %v5010_v22 = vmul.f32 %v16270_v56, %v4974_v10  ;;  %v5640_v12 = vadd.f32 %v5608_v43, %v5540_v39  ;;  %v5111_v53 = vmul.f32 %v16682_v40, %v11487_v0  ;;  %v4605_v10 = vld [vmem:[#allocation3 + $0xd8] sm:$0xff]  ;;  %v16686_v44 = vld [vmem:[#allocation69_spill] sm:$0xff] }
 0x516   : > { %16676 = vst [vmem:[#allocation35_spill] sm:$0xff] %v13393_v7  ;;  %16678 = vst [vmem:[#allocation63_spill] sm:$0xff] %v13402_v51  ;;  %v13413_v35 = vmul.f32 %v12656_v8, %v13393_v7  ;;  %v16683_v51 = vld [vmem:[#allocation52_spill] sm:$0xff]  ;;  %v6342_v17 = vadd.f32 %v13280_v37, %v6242_v32  ;;  %v5411_v8 = vmul.f32 %v16686_v44, %v11508_v52  ;;  %v16687_v4 = vld [vmem:[#allocation58_spill] sm:$0xff] }
 0x517   : > { %16679 = vst [vmem:[#allocation40_spill] sm:$0xff] %v13406_v20  ;;  %v5211_v31 = vmul.f32 %v16683_v51, %v11492_v2  ;;  %v6940_v20 = vadd.f32 %v16684_v34, %v6840_v46  ;;  %v5042_v1 = vadd.f32 %v5010_v22, %v4942_v59  ;;  %v16685_v13 = vld [vmem:[#allocation12_spill] sm:$0xff]  ;;  %v5740_v43 = vadd.f32 %v5708_v58, %v5640_v12  ;;  %v16688_v40 = vld [vmem:[#allocation22_spill] sm:$0xff]  ;;  %v16690_v32 = vld [vmem:[#allocation51_spill] sm:$0xff] }
 0x518   : > { %16681 = vst [vmem:[#allocation54_spill] sm:$0xff] %v13413_v35  ;;  %v5311_v21 = vmul.f32 %v16685_v13, %v11497_v15  ;;  %v5511_v39 = vmul.f32 %v16687_v4, %v16239_v26  ;;  %v5611_v35 = vmul.f32 %v16688_v40, %v11557_v41  ;;  %v4673_v51 = vld [vmem:[#allocation3 + $0xd9] sm:$0xff]  ;;  %v6442_v37 = vadd.f32 %v13284_v55, %v6342_v17  ;;  %v16691_v58 = vld [vmem:[#allocation36_spill] sm:$0xff]  ;;  %v16692_v13 = vld [vmem:[#allocation81_spill] sm:$0xff] }
 0x519   : > { %v16689_v7 = vld [vmem:[#allocation34_spill] sm:$0xff]  ;;  %v5143_v46 = vadd.f32 %v5111_v53, %v5042_v1  ;;  %v5711_v59 = vmul.f32 %v16690_v32, %v11573_v62  ;;  %v5840_v22 = vadd.f32 %v5808_v27, %v5740_v43  ;;  %v13435_v12 = vmul.f32 %v16691_v58, %v11561_v14  ;;  %v16694_v1 = vld [vmem:[#allocation41_spill] sm:$0xff] }
 0x51a   : > { %v7040_v34 = vadd.f32 %v16689_v7, %v6940_v20  ;;  %v13439_v44 = vmul.f32 %v16692_v13, %v11577_v47  ;;  %v4641_v4 = vmul.f32 %v16355_v42, %v4605_v10  ;;  %v4773_v40 = vld [vmem:[#allocation3 + $0xda] sm:$0xff]  ;;  %v4709_v17 = vmul.f32 %v16356_v30, %v4673_v51 }
 0x51b   : > { %v16693_v7 = vld [vmem:[#allocation27_spill] sm:$0xff]  ;;  %v5243_v53 = vadd.f32 %v5211_v31, %v5143_v46  ;;  %v5940_v27 = vadd.f32 %v13345_v11, %v5840_v22  ;;  %v13448_v43 = vmul.f32 %v16694_v1, %v11584_v36  ;;  %v13452_v13 = vmul.f32 %v13272_v18, %v11616_v9 }
 0x51c   : > { %v7079_v20 = vadd.f32 %v12888_v28, %v7040_v34  ;;  %v6542_v55 = vadd.f32 %v16693_v7, %v6442_v37  ;;  %v13456_v10 = vmul.f32 %v13274_v25, %v11619_v63  ;;  %v4873_v34 = vld [vmem:[#allocation3 + $0xdb] sm:$0xff]  ;;  %v4741_v22 = vadd.f32 %v4709_v17, %v4641_v4  ;;  %v13481_v17 = vld [vmem:[#allocation3 + $0x143] sm:$0xff] }
 0x51d   : > { %v5343_v51 = vadd.f32 %v5311_v21, %v5243_v53  ;;  %v13460_v37 = vld [vmem:[#allocation3 + $0x140] sm:$0xff]  ;;  %v4809_v7 = vmul.f32 %v16358_v48, %v4773_v40  ;;  %v6040_v18 = vadd.f32 %v13352_v49, %v5940_v27  ;;  %v13470_v25 = vmul.f32 %v13286_v6, %v11599_v33  ;;  %v16701_v53 = vld [vmem:[#allocation66_spill] sm:$0xff]  ;;  %16702 = vst [vmem:[#allocation12_spill] sm:$0xff] %v13481_v17 }
 0x51e   : > { %7157 = vrot.lane.b32.xlu0 %v7079_v20, %s8336_s12  ;;  %v6643_v31 = vadd.f32 %v13301_v45, %v6542_v55  ;;  %16695 = vst [vmem:[#allocation33_spill] sm:$0xff] %v13460_v37  ;;  %v13462_v11 = vld [vmem:[#allocation3 + $0x141] sm:$0xff]  ;;  %v16698_v20 = vld [vmem:[#allocation86_spill] sm:$0xff]  ;;  %v4909_v27 = vmul.f32 %v16363_v61, %v4873_v34 }
 0x51f   : > { %16696 = vst [vmem:[#allocation37_spill] sm:$0xff] %v13462_v11  ;;  %v13464_v46 = vld [vmem:[#allocation3 + $0x142] sm:$0xff]  ;;  %v13474_v1 = vmul.f32 %v16698_v20, %v11602_v60  ;;  %v16699_v45 = vld [vmem:[#allocation50_spill] sm:$0xff]  ;;  %v5443_v4 = vadd.f32 %v5411_v8, %v5343_v51  ;;  %v4841_v49 = vadd.f32 %v4809_v7, %v4741_v22  ;;  %v6141_v6 = vadd.f32 %v13360_v57, %v6040_v18  ;;  %v16708_v7 = vld [vmem:[#allocation65_spill] sm:$0xff] }
 0x520   : > { %16697 = vst [vmem:[#allocation52_spill] sm:$0xff] %v13464_v46  ;;  %v13478_v21 = vmul.f32 %v16699_v45, %v11605_v29  ;;  %v4973_v55 = vld [vmem:[#allocation3 + $0xdc] sm:$0xff]  ;;  %v6743_v58 = vadd.f32 %v16701_v53, %v6643_v31  ;;  %v13483_v40 = vld [vmem:[#allocation3 + $0x144] sm:$0xff]  ;;  %v13489_v20 = vmul.f32 %v11632_v50, %v13460_v37  ;;  %v13497_v8 = vmul.f32 %v11622_v24, %v13464_v46 }
 0x521   : > { %16703 = vst [vmem:[#allocation69_spill] sm:$0xff] %v13483_v40  ;;  %v16707_v31 = vld [vmem:[#allocation23_spill] sm:$0xff]  ;;  %v5543_v53 = vadd.f32 %v5511_v39, %v5443_v4  ;;  %v4941_v22 = vadd.f32 %v4909_v27, %v4841_v49  ;;  %v5009_v34 = vmul.f32 %v16270_v56, %v4973_v55  ;;  %v6241_v18 = vadd.f32 %v16708_v7, %v6141_v6  ;;  %v16712_v4 = vld [vmem:[#allocation56_spill] sm:$0xff]  ;;  %v16714_v7 = vld [vmem:[#allocation73_spill] sm:$0xff] }
 0x522   : > { %16700 = vst [vmem:[#allocation17_spill] sm:$0xff] %v13478_v21  ;;  %16704 = vst [vmem:[#allocation58_spill] sm:$0xff] %v13489_v20  ;;  %v13493_v21 = vmul.f32 %v11635_v3, %v13462_v11  ;;  %v6843_v51 = vadd.f32 %v16707_v31, %v6743_v58  ;;  %v13504_v57 = vmul.f32 %v11638_v19, %v13481_v17  ;;  %v16711_v39 = vld [vmem:[#allocation19_spill] sm:$0xff]  ;;  %v16713_v27 = vld [vmem:[#allocation60_spill] sm:$0xff] }
 0x523   : > { %16706 = vst [vmem:[#allocation51_spill] sm:$0xff] %v13497_v8  ;;  %v5110_v58 = vmul.f32 %v16711_v39, %v11487_v0  ;;  %v5643_v49 = vadd.f32 %v5611_v35, %v5543_v53  ;;  %v5041_v6 = vadd.f32 %v5009_v34, %v4941_v22  ;;  %v5210_v31 = vmul.f32 %v16713_v27, %v11492_v2  ;;  %v16715_v17 = vld [vmem:[#allocation68_spill] sm:$0xff]  ;;  %v4608_v37 = vld [vmem:[#allocation3 + $0xf8] sm:$0xff]  ;;  %v16718_v39 = vld [vmem:[#allocation39_spill] sm:$0xff] }
 0x524   : > { %16705 = vst [vmem:[#allocation34_spill] sm:$0xff] %v13493_v21  ;;  %16709 = vst [vmem:[#allocation27_spill] sm:$0xff] %v13504_v57  ;;  %v13509_v21 = vld [vmem:[%s14997_s8 + $0x18] ss:$0 sm:$0xff]  ;;  %v6943_v55 = vadd.f32 %v16712_v4, %v6843_v51  ;;  %v6341_v57 = vadd.f32 %v16714_v7, %v6241_v18  ;;  %v5310_v20 = vmul.f32 %v16715_v17, %v11497_v15  ;;  %v16716_v46 = vld [vmem:[#allocation32_spill] sm:$0xff] }
 0x525   : > { %v13513_v8 = vmul.f32 %v13509_v21, %v13483_v40  ;;  %v5410_v11 = vmul.f32 %v16716_v46, %v11508_v52  ;;  %v5743_v51 = vadd.f32 %v5711_v59, %v5643_v49  ;;  %v5142_v35 = vadd.f32 %v5110_v58, %v5041_v6  ;;  %v16719_v53 = vld [vmem:[#allocation74_spill] sm:$0xff]  ;;  %v16720_v4 = vld [vmem:[#allocation55_spill] sm:$0xff]  ;;  %v16721_v27 = vld [vmem:[#allocation57_spill] sm:$0xff] }
 0x526   : > { %v7043_v45 = vadd.f32 %v16718_v39, %v6943_v55  ;;  %v5610_v22 = vmul.f32 %v16719_v53, %v11557_v41  ;;  %v4676_v34 = vld [vmem:[#allocation3 + $0xf9] sm:$0xff]  ;;  %v6441_v18 = vadd.f32 %v13381_v38, %v6341_v57  ;;  %v5710_v17 = vmul.f32 %v16720_v4, %v11573_v62  ;;  %v16722_v7 = vld [vmem:[#allocation49_spill] sm:$0xff] }
 0x527   : > { %16710 = vst [vmem:[#allocation66_spill] sm:$0xff] %v13513_v8  ;;  %v16717_v8 = vld [vmem:[#allocation43_spill] sm:$0xff]  ;;  %v5810_v46 = vmul.f32 %v16721_v27, %v11561_v14  ;;  %v5843_v59 = vadd.f32 %v13435_v12, %v5743_v51  ;;  %v5242_v58 = vadd.f32 %v5210_v31, %v5142_v35  ;;  %v4644_v49 = vmul.f32 %v16355_v42, %v4608_v37  ;;  %v16723_v57 = vld [vmem:[#allocation78_spill] sm:$0xff] }
 0x528   : > { %v5510_v40 = vmul.f32 %v16717_v8, %v16239_v26  ;;  %v13537_v8 = vmul.f32 %v16722_v7, %v11577_v47  ;;  %v7082_v55 = vadd.f32 %v12888_v28, %v7043_v45  ;;  %v4776_v6 = vld [vmem:[#allocation3 + $0xfa] sm:$0xff]  ;;  %v6541_v38 = vadd.f32 %v13385_v23, %v6441_v18  ;;  %v16727_v18 = vld [vmem:[#allocation76_spill] sm:$0xff] }
 0x529   : > { %v13545_v39 = vmul.f32 %v16723_v57, %v11584_v36  ;;  %v13549_v27 = vmul.f32 %v13354_v16, %v11616_v9  ;;  %v13551_v7 = vld [vmem:[#allocation3 + $0x138] sm:$0xff]  ;;  %v4712_v45 = vmul.f32 %v16356_v30, %v4676_v34  ;;  %v5943_v12 = vadd.f32 %v13439_v44, %v5843_v59  ;;  %v16728_v34 = vld [vmem:[#allocation45_spill] sm:$0xff] }
 0x52a   : > { %16724 = vst [vmem:[#allocation23_spill] sm:$0xff] %v13551_v7  ;;  %7163 = vrot.lane.b32.xlu1 %v7082_v55, %s8336_s12  ;;  %v5342_v37 = vadd.f32 %v5310_v20, %v5242_v58  ;;  %v13558_v23 = vmul.f32 %v13372_v5, %v11619_v63  ;;  %v13562_v31 = vmul.f32 %v13374_v54, %v11599_v33  ;;  %v13564_v51 = vld [vmem:[#allocation3 + $0x139] sm:$0xff] }
 0x52b   : > { %16726 = vst [vmem:[#allocation19_spill] sm:$0xff] %v13564_v51  ;;  %v4876_v35 = vld [vmem:[#allocation3 + $0xfb] sm:$0xff]  ;;  %v6642_v16 = vadd.f32 %v16727_v18, %v6541_v38  ;;  %v13569_v57 = vmul.f32 %v16728_v34, %v11602_v60  ;;  %v4744_v20 = vadd.f32 %v4712_v45, %v4644_v49  ;;  %v4812_v59 = vmul.f32 %v16358_v48, %v4776_v6 }
 0x52c   : > { %16725 = vst [vmem:[#allocation65_spill] sm:$0xff] %v13562_v31  ;;  %v13571_v55 = vld [vmem:[#allocation3 + $0x13a] sm:$0xff]  ;;  %v6043_v58 = vadd.f32 %v13448_v43, %v5943_v12  ;;  %v5442_v54 = vadd.f32 %v5410_v11, %v5342_v37  ;;  %v13583_v38 = vmul.f32 %v11632_v50, %v13551_v7  ;;  %v13590_v49 = vmul.f32 %v11635_v3, %v13564_v51 }
 0x52d   : > { %16729 = vst [vmem:[#allocation56_spill] sm:$0xff] %v13569_v57  ;;  %16730 = vst [vmem:[#allocation60_spill] sm:$0xff] %v13571_v55  ;;  %v13573_v44 = vld [vmem:[#allocation3 + $0x13b] sm:$0xff]  ;;  %v16735_v57 = vld [vmem:[#allocation48_spill] sm:$0xff]  ;;  %v4844_v6 = vadd.f32 %v4812_v59, %v4744_v20  ;;  %v4912_v43 = vmul.f32 %v16363_v61, %v4876_v35  ;;  %v13596_v12 = vmul.f32 %v11622_v24, %v13571_v55 }
 0x52e   : > { %16731 = vst [vmem:[#allocation73_spill] sm:$0xff] %v13573_v44  ;;  %v16732_v5 = vld [vmem:[#allocation35_spill] sm:$0xff]  ;;  %16733 = vst [vmem:[#allocation68_spill] sm:$0xff] %v13583_v38  ;;  %v6742_v4 = vadd.f32 %v16735_v57, %v6642_v16  ;;  %v6144_v11 = vadd.f32 %v13452_v13, %v6043_v58  ;;  %v5542_v45 = vadd.f32 %v5510_v40, %v5442_v54  ;;  %v16741_v40 = vld [vmem:[#allocation22_spill] sm:$0xff] }
 0x52f   : > { %v13579_v31 = vmul.f32 %v16732_v5, %v11605_v29  ;;  %v13585_v18 = vld [vmem:[#allocation3 + $0x13c] sm:$0xff]  ;;  %16736 = vst [vmem:[#allocation43_spill] sm:$0xff] %v13590_v49  ;;  %16737 = vst [vmem:[#allocation39_spill] sm:$0xff] %v13596_v12  ;;  %v13600_v37 = vmul.f32 %v11638_v19, %v13573_v44  ;;  %v4944_v20 = vadd.f32 %v4912_v43, %v4844_v6  ;;  %v16742_v12 = vld [vmem:[#allocation40_spill] sm:$0xff] }
 0x530   : > { %16734 = vst [vmem:[#allocation32_spill] sm:$0xff] %v13585_v18  ;;  %v4976_v34 = vld [vmem:[#allocation3 + $0xfc] sm:$0xff]  ;;  %v13605_v57 = vmul.f32 %v13509_v21, %v13585_v18  ;;  %v6244_v13 = vadd.f32 %v13456_v10, %v6144_v11  ;;  %v5642_v54 = vadd.f32 %v5610_v22, %v5542_v45  ;;  %v5113_v59 = vmul.f32 %v16741_v40, %v11487_v0  ;;  %v4607_v43 = vld [vmem:[#allocation3 + $0xf0] sm:$0xff] }
 0x531   : > { %16738 = vst [vmem:[#allocation74_spill] sm:$0xff] %v13600_v37  ;;  %v16739_v38 = vld [vmem:[#allocation63_spill] sm:$0xff]  ;;  %v5012_v35 = vmul.f32 %v16270_v56, %v4976_v34  ;;  %v5213_v58 = vmul.f32 %v16690_v32, %v11492_v2  ;;  %v16745_v22 = vld [vmem:[#allocation41_spill] sm:$0xff]  ;;  %v16746_v45 = vld [vmem:[#allocation38_spill] sm:$0xff] }
 0x532   : > { %v6842_v16 = vadd.f32 %v16739_v38, %v6742_v4  ;;  %16740 = vst [vmem:[#allocation76_spill] sm:$0xff] %v13605_v57  ;;  %v16743_v4 = vld [vmem:[#allocation36_spill] sm:$0xff]  ;;  %v16744_v57 = vld [vmem:[#allocation81_spill] sm:$0xff]  ;;  %v6344_v34 = vadd.f32 %v13470_v25, %v6244_v13  ;;  %v5742_v10 = vadd.f32 %v5710_v17, %v5642_v54  ;;  %v5513_v11 = vmul.f32 %v16745_v22, %v16239_v26  ;;  %v16747_v18 = vld [vmem:[#allocation54_spill] sm:$0xff] }
 0x533   : > { %v5044_v49 = vadd.f32 %v5012_v35, %v4944_v20  ;;  %v5313_v38 = vmul.f32 %v16743_v4, %v11497_v15  ;;  %v5413_v6 = vmul.f32 %v16744_v57, %v11508_v52  ;;  %v5613_v40 = vmul.f32 %v16746_v45, %v11557_v41  ;;  %v4675_v32 = vld [vmem:[#allocation3 + $0xf1] sm:$0xff]  ;;  %v16748_v20 = vld [vmem:[#allocation87_spill] sm:$0xff] }
 0x534   : > { %v6942_v37 = vadd.f32 %v16742_v12, %v6842_v16  ;;  %v5713_v35 = vmul.f32 %v16748_v20, %v11573_v62  ;;  %v16749_v4 = vld [vmem:[#allocation79_spill] sm:$0xff]  ;;  %v6444_v25 = vadd.f32 %v13474_v1, %v6344_v34  ;;  %v5842_v17 = vadd.f32 %v5810_v46, %v5742_v10  ;;  %v16750_v13 = vld [vmem:[#allocation86_spill] sm:$0xff]  ;;  %v16752_v20 = vld [vmem:[#allocation17_spill] sm:$0xff] }
 0x535   : > { %v5145_v16 = vadd.f32 %v5113_v59, %v5044_v49  ;;  %v13628_v57 = vmul.f32 %v16749_v4, %v11561_v14  ;;  %v13633_v54 = vmul.f32 %v16750_v13, %v11577_v47  ;;  %v4643_v22 = vmul.f32 %v16355_v42, %v4607_v43  ;;  %v4775_v45 = vld [vmem:[#allocation3 + $0xf2] sm:$0xff]  ;;  %v16762_v13 = vld [vmem:[#allocation12_spill] sm:$0xff] }
 0x536   : > { %v7042_v12 = vadd.f32 %v16747_v18, %v6942_v37  ;;  %v16751_v37 = vld [vmem:[#allocation50_spill] sm:$0xff]  ;;  %v4711_v4 = vmul.f32 %v16356_v30, %v4675_v32  ;;  %v6544_v44 = vadd.f32 %v16752_v20, %v6444_v25  ;;  %v5942_v1 = vadd.f32 %v13537_v8, %v5842_v17  ;;  %v16753_v46 = vld [vmem:[#allocation33_spill] sm:$0xff]  ;;  %v16757_v32 = vld [vmem:[#allocation52_spill] sm:$0xff] }
 0x537   : > { %v5245_v49 = vadd.f32 %v5213_v58, %v5145_v16  ;;  %v13639_v59 = vmul.f32 %v16751_v37, %v11584_v36  ;;  %v13646_v34 = vmul.f32 %v16753_v46, %v11616_v9  ;;  %v16754_v43 = vld [vmem:[#allocation37_spill] sm:$0xff]  ;;  %v13657_v16 = vmul.f32 %v16757_v32, %v11599_v33  ;;  %v13659_v20 = vld [vmem:[#allocation3 + $0x159] sm:$0xff] }
 0x538   : > { %v7081_v18 = vadd.f32 %v12888_v28, %v7042_v12  ;;  %v13650_v10 = vmul.f32 %v16754_v43, %v11619_v63  ;;  %v13652_v28 = vld [vmem:[#allocation3 + $0x158] sm:$0xff]  ;;  %16759 = vst [vmem:[#allocation40_spill] sm:$0xff] %v13659_v20  ;;  %v4743_v25 = vadd.f32 %v4711_v4, %v4643_v22  ;;  %v4811_v17 = vmul.f32 %v16358_v48, %v4775_v45 }
 0x539   : > { %16756 = vst [vmem:[#allocation63_spill] sm:$0xff] %v13652_v28  ;;  %v4875_v58 = vld [vmem:[#allocation3 + $0xf3] sm:$0xff]  ;;  %v5345_v12 = vadd.f32 %v5313_v38, %v5245_v49  ;;  %16758 = vst [vmem:[#allocation22_spill] sm:$0xff] %v13657_v16  ;;  %v6042_v37 = vadd.f32 %v13545_v39, %v5942_v1  ;;  %v13674_v49 = vld [vmem:[#allocation3 + $0x15b] sm:$0xff]  ;;  %v13678_v4 = vmul.f32 %v11632_v50, %v13652_v28 }
 0x53a   : > { %16755 = vst [vmem:[#allocation48_spill] sm:$0xff] %v13650_v10  ;;  %7161 = vrot.lane.b32.xlu0 %v7081_v18, %s8336_s12  ;;  %v13661_v8 = vld [vmem:[#allocation3 + $0x15a] sm:$0xff]  ;;  %v13668_v10 = vmul.f32 %v16762_v13, %v11602_v60  ;;  %v16763_v38 = vld [vmem:[#allocation69_spill] sm:$0xff]  ;;  %16765 = vst [vmem:[#allocation41_spill] sm:$0xff] %v13674_v49  ;;  %v4911_v39 = vmul.f32 %v16363_v61, %v4875_v58 }
 0x53b   : > { %16760 = vst [vmem:[#allocation36_spill] sm:$0xff] %v13661_v8  ;;  %v16761_v46 = vld [vmem:[#allocation58_spill] sm:$0xff]  ;;  %v13672_v18 = vmul.f32 %v16763_v38, %v11605_v29  ;;  %v5445_v16 = vadd.f32 %v5413_v6, %v5345_v12  ;;  %16766 = vst [vmem:[#allocation54_spill] sm:$0xff] %v13678_v4  ;;  %v13691_v6 = vmul.f32 %v11622_v24, %v13661_v8 }
 0x53c   : > { %v6645_v43 = vadd.f32 %v16761_v46, %v6544_v44  ;;  %v4975_v32 = vld [vmem:[#allocation3 + $0xf4] sm:$0xff]  ;;  %v13680_v45 = vld [vmem:[#allocation3 + $0x15c] sm:$0xff]  ;;  %v4843_v44 = vadd.f32 %v4811_v17, %v4743_v25  ;;  %v6143_v46 = vadd.f32 %v13549_v27, %v6042_v37  ;;  %v13695_v4 = vmul.f32 %v11638_v19, %v13674_v49 }
 0x53d   : > { %16764 = vst [vmem:[#allocation81_spill] sm:$0xff] %v13672_v18  ;;  %16767 = vst [vmem:[#allocation17_spill] sm:$0xff] %v13680_v45  ;;  %v16768_v22 = vld [vmem:[#allocation34_spill] sm:$0xff]  ;;  %v13687_v18 = vmul.f32 %v11635_v3, %v13659_v20  ;;  %v5545_v12 = vadd.f32 %v5513_v11, %v5445_v16  ;;  %v5011_v58 = vmul.f32 %v16270_v56, %v4975_v32  ;;  %v16772_v17 = vld [vmem:[#allocation51_spill] sm:$0xff] }
 0x53e   : > { %v6745_v1 = vadd.f32 %v16768_v22, %v6645_v43  ;;  %16770 = vst [vmem:[#allocation34_spill] sm:$0xff] %v13691_v6  ;;  %16771 = vst [vmem:[#allocation90_spill] sm:$0xff] %v13695_v4  ;;  %v4943_v25 = vadd.f32 %v4911_v39, %v4843_v44  ;;  %v6243_v27 = vadd.f32 %v13558_v23, %v6143_v46  ;;  %v16774_v16 = vld [vmem:[#allocation55_spill] sm:$0xff]  ;;  %v16775_v44 = vld [vmem:[#allocation57_spill] sm:$0xff] }
 0x53f   : > { %16769 = vst [vmem:[#allocation58_spill] sm:$0xff] %v13687_v18  ;;  %v13702_v37 = vmul.f32 %v13509_v21, %v13680_v45  ;;  %v5112_v22 = vmul.f32 %v16719_v53, %v11487_v0  ;;  %v5645_v6 = vadd.f32 %v5613_v40, %v5545_v12  ;;  %v5212_v18 = vmul.f32 %v16774_v16, %v11492_v2  ;;  %v16776_v32 = vld [vmem:[#allocation27_spill] sm:$0xff]  ;;  %v16778_v23 = vld [vmem:[#allocation49_spill] sm:$0xff]  ;;  %v16781_v16 = vld [vmem:[#allocation30_spill] sm:$0xff] }
 0x540   : > { %v6845_v43 = vadd.f32 %v16772_v17, %v6745_v1  ;;  %v5043_v11 = vadd.f32 %v5011_v58, %v4943_v25  ;;  %v5312_v39 = vmul.f32 %v16775_v44, %v11497_v15  ;;  %v16777_v1 = vld [vmem:[#allocation65_spill] sm:$0xff]  ;;  %v5412_v46 = vmul.f32 %v16778_v23, %v11508_v52  ;;  %v16782_v8 = vld [vmem:[#allocation66_spill] sm:$0xff] }
 0x541   : > { %16773 = vst [vmem:[#allocation51_spill] sm:$0xff] %v13702_v37  ;;  %v6343_v17 = vadd.f32 %v16777_v1, %v6243_v27  ;;  %v16779_v37 = vld [vmem:[#allocation78_spill] sm:$0xff]  ;;  %v4610_v49 = vld [vmem:[#allocation3 + $0x110] sm:$0xff]  ;;  %v5745_v40 = vadd.f32 %v5713_v35, %v5645_v6  ;;  %v5712_v44 = vmul.f32 %v16781_v16, %v11573_v62  ;;  %v16784_v1 = vld [vmem:[#allocation88_spill] sm:$0xff] }
 0x542   : > { %v6945_v4 = vadd.f32 %v16776_v32, %v6845_v43  ;;  %v5512_v45 = vmul.f32 %v16779_v37, %v16239_v26  ;;  %v4678_v53 = vld [vmem:[#allocation3 + $0x111] sm:$0xff]  ;;  %v5144_v12 = vadd.f32 %v5112_v22, %v5043_v11  ;;  %v16783_v32 = vld [vmem:[#allocation56_spill] sm:$0xff]  ;;  %v13724_v23 = vmul.f32 %v16784_v1, %v11561_v14 }
 0x543   : > { %v16780_v25 = vld [vmem:[#allocation89_spill] sm:$0xff]  ;;  %v6443_v27 = vadd.f32 %v16783_v32, %v6343_v17  ;;  %v5845_v6 = vadd.f32 %v13628_v57, %v5745_v40  ;;  %v4646_v11 = vmul.f32 %v16355_v42, %v4610_v49  ;;  %v4714_v16 = vmul.f32 %v16356_v30, %v4678_v53 }
 0x544   : > { %v5612_v58 = vmul.f32 %v16780_v25, %v11557_v41  ;;  %v7045_v43 = vadd.f32 %v16782_v8, %v6945_v4  ;;  %v16785_v37 = vld [vmem:[#allocation45_spill] sm:$0xff]  ;;  %v5244_v22 = vadd.f32 %v5212_v18, %v5144_v12  ;;  %v13736_v8 = vld [vmem:[%s14998_s9] ss:$0 sm:$0xff]  ;;  %v13742_v32 = vmul.f32 %v16732_v5, %v11584_v36 }
 0x545   : > { %v13728_v20 = vmul.f32 %v16785_v37, %v11577_v47  ;;  %v4778_v35 = vld [vmem:[#allocation3 + $0x112] sm:$0xff]  ;;  %v6543_v17 = vadd.f32 %v13579_v31, %v6443_v27  ;;  %v13746_v57 = vmul.f32 %v13551_v7, %v11616_v9  ;;  %v5945_v49 = vadd.f32 %v13633_v54, %v5845_v6  ;;  %v16788_v31 = vld [vmem:[#allocation68_spill] sm:$0xff] }
 0x546   : > { %v7084_v4 = vadd.f32 %v13736_v8, %v7045_v43  ;;  %v4878_v18 = vld [vmem:[#allocation3 + $0x113] sm:$0xff]  ;;  %v5344_v53 = vadd.f32 %v5312_v39, %v5244_v22  ;;  %v4746_v37 = vadd.f32 %v4714_v16, %v4646_v11  ;;  %v4814_v43 = vmul.f32 %v16358_v48, %v4778_v35 }
 0x547   : > { %v13749_v40 = vld [vmem:[#allocation3 + $0x150] sm:$0xff]  ;;  %v6644_v27 = vadd.f32 %v16788_v31, %v6543_v17  ;;  %v13758_v5 = vmul.f32 %v13564_v51, %v11619_v63  ;;  %v13762_v7 = vmul.f32 %v13571_v55, %v11599_v33  ;;  %v6045_v16 = vadd.f32 %v13639_v59, %v5945_v49  ;;  %v16794_v51 = vld [vmem:[#allocation43_spill] sm:$0xff] }
 0x548   : > { %16786 = vst [vmem:[#allocation55_spill] sm:$0xff] %v13749_v40  ;;  %v13751_v12 = vld [vmem:[#allocation3 + $0x151] sm:$0xff]  ;;  %7167 = vrot.lane.b32.xlu1 %v7084_v4, %s8336_s12  ;;  %v5444_v35 = vadd.f32 %v5412_v46, %v5344_v53  ;;  %v4846_v17 = vadd.f32 %v4814_v43, %v4746_v37  ;;  %v4914_v31 = vmul.f32 %v16363_v61, %v4878_v18  ;;  %v16798_v53 = vld [vmem:[#allocation39_spill] sm:$0xff] }
 0x549   : > { %16787 = vst [vmem:[#allocation57_spill] sm:$0xff] %v13751_v12  ;;  %16789 = vst [vmem:[#allocation27_spill] sm:$0xff] %v13762_v7  ;;  %v16790_v54 = vld [vmem:[#allocation73_spill] sm:$0xff]  ;;  %v6744_v55 = vadd.f32 %v16794_v51, %v6644_v27  ;;  %v16795_v7 = vld [vmem:[#allocation32_spill] sm:$0xff]  ;;  %v13787_v59 = vmul.f32 %v11635_v3, %v13751_v12  ;;  %v6146_v46 = vadd.f32 %v13646_v34, %v6045_v16 }
 0x54a   : > { %v13766_v39 = vmul.f32 %v16790_v54, %v11602_v60  ;;  %v4978_v6 = vld [vmem:[#allocation3 + $0x114] sm:$0xff]  ;;  %v13779_v1 = vmul.f32 %v16795_v7, %v11605_v29  ;;  %v13783_v54 = vmul.f32 %v11632_v50, %v13749_v40  ;;  %v5544_v49 = vadd.f32 %v5512_v45, %v5444_v35  ;;  %v16813_v40 = vld [vmem:[#allocation52_spill] sm:$0xff] }
 0x54b   : > { %v13769_v22 = vld [vmem:[#allocation3 + $0x152] sm:$0xff]  ;;  %16797 = vst [vmem:[#allocation66_spill] sm:$0xff] %v13787_v59  ;;  %v4946_v37 = vadd.f32 %v4914_v31, %v4846_v17  ;;  %v5014_v18 = vmul.f32 %v16270_v56, %v4978_v6  ;;  %v6844_v51 = vadd.f32 %v16798_v53, %v6744_v55  ;;  %v16802_v59 = vld [vmem:[#allocation48_spill] sm:$0xff]  ;;  %v16805_v31 = vld [vmem:[#allocation87_spill] sm:$0xff] }
 0x54c   : > { %16791 = vst [vmem:[#allocation65_spill] sm:$0xff] %v13769_v22  ;;  %v13771_v11 = vld [vmem:[#allocation3 + $0x153] sm:$0xff]  ;;  %16796 = vst [vmem:[#allocation89_spill] sm:$0xff] %v13783_v54  ;;  %v13794_v43 = vmul.f32 %v11622_v24, %v13769_v22  ;;  %v6246_v34 = vadd.f32 %v16802_v59, %v6146_v46  ;;  %v5644_v45 = vadd.f32 %v5612_v58, %v5544_v49  ;;  %v4609_v49 = vld [vmem:[#allocation3 + $0x108] sm:$0xff] }
 0x54d   : > { %16792 = vst [vmem:[#allocation49_spill] sm:$0xff] %v13771_v11  ;;  %v13773_v4 = vld [vmem:[#allocation3 + $0x154] sm:$0xff]  ;;  %v13798_v27 = vmul.f32 %v11638_v19, %v13771_v11  ;;  %v5046_v16 = vadd.f32 %v5014_v18, %v4946_v37  ;;  %v5215_v53 = vmul.f32 %v16805_v31, %v11492_v2  ;;  %v4677_v37 = vld [vmem:[#allocation3 + $0x109] sm:$0xff] }
 0x54e   : > { %16793 = vst [vmem:[#allocation78_spill] sm:$0xff] %v13773_v4  ;;  %16799 = vst [vmem:[#allocation56_spill] sm:$0xff] %v13794_v43  ;;  %v13802_v12 = vmul.f32 %v13509_v21, %v13773_v4  ;;  %v16803_v6 = vld [vmem:[#allocation38_spill] sm:$0xff]  ;;  %v16806_v43 = vld [vmem:[#allocation79_spill] sm:$0xff]  ;;  %v5744_v54 = vadd.f32 %v5712_v44, %v5644_v45  ;;  %v13828_v45 = vmul.f32 %v16762_v13, %v11577_v47 }
 0x54f   : > { %16800 = vst [vmem:[#allocation68_spill] sm:$0xff] %v13798_v27  ;;  %v5115_v35 = vmul.f32 %v16803_v6, %v11487_v0  ;;  %v16804_v55 = vld [vmem:[#allocation74_spill] sm:$0xff]  ;;  %v5315_v11 = vmul.f32 %v16806_v43, %v11497_v15  ;;  %v16810_v18 = vld [vmem:[#allocation76_spill] sm:$0xff]  ;;  %v16811_v6 = vld [vmem:[#allocation33_spill] sm:$0xff] }
 0x550   : > { %16801 = vst [vmem:[#allocation43_spill] sm:$0xff] %v13802_v12  ;;  %v6944_v17 = vadd.f32 %v16804_v55, %v6844_v51  ;;  %v16807_v27 = vld [vmem:[#allocation86_spill] sm:$0xff]  ;;  %v5615_v55 = vmul.f32 %v16811_v6, %v11557_v41  ;;  %v16812_v31 = vld [vmem:[#allocation37_spill] sm:$0xff]  ;;  %v5844_v44 = vadd.f32 %v13724_v23, %v5744_v54  ;;  %v13841_v54 = vmul.f32 %v13652_v28, %v11616_v9 }
 0x551   : > { %v5415_v22 = vmul.f32 %v16807_v27, %v11508_v52  ;;  %v16808_v4 = vld [vmem:[#allocation22_spill] sm:$0xff]  ;;  %v5147_v59 = vadd.f32 %v5115_v35, %v5046_v16  ;;  %v5715_v43 = vmul.f32 %v16812_v31, %v11573_v62  ;;  %v5815_v27 = vmul.f32 %v16813_v40, %v11561_v14  ;;  %v4777_v16 = vld [vmem:[#allocation3 + $0x10a] sm:$0xff] }
 0x552   : > { %v6346_v12 = vadd.f32 %v16808_v4, %v6246_v34  ;;  %v16809_v58 = vld [vmem:[#allocation50_spill] sm:$0xff]  ;;  %v7044_v51 = vadd.f32 %v16810_v18, %v6944_v17  ;;  %v13833_v17 = vmul.f32 %v16763_v38, %v11584_v36  ;;  %v4713_v18 = vmul.f32 %v16356_v30, %v4677_v37  ;;  %v16814_v40 = vld [vmem:[#allocation81_spill] sm:$0xff] }
 0x553   : > { %v5515_v46 = vmul.f32 %v16809_v58, %v16239_v26  ;;  %v5247_v34 = vadd.f32 %v5215_v53, %v5147_v59  ;;  %v4645_v58 = vmul.f32 %v16355_v42, %v4609_v49  ;;  %v5944_v23 = vadd.f32 %v13728_v20, %v5844_v44  ;;  %v13843_v53 = vld [vmem:[#allocation3 + $0x170] sm:$0xff]  ;;  %v16817_v49 = vld [vmem:[#allocation36_spill] sm:$0xff] }
 0x554   : > { %v6446_v4 = vadd.f32 %v13668_v10, %v6346_v12  ;;  %v7083_v35 = vadd.f32 %v13736_v8, %v7044_v51  ;;  %16815 = vst [vmem:[#allocation39_spill] sm:$0xff] %v13843_v53  ;;  %v4877_v59 = vld [vmem:[#allocation3 + $0x10b] sm:$0xff]  ;;  %v13852_v37 = vmul.f32 %v16817_v49, %v11599_v33  ;;  %v13865_v31 = vld [vmem:[#allocation3 + $0x173] sm:$0xff] }
 0x555   : > { %v5347_v12 = vadd.f32 %v5315_v11, %v5247_v34  ;;  %v16816_v51 = vld [vmem:[#allocation40_spill] sm:$0xff]  ;;  %v4745_v20 = vadd.f32 %v4713_v18, %v4645_v58  ;;  %v4813_v11 = vmul.f32 %v16358_v48, %v4777_v16  ;;  %v6044_v34 = vadd.f32 %v13742_v32, %v5944_v23  ;;  %16823 = vst [vmem:[#allocation87_spill] sm:$0xff] %v13865_v31  ;;  %v13875_v58 = vld [vmem:[#allocation3 + $0x174] sm:$0xff] }
 0x556   : > { %v6546_v10 = vadd.f32 %v16814_v40, %v6446_v4  ;;  %7165 = vrot.lane.b32.xlu0 %v7083_v35, %s8336_s12  ;;  %v13848_v38 = vmul.f32 %v16816_v51, %v11619_v63  ;;  %16818 = vst [vmem:[#allocation48_spill] sm:$0xff] %v13852_v37  ;;  %v13854_v40 = vld [vmem:[#allocation3 + $0x171] sm:$0xff]  ;;  %v13873_v16 = vmul.f32 %v11632_v50, %v13843_v53  ;;  %16826 = vst [vmem:[#allocation86_spill] sm:$0xff] %v13875_v58 }
 0x557   : > { %16819 = vst [vmem:[#allocation38_spill] sm:$0xff] %v13854_v40  ;;  %v16820_v4 = vld [vmem:[#allocation54_spill] sm:$0xff]  ;;  %v5447_v28 = vadd.f32 %v5415_v22, %v5347_v12  ;;  %v16821_v35 = vld [vmem:[#allocation41_spill] sm:$0xff]  ;;  %v4845_v32 = vadd.f32 %v4813_v11, %v4745_v20  ;;  %v4913_v22 = vmul.f32 %v16363_v61, %v4877_v59  ;;  %v6145_v23 = vadd.f32 %v13746_v57, %v6044_v34 }
 0x558   : > { %v6647_v44 = vadd.f32 %v16820_v4, %v6546_v10  ;;  %v13861_v13 = vmul.f32 %v16821_v35, %v11602_v60  ;;  %v13863_v51 = vld [vmem:[#allocation3 + $0x172] sm:$0xff]  ;;  %16825 = vst [vmem:[#allocation79_spill] sm:$0xff] %v13873_v16  ;;  %v13882_v4 = vmul.f32 %v11635_v3, %v13854_v40  ;;  %v13890_v16 = vmul.f32 %v11638_v19, %v13865_v31  ;;  %v16840_v31 = vld [vmem:[#allocation19_spill] sm:$0xff] }
 0x559   : > { %16822 = vst [vmem:[#allocation74_spill] sm:$0xff] %v13863_v51  ;;  %v4977_v49 = vld [vmem:[#allocation3 + $0x10c] sm:$0xff]  ;;  %v16827_v18 = vld [vmem:[#allocation58_spill] sm:$0xff]  ;;  %v5547_v12 = vadd.f32 %v5515_v46, %v5447_v28  ;;  %v4945_v20 = vadd.f32 %v4913_v22, %v4845_v32  ;;  %v6245_v57 = vadd.f32 %v13758_v5, %v6145_v23  ;;  %v13897_v46 = vmul.f32 %v13509_v21, %v13875_v58  ;;  %v16839_v58 = vld [vmem:[#allocation23_spill] sm:$0xff] }
 0x55a   : > { %v16824_v37 = vld [vmem:[#allocation17_spill] sm:$0xff]  ;;  %v6747_v10 = vadd.f32 %v16827_v18, %v6647_v44  ;;  %16828 = vst [vmem:[#allocation22_spill] sm:$0xff] %v13882_v4  ;;  %16830 = vst [vmem:[#allocation76_spill] sm:$0xff] %v13890_v16  ;;  %v5013_v59 = vmul.f32 %v16270_v56, %v4977_v49  ;;  %v16831_v11 = vld [vmem:[#allocation34_spill] sm:$0xff]  ;;  %v5114_v18 = vmul.f32 %v16780_v25, %v11487_v0 }
 0x55b   : > { %v13869_v6 = vmul.f32 %v16824_v37, %v11605_v29  ;;  %v13886_v37 = vmul.f32 %v11622_v24, %v13863_v51  ;;  %v5647_v28 = vadd.f32 %v5615_v55, %v5547_v12  ;;  %16832 = vst [vmem:[#allocation81_spill] sm:$0xff] %v13897_v46  ;;  %v16834_v32 = vld [vmem:[#allocation88_spill] sm:$0xff]  ;;  %v16835_v49 = vld [vmem:[#allocation90_spill] sm:$0xff]  ;;  %v16837_v55 = vld [vmem:[#allocation45_spill] sm:$0xff] }
 0x55c   : > { %v6847_v44 = vadd.f32 %v16831_v11, %v6747_v10  ;;  %v5045_v34 = vadd.f32 %v5013_v59, %v4945_v20  ;;  %v5314_v22 = vmul.f32 %v16834_v32, %v11497_v15  ;;  %v16836_v10 = vld [vmem:[#allocation27_spill] sm:$0xff]  ;;  %v5414_v23 = vmul.f32 %v16837_v55, %v11508_v52  ;;  %v4612_v12 = vld [vmem:[#allocation3 + $0x128] sm:$0xff] }
 0x55d   : > { %16829 = vst [vmem:[#allocation50_spill] sm:$0xff] %v13886_v37  ;;  %v16833_v37 = vld [vmem:[#allocation30_spill] sm:$0xff]  ;;  %v6345_v11 = vadd.f32 %v16836_v10, %v6245_v57  ;;  %v5747_v5 = vadd.f32 %v5715_v43, %v5647_v28  ;;  %v4680_v46 = vld [vmem:[#allocation3 + $0x129] sm:$0xff]  ;;  %v16838_v59 = vld [vmem:[#allocation35_spill] sm:$0xff]  ;;  %v5714_v32 = vmul.f32 %v16840_v31, %v11573_v62 }
 0x55e   : > { %v5214_v4 = vmul.f32 %v16833_v37, %v11492_v2  ;;  %v6947_v16 = vadd.f32 %v16835_v49, %v6847_v44  ;;  %v5146_v20 = vadd.f32 %v5114_v18, %v5045_v34  ;;  %v5514_v25 = vmul.f32 %v16838_v59, %v16239_v26  ;;  %v16841_v51 = vld [vmem:[#allocation51_spill] sm:$0xff]  ;;  %v16842_v28 = vld [vmem:[#allocation60_spill] sm:$0xff]  ;;  %v16843_v34 = vld [vmem:[#allocation73_spill] sm:$0xff] }
 0x55f   : > { %v5614_v37 = vmul.f32 %v16839_v58, %v11557_v41  ;;  %v6445_v57 = vadd.f32 %v13766_v39, %v6345_v11  ;;  %v5847_v43 = vadd.f32 %v5815_v27, %v5747_v5  ;;  %v5814_v49 = vmul.f32 %v16842_v28, %v11561_v14  ;;  %v4780_v10 = vld [vmem:[#allocation3 + $0x12a] sm:$0xff]  ;;  %v16844_v11 = vld [vmem:[#allocation55_spill] sm:$0xff] }
 0x560   : > { %v7047_v44 = vadd.f32 %v16841_v51, %v6947_v16  ;;  %v5246_v55 = vadd.f32 %v5214_v4, %v5146_v20  ;;  %v13921_v18 = vmul.f32 %v16843_v34, %v11577_v47  ;;  %v4648_v59 = vmul.f32 %v16355_v42, %v4612_v12  ;;  %v4880_v16 = vld [vmem:[#allocation3 + $0x12b] sm:$0xff]  ;;  %v16854_v34 = vld [vmem:[#allocation78_spill] sm:$0xff] }
 0x561   : > { %v4716_v58 = vmul.f32 %v16356_v30, %v4680_v46  ;;  %v6545_v51 = vadd.f32 %v13779_v1, %v6445_v57  ;;  %v5947_v39 = vadd.f32 %v13828_v45, %v5847_v43  ;;  %v13930_v27 = vmul.f32 %v16795_v7, %v11584_v36  ;;  %v13936_v20 = vld [vmem:[#allocation3 + $0x168] sm:$0xff]  ;;  %v16846_v1 = vld [vmem:[#allocation89_spill] sm:$0xff] }
 0x562   : > { %v7086_v31 = vadd.f32 %v13736_v8, %v7047_v44  ;;  %v5346_v4 = vadd.f32 %v5314_v22, %v5246_v55  ;;  %v13934_v5 = vmul.f32 %v16844_v11, %v11616_v9  ;;  %16845 = vst [vmem:[#allocation54_spill] sm:$0xff] %v13936_v20  ;;  %v4816_v46 = vmul.f32 %v16358_v48, %v4780_v10  ;;  %v16847_v57 = vld [vmem:[#allocation57_spill] sm:$0xff] }
 0x563   : > { %v4748_v12 = vadd.f32 %v4716_v58, %v4648_v59  ;;  %v6646_v44 = vadd.f32 %v16846_v1, %v6545_v51  ;;  %v6047_v45 = vadd.f32 %v13833_v17, %v5947_v39  ;;  %v13944_v43 = vmul.f32 %v16847_v57, %v11619_v63  ;;  %v16848_v22 = vld [vmem:[#allocation65_spill] sm:$0xff]  ;;  %v16853_v1 = vld [vmem:[#allocation66_spill] sm:$0xff] }
 0x564   : > { %7171 = vrot.lane.b32.xlu1 %v7086_v31, %s8336_s12  ;;  %v13948_v55 = vmul.f32 %v16848_v22, %v11599_v33  ;;  %v13950_v11 = vld [vmem:[#allocation3 + $0x169] sm:$0xff]  ;;  %v5446_v58 = vadd.f32 %v5414_v23, %v5346_v4  ;;  %v4916_v39 = vmul.f32 %v16363_v61, %v4880_v16  ;;  %v13965_v28 = vmul.f32 %v16854_v34, %v11605_v29 }
 0x565   : > { %16849 = vst [vmem:[#allocation58_spill] sm:$0xff] %v13950_v11  ;;  %v4980_v7 = vld [vmem:[#allocation3 + $0x12c] sm:$0xff]  ;;  %v4848_v17 = vadd.f32 %v4816_v46, %v4748_v12  ;;  %v6746_v57 = vadd.f32 %v16853_v1, %v6646_v44  ;;  %v6148_v22 = vadd.f32 %v13841_v54, %v6047_v45  ;;  %v13969_v23 = vmul.f32 %v11632_v50, %v13936_v20 }
 0x566   : > { %v16850_v10 = vld [vmem:[#allocation49_spill] sm:$0xff]  ;;  %v13975_v12 = vmul.f32 %v11635_v3, %v13950_v11  ;;  %v5016_v46 = vmul.f32 %v16270_v56, %v4980_v7  ;;  %v16858_v44 = vld [vmem:[#allocation56_spill] sm:$0xff]  ;;  %v16869_v11 = vld [vmem:[#allocation43_spill] sm:$0xff] }
 0x567   : > { %v13954_v59 = vmul.f32 %v16850_v10, %v11602_v60  ;;  %v13956_v31 = vld [vmem:[#allocation3 + $0x16a] sm:$0xff]  ;;  %16855 = vst [vmem:[#allocation88_spill] sm:$0xff] %v13969_v23  ;;  %v5546_v10 = vadd.f32 %v5514_v25, %v5446_v58  ;;  %v4948_v16 = vadd.f32 %v4916_v39, %v4848_v17  ;;  %v6846_v54 = vadd.f32 %v16858_v44, %v6746_v57 }
 0x568   : > { %16851 = vst [vmem:[#allocation34_spill] sm:$0xff] %v13956_v31  ;;  %v13958_v51 = vld [vmem:[#allocation3 + $0x16b] sm:$0xff]  ;;  %16857 = vst [vmem:[#allocation27_spill] sm:$0xff] %v13975_v12  ;;  %v6248_v45 = vadd.f32 %v13848_v38, %v6148_v22  ;;  %v13982_v1 = vmul.f32 %v11622_v24, %v13956_v31 }
 0x569   : > { %16852 = vst [vmem:[#allocation30_spill] sm:$0xff] %v13958_v51  ;;  %v13971_v4 = vld [vmem:[#allocation3 + $0x16c] sm:$0xff]  ;;  %v13986_v23 = vmul.f32 %v11638_v19, %v13958_v51  ;;  %v5646_v25 = vadd.f32 %v5614_v37, %v5546_v10  ;;  %v5048_v17 = vadd.f32 %v5016_v46, %v4948_v16 }
 0x56a   : > { %16856 = vst [vmem:[#allocation90_spill] sm:$0xff] %v13971_v4  ;;  %16859 = vst [vmem:[#allocation45_spill] sm:$0xff] %v13982_v1  ;;  %v13990_v58 = vmul.f32 %v13509_v21, %v13971_v4  ;;  %v16862_v7 = vld [vmem:[#allocation33_spill] sm:$0xff]  ;;  %v16863_v57 = vld [vmem:[#allocation68_spill] sm:$0xff] }
 0x56b   : > { %16860 = vst [vmem:[#allocation35_spill] sm:$0xff] %v13986_v23  ;;  %v5117_v39 = vmul.f32 %v16862_v7, %v11487_v0  ;;  %v6946_v44 = vadd.f32 %v16863_v57, %v6846_v54  ;;  %v16864_v38 = vld [vmem:[#allocation48_spill] sm:$0xff]  ;;  %v16865_v12 = vld [vmem:[#allocation37_spill] sm:$0xff]  ;;  %v5746_v23 = vadd.f32 %v5714_v32, %v5646_v25  ;;  %v16870_v57 = vld [vmem:[#allocation63_spill] sm:$0xff] }
 0x56c   : > { %16861 = vst [vmem:[#allocation51_spill] sm:$0xff] %v13990_v58  ;;  %v6348_v22 = vadd.f32 %v16864_v38, %v6248_v45  ;;  %v5217_v1 = vmul.f32 %v16865_v12, %v11492_v2  ;;  %v16866_v31 = vld [vmem:[#allocation52_spill] sm:$0xff]  ;;  %v16868_v16 = vld [vmem:[#allocation69_spill] sm:$0xff]  ;;  %v4611_v58 = vld [vmem:[#allocation3 + $0x120] sm:$0xff]  ;;  %v5617_v12 = vmul.f32 %v16870_v57, %v11557_v41 }
 0x56d   : > { %v5317_v51 = vmul.f32 %v16866_v31, %v11497_v15  ;;  %v5149_v37 = vadd.f32 %v5117_v39, %v5048_v17  ;;  %v16867_v10 = vld [vmem:[#allocation12_spill] sm:$0xff]  ;;  %v5517_v46 = vmul.f32 %v16868_v16, %v16239_v26  ;;  %v7046_v54 = vadd.f32 %v16869_v11, %v6946_v44 }
 0x56e   : > { %v5417_v4 = vmul.f32 %v16867_v10, %v11508_v52  ;;  %v4679_v7 = vld [vmem:[#allocation3 + $0x121] sm:$0xff]  ;;  %v6448_v45 = vadd.f32 %v13861_v13, %v6348_v22  ;;  %v5846_v32 = vadd.f32 %v5814_v49, %v5746_v23  ;;  %v14014_v10 = vmul.f32 %v16821_v35, %v11577_v47  ;;  %v16873_v23 = vld [vmem:[#allocation17_spill] sm:$0xff] }
 0x56f   : > { %v16871_v38 = vld [vmem:[#allocation40_spill] sm:$0xff]  ;;  %v5249_v25 = vadd.f32 %v5217_v1, %v5149_v37  ;;  %v7085_v11 = vadd.f32 %v13736_v8, %v7046_v54  ;;  %v4647_v44 = vmul.f32 %v16355_v42, %v4611_v58  ;;  %v4715_v22 = vmul.f32 %v16356_v30, %v4679_v7  ;;  %v16874_v54 = vld [vmem:[#allocation79_spill] sm:$0xff] }
 0x570   : > { %v5717_v31 = vmul.f32 %v16871_v38, %v11573_v62  ;;  %v16872_v17 = vld [vmem:[#allocation36_spill] sm:$0xff]  ;;  %v6548_v13 = vadd.f32 %v13869_v6, %v6448_v45  ;;  %v5946_v38 = vadd.f32 %v13921_v18, %v5846_v32  ;;  %v14023_v1 = vmul.f32 %v16873_v23, %v11584_v36 }
 0x571   : > { %v5817_v39 = vmul.f32 %v16872_v17, %v11561_v14  ;;  %v4779_v16 = vld [vmem:[#allocation3 + $0x122] sm:$0xff]  ;;  %v5349_v49 = vadd.f32 %v5317_v51, %v5249_v25  ;;  %v14027_v37 = vmul.f32 %v13843_v53, %v11616_v9  ;;  %7169 = vrot.lane.b32.xlu0 %v7085_v11, %s8336_s12  ;;  %v14033_v58 = vmul.f32 %v13854_v40, %v11619_v63  ;;  %v16877_v53 = vld [vmem:[#allocation74_spill] sm:$0xff] }
 0x572   : > { %v4879_v35 = vld [vmem:[#allocation3 + $0x123] sm:$0xff]  ;;  %v6649_v6 = vadd.f32 %v16874_v54, %v6548_v13  ;;  %v4747_v51 = vadd.f32 %v4715_v22, %v4647_v44  ;;  %v4815_v45 = vmul.f32 %v16358_v48, %v4779_v16  ;;  %v6046_v32 = vadd.f32 %v13930_v27, %v5946_v38  ;;  %v16880_v17 = vld [vmem:[#allocation22_spill] sm:$0xff]  ;;  %v14056_v16 = vld [vmem:[#allocation3 + $0x18b] sm:$0xff] }
 0x573   : > { %v14035_v7 = vld [vmem:[#allocation3 + $0x188] sm:$0xff]  ;;  %v5449_v25 = vadd.f32 %v5417_v4, %v5349_v49  ;;  %v14043_v23 = vmul.f32 %v16877_v53, %v11599_v33  ;;  %v16878_v11 = vld [vmem:[#allocation87_spill] sm:$0xff]  ;;  %v16881_v44 = vld [vmem:[#allocation86_spill] sm:$0xff]  ;;  %16883 = vst [vmem:[#allocation68_spill] sm:$0xff] %v14056_v16  ;;  %v4915_v38 = vmul.f32 %v16363_v61, %v4879_v35 }
 0x574   : > { %16875 = vst [vmem:[#allocation89_spill] sm:$0xff] %v14035_v7  ;;  %v14037_v18 = vld [vmem:[#allocation3 + $0x189] sm:$0xff]  ;;  %v14047_v13 = vmul.f32 %v16878_v11, %v11602_v60  ;;  %v6749_v57 = vadd.f32 %v16880_v17, %v6649_v6  ;;  %v14054_v22 = vmul.f32 %v16881_v44, %v11605_v29  ;;  %v4847_v4 = vadd.f32 %v4815_v45, %v4747_v51  ;;  %v16886_v6 = vld [vmem:[#allocation50_spill] sm:$0xff] }
 0x575   : > { %16876 = vst [vmem:[#allocation66_spill] sm:$0xff] %v14037_v18  ;;  %v14049_v54 = vld [vmem:[#allocation3 + $0x18a] sm:$0xff]  ;;  %v6147_v49 = vadd.f32 %v13934_v5, %v6046_v32  ;;  %v5549_v11 = vadd.f32 %v5517_v46, %v5449_v25  ;;  %v14064_v53 = vmul.f32 %v11632_v50, %v14035_v7  ;;  %v14068_v17 = vmul.f32 %v11635_v3, %v14037_v18 }
 0x576   : > { %16879 = vst [vmem:[#allocation56_spill] sm:$0xff] %v14049_v54  ;;  %v4979_v40 = vld [vmem:[#allocation3 + $0x124] sm:$0xff]  ;;  %16882 = vst [vmem:[#allocation33_spill] sm:$0xff] %v14054_v22  ;;  %v14058_v27 = vld [vmem:[#allocation3 + $0x18c] sm:$0xff]  ;;  %v6849_v44 = vadd.f32 %v16886_v6, %v6749_v57  ;;  %v14073_v22 = vmul.f32 %v11622_v24, %v14049_v54  ;;  %v4947_v51 = vadd.f32 %v4915_v38, %v4847_v4 }
 0x577   : > { %16884 = vst [vmem:[#allocation48_spill] sm:$0xff] %v14058_v27  ;;  %16885 = vst [vmem:[#allocation37_spill] sm:$0xff] %v14068_v17  ;;  %v5015_v35 = vmul.f32 %v16270_v56, %v4979_v40  ;;  %v6247_v5 = vadd.f32 %v13944_v43, %v6147_v49  ;;  %v5649_v46 = vadd.f32 %v5617_v12, %v5549_v11  ;;  %v16890_v25 = vld [vmem:[#allocation76_spill] sm:$0xff]  ;;  %v16891_v17 = vld [vmem:[#allocation23_spill] sm:$0xff] }
 0x578   : > { %16887 = vst [vmem:[#allocation52_spill] sm:$0xff] %v14073_v22  ;;  %v14079_v45 = vmul.f32 %v11638_v19, %v14056_v16  ;;  %v14083_v32 = vmul.f32 %v13509_v21, %v14058_v27  ;;  %v6949_v57 = vadd.f32 %v16890_v25, %v6849_v44  ;;  %v5116_v22 = vmul.f32 %v16891_v17, %v11487_v0  ;;  %v16892_v4 = vld [vmem:[#allocation19_spill] sm:$0xff]  ;;  %v16893_v11 = vld [vmem:[#allocation60_spill] sm:$0xff]  ;;  %v16894_v49 = vld [vmem:[#allocation73_spill] sm:$0xff] }
 0x579   : > { %v5047_v6 = vadd.f32 %v5015_v35, %v4947_v51  ;;  %v5216_v40 = vmul.f32 %v16892_v4, %v11492_v2  ;;  %v6347_v43 = vadd.f32 %v13948_v55, %v6247_v5  ;;  %v5749_v12 = vadd.f32 %v5717_v31, %v5649_v46  ;;  %v4614_v27 = vld [vmem:[#allocation3 + $0x140] sm:$0xff]  ;;  %v16896_v51 = vld [vmem:[#allocation32_spill] sm:$0xff]  ;;  %v16898_v5 = vld [vmem:[#allocation57_spill] sm:$0xff] }
 0x57a   : > { %16888 = vst [vmem:[#allocation12_spill] sm:$0xff] %v14079_v45  ;;  %16889 = vst [vmem:[#allocation69_spill] sm:$0xff] %v14083_v32  ;;  %v5316_v38 = vmul.f32 %v16893_v11, %v11497_v15  ;;  %v5416_v45 = vmul.f32 %v16894_v49, %v11508_v52  ;;  %v16895_v32 = vld [vmem:[#allocation81_spill] sm:$0xff]  ;;  %v5516_v35 = vmul.f32 %v16896_v51, %v16239_v26  ;;  %v16897_v17 = vld [vmem:[#allocation55_spill] sm:$0xff] }
 0x57b   : > { %v7049_v16 = vadd.f32 %v16895_v32, %v6949_v57  ;;  %v5148_v44 = vadd.f32 %v5116_v22, %v5047_v6  ;;  %v5616_v25 = vmul.f32 %v16897_v17, %v11557_v41  ;;  %v4682_v4 = vld [vmem:[#allocation3 + $0x141] sm:$0xff]  ;;  %v6447_v55 = vadd.f32 %v13954_v59, %v6347_v43  ;;  %v16899_v11 = vld [vmem:[#allocation65_spill] sm:$0xff] }
 0x57c   : > { %v5849_v31 = vadd.f32 %v5817_v39, %v5749_v12  ;;  %v5716_v46 = vmul.f32 %v16898_v5, %v11573_v62  ;;  %v5816_v49 = vmul.f32 %v16899_v11, %v11561_v14  ;;  %v16900_v22 = vld [vmem:[#allocation49_spill] sm:$0xff]  ;;  %v4650_v6 = vmul.f32 %v16355_v42, %v4614_v27  ;;  %v4782_v51 = vld [vmem:[#allocation3 + $0x142] sm:$0xff]  ;;  %v16902_v27 = vld [vmem:[#allocation58_spill] sm:$0xff] }
 0x57d   : > { %v7088_v54 = vadd.f32 %v13736_v8, %v7049_v16  ;;  %v5248_v32 = vadd.f32 %v5216_v40, %v5148_v44  ;;  %v14108_v57 = vmul.f32 %v16900_v22, %v11577_v47  ;;  %v6547_v17 = vadd.f32 %v13965_v28, %v6447_v55  ;;  %v14117_v43 = vld [vmem:[#allocation3 + $0x180] sm:$0xff]  ;;  %v16909_v11 = vld [vmem:[#allocation30_spill] sm:$0xff] }
 0x57e   : > { %v5949_v59 = vadd.f32 %v14014_v10, %v5849_v31  ;;  %v14115_v39 = vmul.f32 %v16854_v34, %v11584_v36  ;;  %16901 = vst [vmem:[#allocation43_spill] sm:$0xff] %v14117_v43  ;;  %v4718_v16 = vmul.f32 %v16356_v30, %v4682_v4  ;;  %v14123_v12 = vmul.f32 %v13936_v20, %v11616_v9  ;;  %v16903_v10 = vld [vmem:[#allocation34_spill] sm:$0xff]  ;;  %v4882_v55 = vld [vmem:[#allocation3 + $0x143] sm:$0xff] }
 0x57f   : > { %7175 = vrot.lane.b32.xlu1 %v7088_v54, %s8336_s12  ;;  %v5348_v40 = vadd.f32 %v5316_v38, %v5248_v32  ;;  %v14127_v28 = vmul.f32 %v16902_v27, %v11619_v63  ;;  %v14131_v44 = vmul.f32 %v16903_v10, %v11599_v33  ;;  %v16905_v31 = vld [vmem:[#allocation88_spill] sm:$0xff]  ;;  %v4818_v20 = vmul.f32 %v16358_v48, %v4782_v51  ;;  %v16910_v10 = vld [vmem:[#allocation90_spill] sm:$0xff] }
 0x580   : > { %v6648_v34 = vadd.f32 %v16905_v31, %v6547_v17  ;;  %v6049_v4 = vadd.f32 %v14023_v1, %v5949_v59  ;;  %v14135_v22 = vld [vmem:[#allocation3 + $0x181] sm:$0xff]  ;;  %v4750_v32 = vadd.f32 %v4718_v16, %v4650_v6  ;;  %v14144_v5 = vmul.f32 %v16909_v11, %v11602_v60 }
 0x581   : > { %16904 = vst [vmem:[#allocation79_spill] sm:$0xff] %v14131_v44  ;;  %16906 = vst [vmem:[#allocation22_spill] sm:$0xff] %v14135_v22  ;;  %v14137_v54 = vld [vmem:[#allocation3 + $0x182] sm:$0xff]  ;;  %v5448_v27 = vadd.f32 %v5416_v45, %v5348_v40  ;;  %v14148_v44 = vmul.f32 %v16910_v10, %v11605_v29  ;;  %v14152_v1 = vmul.f32 %v11632_v50, %v14117_v43 }
 0x582   : > { %16907 = vst [vmem:[#allocation50_spill] sm:$0xff] %v14137_v54  ;;  %v14139_v38 = vld [vmem:[#allocation3 + $0x183] sm:$0xff]  ;;  %v6150_v6 = vadd.f32 %v14027_v37, %v6049_v4  ;;  %v4850_v45 = vadd.f32 %v4818_v20, %v4750_v32  ;;  %v4918_v51 = vmul.f32 %v16363_v61, %v4882_v55  ;;  %v14161_v11 = vmul.f32 %v11635_v3, %v14135_v22 }
 0x583   : > { %16908 = vst [vmem:[#allocation76_spill] sm:$0xff] %v14139_v38  ;;  %16911 = vst [vmem:[#allocation23_spill] sm:$0xff] %v14152_v1  ;;  %v4982_v17 = vld [vmem:[#allocation3 + $0x144] sm:$0xff]  ;;  %v5548_v40 = vadd.f32 %v5516_v35, %v5448_v27  ;;  %v14165_v10 = vmul.f32 %v11622_v24, %v14137_v54  ;;  %v14169_v1 = vmul.f32 %v11638_v19, %v14139_v38 }
 0x584   : > { %v16912_v59 = vld [vmem:[#allocation27_spill] sm:$0xff]  ;;  %16914 = vst [vmem:[#allocation60_spill] sm:$0xff] %v14161_v11  ;;  %v6250_v4 = vadd.f32 %v14033_v58, %v6150_v6  ;;  %v4950_v20 = vadd.f32 %v4918_v51, %v4850_v45  ;;  %v5018_v55 = vmul.f32 %v16270_v56, %v4982_v17  ;;  %v16922_v58 = vld [vmem:[#allocation36_spill] sm:$0xff]  ;;  %v4613_v17 = vld [vmem:[#allocation3 + $0x138] sm:$0xff] }
 0x585   : > { %v6748_v31 = vadd.f32 %v16912_v59, %v6648_v34  ;;  %v14156_v16 = vld [vmem:[#allocation3 + $0x184] sm:$0xff]  ;;  %16915 = vst [vmem:[#allocation73_spill] sm:$0xff] %v14165_v10  ;;  %16916 = vst [vmem:[#allocation81_spill] sm:$0xff] %v14169_v1  ;;  %v16917_v34 = vld [vmem:[#allocation45_spill] sm:$0xff]  ;;  %v5648_v35 = vadd.f32 %v5616_v25, %v5548_v40  ;;  %v5319_v6 = vmul.f32 %v16922_v58, %v11497_v15 }
 0x586   : > { %16913 = vst [vmem:[#allocation19_spill] sm:$0xff] %v14156_v16  ;;  %v14176_v27 = vmul.f32 %v13509_v21, %v14156_v16  ;;  %v16919_v32 = vld [vmem:[#allocation63_spill] sm:$0xff]  ;;  %v16920_v10 = vld [vmem:[#allocation40_spill] sm:$0xff]  ;;  %v16923_v45 = vld [vmem:[#allocation41_spill] sm:$0xff] }
 0x587   : > { %v6848_v37 = vadd.f32 %v16917_v34, %v6748_v31  ;;  %v5119_v59 = vmul.f32 %v16919_v32, %v11487_v0  ;;  %v5219_v11 = vmul.f32 %v16920_v10, %v11492_v2  ;;  %v16921_v38 = vld [vmem:[#allocation35_spill] sm:$0xff]  ;;  %v6350_v31 = vadd.f32 %v14043_v23, %v6250_v4  ;;  %v16924_v40 = vld [vmem:[#allocation17_spill] sm:$0xff]  ;;  %v16927_v4 = vld [vmem:[#allocation38_spill] sm:$0xff] }
 0x588   : > { %16918 = vst [vmem:[#allocation32_spill] sm:$0xff] %v14176_v27  ;;  %v5050_v34 = vadd.f32 %v5018_v55, %v4950_v20  ;;  %v5748_v25 = vadd.f32 %v5716_v46, %v5648_v35  ;;  %v5419_v51 = vmul.f32 %v16923_v45, %v11508_v52  ;;  %v5519_v27 = vmul.f32 %v16924_v40, %v16239_v26  ;;  %v16925_v32 = vld [vmem:[#allocation39_spill] sm:$0xff]  ;;  %v16928_v46 = vld [vmem:[#allocation74_spill] sm:$0xff] }
 0x589   : > { %v6948_v1 = vadd.f32 %v16921_v38, %v6848_v37  ;;  %v5619_v16 = vmul.f32 %v16925_v32, %v11557_v41  ;;  %v4681_v10 = vld [vmem:[#allocation3 + $0x139] sm:$0xff]  ;;  %v6450_v23 = vadd.f32 %v14047_v13, %v6350_v31  ;;  %v5719_v20 = vmul.f32 %v16927_v4, %v11573_v62 }
 0x58a   : > { %v16926_v54 = vld [vmem:[#allocation51_spill] sm:$0xff]  ;;  %v5151_v37 = vadd.f32 %v5119_v59, %v5050_v34  ;;  %v5848_v55 = vadd.f32 %v5816_v49, %v5748_v25  ;;  %v14198_v35 = vmul.f32 %v16928_v46, %v11561_v14  ;;  %v4649_v40 = vmul.f32 %v16355_v42, %v4613_v17  ;;  %v16931_v34 = vld [vmem:[#allocation86_spill] sm:$0xff] }
 0x58b   : > { %v7048_v38 = vadd.f32 %v16926_v54, %v6948_v1  ;;  %v16929_v58 = vld [vmem:[#allocation87_spill] sm:$0xff]  ;;  %v16930_v1 = vld [vmem:[#allocation33_spill] sm:$0xff]  ;;  %v4717_v31 = vmul.f32 %v16356_v30, %v4681_v10  ;;  %v14211_v25 = vmul.f32 %v16931_v34, %v11584_v36  ;;  %v14219_v17 = vmul.f32 %v14037_v18, %v11619_v63  ;;  %v16935_v18 = vld [vmem:[#allocation56_spill] sm:$0xff] }
 0x58c   : > { %v14202_v45 = vmul.f32 %v16929_v58, %v11577_v47  ;;  %v4781_v32 = vld [vmem:[#allocation3 + $0x13a] sm:$0xff]  ;;  %v6550_v13 = vadd.f32 %v16930_v1, %v6450_v23  ;;  %v5251_v59 = vadd.f32 %v5219_v11, %v5151_v37  ;;  %v5948_v49 = vadd.f32 %v14108_v57, %v5848_v55  ;;  %v14227_v37 = vld [vmem:[#allocation3 + $0x1a2] sm:$0xff] }
 0x58d   : > { %v7087_v54 = vadd.f32 %v13736_v8, %v7048_v38  ;;  %v14215_v58 = vmul.f32 %v14035_v7, %v11616_v9  ;;  %v4881_v38 = vld [vmem:[#allocation3 + $0x13b] sm:$0xff]  ;;  %16934 = vst [vmem:[#allocation45_spill] sm:$0xff] %v14227_v37  ;;  %v4749_v55 = vadd.f32 %v4717_v31, %v4649_v40  ;;  %v4817_v1 = vmul.f32 %v16358_v48, %v4781_v32  ;;  %v14244_v31 = vld [vmem:[#allocation3 + $0x1a3] sm:$0xff] }
 0x58e   : > { %v6651_v11 = vadd.f32 %v14064_v53, %v6550_v13  ;;  %v5351_v10 = vadd.f32 %v5319_v6, %v5251_v59  ;;  %v14223_v23 = vld [vmem:[#allocation3 + $0x1a0] sm:$0xff]  ;;  %v6048_v7 = vadd.f32 %v14115_v39, %v5948_v49  ;;  %v14233_v34 = vmul.f32 %v16935_v18, %v11599_v33  ;;  %v16937_v53 = vld [vmem:[#allocation48_spill] sm:$0xff]  ;;  %v16939_v59 = vld [vmem:[#allocation37_spill] sm:$0xff]  ;;  %16940 = vst [vmem:[#allocation40_spill] sm:$0xff] %v14244_v31 }
 0x58f   : > { %7173 = vrot.lane.b32.xlu0 %v7087_v54, %s8336_s12  ;;  %16932 = vst [vmem:[#allocation88_spill] sm:$0xff] %v14223_v23  ;;  %v14225_v57 = vld [vmem:[#allocation3 + $0x1a1] sm:$0xff]  ;;  %v14241_v6 = vmul.f32 %v16937_v53, %v11605_v29  ;;  %v4849_v39 = vadd.f32 %v4817_v1, %v4749_v55  ;;  %v4917_v49 = vmul.f32 %v16363_v61, %v4881_v38 }
 0x590   : > { %16933 = vst [vmem:[#allocation27_spill] sm:$0xff] %v14225_v57  ;;  %v16936_v54 = vld [vmem:[#allocation68_spill] sm:$0xff]  ;;  %v4981_v13 = vld [vmem:[#allocation3 + $0x13c] sm:$0xff]  ;;  %v6751_v4 = vadd.f32 %v16939_v59, %v6651_v11  ;;  %v5451_v40 = vadd.f32 %v5419_v51, %v5351_v10  ;;  %v6149_v18 = vadd.f32 %v14123_v12, %v6048_v7  ;;  %v14260_v51 = vmul.f32 %v11622_v24, %v14227_v37 }
 0x591   : > { %v14237_v46 = vmul.f32 %v16936_v54, %v11602_v60  ;;  %16938 = vst [vmem:[#allocation63_spill] sm:$0xff] %v14241_v6  ;;  %v14246_v32 = vld [vmem:[#allocation3 + $0x1a4] sm:$0xff]  ;;  %v14252_v54 = vmul.f32 %v11632_v50, %v14223_v23  ;;  %v14256_v6 = vmul.f32 %v11635_v3, %v14225_v57  ;;  %v4949_v55 = vadd.f32 %v4917_v49, %v4849_v39 }
 0x592   : > { %16941 = vst [vmem:[#allocation35_spill] sm:$0xff] %v14246_v32  ;;  %16944 = vst [vmem:[#allocation17_spill] sm:$0xff] %v14260_v51  ;;  %v16945_v11 = vld [vmem:[#allocation52_spill] sm:$0xff]  ;;  %v5551_v59 = vadd.f32 %v5519_v27, %v5451_v40  ;;  %v5017_v38 = vmul.f32 %v16270_v56, %v4981_v13  ;;  %v6249_v7 = vadd.f32 %v14127_v28, %v6149_v18  ;;  %v16950_v40 = vld [vmem:[#allocation57_spill] sm:$0xff] }
 0x593   : > { %16942 = vst [vmem:[#allocation36_spill] sm:$0xff] %v14252_v54  ;;  %16943 = vst [vmem:[#allocation41_spill] sm:$0xff] %v14256_v6  ;;  %v6851_v10 = vadd.f32 %v16945_v11, %v6751_v4  ;;  %v14267_v12 = vmul.f32 %v11638_v19, %v14244_v31  ;;  %v14271_v1 = vmul.f32 %v13509_v21, %v14246_v32  ;;  %v16948_v6 = vld [vmem:[#allocation55_spill] sm:$0xff]  ;;  %v16949_v51 = vld [vmem:[#allocation12_spill] sm:$0xff] }
 0x594   : > { %v5118_v54 = vmul.f32 %v16948_v6, %v11487_v0  ;;  %v5651_v4 = vadd.f32 %v5619_v16, %v5551_v59  ;;  %v5049_v27 = vadd.f32 %v5017_v38, %v4949_v55  ;;  %v5218_v13 = vmul.f32 %v16950_v40, %v11492_v2  ;;  %v16951_v39 = vld [vmem:[#allocation79_spill] sm:$0xff]  ;;  %v16952_v28 = vld [vmem:[#allocation65_spill] sm:$0xff]  ;;  %v16954_v21 = vld [vmem:[#allocation78_spill] sm:$0xff] }
 0x595   : > { %16946 = vst [vmem:[#allocation51_spill] sm:$0xff] %v14267_v12  ;;  %16947 = vst [vmem:[#allocation33_spill] sm:$0xff] %v14271_v1  ;;  %v6951_v37 = vadd.f32 %v16949_v51, %v6851_v10  ;;  %v6349_v18 = vadd.f32 %v16951_v39, %v6249_v7  ;;  %v5318_v49 = vmul.f32 %v16952_v28, %v11497_v15  ;;  %v16953_v11 = vld [vmem:[#allocation49_spill] sm:$0xff]  ;;  %v4616_v32 = vld [vmem:[#allocation3 + $0x158] sm:$0xff] }
 0x596   : > { %v5418_v12 = vmul.f32 %v16953_v11, %v11508_v52  ;;  %v5518_v1 = vmul.f32 %v16954_v21, %v16239_v26  ;;  %v16955_v6 = vld [vmem:[#allocation69_spill] sm:$0xff]  ;;  %v5751_v51 = vadd.f32 %v5719_v20, %v5651_v4  ;;  %v5150_v16 = vadd.f32 %v5118_v54, %v5049_v27  ;;  %v16956_v10 = vld [vmem:[#allocation54_spill] sm:$0xff] }
 0x597   : > { %v7051_v31 = vadd.f32 %v16955_v6, %v6951_v37  ;;  %v5618_v59 = vmul.f32 %v16956_v10, %v11557_v41  ;;  %v4684_v55 = vld [vmem:[#allocation3 + $0x159] sm:$0xff]  ;;  %v6449_v38 = vadd.f32 %v14144_v5, %v6349_v18  ;;  %v4652_v4 = vmul.f32 %v16355_v42, %v4616_v32 }
 0x598   : > { %v16957_v7 = vld [vmem:[#allocation58_spill] sm:$0xff]  ;;  %v5851_v37 = vadd.f32 %v14198_v35, %v5751_v51  ;;  %v5250_v54 = vadd.f32 %v5218_v13, %v5150_v16 }
 0x599   : > { %v5718_v40 = vmul.f32 %v16957_v7, %v11573_v62  ;;  %v16958_v39 = vld [vmem:[#allocation34_spill] sm:$0xff]  ;;  %v7090_v20 = vadd.f32 %v13736_v8, %v7051_v31  ;;  %v6549_v5 = vadd.f32 %v14148_v44, %v6449_v38  ;;  %v4720_v31 = vmul.f32 %v16356_v30, %v4684_v55  ;;  %v16966_v55 = vld [vmem:[#allocation76_spill] sm:$0xff] }
 0x59a   : > { %v14293_v28 = vmul.f32 %v16958_v39, %v11561_v14  ;;  %v16959_v11 = vld [vmem:[#allocation30_spill] sm:$0xff]  ;;  %v14309_v39 = vmul.f32 %v14117_v43, %v11616_v9  ;;  %v5951_v35 = vadd.f32 %v14202_v45, %v5851_v37  ;;  %v5350_v32 = vadd.f32 %v5318_v49, %v5250_v54  ;;  %v16965_v43 = vld [vmem:[#allocation23_spill] sm:$0xff] }
 0x59b   : > { %v14297_v21 = vmul.f32 %v16959_v11, %v11577_v47  ;;  %v4784_v27 = vld [vmem:[#allocation3 + $0x15a] sm:$0xff]  ;;  %7179 = vrot.lane.b32.xlu1 %v7090_v20, %s8336_s12  ;;  %v14318_v44 = vmul.f32 %v14135_v22, %v11619_v63  ;;  %v14329_v7 = vmul.f32 %v16966_v55, %v11602_v60  ;;  %v4752_v49 = vadd.f32 %v4720_v31, %v4652_v4 }
 0x59c   : > { %v16960_v18 = vld [vmem:[#allocation90_spill] sm:$0xff]  ;;  %v4820_v37 = vmul.f32 %v16358_v48, %v4784_v27  ;;  %v6051_v54 = vadd.f32 %v14211_v25, %v5951_v35  ;;  %v16970_v22 = vld [vmem:[#allocation19_spill] sm:$0xff] }
 0x59d   : > { %v14305_v6 = vmul.f32 %v16960_v18, %v11584_v36  ;;  %v14311_v11 = vld [vmem:[#allocation3 + $0x198] sm:$0xff]  ;;  %v6650_v18 = vadd.f32 %v16965_v43, %v6549_v5  ;;  %16967 = vst [vmem:[#allocation12_spill] sm:$0xff] %v14329_v7  ;;  %v16973_v7 = vld [vmem:[#allocation60_spill] sm:$0xff] }
 0x59e   : > { %16961 = vst [vmem:[#allocation37_spill] sm:$0xff] %v14311_v11  ;;  %v16962_v13 = vld [vmem:[#allocation50_spill] sm:$0xff]  ;;  %v14343_v43 = vmul.f32 %v11632_v50, %v14311_v11  ;;  %v4852_v27 = vadd.f32 %v4820_v37, %v4752_v49 }
 0x59f   : > { %v14322_v51 = vmul.f32 %v16962_v13, %v11599_v33  ;;  %v14324_v16 = vld [vmem:[#allocation3 + $0x199] sm:$0xff]  ;;  %v5450_v13 = vadd.f32 %v5418_v12, %v5350_v32  ;;  %v6750_v10 = vadd.f32 %v16973_v7, %v6650_v18  ;;  %v6152_v12 = vadd.f32 %v14215_v58, %v6051_v54  ;;  %v14366_v18 = vld [vmem:[%s14997_s8 + $0x18] ss:$0 sm:$0xff] }
 0x5a0   : > { %16964 = vst [vmem:[#allocation55_spill] sm:$0xff] %v14324_v16  ;;  %v4884_v38 = vld [vmem:[#allocation3 + $0x15b] sm:$0xff]  ;;  %16971 = vst [vmem:[#allocation65_spill] sm:$0xff] %v14343_v43  ;;  %v14350_v4 = vmul.f32 %v11635_v3, %v14324_v16  ;;  %v16977_v43 = vld [vmem:[#allocation73_spill] sm:$0xff] }
 0x5a1   : > { %16963 = vst [vmem:[#allocation52_spill] sm:$0xff] %v14322_v51  ;;  %v14331_v20 = vld [vmem:[#allocation3 + $0x19a] sm:$0xff]  ;;  %v14339_v51 = vmul.f32 %v16970_v22, %v11605_v29  ;;  %v4920_v25 = vmul.f32 %v16363_v61, %v4884_v38  ;;  %v5550_v31 = vadd.f32 %v5518_v1, %v5450_v13  ;;  %v6850_v7 = vadd.f32 %v16977_v43, %v6750_v10  ;;  %v14373_v13 = vpop.permute.xlu1 %7133 }
 0x5a2   : > { %16968 = vst [vmem:[#allocation57_spill] sm:$0xff] %v14331_v20  ;;  %v14333_v45 = vld [vmem:[#allocation3 + $0x19b] sm:$0xff]  ;;  %16974 = vst [vmem:[#allocation78_spill] sm:$0xff] %v14350_v4  ;;  %v14356_v35 = vmul.f32 %v11622_v24, %v14331_v20  ;;  %v6252_v49 = vadd.f32 %v14219_v17, %v6152_v12  ;;  %v14390_v20 = vpop.permute.xlu0 %7129 }
 0x5a3   : > { %16969 = vst [vmem:[#allocation79_spill] sm:$0xff] %v14333_v45  ;;  %v14345_v5 = vld [vmem:[#allocation3 + $0x19c] sm:$0xff]  ;;  %v14360_v32 = vmul.f32 %v11638_v19, %v14333_v45  ;;  %16978 = vst [vmem:[#allocation60_spill] sm:$0xff] %v14366_v18  ;;  %v4952_v58 = vadd.f32 %v4920_v25, %v4852_v27  ;;  %v5650_v37 = vadd.f32 %v5618_v59, %v5550_v31  ;;  %v4615_v25 = vld [vmem:[#allocation3 + $0x150] sm:$0xff] }
 0x5a4   : > { %16972 = vst [vmem:[#allocation49_spill] sm:$0xff] %v14345_v5  ;;  %v4984_v55 = vld [vmem:[#allocation3 + $0x15c] sm:$0xff]  ;;  %16975 = vst [vmem:[#allocation69_spill] sm:$0xff] %v14356_v35  ;;  %v14370_v38 = vmul.f32 %v14366_v18, %v14345_v5  ;;  %v16983_v35 = vld [vmem:[#allocation81_spill] sm:$0xff] }
 0x5a5   : > { %16976 = vst [vmem:[#allocation23_spill] sm:$0xff] %v14360_v32  ;;  %v5020_v1 = vmul.f32 %v16270_v56, %v4984_v55  ;;  %16980 = vst [vmem:[#allocation91_spill] sm:$0xff] %v14373_v13  ;;  %v16981_v54 = vld [vmem:[#allocation39_spill] sm:$0xff]  ;;  %v16982_v43 = vld [vmem:[#allocation38_spill] sm:$0xff]  ;;  %v6950_v4 = vadd.f32 %v16983_v35, %v6850_v7  ;;  %v6352_v13 = vadd.f32 %v14233_v34, %v6252_v49 }
 0x5a6   : > { %16979 = vst [vmem:[#allocation73_spill] sm:$0xff] %v14370_v38  ;;  %v5121_v10 = vmul.f32 %v16981_v54, %v11487_v0  ;;  %v5221_v32 = vmul.f32 %v16982_v43, %v11492_v2  ;;  %v16984_v5 = vld [vmem:[#allocation74_spill] sm:$0xff]  ;;  %v16985_v27 = vld [vmem:[#allocation87_spill] sm:$0xff]  ;;  %v5750_v17 = vadd.f32 %v5718_v40, %v5650_v37  ;;  %v16987_v31 = vld [vmem:[#allocation89_spill] sm:$0xff] }
 0x5a7   : > { %v5052_v45 = vadd.f32 %v5020_v1, %v4952_v58  ;;  %v5321_v38 = vmul.f32 %v16984_v5, %v11497_v15  ;;  %v5421_v55 = vmul.f32 %v16985_v27, %v11508_v52  ;;  %v16986_v59 = vld [vmem:[#allocation86_spill] sm:$0xff]  ;;  %v5621_v54 = vmul.f32 %v16987_v31, %v11557_v41  ;;  %16988 = vst [vmem:[#allocation39_spill] sm:$0xff] %v14390_v20  ;;  %v16989_v35 = vld [vmem:[#allocation32_spill] sm:$0xff]  ;;  %v14412_v20 = vpop.permute.xlu1 %7135 }
 0x5a8   : > { %v5521_v12 = vmul.f32 %v16986_v59, %v16239_v26  ;;  %v4683_v43 = vld [vmem:[#allocation3 + $0x151] sm:$0xff]  ;;  %v7050_v7 = vadd.f32 %v16989_v35, %v6950_v4  ;;  %v16991_v27 = vld [vmem:[#allocation56_spill] sm:$0xff]  ;;  %v6452_v34 = vadd.f32 %v14237_v46, %v6352_v13  ;;  %v5850_v40 = vadd.f32 %v14293_v28, %v5750_v17  ;;  %16993 = vst [vmem:[#allocation38_spill] sm:$0xff] %v14412_v20  ;;  %v16994_v46 = vld [vmem:[#allocation63_spill] sm:$0xff] }
 0x5a9   : > { %v5153_v58 = vadd.f32 %v5121_v10, %v5052_v45  ;;  %v16990_v5 = vld [vmem:[#allocation66_spill] sm:$0xff]  ;;  %v14397_v16 = vmul.f32 %v16991_v27, %v11561_v14  ;;  %v16992_v49 = vld [vmem:[#allocation68_spill] sm:$0xff]  ;;  %v4651_v59 = vmul.f32 %v16355_v42, %v4615_v25  ;;  %v14409_v10 = vmul.f32 %v16937_v53, %v11584_v36 }
 0x5aa   : > { %v5721_v1 = vmul.f32 %v16990_v5, %v11573_v62  ;;  %v14403_v37 = vmul.f32 %v16992_v49, %v11577_v47  ;;  %v4783_v31 = vld [vmem:[#allocation3 + $0x152] sm:$0xff]  ;;  %v7089_v45 = vadd.f32 %v13736_v8, %v7050_v7  ;;  %v4719_v35 = vmul.f32 %v16356_v30, %v4683_v43 }
 0x5ab   : > { %v5253_v4 = vadd.f32 %v5221_v32, %v5153_v58  ;;  %v6552_v28 = vadd.f32 %v16994_v46, %v6452_v34  ;;  %v5950_v13 = vadd.f32 %v14297_v21, %v5850_v40  ;;  %v14418_v17 = vmul.f32 %v14223_v23, %v11616_v9  ;;  %v4883_v32 = vld [vmem:[#allocation3 + $0x153] sm:$0xff]  ;;  %v16996_v21 = vld [vmem:[#allocation36_spill] sm:$0xff] }
 0x5ac   : > { %v14422_v25 = vmul.f32 %v14225_v57, %v11619_v63  ;;  %7177 = vrot.lane.b32.xlu0 %v7089_v45, %s8336_s12  ;;  %v16995_v43 = vld [vmem:[#allocation45_spill] sm:$0xff]  ;;  %v4751_v20 = vadd.f32 %v4719_v35, %v4651_v59  ;;  %v4819_v34 = vmul.f32 %v16358_v48, %v4783_v31  ;;  %v16997_v23 = vld [vmem:[#allocation40_spill] sm:$0xff]  ;;  %v16999_v57 = vld [vmem:[#allocation35_spill] sm:$0xff] }
 0x5ad   : > { %v5353_v7 = vadd.f32 %v5321_v38, %v5253_v4  ;;  %v14427_v58 = vmul.f32 %v16995_v43, %v11599_v33  ;;  %v6653_v40 = vadd.f32 %v16996_v21, %v6552_v28  ;;  %v6050_v46 = vadd.f32 %v14305_v6, %v5950_v13  ;;  %v14440_v38 = vld [vmem:[#allocation3 + $0x1b8] sm:$0xff]  ;;  %v14442_v4 = vpop.permute.xlu0 %7131  ;;  %v17006_v21 = vld [vmem:[#allocation41_spill] sm:$0xff] }
 0x5ae   : > { %v14434_v53 = vmul.f32 %v16997_v23, %v11602_v60  ;;  %v14438_v49 = vmul.f32 %v16999_v57, %v11605_v29  ;;  %17001 = vst [vmem:[#allocation87_spill] sm:$0xff] %v14440_v38  ;;  %v4983_v45 = vld [vmem:[#allocation3 + $0x154] sm:$0xff]  ;;  %17002 = vst [vmem:[#allocation86_spill] sm:$0xff] %v14442_v4  ;;  %v14446_v31 = vmul.f32 %v11632_v50, %v14440_v38 }
 0x5af   : > { %v5453_v59 = vadd.f32 %v5421_v55, %v5353_v7  ;;  %v14448_v35 = vld [vmem:[#allocation3 + $0x1b9] sm:$0xff]  ;;  %v4851_v28 = vadd.f32 %v4819_v34, %v4751_v20  ;;  %v4919_v13 = vmul.f32 %v16363_v61, %v4883_v32  ;;  %v6753_v57 = vadd.f32 %v17006_v21, %v6653_v40  ;;  %v14472_v40 = vpop.permute.xlu1 %7139  ;;  %v17025_v38 = vld [vmem:[#allocation33_spill] sm:$0xff] }
 0x5b0   : > { %16998 = vst [vmem:[#allocation81_spill] sm:$0xff] %v14434_v53  ;;  %17000 = vst [vmem:[#allocation74_spill] sm:$0xff] %v14438_v49  ;;  %v14450_v6 = vld [vmem:[#allocation3 + $0x1ba] sm:$0xff]  ;;  %v6151_v49 = vadd.f32 %v14309_v39, %v6050_v46  ;;  %v14457_v23 = vmul.f32 %v11635_v3, %v14448_v35  ;;  %v5019_v39 = vmul.f32 %v16270_v56, %v4983_v45  ;;  %v17013_v46 = vld [vmem:[#allocation17_spill] sm:$0xff] }
 0x5b1   : > { %17003 = vst [vmem:[#allocation89_spill] sm:$0xff] %v14446_v31  ;;  %17004 = vst [vmem:[#allocation32_spill] sm:$0xff] %v14448_v35  ;;  %v14461_v55 = vmul.f32 %v11622_v24, %v14450_v6  ;;  %v14463_v7 = vld [vmem:[#allocation3 + $0x1bb] sm:$0xff]  ;;  %v5553_v4 = vadd.f32 %v5521_v12, %v5453_v59  ;;  %v4951_v34 = vadd.f32 %v4919_v13, %v4851_v28  ;;  %v4618_v35 = vld [vmem:[#allocation3 + $0x170] sm:$0xff] }
 0x5b2   : > { %17005 = vst [vmem:[#allocation66_spill] sm:$0xff] %v14450_v6  ;;  %17007 = vst [vmem:[#allocation56_spill] sm:$0xff] %v14457_v23  ;;  %v14467_v20 = vmul.f32 %v11638_v19, %v14463_v7  ;;  %v14469_v32 = vld [vmem:[#allocation3 + $0x1bc] sm:$0xff]  ;;  %v6853_v21 = vadd.f32 %v17013_v46, %v6753_v57  ;;  %v6251_v23 = vadd.f32 %v14318_v44, %v6151_v49  ;;  %v17020_v44 = vld [vmem:[#allocation52_spill] sm:$0xff] }
 0x5b3   : > { %17008 = vst [vmem:[#allocation63_spill] sm:$0xff] %v14461_v55  ;;  %17009 = vst [vmem:[#allocation45_spill] sm:$0xff] %v14463_v7  ;;  %v14478_v55 = vmul.f32 %v14366_v18, %v14469_v32  ;;  %v17015_v12 = vld [vmem:[#allocation54_spill] sm:$0xff]  ;;  %v14482_v7 = vpop.permute.xlu0 %7137  ;;  %v5051_v31 = vadd.f32 %v5019_v39, %v4951_v34  ;;  %v17019_v57 = vld [vmem:[#allocation51_spill] sm:$0xff] }
 0x5b4   : > { %17010 = vst [vmem:[#allocation36_spill] sm:$0xff] %v14467_v20  ;;  %17011 = vst [vmem:[#allocation41_spill] sm:$0xff] %v14469_v32  ;;  %v5120_v59 = vmul.f32 %v17015_v12, %v11487_v0  ;;  %v5653_v20 = vadd.f32 %v5621_v54, %v5553_v4  ;;  %v17017_v28 = vld [vmem:[#allocation58_spill] sm:$0xff]  ;;  %v6953_v46 = vadd.f32 %v17019_v57, %v6853_v21  ;;  %v17023_v34 = vld [vmem:[#allocation43_spill] sm:$0xff] }
 0x5b5   : > { %17012 = vst [vmem:[#allocation92_spill] sm:$0xff] %v14472_v40  ;;  %17014 = vst [vmem:[#allocation17_spill] sm:$0xff] %v14478_v55  ;;  %v5220_v45 = vmul.f32 %v17017_v28, %v11492_v2  ;;  %v17018_v13 = vld [vmem:[#allocation34_spill] sm:$0xff]  ;;  %v6351_v49 = vadd.f32 %v17020_v44, %v6251_v23  ;;  %v5620_v39 = vmul.f32 %v17023_v34, %v11557_v41  ;;  %v17026_v57 = vld [vmem:[#allocation12_spill] sm:$0xff] }
 0x5b6   : > { %17016 = vst [vmem:[#allocation54_spill] sm:$0xff] %v14482_v7  ;;  %v5320_v40 = vmul.f32 %v17018_v13, %v11497_v15  ;;  %v17021_v32 = vld [vmem:[#allocation30_spill] sm:$0xff]  ;;  %v5753_v54 = vadd.f32 %v5721_v1, %v5653_v20  ;;  %v5152_v4 = vadd.f32 %v5120_v59, %v5051_v31  ;;  %v7053_v21 = vadd.f32 %v17025_v38, %v6953_v46 }
 0x5b7   : > { %v5420_v55 = vmul.f32 %v17021_v32, %v11508_v52  ;;  %v17022_v6 = vld [vmem:[#allocation90_spill] sm:$0xff]  ;;  %v6451_v23 = vadd.f32 %v17026_v57, %v6351_v49  ;;  %v4654_v59 = vmul.f32 %v16355_v42, %v4618_v35  ;;  %v14517_v49 = vmul.f32 %v16970_v22, %v11584_v36 }
 0x5b8   : > { %v5520_v12 = vmul.f32 %v17022_v6, %v16239_v26  ;;  %v4686_v7 = vld [vmem:[#allocation3 + $0x171] sm:$0xff]  ;;  %v17028_v6 = vld [vmem:[#allocation76_spill] sm:$0xff]  ;;  %v5853_v31 = vadd.f32 %v14397_v16, %v5753_v54  ;;  %v5252_v20 = vadd.f32 %v5220_v45, %v5152_v4  ;;  %v7092_v38 = vadd.f32 %v13736_v8, %v7053_v21  ;;  %v14523_v45 = vpop.permute.xlu0 %7141  ;;  %v17032_v21 = vld [vmem:[#allocation55_spill] sm:$0xff] }
 0x5b9   : > { %v17024_v28 = vld [vmem:[#allocation22_spill] sm:$0xff]  ;;  %v14506_v53 = vmul.f32 %v17028_v6, %v11577_v47  ;;  %v4722_v34 = vmul.f32 %v16356_v30, %v4686_v7  ;;  %v6551_v46 = vadd.f32 %v14339_v51, %v6451_v23  ;;  %v14521_v57 = vmul.f32 %v14311_v11, %v11616_v9  ;;  %17030 = vst [vmem:[#allocation34_spill] sm:$0xff] %v14523_v45  ;;  %v17031_v8 = vld [vmem:[#allocation65_spill] sm:$0xff]  ;;  %v17034_v45 = vld [vmem:[#allocation79_spill] sm:$0xff] }
 0x5ba   : > { %v5720_v13 = vmul.f32 %v17024_v28, %v11573_v62  ;;  %v17027_v44 = vld [vmem:[#allocation50_spill] sm:$0xff]  ;;  %v14511_v28 = vpop.permute.xlu1 %7143  ;;  %v5953_v35 = vadd.f32 %v14403_v37, %v5853_v31  ;;  %v5352_v7 = vadd.f32 %v5320_v40, %v5252_v20  ;;  %7183 = vrot.lane.b32.xlu1 %v7092_v38, %s8336_s12  ;;  %v14531_v23 = vmul.f32 %v17032_v21, %v11619_v63  ;;  %v14542_v31 = vld [vmem:[#allocation3 + $0x1b0] sm:$0xff]  ;;  %v5087_v38 = vld [vmem:[#allocation3 + $0x188] sm:$0xff] }
 0x5bb   : > { %v14502_v32 = vmul.f32 %v17027_v44, %v11561_v14  ;;  %v4786_v1 = vld [vmem:[#allocation3 + $0x172] sm:$0xff]  ;;  %17029 = vst [vmem:[#allocation58_spill] sm:$0xff] %v14511_v28  ;;  %v4754_v54 = vadd.f32 %v4722_v34, %v4654_v59  ;;  %v6652_v51 = vadd.f32 %v17031_v8, %v6551_v46  ;;  %v14539_v22 = vmul.f32 %v17034_v45, %v11602_v60 }
 0x5bc   : > { %v4886_v16 = vld [vmem:[#allocation3 + $0x173] sm:$0xff]  ;;  %v4822_v4 = vmul.f32 %v16358_v48, %v4786_v1  ;;  %v6053_v40 = vadd.f32 %v14409_v10, %v5953_v35  ;;  %v5452_v1 = vadd.f32 %v5420_v55, %v5352_v7 }
 0x5bd   : > { %v17033_v28 = vld [vmem:[#allocation57_spill] sm:$0xff]  ;;  %17035 = vst [vmem:[#allocation51_spill] sm:$0xff] %v14539_v22  ;;  %v4922_v34 = vmul.f32 %v16363_v61, %v4886_v16  ;;  %v17037_v46 = vld [vmem:[#allocation78_spill] sm:$0xff]  ;;  %v14554_v22 = vmul.f32 %v11632_v50, %v14542_v31 }
 0x5be   : > { %v14535_v11 = vmul.f32 %v17033_v28, %v11599_v33  ;;  %v4986_v37 = vld [vmem:[#allocation3 + $0x174] sm:$0xff]  ;;  %v4854_v59 = vadd.f32 %v4822_v4, %v4754_v54  ;;  %v6752_v8 = vadd.f32 %v17037_v46, %v6652_v51  ;;  %v6154_v55 = vadd.f32 %v14418_v17, %v6053_v40  ;;  %v14568_v46 = vpop.permute.xlu1 %7147  ;;  %v14583_v40 = vpop.permute.xlu0 %7145 }
 0x5bf   : > { %v14544_v20 = vld [vmem:[#allocation3 + $0x1b1] sm:$0xff]  ;;  %17040 = vst [vmem:[#allocation90_spill] sm:$0xff] %v14554_v22  ;;  %v5552_v35 = vadd.f32 %v5520_v12, %v5452_v1  ;;  %v5022_v51 = vmul.f32 %v16270_v56, %v4986_v37  ;;  %17047 = vst [vmem:[#allocation65_spill] sm:$0xff] %v14583_v40 }
 0x5c0   : > { %17036 = vst [vmem:[#allocation52_spill] sm:$0xff] %v14544_v20  ;;  %v17038_v28 = vld [vmem:[#allocation49_spill] sm:$0xff]  ;;  %v14558_v10 = vmul.f32 %v11635_v3, %v14544_v20  ;;  %v4954_v4 = vadd.f32 %v4922_v34, %v4854_v59  ;;  %v6254_v37 = vadd.f32 %v14422_v25, %v6154_v55  ;;  %v17048_v34 = vld [vmem:[#allocation23_spill] sm:$0xff]  ;;  %v17050_v25 = vld [vmem:[#allocation48_spill] sm:$0xff] }
 0x5c1   : > { %v14550_v21 = vmul.f32 %v17038_v28, %v11605_v29  ;;  %v14561_v7 = vld [vmem:[#allocation3 + $0x1b2] sm:$0xff]  ;;  %v5652_v1 = vadd.f32 %v5620_v39, %v5552_v35  ;;  %v5523_v39 = vmul.f32 %v17050_v25, %v16239_v26  ;;  %v4617_v55 = vld [vmem:[#allocation3 + $0x168] sm:$0xff]  ;;  %v14617_v25 = vld [vmem:[%s14998_s9] ss:$0 sm:$0xff] }
 0x5c2   : > { %17041 = vst [vmem:[#allocation43_spill] sm:$0xff] %v14561_v7  ;;  %v14563_v16 = vld [vmem:[#allocation3 + $0x1b3] sm:$0xff]  ;;  %v14573_v20 = vmul.f32 %v11622_v24, %v14561_v7  ;;  %v5054_v59 = vadd.f32 %v5022_v51, %v4954_v4  ;;  %v5223_v7 = vmul.f32 %v16990_v5, %v11492_v2  ;;  %v17052_v4 = vld [vmem:[#allocation88_spill] sm:$0xff]  ;;  %v17053_v51 = vld [vmem:[#allocation27_spill] sm:$0xff] }
 0x5c3   : > { %17039 = vst [vmem:[#allocation30_spill] sm:$0xff] %v14550_v21  ;;  %17042 = vst [vmem:[#allocation33_spill] sm:$0xff] %v14563_v16  ;;  %v14565_v54 = vld [vmem:[#allocation3 + $0x1b4] sm:$0xff]  ;;  %v14577_v17 = vmul.f32 %v11638_v19, %v14563_v16  ;;  %v5323_v16 = vmul.f32 %v16991_v27, %v11497_v15  ;;  %v17049_v19 = vld [vmem:[#allocation68_spill] sm:$0xff]  ;;  %v5623_v5 = vmul.f32 %v17052_v4, %v11557_v41 }
 0x5c4   : > { %17043 = vst [vmem:[#allocation12_spill] sm:$0xff] %v14565_v54  ;;  %v17044_v21 = vld [vmem:[#allocation69_spill] sm:$0xff]  ;;  %v14581_v12 = vmul.f32 %v14366_v18, %v14565_v54  ;;  %v5423_v54 = vmul.f32 %v17049_v19, %v11508_v52  ;;  %v6354_v18 = vadd.f32 %v14427_v58, %v6254_v37  ;;  %v5723_v27 = vmul.f32 %v17053_v51, %v11573_v62 }
 0x5c5   : > { %v6852_v22 = vadd.f32 %v17044_v21, %v6752_v8  ;;  %17045 = vst [vmem:[#allocation50_spill] sm:$0xff] %v14577_v17  ;;  %v5123_v21 = vmul.f32 %v11487_v0, %v5087_v38  ;;  %v4685_v38 = vld [vmem:[#allocation3 + $0x169] sm:$0xff]  ;;  %v14604_v19 = vmul.f32 %v16995_v43, %v11561_v14 }
 0x5c6   : > { %17046 = vst [vmem:[#allocation76_spill] sm:$0xff] %v14581_v12  ;;  %v5752_v12 = vadd.f32 %v5720_v13, %v5652_v1  ;;  %v17051_v35 = vld [vmem:[#allocation73_spill] sm:$0xff] }
 0x5c7   : > { %v6952_v8 = vadd.f32 %v17048_v34, %v6852_v22  ;;  %v5155_v17 = vadd.f32 %v5123_v21, %v5054_v59  ;;  %v17054_v58 = vld [vmem:[#allocation81_spill] sm:$0xff]  ;;  %v17055_v59 = vld [vmem:[#allocation40_spill] sm:$0xff] }
 0x5c8   : > { %v6454_v13 = vadd.f32 %v17054_v58, %v6354_v18  ;;  %v5852_v37 = vadd.f32 %v14502_v32, %v5752_v12  ;;  %v14610_v21 = vmul.f32 %v17055_v59, %v11577_v47  ;;  %v4785_v34 = vld [vmem:[#allocation3 + $0x16a] sm:$0xff]  ;;  %v4653_v32 = vmul.f32 %v16355_v42, %v4617_v55  ;;  %v17059_v12 = vld [vmem:[#allocation74_spill] sm:$0xff]  ;;  %v17060_v59 = vld [vmem:[#allocation87_spill] sm:$0xff] }
 0x5c9   : > { %v7052_v22 = vadd.f32 %v17051_v35, %v6952_v8  ;;  %v5255_v1 = vadd.f32 %v5223_v7, %v5155_v17  ;;  %v14612_v8 = vpop.permute.xlu1 %7151  ;;  %v17057_v35 = vld [vmem:[#allocation35_spill] sm:$0xff]  ;;  %v4721_v7 = vmul.f32 %v16356_v30, %v4685_v38  ;;  %v14626_v17 = vpop.permute.xlu0 %7149  ;;  %v4885_v40 = vld [vmem:[#allocation3 + $0x16b] sm:$0xff]  ;;  %v17063_v30 = vld [vmem:[#allocation66_spill] sm:$0xff] }
 0x5ca   : > { %17056 = vst [vmem:[#allocation79_spill] sm:$0xff] %v14612_v8  ;;  %v14622_v18 = vmul.f32 %v17057_v35, %v11584_v36  ;;  %17058 = vst [vmem:[#allocation78_spill] sm:$0xff] %v14626_v17  ;;  %v6554_v4 = vadd.f32 %v17059_v12, %v6454_v13  ;;  %v5952_v51 = vadd.f32 %v14506_v53, %v5852_v37  ;;  %v17061_v35 = vld [vmem:[#allocation32_spill] sm:$0xff]  ;;  %v6689_v38 = vld [vmem:[#allocation3 + $0x1d1] sm:$0xff] }
 0x5cb   : > { %v7091_v43 = vadd.f32 %v14617_v25, %v7052_v22  ;;  %v5355_v58 = vadd.f32 %v5323_v16, %v5255_v1  ;;  %v14632_v8 = vmul.f32 %v17060_v59, %v11616_v9  ;;  %v6589_v22 = vld [vmem:[#allocation3 + $0x1d0] sm:$0xff]  ;;  %v14637_v42 = vmul.f32 %v17061_v35, %v11619_v63  ;;  %v5086_v16 = vld [vmem:[#allocation3 + $0x180] sm:$0xff] }
 0x5cc   : > { %v14641_v55 = vmul.f32 %v17063_v30, %v11599_v33  ;;  %v4753_v13 = vadd.f32 %v4721_v7, %v4653_v32  ;;  %v4821_v53 = vmul.f32 %v16358_v48, %v4785_v34  ;;  %v17064_v37 = vld [vmem:[#allocation89_spill] sm:$0xff]  ;;  %v6052_v12 = vadd.f32 %v14517_v49, %v5952_v51  ;;  %v17067_v7 = vld [vmem:[#allocation56_spill] sm:$0xff] }
 0x5cd   : > { %7181 = vrot.lane.b32.xlu0 %v7091_v43, %s8336_s12  ;;  %17062 = vst [vmem:[#allocation49_spill] sm:$0xff] %v14637_v42  ;;  %v6655_v1 = vadd.f32 %v17064_v37, %v6554_v4  ;;  %v5455_v59 = vadd.f32 %v5423_v54, %v5355_v58  ;;  %v17065_v43 = vld [vmem:[#allocation45_spill] sm:$0xff]  ;;  %v14655_v32 = vmul.f32 %v11632_v50, %v6589_v22  ;;  %v14663_v58 = vpop.permute.xlu1 %7155 }
 0x5ce   : > { %v14648_v17 = vmul.f32 %v17065_v43, %v11602_v60  ;;  %v6789_v35 = vld [vmem:[#allocation3 + $0x1d2] sm:$0xff]  ;;  %v4853_v48 = vadd.f32 %v4821_v53, %v4753_v13  ;;  %v4921_v34 = vmul.f32 %v16363_v61, %v4885_v40  ;;  %v6153_v49 = vadd.f32 %v14521_v57, %v6052_v12  ;;  %v14670_v53 = vpop.permute.xlu0 %7153  ;;  %v17068_v61 = vld [vmem:[#allocation63_spill] sm:$0xff] }
 0x5cf   : > { %v4985_v63 = vld [vmem:[#allocation3 + $0x16c] sm:$0xff]  ;;  %v6755_v4 = vadd.f32 %v17067_v7, %v6655_v1  ;;  %v5555_v54 = vadd.f32 %v5523_v39, %v5455_v59  ;;  %v14661_v51 = vmul.f32 %v11635_v3, %v6689_v38  ;;  %v14666_v37 = vmul.f32 %v11622_v24, %v6789_v35  ;;  %v17069_v38 = vld [vmem:[#allocation22_spill] sm:$0xff] }
 0x5d0   : > { %v17066_v42 = vld [vmem:[#allocation41_spill] sm:$0xff]  ;;  %v5021_v22 = vmul.f32 %v16270_v56, %v4985_v63  ;;  %v5122_v13 = vmul.f32 %v11487_v0, %v5086_v16  ;;  %v6253_v57 = vadd.f32 %v14531_v23, %v6153_v49  ;;  %v5222_v1 = vmul.f32 %v17069_v38, %v11492_v2  ;;  %v17070_v63 = vld [vmem:[#allocation19_spill] sm:$0xff]  ;;  %v17071_v56 = vld [vmem:[#allocation36_spill] sm:$0xff] }
 0x5d1   : > { %v14652_v30 = vmul.f32 %v17066_v42, %v11605_v29  ;;  %v4953_v42 = vadd.f32 %v4921_v34, %v4853_v48  ;;  %v6855_v40 = vadd.f32 %v17068_v61, %v6755_v4  ;;  %v5655_v39 = vadd.f32 %v5623_v5, %v5555_v54  ;;  %v17072_v23 = vld [vmem:[#allocation37_spill] sm:$0xff]  ;;  %v17073_v2 = vld [vmem:[#allocation55_spill] sm:$0xff]  ;;  %v14705_v4 = vpop.permute.xlu1 %7159 }
 0x5d2   : > { %v5322_v59 = vmul.f32 %v17027_v44, %v11497_v15  ;;  %v5422_v43 = vmul.f32 %v17028_v6, %v11508_v52  ;;  %v5522_v0 = vmul.f32 %v17070_v63, %v16239_v26  ;;  %v6353_v35 = vadd.f32 %v14535_v11, %v6253_v57  ;;  %v17074_v15 = vld [vmem:[#allocation57_spill] sm:$0xff]  ;;  %v17076_v6 = vld [vmem:[#allocation51_spill] sm:$0xff] }
 0x5d3   : > { %v5053_v12 = vadd.f32 %v5021_v22, %v4953_v42  ;;  %v6955_v16 = vadd.f32 %v17071_v56, %v6855_v40  ;;  %v5755_v48 = vadd.f32 %v5723_v27, %v5655_v39  ;;  %v5622_v5 = vmul.f32 %v17072_v23, %v11557_v41  ;;  %v17075_v44 = vld [vmem:[#allocation17_spill] sm:$0xff]  ;;  %v17079_v42 = vld [vmem:[#allocation86_spill] sm:$0xff]  ;;  %v17080_v22 = vld [vmem:[#allocation47_spill] sm:$0xff] }
 0x5d4   : > { %v14688_v7 = vmul.f32 %v17073_v2, %v11573_v62  ;;  %v14692_v52 = vmul.f32 %v17074_v15, %v11561_v14  ;;  %v14696_v26 = vmul.f32 %v17034_v45, %v11577_v47  ;;  %v6453_v27 = vadd.f32 %v17076_v6, %v6353_v35  ;;  %v17077_v47 = vld [vmem:[#allocation39_spill] sm:$0xff]  ;;  %v17078_v45 = vld [vmem:[#allocation24_spill] sm:$0xff]  ;;  %v17084_v56 = vld [vmem:[#allocation38_spill] sm:$0xff] }
 0x5d5   : > { %v5154_v34 = vadd.f32 %v5122_v13, %v5053_v12  ;;  %v7055_v11 = vadd.f32 %v17075_v44, %v6955_v16  ;;  %v5855_v41 = vadd.f32 %v14604_v19, %v5755_v48  ;;  %v14703_v62 = vmul.f32 %v17038_v28, %v11584_v36  ;;  %v14717_v13 = vpop.permute.xlu0 %7157  ;;  %v17081_v28 = vld [vmem:[#allocation30_spill] sm:$0xff]  ;;  %v8203_v39 = vld [vmem:[%s8504_s23 + $0x8] sm:$0xff] }
 0x5d6   : > { %v14709_v14 = vmul.f32 %v14542_v31, %v11616_v9  ;;  %v7225_v54 = vsel %vm4488_vm4, %v17078_v45, %v17077_v47  ;;  %v7226_v19 = vsel %vm4488_vm4, %v17080_v22, %v17079_v42  ;;  %v6553_v61 = vadd.f32 %v17081_v28, %v6453_v27  ;;  %v8202_v31 = vld [vmem:[%s8504_s23] sm:$0xff]  ;;  %v17083_v12 = vld [vmem:[#allocation42_spill] sm:$0xff]  ;;  %v17085_v16 = vld [vmem:[#allocation16_spill] sm:$0xff] }
 0x5d7   : > { %v5254_v49 = vadd.f32 %v5222_v1, %v5154_v34  ;;  %v7094_v36 = vadd.f32 %v14617_v25, %v7055_v11  ;;  %v5955_v9 = vadd.f32 %v14610_v21, %v5855_v41  ;;  %v7257_v40 = vadd.f32 %v8202_v31, %v7225_v54  ;;  %v17082_v1 = vld [vmem:[#allocation91_spill] sm:$0xff]  ;;  %v17086_v48 = vld [vmem:[#allocation90_spill] sm:$0xff]  ;;  %v8204_v21 = vld [vmem:[%s8504_s23 + $0x10] sm:$0xff] }
 0x5d8   : > { %v7258_v38 = vadd.f32 %v8203_v39, %v7226_v19  ;;  %v7227_v63 = vsel %vm4488_vm4, %v17083_v12, %v17082_v1  ;;  %v7228_v35 = vsel %vm4488_vm4, %v17085_v16, %v17084_v56  ;;  %v6654_v23 = vadd.f32 %v17086_v48, %v6553_v61  ;;  %v8205_v2 = vld [vmem:[%s8504_s23 + $0x18] sm:$0xff]  ;;  %v17088_v11 = vld [vmem:[#allocation83_spill] sm:$0xff]  ;;  %v17092_v45 = vld [vmem:[#allocation85_spill] sm:$0xff]  ;;  %v7164_v61 = vpop.permute.xlu1 %7163 }
 0x5d9   : > { %v5354_v57 = vadd.f32 %v5322_v59, %v5254_v49  ;;  %7187 = vrot.lane.b32.xlu1 %v7094_v36, %s8336_s12  ;;  %v6055_v34 = vadd.f32 %v14622_v18, %v5955_v9  ;;  %7289 = vst.msk [vmem:[%s14735_s30] sm:$0xff] %vm419_vm0, %v7257_v40  ;;  %v7259_v59 = vadd.f32 %v8204_v21, %v7227_v63  ;;  %v17087_v18 = vld [vmem:[#allocation92_spill] sm:$0xff]  ;;  %v17089_v27 = vld [vmem:[#allocation54_spill] sm:$0xff]  ;;  %v8207_v36 = vld [vmem:[%s8504_s23 + $0x20] sm:$0xff]  ;;  %v7162_v1 = vpop.permute.xlu0 %7161 }
 0x5da   : > { %v7260_v15 = vadd.f32 %v8205_v2, %v7228_v35  ;;  %7290 = vst.msk [vmem:[%s14735_s30 + $0x8] sm:$0xff] %vm419_vm0, %v7258_v38  ;;  %v7230_v6 = vsel %vm4488_vm4, %v17088_v11, %v17087_v18  ;;  %v17090_v41 = vld [vmem:[#allocation14_spill] sm:$0xff]  ;;  %v6754_v42 = vadd.f32 %v14558_v10, %v6654_v23  ;;  %v17095_v39 = vld [vmem:[#allocation15_spill] sm:$0xff]  ;;  %v17096_v63 = vld [vmem:[#allocation49_spill] sm:$0xff] }
 0x5db   : > { %v5454_v44 = vadd.f32 %v5422_v43, %v5354_v57  ;;  %v7229_v49 = vsel %vm4488_vm4, %v17090_v41, %v17089_v27  ;;  %v17091_v47 = vld [vmem:[#allocation58_spill] sm:$0xff]  ;;  %v6156_v22 = vadd.f32 %v14632_v8, %v6055_v34  ;;  %7291 = vst.msk [vmem:[%s14735_s30 + $0x10] sm:$0xff] %vm419_vm0, %v7259_v59  ;;  %v8206_v43 = vld [vmem:[%s8504_s23 + $0x28] sm:$0xff]  ;;  %v7234_v38 = vsel %vm4488_vm4, %v17095_v39, %v14568_v46  ;;  %v17097_v46 = vld [vmem:[#allocation65_spill] sm:$0xff] }
 0x5dc   : > { %v7232_v54 = vsel %vm4488_vm4, %v17092_v45, %v17091_v47  ;;  %7292 = vst.msk [vmem:[%s14735_s30 + $0x18] sm:$0xff] %vm419_vm0, %v7260_v15  ;;  %v7262_v19 = vadd.f32 %v8206_v43, %v7230_v6  ;;  %v7261_v28 = vadd.f32 %v8207_v36, %v7229_v49  ;;  %v8208_v31 = vld [vmem:[%s8504_s23 + $0x38] sm:$0xff]  ;;  %v17094_v57 = vld [vmem:[#allocation64_spill] sm:$0xff]  ;;  %v6854_v12 = vadd.f32 %v14573_v20, %v6754_v42  ;;  %v17099_v21 = vld [vmem:[#allocation79_spill] sm:$0xff] }
 0x5dd   : > { %v5554_v9 = vadd.f32 %v5522_v0, %v5454_v44  ;;  %v7264_v40 = vadd.f32 %v8208_v31, %v7232_v54  ;;  %v17093_v10 = vld [vmem:[#allocation34_spill] sm:$0xff]  ;;  %v6256_v56 = vadd.f32 %v17096_v63, %v6156_v22  ;;  %v8209_v0 = vld [vmem:[%s8504_s23 + $0x30] sm:$0xff]  ;;  %v8210_v35 = vld [vmem:[%s8504_s23 + $0x48] sm:$0xff]  ;;  %v7166_v63 = vpop.permute.xlu0 %7165 }
 0x5de   : > { %v7231_v8 = vsel %vm4488_vm4, %v17094_v57, %v17093_v10  ;;  %7294 = vst.msk [vmem:[%s14735_s30 + $0x28] sm:$0xff] %vm419_vm0, %v7262_v19  ;;  %7293 = vst.msk [vmem:[%s14735_s30 + $0x20] sm:$0xff] %vm419_vm0, %v7261_v28  ;;  %v7266_v48 = vadd.f32 %v8210_v35, %v7234_v38  ;;  %v17098_v34 = vld [vmem:[#allocation44_spill] sm:$0xff]  ;;  %v17101_v15 = vld [vmem:[#allocation78_spill] sm:$0xff]  ;;  %v7168_v10 = vpop.permute.xlu1 %7167 }
 0x5df   : > { %v7263_v16 = vadd.f32 %v8209_v0, %v7231_v8  ;;  %v5654_v23 = vadd.f32 %v5622_v5, %v5554_v9  ;;  %7296 = vst.msk [vmem:[%s14735_s30 + $0x38] sm:$0xff] %vm419_vm0, %v7264_v40  ;;  %v7233_v20 = vsel %vm4488_vm4, %v17098_v34, %v17097_v46  ;;  %v17100_v59 = vld [vmem:[#allocation20_spill] sm:$0xff]  ;;  %v17102_v44 = vld [vmem:[#allocation31_spill] sm:$0xff]  ;;  %v17103_v11 = vld [vmem:[#allocation50_spill] sm:$0xff]  ;;  %v6356_v5 = vadd.f32 %v14641_v55, %v6256_v56 }
 0x5e0   : > { %v7236_v2 = vsel %vm4488_vm4, %v17100_v59, %v17099_v21  ;;  %v7235_v18 = vsel %vm4488_vm4, %v17102_v44, %v17101_v15  ;;  %v6954_v6 = vadd.f32 %v17103_v11, %v6854_v12  ;;  %7298 = vst.msk [vmem:[%s14735_s30 + $0x48] sm:$0xff] %vm419_vm0, %v7266_v48  ;;  %v8211_v27 = vld [vmem:[%s8504_s23 + $0x40] sm:$0xff]  ;;  %v8212_v49 = vld [vmem:[%s8504_s23 + $0x58] sm:$0xff]  ;;  %v8213_v54 = vld [vmem:[%s8504_s23 + $0x50] sm:$0xff] }
 0x5e1   : > { %7295 = vst.msk [vmem:[%s14735_s30 + $0x30] sm:$0xff] %vm419_vm0, %v7263_v16  ;;  %v7265_v41 = vadd.f32 %v8211_v27, %v7233_v20  ;;  %v7268_v47 = vadd.f32 %v8212_v49, %v7236_v2  ;;  %v5754_v45 = vadd.f32 %v14688_v7, %v5654_v23  ;;  %v7267_v42 = vadd.f32 %v8213_v54, %v7235_v18  ;;  %v17104_v22 = vld [vmem:[#allocation59_spill] sm:$0xff]  ;;  %v17105_v55 = vld [vmem:[#allocation62_spill] sm:$0xff]  ;;  %v17106_v36 = vld [vmem:[#allocation76_spill] sm:$0xff] }
 0x5e2   : > { %v7238_v43 = vsel %vm4488_vm4, %v17104_v22, %v14663_v58  ;;  %v7237_v19 = vsel %vm4488_vm4, %v17105_v55, %v14670_v53  ;;  %v7054_v28 = vadd.f32 %v17106_v36, %v6954_v6  ;;  %v6456_v9 = vadd.f32 %v14648_v17, %v6356_v5  ;;  %v8214_v7 = vld [vmem:[%s8504_s23 + $0x68] sm:$0xff]  ;;  %v8215_v40 = vld [vmem:[%s8504_s23 + $0x60] sm:$0xff]  ;;  %v8217_v16 = vld [vmem:[%s8504_s23 + $0x70] sm:$0xff]  ;;  %v7172_v54 = vpop.permute.xlu1 %7171 }
 0x5e3   : > { %7297 = vst.msk [vmem:[%s14735_s30 + $0x40] sm:$0xff] %vm419_vm0, %v7265_v41  ;;  %7300 = vst.msk [vmem:[%s14735_s30 + $0x58] sm:$0xff] %vm419_vm0, %v7268_v47  ;;  %v7270_v31 = vadd.f32 %v8214_v7, %v7238_v43  ;;  %v7269_v58 = vadd.f32 %v8215_v40, %v7237_v19  ;;  %v5854_v57 = vadd.f32 %v14692_v52, %v5754_v45  ;;  %v17107_v17 = vld [vmem:[#allocation71_spill] sm:$0xff]  ;;  %v17109_v38 = vld [vmem:[#allocation80_spill] sm:$0xff] }
 0x5e4   : > { %7299 = vst.msk [vmem:[%s14735_s30 + $0x50] sm:$0xff] %vm419_vm0, %v7267_v42  ;;  %v7240_v53 = vsel %vm4488_vm4, %v17107_v17, %v14705_v4  ;;  %v17108_v8 = vld [vmem:[#allocation75_spill] sm:$0xff]  ;;  %v7242_v12 = vsel %vm4488_vm4, %v17109_v38, %v7164_v61  ;;  %v7093_v56 = vadd.f32 %v14617_v25, %v7054_v28  ;;  %v6556_v52 = vadd.f32 %v14652_v30, %v6456_v9  ;;  %v8216_v4 = vld [vmem:[%s8504_s23 + $0x78] sm:$0xff]  ;;  %v8218_v48 = vld [vmem:[%s8504_s23 + $0x88] sm:$0xff] }
 0x5e5   : > { %v7239_v39 = vsel %vm4488_vm4, %v17108_v8, %v14717_v13  ;;  %7302 = vst.msk [vmem:[%s14735_s30 + $0x68] sm:$0xff] %vm419_vm0, %v7270_v31  ;;  %7301 = vst.msk [vmem:[%s14735_s30 + $0x60] sm:$0xff] %vm419_vm0, %v7269_v58  ;;  %v7272_v0 = vadd.f32 %v8216_v4, %v7240_v53  ;;  %v6889_v35 = vld [vmem:[#allocation3 + $0x1d3] sm:$0xff]  ;;  %v5954_v61 = vadd.f32 %v14696_v26, %v5854_v57  ;;  %v8219_v26 = vld [vmem:[%s8504_s23 + $0x80] sm:$0xff]  ;;  %v7170_v4 = vpop.permute.xlu0 %7169 }
 0x5e6   : > { %v7271_v13 = vadd.f32 %v8217_v16, %v7239_v39  ;;  %v7274_v23 = vadd.f32 %v8218_v48, %v7242_v12  ;;  %v17110_v46 = vld [vmem:[#allocation46_spill] sm:$0xff]  ;;  %7185 = vrot.lane.b32.xlu0 %v7093_v56, %s8336_s12  ;;  %v6657_v21 = vadd.f32 %v14655_v32, %v6556_v52  ;;  %v17113_v6 = vld [vmem:[#allocation67_spill] sm:$0xff]  ;;  %v17114_v5 = vld [vmem:[#allocation52_spill] sm:$0xff] }
 0x5e7   : > { %v7241_v30 = vsel %vm4488_vm4, %v17110_v46, %v7162_v1  ;;  %v17111_v34 = vld [vmem:[#allocation26_spill] sm:$0xff]  ;;  %7304 = vst.msk [vmem:[%s14735_s30 + $0x78] sm:$0xff] %vm419_vm0, %v7272_v0  ;;  %v6054_v11 = vadd.f32 %v14703_v62, %v5954_v61  ;;  %v6223_v32 = vmul.f32 %v17114_v5, %v17113_v6  ;;  %v8221_v27 = vld [vmem:[%s8504_s23 + $0x90] sm:$0xff]  ;;  %v17116_v42 = vld [vmem:[#allocation43_spill] sm:$0xff] }
 0x5e8   : > { %v7244_v20 = vsel %vm4488_vm4, %v17111_v34, %v7168_v10  ;;  %7303 = vst.msk [vmem:[%s14735_s30 + $0x70] sm:$0xff] %vm419_vm0, %v7271_v13  ;;  %v7273_v59 = vadd.f32 %v8219_v26, %v7241_v30  ;;  %v8220_v2 = vld [vmem:[%s8504_s23 + $0x98] sm:$0xff]  ;;  %7306 = vst.msk [vmem:[%s14735_s30 + $0x88] sm:$0xff] %vm419_vm0, %v7274_v23  ;;  %v6757_v49 = vadd.f32 %v14661_v51, %v6657_v21  ;;  %v17117_v43 = vld [vmem:[#allocation28_spill] sm:$0xff] }
 0x5e9   : > { %v7276_v15 = vadd.f32 %v8220_v2, %v7244_v20  ;;  %v17112_v44 = vld [vmem:[#allocation82_spill] sm:$0xff]  ;;  %v6155_v62 = vadd.f32 %v14709_v14, %v6054_v11  ;;  %v6323_v22 = vmul.f32 %v17116_v42, %v11599_v33  ;;  %v7246_v55 = vsel %vm4488_vm4, %v17117_v43, %v7172_v54  ;;  %v17118_v19 = vld [vmem:[#allocation60_spill] sm:$0xff]  ;;  %v17119_v31 = vld [vmem:[#allocation33_spill] sm:$0xff] }
 0x5ea   : > { %v7243_v1 = vsel %vm4488_vm4, %v17112_v44, %v7166_v63  ;;  %v6989_v18 = vld [vmem:[#allocation3 + $0x1d4] sm:$0xff]  ;;  %7305 = vst.msk [vmem:[%s14735_s30 + $0x80] sm:$0xff] %vm419_vm0, %v7273_v59  ;;  %v6857_v51 = vadd.f32 %v14666_v37, %v6757_v49  ;;  %v8222_v28 = vld [vmem:[%s8504_s23 + $0xa8] sm:$0xff]  ;;  %v6423_v40 = vmul.f32 %v17119_v31, %v11602_v60  ;;  %v8227_v49 = vld [vmem:[%s8504_s23 + $0xc0] sm:$0xff] }
 0x5eb   : > { %v7275_v41 = vadd.f32 %v8221_v27, %v7243_v1  ;;  %v17115_v47 = vld [vmem:[#allocation70_spill] sm:$0xff]  ;;  %7308 = vst.msk [vmem:[%s14735_s30 + $0x98] sm:$0xff] %vm419_vm0, %v7276_v15  ;;  %v7025_v36 = vmul.f32 %v17118_v19, %v6989_v18  ;;  %v7278_v9 = vadd.f32 %v8222_v28, %v7246_v55  ;;  %v6255_v7 = vadd.f32 %v6223_v32, %v6155_v62  ;;  %v6588_v14 = vld [vmem:[#allocation3 + $0x1c8] sm:$0xff]  ;;  %v17122_v34 = vld [vmem:[#allocation29_spill] sm:$0xff] }
 0x5ec   : > { %v6925_v45 = vmul.f32 %v17115_v47, %v6889_v35  ;;  %v17120_v10 = vld [vmem:[#allocation12_spill] sm:$0xff]  ;;  %v6624_v8 = vmul.f32 %v11632_v50, %v6588_v14  ;;  %v8223_v35 = vld [vmem:[%s8504_s23 + $0xa0] sm:$0xff]  ;;  %v8224_v21 = vld [vmem:[%s8504_s23 + $0xb8] sm:$0xff] }
 0x5ed   : > { %7307 = vst.msk [vmem:[%s14735_s30 + $0x90] sm:$0xff] %vm419_vm0, %v7275_v41  ;;  %7310 = vst.msk [vmem:[%s14735_s30 + $0xa8] sm:$0xff] %vm419_vm0, %v7278_v9  ;;  %v6355_v33 = vadd.f32 %v6323_v22, %v6255_v7  ;;  %v6523_v57 = vmul.f32 %v17120_v10, %v11605_v29  ;;  %v6688_v53 = vld [vmem:[#allocation3 + $0x1c9] sm:$0xff]  ;;  %v17124_v18 = vld [vmem:[#allocation11_spill] sm:$0xff] }
 0x5ee   : > { %v6957_v58 = vadd.f32 %v6925_v45, %v6857_v51  ;;  %v6788_v38 = vld [vmem:[#allocation3 + $0x1ca] sm:$0xff]  ;;  %v6724_v60 = vmul.f32 %v11635_v3, %v6688_v53  ;;  %v17126_v54 = vld [vmem:[#allocation18_spill] sm:$0xff]  ;;  %v8231_v10 = vld [vmem:[%s8504_s23 + $0xe0] sm:$0xff] }
 0x5ef   : > { %v6455_v37 = vadd.f32 %v6423_v40, %v6355_v33  ;;  %v6888_v63 = vld [vmem:[#allocation3 + $0x1cb] sm:$0xff]  ;;  %v6824_v52 = vmul.f32 %v11622_v24, %v6788_v38  ;;  %v8228_v42 = vld [vmem:[%s8504_s23 + $0xd8] sm:$0xff] }
 0x5f0   : > { %v7057_v17 = vadd.f32 %v7025_v36, %v6957_v58  ;;  %v6988_v29 = vld [vmem:[#allocation3 + $0x1cc] sm:$0xff]  ;;  %v6924_v50 = vmul.f32 %v17115_v47, %v6888_v63 }
 0x5f1   : > { %v6555_v12 = vadd.f32 %v6523_v57, %v6455_v37  ;;  %v17121_v16 = vld [vmem:[#allocation84_spill] sm:$0xff]  ;;  %v7024_v48 = vmul.f32 %v17118_v19, %v6988_v29  ;;  %v7176_v30 = vpop.permute.xlu1 %7175  ;;  %v17123_v2 = vld [vmem:[#allocation77_spill] sm:$0xff] }
 0x5f2   : > { %v7096_v39 = vadd.f32 %v14617_v25, %v7057_v17  ;;  %v7245_v13 = vsel %vm4488_vm4, %v17121_v16, %v7170_v4  ;;  %v7248_v20 = vsel %vm4488_vm4, %v17122_v34, %v7176_v30  ;;  %v8225_v44 = vld [vmem:[%s8504_s23 + $0xb0] sm:$0xff]  ;;  %v8226_v6 = vld [vmem:[%s8504_s23 + $0xc8] sm:$0xff] }
 0x5f3   : > { %v6656_v56 = vadd.f32 %v6624_v8, %v6555_v12  ;;  %v7277_v61 = vadd.f32 %v8223_v35, %v7245_v13  ;;  %v7280_v26 = vadd.f32 %v8224_v21, %v7248_v20  ;;  %v17125_v27 = vld [vmem:[#allocation13_spill] sm:$0xff]  ;;  %v8230_v31 = vld [vmem:[%s8504_s23 + $0xe8] sm:$0xff]  ;;  %v8232_v8 = vld [vmem:[%s8504_s23 + $0xf8] sm:$0xff] }
 0x5f4   : > { %7191 = vrot.lane.b32.xlu1 %v7096_v39, %s8336_s12  ;;  %v17127_v55 = vld [vmem:[#allocation21_spill] sm:$0xff]  ;;  %v17130_v53 = vld [vmem:[#allocation72_spill] sm:$0xff] }
 0x5f5   : > { %v6756_v0 = vadd.f32 %v6724_v60, %v6656_v56  ;;  %7309 = vst.msk [vmem:[%s14735_s30 + $0xa0] sm:$0xff] %vm419_vm0, %v7277_v61  ;;  %7312 = vst.msk [vmem:[%s14735_s30 + $0xb8] sm:$0xff] %vm419_vm0, %v7280_v26  ;;  %v8229_v19 = vld [vmem:[%s8504_s23 + $0xd0] sm:$0xff] }
 0x5f6   : > { %v17128_v9 = vld [vmem:[#allocation25_spill] sm:$0xff] }
 0x5f7   : > { %v6856_v3 = vadd.f32 %v6824_v52, %v6756_v0  ;;  %v17129_v14 = vld [vmem:[#allocation53_spill] sm:$0xff] }
 0x5f8   : > { %v17131_v12 = vld [vmem:[#allocation61_spill] sm:$0xff] }
 0x5f9   : > { %v6956_v24 = vadd.f32 %v6924_v50, %v6856_v3  ;;  %v8233_v63 = vld [vmem:[%s8504_s23 + $0xf0] sm:$0xff] }
 0x5fb   : > { %v7056_v23 = vadd.f32 %v7024_v48, %v6956_v24 }
 0x5fd   : > { %v7095_v46 = vadd.f32 %v14617_v25, %v7056_v23 }
 0x5ff   : > { %7189 = vrot.lane.b32.xlu0 %v7095_v46, %s8336_s12 }
 0x601   : > { %v7174_v59 = vpop.permute.xlu0 %7173 }
 0x602   : > { %v7247_v15 = vsel %vm4488_vm4, %v17123_v2, %v7174_v59 }
 0x603   : > { %v7279_v25 = vadd.f32 %v8225_v44, %v7247_v15 }
 0x605   : > { %7311 = vst.msk [vmem:[%s14735_s30 + $0xb0] sm:$0xff] %vm419_vm0, %v7279_v25 }
 0x60d   : > { %v7180_v1 = vpop.permute.xlu1 %7179 }
 0x60e   : > { %v7250_v11 = vsel %vm4488_vm4, %v17124_v18, %v7180_v1 }
 0x60f   : > { %v7282_v5 = vadd.f32 %v8226_v6, %v7250_v11 }
 0x611   : > { %7314 = vst.msk [vmem:[%s14735_s30 + $0xc8] sm:$0xff] %vm419_vm0, %v7282_v5 }
 0x61e   : > { %v7178_v32 = vpop.permute.xlu0 %7177 }
 0x61f   : > { %v7249_v41 = vsel %vm4488_vm4, %v17125_v27, %v7178_v32 }
 0x620   : > { %v7281_v47 = vadd.f32 %v8227_v49, %v7249_v41 }
 0x622   : > { %7313 = vst.msk [vmem:[%s14735_s30 + $0xc0] sm:$0xff] %vm419_vm0, %v7281_v47 }
 0x62c   : > { %v7184_v45 = vpop.permute.xlu1 %7183 }
 0x62d   : > { %v7252_v62 = vsel %vm4488_vm4, %v17126_v54, %v7184_v45 }
 0x62e   : > { %v7284_v22 = vadd.f32 %v8228_v42, %v7252_v62 }
 0x630   : > { %7316 = vst.msk [vmem:[%s14735_s30 + $0xd8] sm:$0xff] %vm419_vm0, %v7284_v22 }
 0x63f   : > { %v7182_v43 = vpop.permute.xlu0 %7181 }
 0x640   : > { %v7251_v51 = vsel %vm4488_vm4, %v17127_v55, %v7182_v43 }
 0x641   : > { %v7283_v36 = vadd.f32 %v8229_v19, %v7251_v51 }
 0x643   : > { %7315 = vst.msk [vmem:[%s14735_s30 + $0xd0] sm:$0xff] %vm419_vm0, %v7283_v36 }
 0x64b   : > { %v7188_v28 = vpop.permute.xlu1 %7187 }
 0x64c   : > { %v7254_v7 = vsel %vm4488_vm4, %v17128_v9, %v7188_v28 }
 0x64d   : > { %v7286_v40 = vadd.f32 %v8230_v31, %v7254_v7 }
 0x64f   : > { %7318 = vst.msk [vmem:[%s14735_s30 + $0xe8] sm:$0xff] %vm419_vm0, %v7286_v40 }
 0x658   : > { %v7186_v58 = vpop.permute.xlu0 %7185 }
 0x659   : > { %v7253_v33 = vsel %vm4488_vm4, %v17129_v14, %v7186_v58 }
 0x65a   : > { %v7285_v57 = vadd.f32 %v8231_v10, %v7253_v33 }
 0x65c   : > { %7317 = vst.msk [vmem:[%s14735_s30 + $0xe0] sm:$0xff] %vm419_vm0, %v7285_v57 }
 0x666   : > { %v7192_v17 = vpop.permute.xlu1 %7191 }
 0x667   : > { %v7256_v37 = vsel %vm4488_vm4, %v17130_v53, %v7192_v17 }
 0x668   : > { %v7288_v39 = vadd.f32 %v8232_v8, %v7256_v37 }
 0x66a   : > { %7320 = vst.msk [vmem:[%s14735_s30 + $0xf8] sm:$0xff] %vm419_vm0, %v7288_v39 }
 0x671   : > { %v7190_v38 = vpop.permute.xlu0 %7189 }
 0x672   : > { %v7255_v60 = vsel %vm4488_vm4, %v17131_v12, %v7190_v38 }
 0x673   : > { %v7287_v56 = vadd.f32 %v8233_v63, %v7255_v60 }
 0x675   : > { %7319 = vst.msk [vmem:[%s14735_s30 + $0xf0] sm:$0xff] %vm419_vm0, %v7287_v56 }
 0x676   : > { %8277 = shalt.err (!%p8274_p2)
}
 0x677   : > { %s8278_s23 = scalar_lea.hbm %s14939_s20, 4096  ;;  %s8282_s22 = scalar_lea.hbm %s14999_s10, 8192 }
 0x678   : > { %p8279_p4 = scmp.ne.s32.totalorder %s14939_s20, %s8278_s23  ;;  %p8283_p9 = scmp.lt.u32.totalorder %s14939_s20, %s14999_s10 }
 0x679   : > { %p8284_p1 = scmp.lt.u32.totalorder %s8282_s22, %s8278_s23  ;;  %p8286_p6 = scmp.lt.u32.totalorder %s8278_s23, %s14939_s20 }
 0x67a   : > { %p8280_p5 = pnand %p8279_p4, %p17132_p11 }
 0x67b   : > { %p8285_p3 = por %p8284_p1, %p8283_p9 }
 0x67c   : > { %p8281_p7 = pneg %p8280_p5 }
 0x67d   : > { %p8287_p12 = por %p8286_p6, %p8285_p3 }
 0x67f   : > { %p8288_p13 = pnand %p8287_p12, %p8281_p7 }
 0x681   : > { %8291 = shalt.err (!%p8288_p13)
}
 0x682   : > { %s8338_s21 = smov 128  }
 0x683   : > { %7884 = dma.vmem_to_hbm [thread:$0]  (%p17132_p11), %s14942_s29, 4096, %s14939_s20, %s7322_s17, %s8338_s21, %s8338_s21, %s8336_s12  }
 0x684 PF: > { %s7350_s27 = sand.u32 1, %s8318_s13   ;;  %p17133_p8 = scmp.ne.s32.totalorder %s15693_s26, 0 }
 0x685   : > { %p17134_p10 = scmp.ge.s32.totalorder %s8330_s16, 2  ;;  %s7351_s23 = scalar_lea.sflag [#allocation6], %s7350_s27 }
 0x687   : > { %p7891_p0 = pnand %p17134_p10, %p17133_p8 }
 0x689   : > { %8313 = dma.done.wait (!%p7891_p0), %s7351_s23, 4096  }
 0x68a   : > { %8315 = vsyncadd (!%p7891_p0), %s7351_s23, 4294963200  ;;  %s17135_s25 = sld [smem:[#allocation10_spill]]  ;;  %p23_p2 = scmp.ge.s32.totalorder %s8419_s19, 4  }
 0x68b   : > { %s17136_s13 = smov %s8322_s14  ;;  %s17137_s14 = smov %s8326_s15 }
 0x68c   : > { %s17139_s16 = smov %s8419_s19  ;;  %25 = sbr.rel (!%p23_p2) target bundleno = 5 (0x5), region = 113 }
 0x690   : > { %s17138_s15 = smov %s17135_s25 }
 0x693   :  { %7356 = vsyncpa [#allocation5], 1 }
 0x694   :  { %7358 = vsyncpa [#allocation5 + $0x1], 1 }
 0x695   :  { %7359 = vsyncpa [#allocation6], 1 }
 0x696   :  { %7361 = vsyncpa [#allocation6 + $0x1], 1 }

</bundles_post_ra>
